<compile_context>
chip_gen: v7x
topology: tpu7x:2x2x1
jax: 0.10.0
libtpu: 0.0.40
codegen_flags: <defaults>
</compile_context>

<pallas_src>
import jax
import jax.numpy as jnp
from jax.experimental import pallas as pl
from jax.experimental.pallas import tpu as pltpu

EPS = 1e-5
LANE = 128


def _round_up(x, m):
    return ((x + m - 1) // m) * m


# --------------------------------------------------------------------------
# Conv kernel: 3x3x3 "SAME" conv (no bias) + per-channel sum / sum^2 stats.
# Optionally fuses BN+ReLU (scale/bias) onto the *input* (used for conv2).
# --------------------------------------------------------------------------
def _make_conv_kernel(fused):
    def kernel(*refs):
        if fused:
            (x_ref, w_ref, scale_ref, bias_ref,
             y_ref, sum_ref, ssq_ref, pad_ref) = refs
        else:
            x_ref, w_ref, y_ref, sum_ref, ssq_ref, pad_ref = refs
            scale_ref = bias_ref = None

        d = pl.program_id(1)
        D = x_ref.shape[1]
        H = x_ref.shape[2]
        W = x_ref.shape[3]
        Cin = x_ref.shape[4]
        Cout = y_ref.shape[3]

        # per-sample stats accumulators: init on the first depth slab
        @pl.when(d == 0)
        def _init_stats():
            sum_ref[...] = jnp.zeros_like(sum_ref)
            ssq_ref[...] = jnp.zeros_like(ssq_ref)

        # zero-bordered H/W halo scratch; interior is overwritten per tap-plane
        pad_ref[...] = jnp.zeros_like(pad_ref)

        if fused:
            scl = scale_ref[...]   # [1, Cin]
            bia = bias_ref[...]    # [1, Cin]

        acc = jnp.zeros((H * W, Cout), jnp.float32)
        for kd in range(3):
            sd = d + kd - 1
            inb = jnp.logical_and(sd >= 0, sd < D)
            sd_c = jnp.clip(sd, 0, D - 1)
            plane = x_ref[0, pl.ds(sd_c, 1)][0]            # [H, W, Cin]
            if fused:
                # BN1 + ReLU applied to conv2's input tile (free VPU work)
                plane = jnp.maximum(plane * scl + bia, 0.0)
            # zero out-of-range depth halo (zero padding happens *after* BN+ReLU,
            # matching SAME padding of the post-activation tensor)
            plane = plane * inb.astype(plane.dtype)
            pad_ref[1:H + 1, 1:W + 1, :] = plane
            for kh in range(3):
                for kw in range(3):
                    xs = pad_ref[kh:kh + H, kw:kw + W, :]   # [H, W, Cin]
                    acc = acc + jnp.dot(xs.reshape(H * W, Cin),
                                        w_ref[kd, kh, kw],
                                        preferred_element_type=jnp.float32)

        # single lane-dense slab store + one reduction for the batch stats
        y_ref[0, 0] = acc
        sum_ref[...] += jnp.sum(acc, axis=0).reshape(1, 1, Cout)
        ssq_ref[...] += jnp.sum(acc * acc, axis=0).reshape(1, 1, Cout)

    return kernel


def conv3d_stats_pallas(x, w, scale=None, bias=None):
    """x: [N, D, H, W, Cin] f32 (unpadded), w: [3,3,3,Cin,Cout].
    If scale/bias ([1, Cin]) are given, relu(x*scale+bias) is applied to the
    input inside the kernel (fused BN+ReLU).
    Returns (y [N, D, H*W, Cout], sums [N,1,Cout], ssq [N,1,Cout])."""
    N, D, H, W, Cin = x.shape
    Cout = w.shape[-1]
    fused = scale is not None

    in_specs = [
        pl.BlockSpec((1, D, H, W, Cin), lambda n, d: (n, 0, 0, 0, 0)),
        pl.BlockSpec((3, 3, 3, Cin, Cout), lambda n, d: (0, 0, 0, 0, 0)),
    ]
    args = [x, w]
    if fused:
        in_specs += [pl.BlockSpec((1, Cin), lambda n, d: (0, 0)),
                     pl.BlockSpec((1, Cin), lambda n, d: (0, 0))]
        args += [scale, bias]

    flops = 2 * N * D * H * W * 27 * Cin * Cout
    bytes_accessed = 4 * (x.size + w.size + N * D * H * W * Cout)

    return pl.pallas_call(
        _make_conv_kernel(fused),
        grid=(N, D),
        in_specs=in_specs,
        out_specs=(
            pl.BlockSpec((1, 1, H * W, Cout), lambda n, d: (n, d, 0, 0)),
            pl.BlockSpec((1, 1, Cout), lambda n, d: (n, 0, 0)),
            pl.BlockSpec((1, 1, Cout), lambda n, d: (n, 0, 0)),
        ),
        out_shape=(
            jax.ShapeDtypeStruct((N, D, H * W, Cout), jnp.float32),
            jax.ShapeDtypeStruct((N, 1, Cout), jnp.float32),
            jax.ShapeDtypeStruct((N, 1, Cout), jnp.float32),
        ),
        scratch_shapes=[pltpu.VMEM((H + 2, W + 2, Cin), jnp.float32)],
        compiler_params=pltpu.CompilerParams(
            dimension_semantics=("parallel", "arbitrary"),
            vmem_limit_bytes=32 * 1024 * 1024),
        cost_estimate=pl.CostEstimate(
            flops=flops, transcendentals=0, bytes_accessed=bytes_accessed),
    )(*args)


# --------------------------------------------------------------------------
# BN-apply + ReLU + 2x2x2 max-pool, indexing the raw conv2 output directly.
# The 2x2x2 window is exposed as size-2 axes by a free row-major reshape.
# --------------------------------------------------------------------------
def _bn_relu_pool_kernel(y_ref, scale_ref, bias_ref, o_ref):
    # y_ref: [1, 1, 2, Ho, 2, Wo, 2, C]; scale/bias: [1, C]; o_ref: [1,1,Ho,Wo,C]
    z = jnp.maximum(y_ref[...] * scale_ref[...] + bias_ref[...], 0.0)
    za = jnp.maximum(z[:, :, 0], z[:, :, 1])            # depth pair
    zb = jnp.maximum(za[:, :, :, 0], za[:, :, :, 1])    # height pair
    o_ref[...] = jnp.max(zb, axis=4)                    # width pair (sublane)


def bn_relu_maxpool_pallas(y2w, scale, bias):
    N, Do, _, Ho, _, Wo, _, C = y2w.shape
    return pl.pallas_call(
        _bn_relu_pool_kernel,
        grid=(N, Do),
        in_specs=[
            pl.BlockSpec((1, 1, 2, Ho, 2, Wo, 2, C),
                         lambda n, do: (n, do, 0, 0, 0, 0, 0, 0)),
            pl.BlockSpec((1, C), lambda n, do: (0, 0)),
            pl.BlockSpec((1, C), lambda n, do: (0, 0)),
        ],
        out_specs=pl.BlockSpec((1, 1, Ho, Wo, C),
                               lambda n, do: (n, do, 0, 0, 0)),
        out_shape=jax.ShapeDtypeStruct((N, Do, Ho, Wo, C), jnp.float32),
        compiler_params=pltpu.CompilerParams(
            dimension_semantics=("parallel", "parallel"),
            vmem_limit_bytes=32 * 1024 * 1024),
    )(y2w, scale, bias)


# --------------------------------------------------------------------------
# Module forward (glue: transposes, channel padding, tiny per-channel math)
# --------------------------------------------------------------------------
@jax.jit
def downscaling_block(x_ncdhw, w1, w2, g1, be1, g2, be2):
    N, Cin, D, H, W = x_ncdhw.shape
    Cm = w1.shape[-1]
    Co = w2.shape[-1]
    # TODO(synk): PyTorch MaxPool3d(2) floors odd spatial dims; only even dims
    # are supported here.
    assert D % 2 == 0 and H % 2 == 0 and W % 2 == 0

    Cin_p = _round_up(Cin, LANE)
    Cm_p = _round_up(Cm, LANE)
    Co_p = _round_up(Co, LANE)

    # NCDHW -> NDHWC; pad channels to lane width so all tiles are lane-dense.
    x = jnp.transpose(x_ncdhw, (0, 2, 3, 4, 1)).astype(jnp.float32)
    x = jnp.pad(x, ((0, 0), (0, 0), (0, 0), (0, 0), (0, Cin_p - Cin)))

    w1p = jnp.pad(w1.astype(jnp.float32),
                  ((0, 0), (0, 0), (0, 0), (0, Cin_p - Cin), (0, Cm_p - Cm)))
    w2p = jnp.pad(w2.astype(jnp.float32),
                  ((0, 0), (0, 0), (0, 0), (0, Cm_p - Cm), (0, Co_p - Co)))
    g1p = jnp.pad(g1.astype(jnp.float32), (0, Cm_p - Cm))
    be1p = jnp.pad(be1.astype(jnp.float32), (0, Cm_p - Cm))
    g2p = jnp.pad(g2.astype(jnp.float32), (0, Co_p - Co))
    be2p = jnp.pad(be2.astype(jnp.float32), (0, Co_p - Co))

    cnt = float(N * D * H * W)

    # --- conv1 + per-sample batch stats (Pallas) ---
    y1, s1, ss1 = conv3d_stats_pallas(x, w1p)
    s1 = jnp.sum(s1, axis=0)                         # [1, Cm_p]
    ss1 = jnp.sum(ss1, axis=0)
    mean1 = s1 / cnt
    # TODO(synk): E[x^2]-E[x]^2 can cancel for large-magnitude outputs; clamped.
    var1 = jnp.maximum(ss1 / cnt - mean1 * mean1, 0.0)
    scale1 = g1p[None, :] / jnp.sqrt(var1 + EPS)
    bias1 = be1p[None, :] - mean1 * scale1

    # --- conv2 with BN1+ReLU fused on its input (Pallas) ---
    y1v = y1.reshape(N, D, H, W, Cm_p)               # free row-major split
    y2, s2, ss2 = conv3d_stats_pallas(y1v, w2p, scale1, bias1)
    s2 = jnp.sum(s2, axis=0)
    ss2 = jnp.sum(ss2, axis=0)
    mean2 = s2 / cnt
    var2 = jnp.maximum(ss2 / cnt - mean2 * mean2, 0.0)
    scale2 = g2p[None, :] / jnp.sqrt(var2 + EPS)
    bias2 = be2p[None, :] - mean2 * scale2

    # --- BN2 + ReLU + MaxPool3d(2) (Pallas); pool window via free reshape ---
    Do, Ho, Wo = D // 2, H // 2, W // 2
    y2w = y2.reshape(N, Do, 2, Ho, 2, Wo, 2, Co_p)   # free row-major split
    pooled = bn_relu_maxpool_pallas(y2w, scale2, bias2)   # [N, Do, Ho, Wo, Co_p]

    out = pooled[..., :Co]
    return jnp.transpose(out, (0, 4, 1, 2, 3))       # back to NCDHW


# --------------------------------------------------------------------------
# Pure-JAX reference (for correctness check)
# --------------------------------------------------------------------------
def reference(x_ncdhw, w1, w2, g1, be1, g2, be2):
    x = jnp.transpose(x_ncdhw, (0, 2, 3, 4, 1)).astype(jnp.float32)

    def conv(t, w):
        return jax.lax.conv_general_dilated(
            t, w, (1, 1, 1), "SAME",
            dimension_numbers=("NDHWC", "DHWIO", "NDHWC"),
            precision=jax.lax.Precision.HIGHEST)

    def bn_relu(t, g, b):
        m = t.mean((0, 1, 2, 3))
        v = t.var((0, 1, 2, 3))
        return jnp.maximum((t - m) / jnp.sqrt(v + EPS) * g + b, 0.0)

    z1 = bn_relu(conv(x, w1), g1, be1)
    z2 = bn_relu(conv(z1, w2), g2, be2)
    p = jax.lax.reduce_window(z2, -jnp.inf, jax.lax.max,
                              (1, 2, 2, 2, 1), (1, 2, 2, 2, 1), "VALID")
    return jnp.transpose(p, (0, 4, 1, 2, 3))


# --------------------------------------------------------------------------
def init_params(key, in_channels, out_channels):
    mid = out_channels
    k1, k2 = jax.random.split(key)
    b1 = 1.0 / (in_channels * 27.0) ** 0.5   # kaiming_uniform(a=sqrt(5)) bound
    b2 = 1.0 / (mid * 27.0) ** 0.5
    w1 = jax.random.uniform(k1, (3, 3, 3, in_channels, mid), jnp.float32, -b1, b1)
    w2 = jax.random.uniform(k2, (3, 3, 3, mid, out_channels), jnp.float32, -b2, b2)
    g1 = jnp.ones((mid,), jnp.float32)
    be1 = jnp.zeros((mid,), jnp.float32)
    g2 = jnp.ones((out_channels,), jnp.float32)
    be2 = jnp.zeros((out_channels,), jnp.float32)
    return w1, w2, g1, be1, g2, be2


if __name__ == "__main__":
    key = jax.random.PRNGKey(0)
    kx, kp = jax.random.split(key)

    N, Cin, Cout, D, H, W = 2, 4, 8, 8, 8, 8
    x = jax.random.normal(kx, (N, Cin, D, H, W), jnp.float32)   # NCDHW like PyTorch
    params = init_params(kp, Cin, Cout)

    out = jax.block_until_ready(downscaling_block(x, *params))
    assert out.shape == (N, Cout, D // 2, H // 2, W // 2), out.shape

    ref = jax.block_until_ready(reference(x, *params))
    max_diff = float(jnp.max(jnp.abs(out - ref)))
    if not bool(jnp.allclose(out, ref, rtol=5e-2, atol=5e-2)):
        raise AssertionError(f"Pallas output mismatch, max |diff| = {max_diff}")

    print("KERNEL_OK")
</pallas_src>

<mosaic_0001>
module attributes {stable_mosaic.version = 11 : i64} {
  func.func @kernel(%arg0: i32, %arg1: i32, %arg2: memref<1x8x8x8x128xf32, #tpu.memory_space<vmem>>, %arg3: memref<3x3x3x128x128xf32, #tpu.memory_space<vmem>>, %arg4: memref<1x1x64x128xf32, #tpu.memory_space<vmem>>, %arg5: memref<1x1x128xf32, #tpu.memory_space<vmem>>, %arg6: memref<1x1x128xf32, #tpu.memory_space<vmem>>, %arg7: memref<10x10x128xf32, #tpu.memory_space<vmem>>) attributes {dimension_semantics = [#tpu.dimension_semantics<parallel>, #tpu.dimension_semantics<arbitrary>], iteration_bounds = array<i64: 2, 8>, scalar_prefetch = 0 : i64, scratch_operands = 1 : i64, tpu.core_type = #tpu.core_type<tc>, window_params = [{transform_indices = @transform_0, window_bounds = array<i64: 1, 8, 8, 8, 128>}, {pipeline_mode = #tpu.pipeline_mode<synchronous>, transform_indices = @transform_1, window_bounds = array<i64: 3, 3, 3, 128, 128>}, {transform_indices = @transform_2, window_bounds = array<i64: 1, 1, 64, 128>}, {transform_indices = @transform_3, window_bounds = array<i64: 1, 1, 128>}, {transform_indices = @transform_4, window_bounds = array<i64: 1, 1, 128>}]} {
    %c0_i32 = arith.constant 0 : i32
    %0 = arith.cmpi eq, %arg1, %c0_i32 : i32
    %1 = arith.extui %0 : i1 to i32
    %c0_i32_0 = arith.constant 0 : i32
    %2 = arith.cmpi ne, %1, %c0_i32_0 : i32
    scf.if %2 {
      %cst_298 = arith.constant 0.000000e+00 : f32
      %230 = vector.broadcast %cst_298 : f32 to vector<1x1x128xf32>
      %c0_299 = arith.constant 0 : index
      %c0_300 = arith.constant 0 : index
      %c0_301 = arith.constant 0 : index
      %231 = vector.load %arg5[%c0_299, %c0_300, %c0_301] : memref<1x1x128xf32, #tpu.memory_space<vmem>>, vector<1x1x128xf32>
      tpu.vector_store %arg5[%c0_299, %c0_300, %c0_301], %230 {strides = array<i32>} : memref<1x1x128xf32, #tpu.memory_space<vmem>>, vector<1x1x128xf32>,
      %cst_302 = arith.constant 0.000000e+00 : f32
      %232 = vector.broadcast %cst_302 : f32 to vector<1x1x128xf32>
      %c0_303 = arith.constant 0 : index
      %c0_304 = arith.constant 0 : index
      %c0_305 = arith.constant 0 : index
      %233 = vector.load %arg6[%c0_303, %c0_304, %c0_305] : memref<1x1x128xf32, #tpu.memory_space<vmem>>, vector<1x1x128xf32>
      tpu.vector_store %arg6[%c0_303, %c0_304, %c0_305], %232 {strides = array<i32>} : memref<1x1x128xf32, #tpu.memory_space<vmem>>, vector<1x1x128xf32>,
    } else {
    }
    %cst = arith.constant 0.000000e+00 : f32
    %3 = vector.broadcast %cst : f32 to vector<10x10x128xf32>
    %c0 = arith.constant 0 : index
    %c0_1 = arith.constant 0 : index
    %c0_2 = arith.constant 0 : index
    %4 = vector.load %arg7[%c0, %c0_1, %c0_2] : memref<10x10x128xf32, #tpu.memory_space<vmem>>, vector<10x10x128xf32>
    tpu.vector_store %arg7[%c0, %c0_1, %c0_2], %3 {strides = array<i32>} : memref<10x10x128xf32, #tpu.memory_space<vmem>>, vector<10x10x128xf32>,
    %cst_3 = arith.constant 0.000000e+00 : f32
    %5 = vector.broadcast %cst_3 : f32 to vector<64x128xf32>
    %c0_i32_4 = arith.constant 0 : i32
    %6 = arith.addi %arg1, %c0_i32_4 : i32
    %c1_i32 = arith.constant 1 : i32
    %7 = arith.subi %6, %c1_i32 : i32
    %c0_i32_5 = arith.constant 0 : i32
    %8 = arith.cmpi sge, %7, %c0_i32_5 : i32
    %c8_i32 = arith.constant 8 : i32
    %9 = arith.cmpi slt, %7, %c8_i32 : i32
    %10 = arith.andi %8, %9 : i1
    %c0_i32_6 = arith.constant 0 : i32
    %c7_i32 = arith.constant 7 : i32
    %11 = arith.maxsi %c0_i32_6, %7 : i32
    %12 = arith.minsi %c7_i32, %11 : i32
    %c0_7 = arith.constant 0 : index
    %13 = arith.index_cast %12 : i32 to index
    %c0_8 = arith.constant 0 : index
    %c0_9 = arith.constant 0 : index
    %c0_10 = arith.constant 0 : index
    %14 = vector.load %arg2[%c0_7, %13, %c0_8, %c0_9, %c0_10] : memref<1x8x8x8x128xf32, #tpu.memory_space<vmem>>, vector<1x1x8x8x128xf32>
    %15 = vector.shape_cast %14 : vector<1x1x8x8x128xf32> to vector<1x8x8x128xf32>
    %16 = vector.shape_cast %15 : vector<1x8x8x128xf32> to vector<8x8x128xf32>
    %17 = arith.extui %10 : i1 to i32
    %18 = arith.sitofp %17 : i32 to f32
    %19 = vector.broadcast %18 : f32 to vector<8x8x128xf32>
    %20 = arith.mulf %16, %19 : vector<8x8x128xf32>
    %c1 = arith.constant 1 : index
    %c1_11 = arith.constant 1 : index
    %c0_12 = arith.constant 0 : index
    %21 = vector.load %arg7[%c1, %c1_11, %c0_12] : memref<10x10x128xf32, #tpu.memory_space<vmem>>, vector<8x8x128xf32>
    tpu.vector_store %arg7[%c1, %c1_11, %c0_12], %20 {strides = array<i32>} : memref<10x10x128xf32, #tpu.memory_space<vmem>>, vector<8x8x128xf32>,
    %c0_13 = arith.constant 0 : index
    %c0_14 = arith.constant 0 : index
    %c0_15 = arith.constant 0 : index
    %22 = vector.load %arg7[%c0_13, %c0_14, %c0_15] : memref<10x10x128xf32, #tpu.memory_space<vmem>>, vector<8x8x128xf32>
    %23 = vector.shape_cast %22 : vector<8x8x128xf32> to vector<64x128xf32>
    %c0_16 = arith.constant 0 : index
    %c0_17 = arith.constant 0 : index
    %c0_18 = arith.constant 0 : index
    %c0_19 = arith.constant 0 : index
    %c0_20 = arith.constant 0 : index
    %24 = vector.load %arg3[%c0_16, %c0_17, %c0_18, %c0_19, %c0_20] : memref<3x3x3x128x128xf32, #tpu.memory_space<vmem>>, vector<1x1x1x128x128xf32>
    %25 = vector.shape_cast %24 : vector<1x1x1x128x128xf32> to vector<128x128xf32>
    %cst_21 = arith.constant dense<0.000000e+00> : vector<64x128xf32>
    %26 = tpu.matmul %23, %25, %cst_21 {dimension_numbers = #tpu.dot_dimension_numbers<[1], [0], [0], [1], [0, 0, 1, 1], [], []>} : vector<64x128xf32>, vector<128x128xf32>, vector<64x128xf32> -> vector<64x128xf32>
    %27 = arith.addf %5, %26 : vector<64x128xf32>
    %c0_22 = arith.constant 0 : index
    %c1_23 = arith.constant 1 : index
    %c0_24 = arith.constant 0 : index
    %28 = vector.load %arg7[%c0_22, %c1_23, %c0_24] : memref<10x10x128xf32, #tpu.memory_space<vmem>>, vector<8x8x128xf32>
    %29 = vector.shape_cast %28 : vector<8x8x128xf32> to vector<64x128xf32>
    %c0_25 = arith.constant 0 : index
    %c0_26 = arith.constant 0 : index
    %c1_27 = arith.constant 1 : index
    %c0_28 = arith.constant 0 : index
    %c0_29 = arith.constant 0 : index
    %30 = vector.load %arg3[%c0_25, %c0_26, %c1_27, %c0_28, %c0_29] : memref<3x3x3x128x128xf32, #tpu.memory_space<vmem>>, vector<1x1x1x128x128xf32>
    %31 = vector.shape_cast %30 : vector<1x1x1x128x128xf32> to vector<128x128xf32>
    %cst_30 = arith.constant dense<0.000000e+00> : vector<64x128xf32>
    %32 = tpu.matmul %29, %31, %cst_30 {dimension_numbers = #tpu.dot_dimension_numbers<[1], [0], [0], [1], [0, 0, 1, 1], [], []>} : vector<64x128xf32>, vector<128x128xf32>, vector<64x128xf32> -> vector<64x128xf32>
    %33 = arith.addf %27, %32 : vector<64x128xf32>
    %c0_31 = arith.constant 0 : index
    %c2 = arith.constant 2 : index
    %c0_32 = arith.constant 0 : index
    %34 = vector.load %arg7[%c0_31, %c2, %c0_32] : memref<10x10x128xf32, #tpu.memory_space<vmem>>, vector<8x8x128xf32>
    %35 = vector.shape_cast %34 : vector<8x8x128xf32> to vector<64x128xf32>
    %c0_33 = arith.constant 0 : index
    %c0_34 = arith.constant 0 : index
    %c2_35 = arith.constant 2 : index
    %c0_36 = arith.constant 0 : index
    %c0_37 = arith.constant 0 : index
    %36 = vector.load %arg3[%c0_33, %c0_34, %c2_35, %c0_36, %c0_37] : memref<3x3x3x128x128xf32, #tpu.memory_space<vmem>>, vector<1x1x1x128x128xf32>
    %37 = vector.shape_cast %36 : vector<1x1x1x128x128xf32> to vector<128x128xf32>
    %cst_38 = arith.constant dense<0.000000e+00> : vector<64x128xf32>
    %38 = tpu.matmul %35, %37, %cst_38 {dimension_numbers = #tpu.dot_dimension_numbers<[1], [0], [0], [1], [0, 0, 1, 1], [], []>} : vector<64x128xf32>, vector<128x128xf32>, vector<64x128xf32> -> vector<64x128xf32>
    %39 = arith.addf %33, %38 : vector<64x128xf32>
    %c1_39 = arith.constant 1 : index
    %c0_40 = arith.constant 0 : index
    %c0_41 = arith.constant 0 : index
    %40 = vector.load %arg7[%c1_39, %c0_40, %c0_41] : memref<10x10x128xf32, #tpu.memory_space<vmem>>, vector<8x8x128xf32>
    %41 = vector.shape_cast %40 : vector<8x8x128xf32> to vector<64x128xf32>
    %c0_42 = arith.constant 0 : index
    %c1_43 = arith.constant 1 : index
    %c0_44 = arith.constant 0 : index
    %c0_45 = arith.constant 0 : index
    %c0_46 = arith.constant 0 : index
    %42 = vector.load %arg3[%c0_42, %c1_43, %c0_44, %c0_45, %c0_46] : memref<3x3x3x128x128xf32, #tpu.memory_space<vmem>>, vector<1x1x1x128x128xf32>
    %43 = vector.shape_cast %42 : vector<1x1x1x128x128xf32> to vector<128x128xf32>
    %cst_47 = arith.constant dense<0.000000e+00> : vector<64x128xf32>
    %44 = tpu.matmul %41, %43, %cst_47 {dimension_numbers = #tpu.dot_dimension_numbers<[1], [0], [0], [1], [0, 0, 1, 1], [], []>} : vector<64x128xf32>, vector<128x128xf32>, vector<64x128xf32> -> vector<64x128xf32>
    %45 = arith.addf %39, %44 : vector<64x128xf32>
    %c1_48 = arith.constant 1 : index
    %c1_49 = arith.constant 1 : index
    %c0_50 = arith.constant 0 : index
    %46 = vector.load %arg7[%c1_48, %c1_49, %c0_50] : memref<10x10x128xf32, #tpu.memory_space<vmem>>, vector<8x8x128xf32>
    %47 = vector.shape_cast %46 : vector<8x8x128xf32> to vector<64x128xf32>
    %c0_51 = arith.constant 0 : index
    %c1_52 = arith.constant 1 : index
    %c1_53 = arith.constant 1 : index
    %c0_54 = arith.constant 0 : index
    %c0_55 = arith.constant 0 : index
    %48 = vector.load %arg3[%c0_51, %c1_52, %c1_53, %c0_54, %c0_55] : memref<3x3x3x128x128xf32, #tpu.memory_space<vmem>>, vector<1x1x1x128x128xf32>
    %49 = vector.shape_cast %48 : vector<1x1x1x128x128xf32> to vector<128x128xf32>
    %cst_56 = arith.constant dense<0.000000e+00> : vector<64x128xf32>
    %50 = tpu.matmul %47, %49, %cst_56 {dimension_numbers = #tpu.dot_dimension_numbers<[1], [0], [0], [1], [0, 0, 1, 1], [], []>} : vector<64x128xf32>, vector<128x128xf32>, vector<64x128xf32> -> vector<64x128xf32>
    %51 = arith.addf %45, %50 : vector<64x128xf32>
    %c1_57 = arith.constant 1 : index
    %c2_58 = arith.constant 2 : index
    %c0_59 = arith.constant 0 : index
    %52 = vector.load %arg7[%c1_57, %c2_58, %c0_59] : memref<10x10x128xf32, #tpu.memory_space<vmem>>, vector<8x8x128xf32>
    %53 = vector.shape_cast %52 : vector<8x8x128xf32> to vector<64x128xf32>
    %c0_60 = arith.constant 0 : index
    %c1_61 = arith.constant 1 : index
    %c2_62 = arith.constant 2 : index
    %c0_63 = arith.constant 0 : index
    %c0_64 = arith.constant 0 : index
    %54 = vector.load %arg3[%c0_60, %c1_61, %c2_62, %c0_63, %c0_64] : memref<3x3x3x128x128xf32, #tpu.memory_space<vmem>>, vector<1x1x1x128x128xf32>
    %55 = vector.shape_cast %54 : vector<1x1x1x128x128xf32> to vector<128x128xf32>
    %cst_65 = arith.constant dense<0.000000e+00> : vector<64x128xf32>
    %56 = tpu.matmul %53, %55, %cst_65 {dimension_numbers = #tpu.dot_dimension_numbers<[1], [0], [0], [1], [0, 0, 1, 1], [], []>} : vector<64x128xf32>, vector<128x128xf32>, vector<64x128xf32> -> vector<64x128xf32>
    %57 = arith.addf %51, %56 : vector<64x128xf32>
    %c2_66 = arith.constant 2 : index
    %c0_67 = arith.constant 0 : index
    %c0_68 = arith.constant 0 : index
    %58 = vector.load %arg7[%c2_66, %c0_67, %c0_68] : memref<10x10x128xf32, #tpu.memory_space<vmem>>, vector<8x8x128xf32>
    %59 = vector.shape_cast %58 : vector<8x8x128xf32> to vector<64x128xf32>
    %c0_69 = arith.constant 0 : index
    %c2_70 = arith.constant 2 : index
    %c0_71 = arith.constant 0 : index
    %c0_72 = arith.constant 0 : index
    %c0_73 = arith.constant 0 : index
    %60 = vector.load %arg3[%c0_69, %c2_70, %c0_71, %c0_72, %c0_73] : memref<3x3x3x128x128xf32, #tpu.memory_space<vmem>>, vector<1x1x1x128x128xf32>
    %61 = vector.shape_cast %60 : vector<1x1x1x128x128xf32> to vector<128x128xf32>
    %cst_74 = arith.constant dense<0.000000e+00> : vector<64x128xf32>
    %62 = tpu.matmul %59, %61, %cst_74 {dimension_numbers = #tpu.dot_dimension_numbers<[1], [0], [0], [1], [0, 0, 1, 1], [], []>} : vector<64x128xf32>, vector<128x128xf32>, vector<64x128xf32> -> vector<64x128xf32>
    %63 = arith.addf %57, %62 : vector<64x128xf32>
    %c2_75 = arith.constant 2 : index
    %c1_76 = arith.constant 1 : index
    %c0_77 = arith.constant 0 : index
    %64 = vector.load %arg7[%c2_75, %c1_76, %c0_77] : memref<10x10x128xf32, #tpu.memory_space<vmem>>, vector<8x8x128xf32>
    %65 = vector.shape_cast %64 : vector<8x8x128xf32> to vector<64x128xf32>
    %c0_78 = arith.constant 0 : index
    %c2_79 = arith.constant 2 : index
    %c1_80 = arith.constant 1 : index
    %c0_81 = arith.constant 0 : index
    %c0_82 = arith.constant 0 : index
    %66 = vector.load %arg3[%c0_78, %c2_79, %c1_80, %c0_81, %c0_82] : memref<3x3x3x128x128xf32, #tpu.memory_space<vmem>>, vector<1x1x1x128x128xf32>
    %67 = vector.shape_cast %66 : vector<1x1x1x128x128xf32> to vector<128x128xf32>
    %cst_83 = arith.constant dense<0.000000e+00> : vector<64x128xf32>
    %68 = tpu.matmul %65, %67, %cst_83 {dimension_numbers = #tpu.dot_dimension_numbers<[1], [0], [0], [1], [0, 0, 1, 1], [], []>} : vector<64x128xf32>, vector<128x128xf32>, vector<64x128xf32> -> vector<64x128xf32>
    %69 = arith.addf %63, %68 : vector<64x128xf32>
    %c2_84 = arith.constant 2 : index
    %c2_85 = arith.constant 2 : index
    %c0_86 = arith.constant 0 : index
    %70 = vector.load %arg7[%c2_84, %c2_85, %c0_86] : memref<10x10x128xf32, #tpu.memory_space<vmem>>, vector<8x8x128xf32>
    %71 = vector.shape_cast %70 : vector<8x8x128xf32> to vector<64x128xf32>
    %c0_87 = arith.constant 0 : index
    %c2_88 = arith.constant 2 : index
    %c2_89 = arith.constant 2 : index
    %c0_90 = arith.constant 0 : index
    %c0_91 = arith.constant 0 : index
    %72 = vector.load %arg3[%c0_87, %c2_88, %c2_89, %c0_90, %c0_91] : memref<3x3x3x128x128xf32, #tpu.memory_space<vmem>>, vector<1x1x1x128x128xf32>
    %73 = vector.shape_cast %72 : vector<1x1x1x128x128xf32> to vector<128x128xf32>
    %cst_92 = arith.constant dense<0.000000e+00> : vector<64x128xf32>
    %74 = tpu.matmul %71, %73, %cst_92 {dimension_numbers = #tpu.dot_dimension_numbers<[1], [0], [0], [1], [0, 0, 1, 1], [], []>} : vector<64x128xf32>, vector<128x128xf32>, vector<64x128xf32> -> vector<64x128xf32>
    %75 = arith.addf %69, %74 : vector<64x128xf32>
    %c1_i32_93 = arith.constant 1 : i32
    %76 = arith.addi %arg1, %c1_i32_93 : i32
    %c1_i32_94 = arith.constant 1 : i32
    %77 = arith.subi %76, %c1_i32_94 : i32
    %c0_i32_95 = arith.constant 0 : i32
    %78 = arith.cmpi sge, %77, %c0_i32_95 : i32
    %c8_i32_96 = arith.constant 8 : i32
    %79 = arith.cmpi slt, %77, %c8_i32_96 : i32
    %80 = arith.andi %78, %79 : i1
    %c0_i32_97 = arith.constant 0 : i32
    %c7_i32_98 = arith.constant 7 : i32
    %81 = arith.maxsi %c0_i32_97, %77 : i32
    %82 = arith.minsi %c7_i32_98, %81 : i32
    %c0_99 = arith.constant 0 : index
    %83 = arith.index_cast %82 : i32 to index
    %c0_100 = arith.constant 0 : index
    %c0_101 = arith.constant 0 : index
    %c0_102 = arith.constant 0 : index
    %84 = vector.load %arg2[%c0_99, %83, %c0_100, %c0_101, %c0_102] : memref<1x8x8x8x128xf32, #tpu.memory_space<vmem>>, vector<1x1x8x8x128xf32>
    %85 = vector.shape_cast %84 : vector<1x1x8x8x128xf32> to vector<1x8x8x128xf32>
    %86 = vector.shape_cast %85 : vector<1x8x8x128xf32> to vector<8x8x128xf32>
    %87 = arith.extui %80 : i1 to i32
    %88 = arith.sitofp %87 : i32 to f32
    %89 = vector.broadcast %88 : f32 to vector<8x8x128xf32>
    %90 = arith.mulf %86, %89 : vector<8x8x128xf32>
    %c1_103 = arith.constant 1 : index
    %c1_104 = arith.constant 1 : index
    %c0_105 = arith.constant 0 : index
    %91 = vector.load %arg7[%c1_103, %c1_104, %c0_105] : memref<10x10x128xf32, #tpu.memory_space<vmem>>, vector<8x8x128xf32>
    tpu.vector_store %arg7[%c1_103, %c1_104, %c0_105], %90 {strides = array<i32>} : memref<10x10x128xf32, #tpu.memory_space<vmem>>, vector<8x8x128xf32>,
    %c0_106 = arith.constant 0 : index
    %c0_107 = arith.constant 0 : index
    %c0_108 = arith.constant 0 : index
    %92 = vector.load %arg7[%c0_106, %c0_107, %c0_108] : memref<10x10x128xf32, #tpu.memory_space<vmem>>, vector<8x8x128xf32>
    %93 = vector.shape_cast %92 : vector<8x8x128xf32> to vector<64x128xf32>
    %c1_109 = arith.constant 1 : index
    %c0_110 = arith.constant 0 : index
    %c0_111 = arith.constant 0 : index
    %c0_112 = arith.constant 0 : index
    %c0_113 = arith.constant 0 : index
    %94 = vector.load %arg3[%c1_109, %c0_110, %c0_111, %c0_112, %c0_113] : memref<3x3x3x128x128xf32, #tpu.memory_space<vmem>>, vector<1x1x1x128x128xf32>
    %95 = vector.shape_cast %94 : vector<1x1x1x128x128xf32> to vector<128x128xf32>
    %cst_114 = arith.constant dense<0.000000e+00> : vector<64x128xf32>
    %96 = tpu.matmul %93, %95, %cst_114 {dimension_numbers = #tpu.dot_dimension_numbers<[1], [0], [0], [1], [0, 0, 1, 1], [], []>} : vector<64x128xf32>, vector<128x128xf32>, vector<64x128xf32> -> vector<64x128xf32>
    %97 = arith.addf %75, %96 : vector<64x128xf32>
    %c0_115 = arith.constant 0 : index
    %c1_116 = arith.constant 1 : index
    %c0_117 = arith.constant 0 : index
    %98 = vector.load %arg7[%c0_115, %c1_116, %c0_117] : memref<10x10x128xf32, #tpu.memory_space<vmem>>, vector<8x8x128xf32>
    %99 = vector.shape_cast %98 : vector<8x8x128xf32> to vector<64x128xf32>
    %c1_118 = arith.constant 1 : index
    %c0_119 = arith.constant 0 : index
    %c1_120 = arith.constant 1 : index
    %c0_121 = arith.constant 0 : index
    %c0_122 = arith.constant 0 : index
    %100 = vector.load %arg3[%c1_118, %c0_119, %c1_120, %c0_121, %c0_122] : memref<3x3x3x128x128xf32, #tpu.memory_space<vmem>>, vector<1x1x1x128x128xf32>
    %101 = vector.shape_cast %100 : vector<1x1x1x128x128xf32> to vector<128x128xf32>
    %cst_123 = arith.constant dense<0.000000e+00> : vector<64x128xf32>
    %102 = tpu.matmul %99, %101, %cst_123 {dimension_numbers = #tpu.dot_dimension_numbers<[1], [0], [0], [1], [0, 0, 1, 1], [], []>} : vector<64x128xf32>, vector<128x128xf32>, vector<64x128xf32> -> vector<64x128xf32>
    %103 = arith.addf %97, %102 : vector<64x128xf32>
    %c0_124 = arith.constant 0 : index
    %c2_125 = arith.constant 2 : index
    %c0_126 = arith.constant 0 : index
    %104 = vector.load %arg7[%c0_124, %c2_125, %c0_126] : memref<10x10x128xf32, #tpu.memory_space<vmem>>, vector<8x8x128xf32>
    %105 = vector.shape_cast %104 : vector<8x8x128xf32> to vector<64x128xf32>
    %c1_127 = arith.constant 1 : index
    %c0_128 = arith.constant 0 : index
    %c2_129 = arith.constant 2 : index
    %c0_130 = arith.constant 0 : index
    %c0_131 = arith.constant 0 : index
    %106 = vector.load %arg3[%c1_127, %c0_128, %c2_129, %c0_130, %c0_131] : memref<3x3x3x128x128xf32, #tpu.memory_space<vmem>>, vector<1x1x1x128x128xf32>
    %107 = vector.shape_cast %106 : vector<1x1x1x128x128xf32> to vector<128x128xf32>
    %cst_132 = arith.constant dense<0.000000e+00> : vector<64x128xf32>
    %108 = tpu.matmul %105, %107, %cst_132 {dimension_numbers = #tpu.dot_dimension_numbers<[1], [0], [0], [1], [0, 0, 1, 1], [], []>} : vector<64x128xf32>, vector<128x128xf32>, vector<64x128xf32> -> vector<64x128xf32>
    %109 = arith.addf %103, %108 : vector<64x128xf32>
    %c1_133 = arith.constant 1 : index
    %c0_134 = arith.constant 0 : index
    %c0_135 = arith.constant 0 : index
    %110 = vector.load %arg7[%c1_133, %c0_134, %c0_135] : memref<10x10x128xf32, #tpu.memory_space<vmem>>, vector<8x8x128xf32>
    %111 = vector.shape_cast %110 : vector<8x8x128xf32> to vector<64x128xf32>
    %c1_136 = arith.constant 1 : index
    %c1_137 = arith.constant 1 : index
    %c0_138 = arith.constant 0 : index
    %c0_139 = arith.constant 0 : index
    %c0_140 = arith.constant 0 : index
    %112 = vector.load %arg3[%c1_136, %c1_137, %c0_138, %c0_139, %c0_140] : memref<3x3x3x128x128xf32, #tpu.memory_space<vmem>>, vector<1x1x1x128x128xf32>
    %113 = vector.shape_cast %112 : vector<1x1x1x128x128xf32> to vector<128x128xf32>
    %cst_141 = arith.constant dense<0.000000e+00> : vector<64x128xf32>
    %114 = tpu.matmul %111, %113, %cst_141 {dimension_numbers = #tpu.dot_dimension_numbers<[1], [0], [0], [1], [0, 0, 1, 1], [], []>} : vector<64x128xf32>, vector<128x128xf32>, vector<64x128xf32> -> vector<64x128xf32>
    %115 = arith.addf %109, %114 : vector<64x128xf32>
    %c1_142 = arith.constant 1 : index
    %c1_143 = arith.constant 1 : index
    %c0_144 = arith.constant 0 : index
    %116 = vector.load %arg7[%c1_142, %c1_143, %c0_144] : memref<10x10x128xf32, #tpu.memory_space<vmem>>, vector<8x8x128xf32>
    %117 = vector.shape_cast %116 : vector<8x8x128xf32> to vector<64x128xf32>
    %c1_145 = arith.constant 1 : index
    %c1_146 = arith.constant 1 : index
    %c1_147 = arith.constant 1 : index
    %c0_148 = arith.constant 0 : index
    %c0_149 = arith.constant 0 : index
    %118 = vector.load %arg3[%c1_145, %c1_146, %c1_147, %c0_148, %c0_149] : memref<3x3x3x128x128xf32, #tpu.memory_space<vmem>>, vector<1x1x1x128x128xf32>
    %119 = vector.shape_cast %118 : vector<1x1x1x128x128xf32> to vector<128x128xf32>
    %cst_150 = arith.constant dense<0.000000e+00> : vector<64x128xf32>
    %120 = tpu.matmul %117, %119, %cst_150 {dimension_numbers = #tpu.dot_dimension_numbers<[1], [0], [0], [1], [0, 0, 1, 1], [], []>} : vector<64x128xf32>, vector<128x128xf32>, vector<64x128xf32> -> vector<64x128xf32>
    %121 = arith.addf %115, %120 : vector<64x128xf32>
    %c1_151 = arith.constant 1 : index
    %c2_152 = arith.constant 2 : index
    %c0_153 = arith.constant 0 : index
    %122 = vector.load %arg7[%c1_151, %c2_152, %c0_153] : memref<10x10x128xf32, #tpu.memory_space<vmem>>, vector<8x8x128xf32>
    %123 = vector.shape_cast %122 : vector<8x8x128xf32> to vector<64x128xf32>
    %c1_154 = arith.constant 1 : index
    %c1_155 = arith.constant 1 : index
    %c2_156 = arith.constant 2 : index
    %c0_157 = arith.constant 0 : index
    %c0_158 = arith.constant 0 : index
    %124 = vector.load %arg3[%c1_154, %c1_155, %c2_156, %c0_157, %c0_158] : memref<3x3x3x128x128xf32, #tpu.memory_space<vmem>>, vector<1x1x1x128x128xf32>
    %125 = vector.shape_cast %124 : vector<1x1x1x128x128xf32> to vector<128x128xf32>
    %cst_159 = arith.constant dense<0.000000e+00> : vector<64x128xf32>
    %126 = tpu.matmul %123, %125, %cst_159 {dimension_numbers = #tpu.dot_dimension_numbers<[1], [0], [0], [1], [0, 0, 1, 1], [], []>} : vector<64x128xf32>, vector<128x128xf32>, vector<64x128xf32> -> vector<64x128xf32>
    %127 = arith.addf %121, %126 : vector<64x128xf32>
    %c2_160 = arith.constant 2 : index
    %c0_161 = arith.constant 0 : index
    %c0_162 = arith.constant 0 : index
    %128 = vector.load %arg7[%c2_160, %c0_161, %c0_162] : memref<10x10x128xf32, #tpu.memory_space<vmem>>, vector<8x8x128xf32>
    %129 = vector.shape_cast %128 : vector<8x8x128xf32> to vector<64x128xf32>
    %c1_163 = arith.constant 1 : index
    %c2_164 = arith.constant 2 : index
    %c0_165 = arith.constant 0 : index
    %c0_166 = arith.constant 0 : index
    %c0_167 = arith.constant 0 : index
    %130 = vector.load %arg3[%c1_163, %c2_164, %c0_165, %c0_166, %c0_167] : memref<3x3x3x128x128xf32, #tpu.memory_space<vmem>>, vector<1x1x1x128x128xf32>
    %131 = vector.shape_cast %130 : vector<1x1x1x128x128xf32> to vector<128x128xf32>
    %cst_168 = arith.constant dense<0.000000e+00> : vector<64x128xf32>
    %132 = tpu.matmul %129, %131, %cst_168 {dimension_numbers = #tpu.dot_dimension_numbers<[1], [0], [0], [1], [0, 0, 1, 1], [], []>} : vector<64x128xf32>, vector<128x128xf32>, vector<64x128xf32> -> vector<64x128xf32>
    %133 = arith.addf %127, %132 : vector<64x128xf32>
    %c2_169 = arith.constant 2 : index
    %c1_170 = arith.constant 1 : index
    %c0_171 = arith.constant 0 : index
    %134 = vector.load %arg7[%c2_169, %c1_170, %c0_171] : memref<10x10x128xf32, #tpu.memory_space<vmem>>, vector<8x8x128xf32>
    %135 = vector.shape_cast %134 : vector<8x8x128xf32> to vector<64x128xf32>
    %c1_172 = arith.constant 1 : index
    %c2_173 = arith.constant 2 : index
    %c1_174 = arith.constant 1 : index
    %c0_175 = arith.constant 0 : index
    %c0_176 = arith.constant 0 : index
    %136 = vector.load %arg3[%c1_172, %c2_173, %c1_174, %c0_175, %c0_176] : memref<3x3x3x128x128xf32, #tpu.memory_space<vmem>>, vector<1x1x1x128x128xf32>
    %137 = vector.shape_cast %136 : vector<1x1x1x128x128xf32> to vector<128x128xf32>
    %cst_177 = arith.constant dense<0.000000e+00> : vector<64x128xf32>
    %138 = tpu.matmul %135, %137, %cst_177 {dimension_numbers = #tpu.dot_dimension_numbers<[1], [0], [0], [1], [0, 0, 1, 1], [], []>} : vector<64x128xf32>, vector<128x128xf32>, vector<64x128xf32> -> vector<64x128xf32>
    %139 = arith.addf %133, %138 : vector<64x128xf32>
    %c2_178 = arith.constant 2 : index
    %c2_179 = arith.constant 2 : index
    %c0_180 = arith.constant 0 : index
    %140 = vector.load %arg7[%c2_178, %c2_179, %c0_180] : memref<10x10x128xf32, #tpu.memory_space<vmem>>, vector<8x8x128xf32>
    %141 = vector.shape_cast %140 : vector<8x8x128xf32> to vector<64x128xf32>
    %c1_181 = arith.constant 1 : index
    %c2_182 = arith.constant 2 : index
    %c2_183 = arith.constant 2 : index
    %c0_184 = arith.constant 0 : index
    %c0_185 = arith.constant 0 : index
    %142 = vector.load %arg3[%c1_181, %c2_182, %c2_183, %c0_184, %c0_185] : memref<3x3x3x128x128xf32, #tpu.memory_space<vmem>>, vector<1x1x1x128x128xf32>
    %143 = vector.shape_cast %142 : vector<1x1x1x128x128xf32> to vector<128x128xf32>
    %cst_186 = arith.constant dense<0.000000e+00> : vector<64x128xf32>
    %144 = tpu.matmul %141, %143, %cst_186 {dimension_numbers = #tpu.dot_dimension_numbers<[1], [0], [0], [1], [0, 0, 1, 1], [], []>} : vector<64x128xf32>, vector<128x128xf32>, vector<64x128xf32> -> vector<64x128xf32>
    %145 = arith.addf %139, %144 : vector<64x128xf32>
    %c2_i32 = arith.constant 2 : i32
    %146 = arith.addi %arg1, %c2_i32 : i32
    %c1_i32_187 = arith.constant 1 : i32
    %147 = arith.subi %146, %c1_i32_187 : i32
    %c0_i32_188 = arith.constant 0 : i32
    %148 = arith.cmpi sge, %147, %c0_i32_188 : i32
    %c8_i32_189 = arith.constant 8 : i32
    %149 = arith.cmpi slt, %147, %c8_i32_189 : i32
    %150 = arith.andi %148, %149 : i1
    %c0_i32_190 = arith.constant 0 : i32
    %c7_i32_191 = arith.constant 7 : i32
    %151 = arith.maxsi %c0_i32_190, %147 : i32
    %152 = arith.minsi %c7_i32_191, %151 : i32
    %c0_192 = arith.constant 0 : index
    %153 = arith.index_cast %152 : i32 to index
    %c0_193 = arith.constant 0 : index
    %c0_194 = arith.constant 0 : index
    %c0_195 = arith.constant 0 : index
    %154 = vector.load %arg2[%c0_192, %153, %c0_193, %c0_194, %c0_195] : memref<1x8x8x8x128xf32, #tpu.memory_space<vmem>>, vector<1x1x8x8x128xf32>
    %155 = vector.shape_cast %154 : vector<1x1x8x8x128xf32> to vector<1x8x8x128xf32>
    %156 = vector.shape_cast %155 : vector<1x8x8x128xf32> to vector<8x8x128xf32>
    %157 = arith.extui %150 : i1 to i32
    %158 = arith.sitofp %157 : i32 to f32
    %159 = vector.broadcast %158 : f32 to vector<8x8x128xf32>
    %160 = arith.mulf %156, %159 : vector<8x8x128xf32>
    %c1_196 = arith.constant 1 : index
    %c1_197 = arith.constant 1 : index
    %c0_198 = arith.constant 0 : index
    %161 = vector.load %arg7[%c1_196, %c1_197, %c0_198] : memref<10x10x128xf32, #tpu.memory_space<vmem>>, vector<8x8x128xf32>
    tpu.vector_store %arg7[%c1_196, %c1_197, %c0_198], %160 {strides = array<i32>} : memref<10x10x128xf32, #tpu.memory_space<vmem>>, vector<8x8x128xf32>,
    %c0_199 = arith.constant 0 : index
    %c0_200 = arith.constant 0 : index
    %c0_201 = arith.constant 0 : index
    %162 = vector.load %arg7[%c0_199, %c0_200, %c0_201] : memref<10x10x128xf32, #tpu.memory_space<vmem>>, vector<8x8x128xf32>
    %163 = vector.shape_cast %162 : vector<8x8x128xf32> to vector<64x128xf32>
    %c2_202 = arith.constant 2 : index
    %c0_203 = arith.constant 0 : index
    %c0_204 = arith.constant 0 : index
    %c0_205 = arith.constant 0 : index
    %c0_206 = arith.constant 0 : index
    %164 = vector.load %arg3[%c2_202, %c0_203, %c0_204, %c0_205, %c0_206] : memref<3x3x3x128x128xf32, #tpu.memory_space<vmem>>, vector<1x1x1x128x128xf32>
    %165 = vector.shape_cast %164 : vector<1x1x1x128x128xf32> to vector<128x128xf32>
    %cst_207 = arith.constant dense<0.000000e+00> : vector<64x128xf32>
    %166 = tpu.matmul %163, %165, %cst_207 {dimension_numbers = #tpu.dot_dimension_numbers<[1], [0], [0], [1], [0, 0, 1, 1], [], []>} : vector<64x128xf32>, vector<128x128xf32>, vector<64x128xf32> -> vector<64x128xf32>
    %167 = arith.addf %145, %166 : vector<64x128xf32>
    %c0_208 = arith.constant 0 : index
    %c1_209 = arith.constant 1 : index
    %c0_210 = arith.constant 0 : index
    %168 = vector.load %arg7[%c0_208, %c1_209, %c0_210] : memref<10x10x128xf32, #tpu.memory_space<vmem>>, vector<8x8x128xf32>
    %169 = vector.shape_cast %168 : vector<8x8x128xf32> to vector<64x128xf32>
    %c2_211 = arith.constant 2 : index
    %c0_212 = arith.constant 0 : index
    %c1_213 = arith.constant 1 : index
    %c0_214 = arith.constant 0 : index
    %c0_215 = arith.constant 0 : index
    %170 = vector.load %arg3[%c2_211, %c0_212, %c1_213, %c0_214, %c0_215] : memref<3x3x3x128x128xf32, #tpu.memory_space<vmem>>, vector<1x1x1x128x128xf32>
    %171 = vector.shape_cast %170 : vector<1x1x1x128x128xf32> to vector<128x128xf32>
    %cst_216 = arith.constant dense<0.000000e+00> : vector<64x128xf32>
    %172 = tpu.matmul %169, %171, %cst_216 {dimension_numbers = #tpu.dot_dimension_numbers<[1], [0], [0], [1], [0, 0, 1, 1], [], []>} : vector<64x128xf32>, vector<128x128xf32>, vector<64x128xf32> -> vector<64x128xf32>
    %173 = arith.addf %167, %172 : vector<64x128xf32>
    %c0_217 = arith.constant 0 : index
    %c2_218 = arith.constant 2 : index
    %c0_219 = arith.constant 0 : index
    %174 = vector.load %arg7[%c0_217, %c2_218, %c0_219] : memref<10x10x128xf32, #tpu.memory_space<vmem>>, vector<8x8x128xf32>
    %175 = vector.shape_cast %174 : vector<8x8x128xf32> to vector<64x128xf32>
    %c2_220 = arith.constant 2 : index
    %c0_221 = arith.constant 0 : index
    %c2_222 = arith.constant 2 : index
    %c0_223 = arith.constant 0 : index
    %c0_224 = arith.constant 0 : index
    %176 = vector.load %arg3[%c2_220, %c0_221, %c2_222, %c0_223, %c0_224] : memref<3x3x3x128x128xf32, #tpu.memory_space<vmem>>, vector<1x1x1x128x128xf32>
    %177 = vector.shape_cast %176 : vector<1x1x1x128x128xf32> to vector<128x128xf32>
    %cst_225 = arith.constant dense<0.000000e+00> : vector<64x128xf32>
    %178 = tpu.matmul %175, %177, %cst_225 {dimension_numbers = #tpu.dot_dimension_numbers<[1], [0], [0], [1], [0, 0, 1, 1], [], []>} : vector<64x128xf32>, vector<128x128xf32>, vector<64x128xf32> -> vector<64x128xf32>
    %179 = arith.addf %173, %178 : vector<64x128xf32>
    %c1_226 = arith.constant 1 : index
    %c0_227 = arith.constant 0 : index
    %c0_228 = arith.constant 0 : index
    %180 = vector.load %arg7[%c1_226, %c0_227, %c0_228] : memref<10x10x128xf32, #tpu.memory_space<vmem>>, vector<8x8x128xf32>
    %181 = vector.shape_cast %180 : vector<8x8x128xf32> to vector<64x128xf32>
    %c2_229 = arith.constant 2 : index
    %c1_230 = arith.constant 1 : index
    %c0_231 = arith.constant 0 : index
    %c0_232 = arith.constant 0 : index
    %c0_233 = arith.constant 0 : index
    %182 = vector.load %arg3[%c2_229, %c1_230, %c0_231, %c0_232, %c0_233] : memref<3x3x3x128x128xf32, #tpu.memory_space<vmem>>, vector<1x1x1x128x128xf32>
    %183 = vector.shape_cast %182 : vector<1x1x1x128x128xf32> to vector<128x128xf32>
    %cst_234 = arith.constant dense<0.000000e+00> : vector<64x128xf32>
    %184 = tpu.matmul %181, %183, %cst_234 {dimension_numbers = #tpu.dot_dimension_numbers<[1], [0], [0], [1], [0, 0, 1, 1], [], []>} : vector<64x128xf32>, vector<128x128xf32>, vector<64x128xf32> -> vector<64x128xf32>
    %185 = arith.addf %179, %184 : vector<64x128xf32>
    %c1_235 = arith.constant 1 : index
    %c1_236 = arith.constant 1 : index
    %c0_237 = arith.constant 0 : index
    %186 = vector.load %arg7[%c1_235, %c1_236, %c0_237] : memref<10x10x128xf32, #tpu.memory_space<vmem>>, vector<8x8x128xf32>
    %187 = vector.shape_cast %186 : vector<8x8x128xf32> to vector<64x128xf32>
    %c2_238 = arith.constant 2 : index
    %c1_239 = arith.constant 1 : index
    %c1_240 = arith.constant 1 : index
    %c0_241 = arith.constant 0 : index
    %c0_242 = arith.constant 0 : index
    %188 = vector.load %arg3[%c2_238, %c1_239, %c1_240, %c0_241, %c0_242] : memref<3x3x3x128x128xf32, #tpu.memory_space<vmem>>, vector<1x1x1x128x128xf32>
    %189 = vector.shape_cast %188 : vector<1x1x1x128x128xf32> to vector<128x128xf32>
    %cst_243 = arith.constant dense<0.000000e+00> : vector<64x128xf32>
    %190 = tpu.matmul %187, %189, %cst_243 {dimension_numbers = #tpu.dot_dimension_numbers<[1], [0], [0], [1], [0, 0, 1, 1], [], []>} : vector<64x128xf32>, vector<128x128xf32>, vector<64x128xf32> -> vector<64x128xf32>
    %191 = arith.addf %185, %190 : vector<64x128xf32>
    %c1_244 = arith.constant 1 : index
    %c2_245 = arith.constant 2 : index
    %c0_246 = arith.constant 0 : index
    %192 = vector.load %arg7[%c1_244, %c2_245, %c0_246] : memref<10x10x128xf32, #tpu.memory_space<vmem>>, vector<8x8x128xf32>
    %193 = vector.shape_cast %192 : vector<8x8x128xf32> to vector<64x128xf32>
    %c2_247 = arith.constant 2 : index
    %c1_248 = arith.constant 1 : index
    %c2_249 = arith.constant 2 : index
    %c0_250 = arith.constant 0 : index
    %c0_251 = arith.constant 0 : index
    %194 = vector.load %arg3[%c2_247, %c1_248, %c2_249, %c0_250, %c0_251] : memref<3x3x3x128x128xf32, #tpu.memory_space<vmem>>, vector<1x1x1x128x128xf32>
    %195 = vector.shape_cast %194 : vector<1x1x1x128x128xf32> to vector<128x128xf32>
    %cst_252 = arith.constant dense<0.000000e+00> : vector<64x128xf32>
    %196 = tpu.matmul %193, %195, %cst_252 {dimension_numbers = #tpu.dot_dimension_numbers<[1], [0], [0], [1], [0, 0, 1, 1], [], []>} : vector<64x128xf32>, vector<128x128xf32>, vector<64x128xf32> -> vector<64x128xf32>
    %197 = arith.addf %191, %196 : vector<64x128xf32>
    %c2_253 = arith.constant 2 : index
    %c0_254 = arith.constant 0 : index
    %c0_255 = arith.constant 0 : index
    %198 = vector.load %arg7[%c2_253, %c0_254, %c0_255] : memref<10x10x128xf32, #tpu.memory_space<vmem>>, vector<8x8x128xf32>
    %199 = vector.shape_cast %198 : vector<8x8x128xf32> to vector<64x128xf32>
    %c2_256 = arith.constant 2 : index
    %c2_257 = arith.constant 2 : index
    %c0_258 = arith.constant 0 : index
    %c0_259 = arith.constant 0 : index
    %c0_260 = arith.constant 0 : index
    %200 = vector.load %arg3[%c2_256, %c2_257, %c0_258, %c0_259, %c0_260] : memref<3x3x3x128x128xf32, #tpu.memory_space<vmem>>, vector<1x1x1x128x128xf32>
    %201 = vector.shape_cast %200 : vector<1x1x1x128x128xf32> to vector<128x128xf32>
    %cst_261 = arith.constant dense<0.000000e+00> : vector<64x128xf32>
    %202 = tpu.matmul %199, %201, %cst_261 {dimension_numbers = #tpu.dot_dimension_numbers<[1], [0], [0], [1], [0, 0, 1, 1], [], []>} : vector<64x128xf32>, vector<128x128xf32>, vector<64x128xf32> -> vector<64x128xf32>
    %203 = arith.addf %197, %202 : vector<64x128xf32>
    %c2_262 = arith.constant 2 : index
    %c1_263 = arith.constant 1 : index
    %c0_264 = arith.constant 0 : index
    %204 = vector.load %arg7[%c2_262, %c1_263, %c0_264] : memref<10x10x128xf32, #tpu.memory_space<vmem>>, vector<8x8x128xf32>
    %205 = vector.shape_cast %204 : vector<8x8x128xf32> to vector<64x128xf32>
    %c2_265 = arith.constant 2 : index
    %c2_266 = arith.constant 2 : index
    %c1_267 = arith.constant 1 : index
    %c0_268 = arith.constant 0 : index
    %c0_269 = arith.constant 0 : index
    %206 = vector.load %arg3[%c2_265, %c2_266, %c1_267, %c0_268, %c0_269] : memref<3x3x3x128x128xf32, #tpu.memory_space<vmem>>, vector<1x1x1x128x128xf32>
    %207 = vector.shape_cast %206 : vector<1x1x1x128x128xf32> to vector<128x128xf32>
    %cst_270 = arith.constant dense<0.000000e+00> : vector<64x128xf32>
    %208 = tpu.matmul %205, %207, %cst_270 {dimension_numbers = #tpu.dot_dimension_numbers<[1], [0], [0], [1], [0, 0, 1, 1], [], []>} : vector<64x128xf32>, vector<128x128xf32>, vector<64x128xf32> -> vector<64x128xf32>
    %209 = arith.addf %203, %208 : vector<64x128xf32>
    %c2_271 = arith.constant 2 : index
    %c2_272 = arith.constant 2 : index
    %c0_273 = arith.constant 0 : index
    %210 = vector.load %arg7[%c2_271, %c2_272, %c0_273] : memref<10x10x128xf32, #tpu.memory_space<vmem>>, vector<8x8x128xf32>
    %211 = vector.shape_cast %210 : vector<8x8x128xf32> to vector<64x128xf32>
    %c2_274 = arith.constant 2 : index
    %c2_275 = arith.constant 2 : index
    %c2_276 = arith.constant 2 : index
    %c0_277 = arith.constant 0 : index
    %c0_278 = arith.constant 0 : index
    %212 = vector.load %arg3[%c2_274, %c2_275, %c2_276, %c0_277, %c0_278] : memref<3x3x3x128x128xf32, #tpu.memory_space<vmem>>, vector<1x1x1x128x128xf32>
    %213 = vector.shape_cast %212 : vector<1x1x1x128x128xf32> to vector<128x128xf32>
    %cst_279 = arith.constant dense<0.000000e+00> : vector<64x128xf32>
    %214 = tpu.matmul %211, %213, %cst_279 {dimension_numbers = #tpu.dot_dimension_numbers<[1], [0], [0], [1], [0, 0, 1, 1], [], []>} : vector<64x128xf32>, vector<128x128xf32>, vector<64x128xf32> -> vector<64x128xf32>
    %215 = arith.addf %209, %214 : vector<64x128xf32>
    %c0_280 = arith.constant 0 : index
    %c0_281 = arith.constant 0 : index
    %c0_282 = arith.constant 0 : index
    %c0_283 = arith.constant 0 : index
    %216 = vector.load %arg4[%c0_280, %c0_281, %c0_282, %c0_283] : memref<1x1x64x128xf32, #tpu.memory_space<vmem>>, vector<1x1x64x128xf32>
    %217 = vector.shape_cast %216 : vector<1x1x64x128xf32> to vector<64x128xf32>
    %218 = vector.shape_cast %215 : vector<64x128xf32> to vector<1x1x64x128xf32>
    tpu.vector_store %arg4[%c0_280, %c0_281, %c0_282, %c0_283], %218 {strides = array<i32>} : memref<1x1x64x128xf32, #tpu.memory_space<vmem>>, vector<1x1x64x128xf32>,
    %c0_284 = arith.constant 0 : index
    %c0_285 = arith.constant 0 : index
    %c0_286 = arith.constant 0 : index
    %219 = vector.load %arg5[%c0_284, %c0_285, %c0_286] : memref<1x1x128xf32, #tpu.memory_space<vmem>>, vector<1x1x128xf32>
    %cst_287 = arith.constant dense<0.000000e+00> : vector<128xf32>
    %220 = vector.multi_reduction <add>, %215, %cst_287 [0] : vector<64x128xf32> to vector<128xf32>
    %221 = vector.shape_cast %220 : vector<128xf32> to vector<1x1x128xf32>
    %222 = arith.addf %219, %221 : vector<1x1x128xf32>
    %c0_288 = arith.constant 0 : index
    %c0_289 = arith.constant 0 : index
    %c0_290 = arith.constant 0 : index
    %223 = vector.load %arg5[%c0_288, %c0_289, %c0_290] : memref<1x1x128xf32, #tpu.memory_space<vmem>>, vector<1x1x128xf32>
    tpu.vector_store %arg5[%c0_288, %c0_289, %c0_290], %222 {strides = array<i32>} : memref<1x1x128xf32, #tpu.memory_space<vmem>>, vector<1x1x128xf32>,
    %c0_291 = arith.constant 0 : index
    %c0_292 = arith.constant 0 : index
    %c0_293 = arith.constant 0 : index
    %224 = vector.load %arg6[%c0_291, %c0_292, %c0_293] : memref<1x1x128xf32, #tpu.memory_space<vmem>>, vector<1x1x128xf32>
    %225 = arith.mulf %215, %215 : vector<64x128xf32>
    %cst_294 = arith.constant dense<0.000000e+00> : vector<128xf32>
    %226 = vector.multi_reduction <add>, %225, %cst_294 [0] : vector<64x128xf32> to vector<128xf32>
    %227 = vector.shape_cast %226 : vector<128xf32> to vector<1x1x128xf32>
    %228 = arith.addf %224, %227 : vector<1x1x128xf32>
    %c0_295 = arith.constant 0 : index
    %c0_296 = arith.constant 0 : index
    %c0_297 = arith.constant 0 : index
    %229 = vector.load %arg6[%c0_295, %c0_296, %c0_297] : memref<1x1x128xf32, #tpu.memory_space<vmem>>, vector<1x1x128xf32>
    tpu.vector_store %arg6[%c0_295, %c0_296, %c0_297], %228 {strides = array<i32>} : memref<1x1x128xf32, #tpu.memory_space<vmem>>, vector<1x1x128xf32>,
    return
  }
  func.func @transform_0(%arg0: i32, %arg1: i32) -> (i32, i32, i32, i32, i32) {
    %c0_i32 = arith.constant 0 : i32
    %c0_i32_0 = arith.constant 0 : i32
    %c0_i32_1 = arith.constant 0 : i32
    %c0_i32_2 = arith.constant 0 : i32
    %c0_i32_3 = arith.constant 0 : i32
    return %arg0, %c0_i32, %c0_i32_0, %c0_i32_1, %c0_i32_2 : i32, i32, i32, i32, i32
  }
  func.func @transform_1(%arg0: i32, %arg1: i32) -> (i32, i32, i32, i32, i32) {
    %c0_i32 = arith.constant 0 : i32
    %c0_i32_0 = arith.constant 0 : i32
    %c0_i32_1 = arith.constant 0 : i32
    %c0_i32_2 = arith.constant 0 : i32
    %c0_i32_3 = arith.constant 0 : i32
    %c0_i32_4 = arith.constant 0 : i32
    return %c0_i32, %c0_i32_0, %c0_i32_1, %c0_i32_2, %c0_i32_3 : i32, i32, i32, i32, i32
  }
  func.func @transform_2(%arg0: i32, %arg1: i32) -> (i32, i32, i32, i32) {
    %c0_i32 = arith.constant 0 : i32
    %c0_i32_0 = arith.constant 0 : i32
    %c0_i32_1 = arith.constant 0 : i32
    return %arg0, %arg1, %c0_i32, %c0_i32_0 : i32, i32, i32, i32
  }
  func.func @transform_3(%arg0: i32, %arg1: i32) -> (i32, i32, i32) {
    %c0_i32 = arith.constant 0 : i32
    %c0_i32_0 = arith.constant 0 : i32
    %c0_i32_1 = arith.constant 0 : i32
    return %arg0, %c0_i32, %c0_i32_0 : i32, i32, i32
  }
  func.func @transform_4(%arg0: i32, %arg1: i32) -> (i32, i32, i32) {
    %c0_i32 = arith.constant 0 : i32
    %c0_i32_0 = arith.constant 0 : i32
    %c0_i32_1 = arith.constant 0 : i32
    return %arg0, %c0_i32, %c0_i32_0 : i32, i32, i32
  }
}

module attributes {stable_mosaic.version = 11 : i64} {
  func.func @kernel(%arg0: i32, %arg1: i32, %arg2: memref<1x8x8x8x128xf32, #tpu.memory_space<vmem>>, %arg3: memref<3x3x3x128x128xf32, #tpu.memory_space<vmem>>, %arg4: memref<1x128xf32, #tpu.memory_space<vmem>>, %arg5: memref<1x128xf32, #tpu.memory_space<vmem>>, %arg6: memref<1x1x64x128xf32, #tpu.memory_space<vmem>>, %arg7: memref<1x1x128xf32, #tpu.memory_space<vmem>>, %arg8: memref<1x1x128xf32, #tpu.memory_space<vmem>>, %arg9: memref<10x10x128xf32, #tpu.memory_space<vmem>>) attributes {dimension_semantics = [#tpu.dimension_semantics<parallel>, #tpu.dimension_semantics<arbitrary>], iteration_bounds = array<i64: 2, 8>, scalar_prefetch = 0 : i64, scratch_operands = 1 : i64, tpu.core_type = #tpu.core_type<tc>, window_params = [{transform_indices = @transform_0, window_bounds = array<i64: 1, 8, 8, 8, 128>}, {pipeline_mode = #tpu.pipeline_mode<synchronous>, transform_indices = @transform_1, window_bounds = array<i64: 3, 3, 3, 128, 128>}, {pipeline_mode = #tpu.pipeline_mode<synchronous>, transform_indices = @transform_2, window_bounds = array<i64: 1, 128>}, {pipeline_mode = #tpu.pipeline_mode<synchronous>, transform_indices = @transform_3, window_bounds = array<i64: 1, 128>}, {transform_indices = @transform_4, window_bounds = array<i64: 1, 1, 64, 128>}, {transform_indices = @transform_5, window_bounds = array<i64: 1, 1, 128>}, {transform_indices = @transform_6, window_bounds = array<i64: 1, 1, 128>}]} {
    %c0_i32 = arith.constant 0 : i32
    %0 = arith.cmpi eq, %arg1, %c0_i32 : i32
    %1 = arith.extui %0 : i1 to i32
    %c0_i32_0 = arith.constant 0 : i32
    %2 = arith.cmpi ne, %1, %c0_i32_0 : i32
    scf.if %2 {
      %cst_305 = arith.constant 0.000000e+00 : f32
      %256 = vector.broadcast %cst_305 : f32 to vector<1x1x128xf32>
      %c0_306 = arith.constant 0 : index
      %c0_307 = arith.constant 0 : index
      %c0_308 = arith.constant 0 : index
      %257 = vector.load %arg7[%c0_306, %c0_307, %c0_308] : memref<1x1x128xf32, #tpu.memory_space<vmem>>, vector<1x1x128xf32>
      tpu.vector_store %arg7[%c0_306, %c0_307, %c0_308], %256 {strides = array<i32>} : memref<1x1x128xf32, #tpu.memory_space<vmem>>, vector<1x1x128xf32>,
      %cst_309 = arith.constant 0.000000e+00 : f32
      %258 = vector.broadcast %cst_309 : f32 to vector<1x1x128xf32>
      %c0_310 = arith.constant 0 : index
      %c0_311 = arith.constant 0 : index
      %c0_312 = arith.constant 0 : index
      %259 = vector.load %arg8[%c0_310, %c0_311, %c0_312] : memref<1x1x128xf32, #tpu.memory_space<vmem>>, vector<1x1x128xf32>
      tpu.vector_store %arg8[%c0_310, %c0_311, %c0_312], %258 {strides = array<i32>} : memref<1x1x128xf32, #tpu.memory_space<vmem>>, vector<1x1x128xf32>,
    } else {
    }
    %cst = arith.constant 0.000000e+00 : f32
    %3 = vector.broadcast %cst : f32 to vector<10x10x128xf32>
    %c0 = arith.constant 0 : index
    %c0_1 = arith.constant 0 : index
    %c0_2 = arith.constant 0 : index
    %4 = vector.load %arg9[%c0, %c0_1, %c0_2] : memref<10x10x128xf32, #tpu.memory_space<vmem>>, vector<10x10x128xf32>
    tpu.vector_store %arg9[%c0, %c0_1, %c0_2], %3 {strides = array<i32>} : memref<10x10x128xf32, #tpu.memory_space<vmem>>, vector<10x10x128xf32>,
    %c0_3 = arith.constant 0 : index
    %c0_4 = arith.constant 0 : index
    %5 = vector.load %arg4[%c0_3, %c0_4] : memref<1x128xf32, #tpu.memory_space<vmem>>, vector<1x128xf32>
    %c0_5 = arith.constant 0 : index
    %c0_6 = arith.constant 0 : index
    %6 = vector.load %arg5[%c0_5, %c0_6] : memref<1x128xf32, #tpu.memory_space<vmem>>, vector<1x128xf32>
    %cst_7 = arith.constant 0.000000e+00 : f32
    %7 = vector.broadcast %cst_7 : f32 to vector<64x128xf32>
    %c0_i32_8 = arith.constant 0 : i32
    %8 = arith.addi %arg1, %c0_i32_8 : i32
    %c1_i32 = arith.constant 1 : i32
    %9 = arith.subi %8, %c1_i32 : i32
    %c0_i32_9 = arith.constant 0 : i32
    %10 = arith.cmpi sge, %9, %c0_i32_9 : i32
    %c8_i32 = arith.constant 8 : i32
    %11 = arith.cmpi slt, %9, %c8_i32 : i32
    %12 = arith.andi %10, %11 : i1
    %c0_i32_10 = arith.constant 0 : i32
    %c7_i32 = arith.constant 7 : i32
    %13 = arith.maxsi %c0_i32_10, %9 : i32
    %14 = arith.minsi %c7_i32, %13 : i32
    %c0_11 = arith.constant 0 : index
    %15 = arith.index_cast %14 : i32 to index
    %c0_12 = arith.constant 0 : index
    %c0_13 = arith.constant 0 : index
    %c0_14 = arith.constant 0 : index
    %16 = vector.load %arg2[%c0_11, %15, %c0_12, %c0_13, %c0_14] : memref<1x8x8x8x128xf32, #tpu.memory_space<vmem>>, vector<1x1x8x8x128xf32>
    %17 = vector.shape_cast %16 : vector<1x1x8x8x128xf32> to vector<1x8x8x128xf32>
    %18 = vector.shape_cast %17 : vector<1x8x8x128xf32> to vector<8x8x128xf32>
    %19 = vector.shape_cast %5 : vector<1x128xf32> to vector<1x1x128xf32>
    %20 = vector.broadcast %19 : vector<1x1x128xf32> to vector<8x8x128xf32>
    %21 = arith.mulf %18, %20 : vector<8x8x128xf32>
    %22 = vector.shape_cast %6 : vector<1x128xf32> to vector<1x1x128xf32>
    %23 = vector.broadcast %22 : vector<1x1x128xf32> to vector<8x8x128xf32>
    %24 = arith.addf %21, %23 : vector<8x8x128xf32>
    %cst_15 = arith.constant 0.000000e+00 : f32
    %25 = vector.broadcast %cst_15 : f32 to vector<8x8x128xf32>
    %26 = arith.maximumf %24, %25 : vector<8x8x128xf32>
    %27 = arith.extui %12 : i1 to i32
    %28 = arith.sitofp %27 : i32 to f32
    %29 = vector.broadcast %28 : f32 to vector<8x8x128xf32>
    %30 = arith.mulf %26, %29 : vector<8x8x128xf32>
    %c1 = arith.constant 1 : index
    %c1_16 = arith.constant 1 : index
    %c0_17 = arith.constant 0 : index
    %31 = vector.load %arg9[%c1, %c1_16, %c0_17] : memref<10x10x128xf32, #tpu.memory_space<vmem>>, vector<8x8x128xf32>
    tpu.vector_store %arg9[%c1, %c1_16, %c0_17], %30 {strides = array<i32>} : memref<10x10x128xf32, #tpu.memory_space<vmem>>, vector<8x8x128xf32>,
    %c0_18 = arith.constant 0 : index
    %c0_19 = arith.constant 0 : index
    %c0_20 = arith.constant 0 : index
    %32 = vector.load %arg9[%c0_18, %c0_19, %c0_20] : memref<10x10x128xf32, #tpu.memory_space<vmem>>, vector<8x8x128xf32>
    %33 = vector.shape_cast %32 : vector<8x8x128xf32> to vector<64x128xf32>
    %c0_21 = arith.constant 0 : index
    %c0_22 = arith.constant 0 : index
    %c0_23 = arith.constant 0 : index
    %c0_24 = arith.constant 0 : index
    %c0_25 = arith.constant 0 : index
    %34 = vector.load %arg3[%c0_21, %c0_22, %c0_23, %c0_24, %c0_25] : memref<3x3x3x128x128xf32, #tpu.memory_space<vmem>>, vector<1x1x1x128x128xf32>
    %35 = vector.shape_cast %34 : vector<1x1x1x128x128xf32> to vector<128x128xf32>
    %cst_26 = arith.constant dense<0.000000e+00> : vector<64x128xf32>
    %36 = tpu.matmul %33, %35, %cst_26 {dimension_numbers = #tpu.dot_dimension_numbers<[1], [0], [0], [1], [0, 0, 1, 1], [], []>} : vector<64x128xf32>, vector<128x128xf32>, vector<64x128xf32> -> vector<64x128xf32>
    %37 = arith.addf %7, %36 : vector<64x128xf32>
    %c0_27 = arith.constant 0 : index
    %c1_28 = arith.constant 1 : index
    %c0_29 = arith.constant 0 : index
    %38 = vector.load %arg9[%c0_27, %c1_28, %c0_29] : memref<10x10x128xf32, #tpu.memory_space<vmem>>, vector<8x8x128xf32>
    %39 = vector.shape_cast %38 : vector<8x8x128xf32> to vector<64x128xf32>
    %c0_30 = arith.constant 0 : index
    %c0_31 = arith.constant 0 : index
    %c1_32 = arith.constant 1 : index
    %c0_33 = arith.constant 0 : index
    %c0_34 = arith.constant 0 : index
    %40 = vector.load %arg3[%c0_30, %c0_31, %c1_32, %c0_33, %c0_34] : memref<3x3x3x128x128xf32, #tpu.memory_space<vmem>>, vector<1x1x1x128x128xf32>
    %41 = vector.shape_cast %40 : vector<1x1x1x128x128xf32> to vector<128x128xf32>
    %cst_35 = arith.constant dense<0.000000e+00> : vector<64x128xf32>
    %42 = tpu.matmul %39, %41, %cst_35 {dimension_numbers = #tpu.dot_dimension_numbers<[1], [0], [0], [1], [0, 0, 1, 1], [], []>} : vector<64x128xf32>, vector<128x128xf32>, vector<64x128xf32> -> vector<64x128xf32>
    %43 = arith.addf %37, %42 : vector<64x128xf32>
    %c0_36 = arith.constant 0 : index
    %c2 = arith.constant 2 : index
    %c0_37 = arith.constant 0 : index
    %44 = vector.load %arg9[%c0_36, %c2, %c0_37] : memref<10x10x128xf32, #tpu.memory_space<vmem>>, vector<8x8x128xf32>
    %45 = vector.shape_cast %44 : vector<8x8x128xf32> to vector<64x128xf32>
    %c0_38 = arith.constant 0 : index
    %c0_39 = arith.constant 0 : index
    %c2_40 = arith.constant 2 : index
    %c0_41 = arith.constant 0 : index
    %c0_42 = arith.constant 0 : index
    %46 = vector.load %arg3[%c0_38, %c0_39, %c2_40, %c0_41, %c0_42] : memref<3x3x3x128x128xf32, #tpu.memory_space<vmem>>, vector<1x1x1x128x128xf32>
    %47 = vector.shape_cast %46 : vector<1x1x1x128x128xf32> to vector<128x128xf32>
    %cst_43 = arith.constant dense<0.000000e+00> : vector<64x128xf32>
    %48 = tpu.matmul %45, %47, %cst_43 {dimension_numbers = #tpu.dot_dimension_numbers<[1], [0], [0], [1], [0, 0, 1, 1], [], []>} : vector<64x128xf32>, vector<128x128xf32>, vector<64x128xf32> -> vector<64x128xf32>
    %49 = arith.addf %43, %48 : vector<64x128xf32>
    %c1_44 = arith.constant 1 : index
    %c0_45 = arith.constant 0 : index
    %c0_46 = arith.constant 0 : index
    %50 = vector.load %arg9[%c1_44, %c0_45, %c0_46] : memref<10x10x128xf32, #tpu.memory_space<vmem>>, vector<8x8x128xf32>
    %51 = vector.shape_cast %50 : vector<8x8x128xf32> to vector<64x128xf32>
    %c0_47 = arith.constant 0 : index
    %c1_48 = arith.constant 1 : index
    %c0_49 = arith.constant 0 : index
    %c0_50 = arith.constant 0 : index
    %c0_51 = arith.constant 0 : index
    %52 = vector.load %arg3[%c0_47, %c1_48, %c0_49, %c0_50, %c0_51] : memref<3x3x3x128x128xf32, #tpu.memory_space<vmem>>, vector<1x1x1x128x128xf32>
    %53 = vector.shape_cast %52 : vector<1x1x1x128x128xf32> to vector<128x128xf32>
    %cst_52 = arith.constant dense<0.000000e+00> : vector<64x128xf32>
    %54 = tpu.matmul %51, %53, %cst_52 {dimension_numbers = #tpu.dot_dimension_numbers<[1], [0], [0], [1], [0, 0, 1, 1], [], []>} : vector<64x128xf32>, vector<128x128xf32>, vector<64x128xf32> -> vector<64x128xf32>
    %55 = arith.addf %49, %54 : vector<64x128xf32>
    %c1_53 = arith.constant 1 : index
    %c1_54 = arith.constant 1 : index
    %c0_55 = arith.constant 0 : index
    %56 = vector.load %arg9[%c1_53, %c1_54, %c0_55] : memref<10x10x128xf32, #tpu.memory_space<vmem>>, vector<8x8x128xf32>
    %57 = vector.shape_cast %56 : vector<8x8x128xf32> to vector<64x128xf32>
    %c0_56 = arith.constant 0 : index
    %c1_57 = arith.constant 1 : index
    %c1_58 = arith.constant 1 : index
    %c0_59 = arith.constant 0 : index
    %c0_60 = arith.constant 0 : index
    %58 = vector.load %arg3[%c0_56, %c1_57, %c1_58, %c0_59, %c0_60] : memref<3x3x3x128x128xf32, #tpu.memory_space<vmem>>, vector<1x1x1x128x128xf32>
    %59 = vector.shape_cast %58 : vector<1x1x1x128x128xf32> to vector<128x128xf32>
    %cst_61 = arith.constant dense<0.000000e+00> : vector<64x128xf32>
    %60 = tpu.matmul %57, %59, %cst_61 {dimension_numbers = #tpu.dot_dimension_numbers<[1], [0], [0], [1], [0, 0, 1, 1], [], []>} : vector<64x128xf32>, vector<128x128xf32>, vector<64x128xf32> -> vector<64x128xf32>
    %61 = arith.addf %55, %60 : vector<64x128xf32>
    %c1_62 = arith.constant 1 : index
    %c2_63 = arith.constant 2 : index
    %c0_64 = arith.constant 0 : index
    %62 = vector.load %arg9[%c1_62, %c2_63, %c0_64] : memref<10x10x128xf32, #tpu.memory_space<vmem>>, vector<8x8x128xf32>
    %63 = vector.shape_cast %62 : vector<8x8x128xf32> to vector<64x128xf32>
    %c0_65 = arith.constant 0 : index
    %c1_66 = arith.constant 1 : index
    %c2_67 = arith.constant 2 : index
    %c0_68 = arith.constant 0 : index
    %c0_69 = arith.constant 0 : index
    %64 = vector.load %arg3[%c0_65, %c1_66, %c2_67, %c0_68, %c0_69] : memref<3x3x3x128x128xf32, #tpu.memory_space<vmem>>, vector<1x1x1x128x128xf32>
    %65 = vector.shape_cast %64 : vector<1x1x1x128x128xf32> to vector<128x128xf32>
    %cst_70 = arith.constant dense<0.000000e+00> : vector<64x128xf32>
    %66 = tpu.matmul %63, %65, %cst_70 {dimension_numbers = #tpu.dot_dimension_numbers<[1], [0], [0], [1], [0, 0, 1, 1], [], []>} : vector<64x128xf32>, vector<128x128xf32>, vector<64x128xf32> -> vector<64x128xf32>
    %67 = arith.addf %61, %66 : vector<64x128xf32>
    %c2_71 = arith.constant 2 : index
    %c0_72 = arith.constant 0 : index
    %c0_73 = arith.constant 0 : index
    %68 = vector.load %arg9[%c2_71, %c0_72, %c0_73] : memref<10x10x128xf32, #tpu.memory_space<vmem>>, vector<8x8x128xf32>
    %69 = vector.shape_cast %68 : vector<8x8x128xf32> to vector<64x128xf32>
    %c0_74 = arith.constant 0 : index
    %c2_75 = arith.constant 2 : index
    %c0_76 = arith.constant 0 : index
    %c0_77 = arith.constant 0 : index
    %c0_78 = arith.constant 0 : index
    %70 = vector.load %arg3[%c0_74, %c2_75, %c0_76, %c0_77, %c0_78] : memref<3x3x3x128x128xf32, #tpu.memory_space<vmem>>, vector<1x1x1x128x128xf32>
    %71 = vector.shape_cast %70 : vector<1x1x1x128x128xf32> to vector<128x128xf32>
    %cst_79 = arith.constant dense<0.000000e+00> : vector<64x128xf32>
    %72 = tpu.matmul %69, %71, %cst_79 {dimension_numbers = #tpu.dot_dimension_numbers<[1], [0], [0], [1], [0, 0, 1, 1], [], []>} : vector<64x128xf32>, vector<128x128xf32>, vector<64x128xf32> -> vector<64x128xf32>
    %73 = arith.addf %67, %72 : vector<64x128xf32>
    %c2_80 = arith.constant 2 : index
    %c1_81 = arith.constant 1 : index
    %c0_82 = arith.constant 0 : index
    %74 = vector.load %arg9[%c2_80, %c1_81, %c0_82] : memref<10x10x128xf32, #tpu.memory_space<vmem>>, vector<8x8x128xf32>
    %75 = vector.shape_cast %74 : vector<8x8x128xf32> to vector<64x128xf32>
    %c0_83 = arith.constant 0 : index
    %c2_84 = arith.constant 2 : index
    %c1_85 = arith.constant 1 : index
    %c0_86 = arith.constant 0 : index
    %c0_87 = arith.constant 0 : index
    %76 = vector.load %arg3[%c0_83, %c2_84, %c1_85, %c0_86, %c0_87] : memref<3x3x3x128x128xf32, #tpu.memory_space<vmem>>, vector<1x1x1x128x128xf32>
    %77 = vector.shape_cast %76 : vector<1x1x1x128x128xf32> to vector<128x128xf32>
    %cst_88 = arith.constant dense<0.000000e+00> : vector<64x128xf32>
    %78 = tpu.matmul %75, %77, %cst_88 {dimension_numbers = #tpu.dot_dimension_numbers<[1], [0], [0], [1], [0, 0, 1, 1], [], []>} : vector<64x128xf32>, vector<128x128xf32>, vector<64x128xf32> -> vector<64x128xf32>
    %79 = arith.addf %73, %78 : vector<64x128xf32>
    %c2_89 = arith.constant 2 : index
    %c2_90 = arith.constant 2 : index
    %c0_91 = arith.constant 0 : index
    %80 = vector.load %arg9[%c2_89, %c2_90, %c0_91] : memref<10x10x128xf32, #tpu.memory_space<vmem>>, vector<8x8x128xf32>
    %81 = vector.shape_cast %80 : vector<8x8x128xf32> to vector<64x128xf32>
    %c0_92 = arith.constant 0 : index
    %c2_93 = arith.constant 2 : index
    %c2_94 = arith.constant 2 : index
    %c0_95 = arith.constant 0 : index
    %c0_96 = arith.constant 0 : index
    %82 = vector.load %arg3[%c0_92, %c2_93, %c2_94, %c0_95, %c0_96] : memref<3x3x3x128x128xf32, #tpu.memory_space<vmem>>, vector<1x1x1x128x128xf32>
    %83 = vector.shape_cast %82 : vector<1x1x1x128x128xf32> to vector<128x128xf32>
    %cst_97 = arith.constant dense<0.000000e+00> : vector<64x128xf32>
    %84 = tpu.matmul %81, %83, %cst_97 {dimension_numbers = #tpu.dot_dimension_numbers<[1], [0], [0], [1], [0, 0, 1, 1], [], []>} : vector<64x128xf32>, vector<128x128xf32>, vector<64x128xf32> -> vector<64x128xf32>
    %85 = arith.addf %79, %84 : vector<64x128xf32>
    %c1_i32_98 = arith.constant 1 : i32
    %86 = arith.addi %arg1, %c1_i32_98 : i32
    %c1_i32_99 = arith.constant 1 : i32
    %87 = arith.subi %86, %c1_i32_99 : i32
    %c0_i32_100 = arith.constant 0 : i32
    %88 = arith.cmpi sge, %87, %c0_i32_100 : i32
    %c8_i32_101 = arith.constant 8 : i32
    %89 = arith.cmpi slt, %87, %c8_i32_101 : i32
    %90 = arith.andi %88, %89 : i1
    %c0_i32_102 = arith.constant 0 : i32
    %c7_i32_103 = arith.constant 7 : i32
    %91 = arith.maxsi %c0_i32_102, %87 : i32
    %92 = arith.minsi %c7_i32_103, %91 : i32
    %c0_104 = arith.constant 0 : index
    %93 = arith.index_cast %92 : i32 to index
    %c0_105 = arith.constant 0 : index
    %c0_106 = arith.constant 0 : index
    %c0_107 = arith.constant 0 : index
    %94 = vector.load %arg2[%c0_104, %93, %c0_105, %c0_106, %c0_107] : memref<1x8x8x8x128xf32, #tpu.memory_space<vmem>>, vector<1x1x8x8x128xf32>
    %95 = vector.shape_cast %94 : vector<1x1x8x8x128xf32> to vector<1x8x8x128xf32>
    %96 = vector.shape_cast %95 : vector<1x8x8x128xf32> to vector<8x8x128xf32>
    %97 = vector.shape_cast %5 : vector<1x128xf32> to vector<1x1x128xf32>
    %98 = vector.broadcast %97 : vector<1x1x128xf32> to vector<8x8x128xf32>
    %99 = arith.mulf %96, %98 : vector<8x8x128xf32>
    %100 = vector.shape_cast %6 : vector<1x128xf32> to vector<1x1x128xf32>
    %101 = vector.broadcast %100 : vector<1x1x128xf32> to vector<8x8x128xf32>
    %102 = arith.addf %99, %101 : vector<8x8x128xf32>
    %cst_108 = arith.constant 0.000000e+00 : f32
    %103 = vector.broadcast %cst_108 : f32 to vector<8x8x128xf32>
    %104 = arith.maximumf %102, %103 : vector<8x8x128xf32>
    %105 = arith.extui %90 : i1 to i32
    %106 = arith.sitofp %105 : i32 to f32
    %107 = vector.broadcast %106 : f32 to vector<8x8x128xf32>
    %108 = arith.mulf %104, %107 : vector<8x8x128xf32>
    %c1_109 = arith.constant 1 : index
    %c1_110 = arith.constant 1 : index
    %c0_111 = arith.constant 0 : index
    %109 = vector.load %arg9[%c1_109, %c1_110, %c0_111] : memref<10x10x128xf32, #tpu.memory_space<vmem>>, vector<8x8x128xf32>
    tpu.vector_store %arg9[%c1_109, %c1_110, %c0_111], %108 {strides = array<i32>} : memref<10x10x128xf32, #tpu.memory_space<vmem>>, vector<8x8x128xf32>,
    %c0_112 = arith.constant 0 : index
    %c0_113 = arith.constant 0 : index
    %c0_114 = arith.constant 0 : index
    %110 = vector.load %arg9[%c0_112, %c0_113, %c0_114] : memref<10x10x128xf32, #tpu.memory_space<vmem>>, vector<8x8x128xf32>
    %111 = vector.shape_cast %110 : vector<8x8x128xf32> to vector<64x128xf32>
    %c1_115 = arith.constant 1 : index
    %c0_116 = arith.constant 0 : index
    %c0_117 = arith.constant 0 : index
    %c0_118 = arith.constant 0 : index
    %c0_119 = arith.constant 0 : index
    %112 = vector.load %arg3[%c1_115, %c0_116, %c0_117, %c0_118, %c0_119] : memref<3x3x3x128x128xf32, #tpu.memory_space<vmem>>, vector<1x1x1x128x128xf32>
    %113 = vector.shape_cast %112 : vector<1x1x1x128x128xf32> to vector<128x128xf32>
    %cst_120 = arith.constant dense<0.000000e+00> : vector<64x128xf32>
    %114 = tpu.matmul %111, %113, %cst_120 {dimension_numbers = #tpu.dot_dimension_numbers<[1], [0], [0], [1], [0, 0, 1, 1], [], []>} : vector<64x128xf32>, vector<128x128xf32>, vector<64x128xf32> -> vector<64x128xf32>
    %115 = arith.addf %85, %114 : vector<64x128xf32>
    %c0_121 = arith.constant 0 : index
    %c1_122 = arith.constant 1 : index
    %c0_123 = arith.constant 0 : index
    %116 = vector.load %arg9[%c0_121, %c1_122, %c0_123] : memref<10x10x128xf32, #tpu.memory_space<vmem>>, vector<8x8x128xf32>
    %117 = vector.shape_cast %116 : vector<8x8x128xf32> to vector<64x128xf32>
    %c1_124 = arith.constant 1 : index
    %c0_125 = arith.constant 0 : index
    %c1_126 = arith.constant 1 : index
    %c0_127 = arith.constant 0 : index
    %c0_128 = arith.constant 0 : index
    %118 = vector.load %arg3[%c1_124, %c0_125, %c1_126, %c0_127, %c0_128] : memref<3x3x3x128x128xf32, #tpu.memory_space<vmem>>, vector<1x1x1x128x128xf32>
    %119 = vector.shape_cast %118 : vector<1x1x1x128x128xf32> to vector<128x128xf32>
    %cst_129 = arith.constant dense<0.000000e+00> : vector<64x128xf32>
    %120 = tpu.matmul %117, %119, %cst_129 {dimension_numbers = #tpu.dot_dimension_numbers<[1], [0], [0], [1], [0, 0, 1, 1], [], []>} : vector<64x128xf32>, vector<128x128xf32>, vector<64x128xf32> -> vector<64x128xf32>
    %121 = arith.addf %115, %120 : vector<64x128xf32>
    %c0_130 = arith.constant 0 : index
    %c2_131 = arith.constant 2 : index
    %c0_132 = arith.constant 0 : index
    %122 = vector.load %arg9[%c0_130, %c2_131, %c0_132] : memref<10x10x128xf32, #tpu.memory_space<vmem>>, vector<8x8x128xf32>
    %123 = vector.shape_cast %122 : vector<8x8x128xf32> to vector<64x128xf32>
    %c1_133 = arith.constant 1 : index
    %c0_134 = arith.constant 0 : index
    %c2_135 = arith.constant 2 : index
    %c0_136 = arith.constant 0 : index
    %c0_137 = arith.constant 0 : index
    %124 = vector.load %arg3[%c1_133, %c0_134, %c2_135, %c0_136, %c0_137] : memref<3x3x3x128x128xf32, #tpu.memory_space<vmem>>, vector<1x1x1x128x128xf32>
    %125 = vector.shape_cast %124 : vector<1x1x1x128x128xf32> to vector<128x128xf32>
    %cst_138 = arith.constant dense<0.000000e+00> : vector<64x128xf32>
    %126 = tpu.matmul %123, %125, %cst_138 {dimension_numbers = #tpu.dot_dimension_numbers<[1], [0], [0], [1], [0, 0, 1, 1], [], []>} : vector<64x128xf32>, vector<128x128xf32>, vector<64x128xf32> -> vector<64x128xf32>
    %127 = arith.addf %121, %126 : vector<64x128xf32>
    %c1_139 = arith.constant 1 : index
    %c0_140 = arith.constant 0 : index
    %c0_141 = arith.constant 0 : index
    %128 = vector.load %arg9[%c1_139, %c0_140, %c0_141] : memref<10x10x128xf32, #tpu.memory_space<vmem>>, vector<8x8x128xf32>
    %129 = vector.shape_cast %128 : vector<8x8x128xf32> to vector<64x128xf32>
    %c1_142 = arith.constant 1 : index
    %c1_143 = arith.constant 1 : index
    %c0_144 = arith.constant 0 : index
    %c0_145 = arith.constant 0 : index
    %c0_146 = arith.constant 0 : index
    %130 = vector.load %arg3[%c1_142, %c1_143, %c0_144, %c0_145, %c0_146] : memref<3x3x3x128x128xf32, #tpu.memory_space<vmem>>, vector<1x1x1x128x128xf32>
    %131 = vector.shape_cast %130 : vector<1x1x1x128x128xf32> to vector<128x128xf32>
    %cst_147 = arith.constant dense<0.000000e+00> : vector<64x128xf32>
    %132 = tpu.matmul %129, %131, %cst_147 {dimension_numbers = #tpu.dot_dimension_numbers<[1], [0], [0], [1], [0, 0, 1, 1], [], []>} : vector<64x128xf32>, vector<128x128xf32>, vector<64x128xf32> -> vector<64x128xf32>
    %133 = arith.addf %127, %132 : vector<64x128xf32>
    %c1_148 = arith.constant 1 : index
    %c1_149 = arith.constant 1 : index
    %c0_150 = arith.constant 0 : index
    %134 = vector.load %arg9[%c1_148, %c1_149, %c0_150] : memref<10x10x128xf32, #tpu.memory_space<vmem>>, vector<8x8x128xf32>
    %135 = vector.shape_cast %134 : vector<8x8x128xf32> to vector<64x128xf32>
    %c1_151 = arith.constant 1 : index
    %c1_152 = arith.constant 1 : index
    %c1_153 = arith.constant 1 : index
    %c0_154 = arith.constant 0 : index
    %c0_155 = arith.constant 0 : index
    %136 = vector.load %arg3[%c1_151, %c1_152, %c1_153, %c0_154, %c0_155] : memref<3x3x3x128x128xf32, #tpu.memory_space<vmem>>, vector<1x1x1x128x128xf32>
    %137 = vector.shape_cast %136 : vector<1x1x1x128x128xf32> to vector<128x128xf32>
    %cst_156 = arith.constant dense<0.000000e+00> : vector<64x128xf32>
    %138 = tpu.matmul %135, %137, %cst_156 {dimension_numbers = #tpu.dot_dimension_numbers<[1], [0], [0], [1], [0, 0, 1, 1], [], []>} : vector<64x128xf32>, vector<128x128xf32>, vector<64x128xf32> -> vector<64x128xf32>
    %139 = arith.addf %133, %138 : vector<64x128xf32>
    %c1_157 = arith.constant 1 : index
    %c2_158 = arith.constant 2 : index
    %c0_159 = arith.constant 0 : index
    %140 = vector.load %arg9[%c1_157, %c2_158, %c0_159] : memref<10x10x128xf32, #tpu.memory_space<vmem>>, vector<8x8x128xf32>
    %141 = vector.shape_cast %140 : vector<8x8x128xf32> to vector<64x128xf32>
    %c1_160 = arith.constant 1 : index
    %c1_161 = arith.constant 1 : index
    %c2_162 = arith.constant 2 : index
    %c0_163 = arith.constant 0 : index
    %c0_164 = arith.constant 0 : index
    %142 = vector.load %arg3[%c1_160, %c1_161, %c2_162, %c0_163, %c0_164] : memref<3x3x3x128x128xf32, #tpu.memory_space<vmem>>, vector<1x1x1x128x128xf32>
    %143 = vector.shape_cast %142 : vector<1x1x1x128x128xf32> to vector<128x128xf32>
    %cst_165 = arith.constant dense<0.000000e+00> : vector<64x128xf32>
    %144 = tpu.matmul %141, %143, %cst_165 {dimension_numbers = #tpu.dot_dimension_numbers<[1], [0], [0], [1], [0, 0, 1, 1], [], []>} : vector<64x128xf32>, vector<128x128xf32>, vector<64x128xf32> -> vector<64x128xf32>
    %145 = arith.addf %139, %144 : vector<64x128xf32>
    %c2_166 = arith.constant 2 : index
    %c0_167 = arith.constant 0 : index
    %c0_168 = arith.constant 0 : index
    %146 = vector.load %arg9[%c2_166, %c0_167, %c0_168] : memref<10x10x128xf32, #tpu.memory_space<vmem>>, vector<8x8x128xf32>
    %147 = vector.shape_cast %146 : vector<8x8x128xf32> to vector<64x128xf32>
    %c1_169 = arith.constant 1 : index
    %c2_170 = arith.constant 2 : index
    %c0_171 = arith.constant 0 : index
    %c0_172 = arith.constant 0 : index
    %c0_173 = arith.constant 0 : index
    %148 = vector.load %arg3[%c1_169, %c2_170, %c0_171, %c0_172, %c0_173] : memref<3x3x3x128x128xf32, #tpu.memory_space<vmem>>, vector<1x1x1x128x128xf32>
    %149 = vector.shape_cast %148 : vector<1x1x1x128x128xf32> to vector<128x128xf32>
    %cst_174 = arith.constant dense<0.000000e+00> : vector<64x128xf32>
    %150 = tpu.matmul %147, %149, %cst_174 {dimension_numbers = #tpu.dot_dimension_numbers<[1], [0], [0], [1], [0, 0, 1, 1], [], []>} : vector<64x128xf32>, vector<128x128xf32>, vector<64x128xf32> -> vector<64x128xf32>
    %151 = arith.addf %145, %150 : vector<64x128xf32>
    %c2_175 = arith.constant 2 : index
    %c1_176 = arith.constant 1 : index
    %c0_177 = arith.constant 0 : index
    %152 = vector.load %arg9[%c2_175, %c1_176, %c0_177] : memref<10x10x128xf32, #tpu.memory_space<vmem>>, vector<8x8x128xf32>
    %153 = vector.shape_cast %152 : vector<8x8x128xf32> to vector<64x128xf32>
    %c1_178 = arith.constant 1 : index
    %c2_179 = arith.constant 2 : index
    %c1_180 = arith.constant 1 : index
    %c0_181 = arith.constant 0 : index
    %c0_182 = arith.constant 0 : index
    %154 = vector.load %arg3[%c1_178, %c2_179, %c1_180, %c0_181, %c0_182] : memref<3x3x3x128x128xf32, #tpu.memory_space<vmem>>, vector<1x1x1x128x128xf32>
    %155 = vector.shape_cast %154 : vector<1x1x1x128x128xf32> to vector<128x128xf32>
    %cst_183 = arith.constant dense<0.000000e+00> : vector<64x128xf32>
    %156 = tpu.matmul %153, %155, %cst_183 {dimension_numbers = #tpu.dot_dimension_numbers<[1], [0], [0], [1], [0, 0, 1, 1], [], []>} : vector<64x128xf32>, vector<128x128xf32>, vector<64x128xf32> -> vector<64x128xf32>
    %157 = arith.addf %151, %156 : vector<64x128xf32>
    %c2_184 = arith.constant 2 : index
    %c2_185 = arith.constant 2 : index
    %c0_186 = arith.constant 0 : index
    %158 = vector.load %arg9[%c2_184, %c2_185, %c0_186] : memref<10x10x128xf32, #tpu.memory_space<vmem>>, vector<8x8x128xf32>
    %159 = vector.shape_cast %158 : vector<8x8x128xf32> to vector<64x128xf32>
    %c1_187 = arith.constant 1 : index
    %c2_188 = arith.constant 2 : index
    %c2_189 = arith.constant 2 : index
    %c0_190 = arith.constant 0 : index
    %c0_191 = arith.constant 0 : index
    %160 = vector.load %arg3[%c1_187, %c2_188, %c2_189, %c0_190, %c0_191] : memref<3x3x3x128x128xf32, #tpu.memory_space<vmem>>, vector<1x1x1x128x128xf32>
    %161 = vector.shape_cast %160 : vector<1x1x1x128x128xf32> to vector<128x128xf32>
    %cst_192 = arith.constant dense<0.000000e+00> : vector<64x128xf32>
    %162 = tpu.matmul %159, %161, %cst_192 {dimension_numbers = #tpu.dot_dimension_numbers<[1], [0], [0], [1], [0, 0, 1, 1], [], []>} : vector<64x128xf32>, vector<128x128xf32>, vector<64x128xf32> -> vector<64x128xf32>
    %163 = arith.addf %157, %162 : vector<64x128xf32>
    %c2_i32 = arith.constant 2 : i32
    %164 = arith.addi %arg1, %c2_i32 : i32
    %c1_i32_193 = arith.constant 1 : i32
    %165 = arith.subi %164, %c1_i32_193 : i32
    %c0_i32_194 = arith.constant 0 : i32
    %166 = arith.cmpi sge, %165, %c0_i32_194 : i32
    %c8_i32_195 = arith.constant 8 : i32
    %167 = arith.cmpi slt, %165, %c8_i32_195 : i32
    %168 = arith.andi %166, %167 : i1
    %c0_i32_196 = arith.constant 0 : i32
    %c7_i32_197 = arith.constant 7 : i32
    %169 = arith.maxsi %c0_i32_196, %165 : i32
    %170 = arith.minsi %c7_i32_197, %169 : i32
    %c0_198 = arith.constant 0 : index
    %171 = arith.index_cast %170 : i32 to index
    %c0_199 = arith.constant 0 : index
    %c0_200 = arith.constant 0 : index
    %c0_201 = arith.constant 0 : index
    %172 = vector.load %arg2[%c0_198, %171, %c0_199, %c0_200, %c0_201] : memref<1x8x8x8x128xf32, #tpu.memory_space<vmem>>, vector<1x1x8x8x128xf32>
    %173 = vector.shape_cast %172 : vector<1x1x8x8x128xf32> to vector<1x8x8x128xf32>
    %174 = vector.shape_cast %173 : vector<1x8x8x128xf32> to vector<8x8x128xf32>
    %175 = vector.shape_cast %5 : vector<1x128xf32> to vector<1x1x128xf32>
    %176 = vector.broadcast %175 : vector<1x1x128xf32> to vector<8x8x128xf32>
    %177 = arith.mulf %174, %176 : vector<8x8x128xf32>
    %178 = vector.shape_cast %6 : vector<1x128xf32> to vector<1x1x128xf32>
    %179 = vector.broadcast %178 : vector<1x1x128xf32> to vector<8x8x128xf32>
    %180 = arith.addf %177, %179 : vector<8x8x128xf32>
    %cst_202 = arith.constant 0.000000e+00 : f32
    %181 = vector.broadcast %cst_202 : f32 to vector<8x8x128xf32>
    %182 = arith.maximumf %180, %181 : vector<8x8x128xf32>
    %183 = arith.extui %168 : i1 to i32
    %184 = arith.sitofp %183 : i32 to f32
    %185 = vector.broadcast %184 : f32 to vector<8x8x128xf32>
    %186 = arith.mulf %182, %185 : vector<8x8x128xf32>
    %c1_203 = arith.constant 1 : index
    %c1_204 = arith.constant 1 : index
    %c0_205 = arith.constant 0 : index
    %187 = vector.load %arg9[%c1_203, %c1_204, %c0_205] : memref<10x10x128xf32, #tpu.memory_space<vmem>>, vector<8x8x128xf32>
    tpu.vector_store %arg9[%c1_203, %c1_204, %c0_205], %186 {strides = array<i32>} : memref<10x10x128xf32, #tpu.memory_space<vmem>>, vector<8x8x128xf32>,
    %c0_206 = arith.constant 0 : index
    %c0_207 = arith.constant 0 : index
    %c0_208 = arith.constant 0 : index
    %188 = vector.load %arg9[%c0_206, %c0_207, %c0_208] : memref<10x10x128xf32, #tpu.memory_space<vmem>>, vector<8x8x128xf32>
    %189 = vector.shape_cast %188 : vector<8x8x128xf32> to vector<64x128xf32>
    %c2_209 = arith.constant 2 : index
    %c0_210 = arith.constant 0 : index
    %c0_211 = arith.constant 0 : index
    %c0_212 = arith.constant 0 : index
    %c0_213 = arith.constant 0 : index
    %190 = vector.load %arg3[%c2_209, %c0_210, %c0_211, %c0_212, %c0_213] : memref<3x3x3x128x128xf32, #tpu.memory_space<vmem>>, vector<1x1x1x128x128xf32>
    %191 = vector.shape_cast %190 : vector<1x1x1x128x128xf32> to vector<128x128xf32>
    %cst_214 = arith.constant dense<0.000000e+00> : vector<64x128xf32>
    %192 = tpu.matmul %189, %191, %cst_214 {dimension_numbers = #tpu.dot_dimension_numbers<[1], [0], [0], [1], [0, 0, 1, 1], [], []>} : vector<64x128xf32>, vector<128x128xf32>, vector<64x128xf32> -> vector<64x128xf32>
    %193 = arith.addf %163, %192 : vector<64x128xf32>
    %c0_215 = arith.constant 0 : index
    %c1_216 = arith.constant 1 : index
    %c0_217 = arith.constant 0 : index
    %194 = vector.load %arg9[%c0_215, %c1_216, %c0_217] : memref<10x10x128xf32, #tpu.memory_space<vmem>>, vector<8x8x128xf32>
    %195 = vector.shape_cast %194 : vector<8x8x128xf32> to vector<64x128xf32>
    %c2_218 = arith.constant 2 : index
    %c0_219 = arith.constant 0 : index
    %c1_220 = arith.constant 1 : index
    %c0_221 = arith.constant 0 : index
    %c0_222 = arith.constant 0 : index
    %196 = vector.load %arg3[%c2_218, %c0_219, %c1_220, %c0_221, %c0_222] : memref<3x3x3x128x128xf32, #tpu.memory_space<vmem>>, vector<1x1x1x128x128xf32>
    %197 = vector.shape_cast %196 : vector<1x1x1x128x128xf32> to vector<128x128xf32>
    %cst_223 = arith.constant dense<0.000000e+00> : vector<64x128xf32>
    %198 = tpu.matmul %195, %197, %cst_223 {dimension_numbers = #tpu.dot_dimension_numbers<[1], [0], [0], [1], [0, 0, 1, 1], [], []>} : vector<64x128xf32>, vector<128x128xf32>, vector<64x128xf32> -> vector<64x128xf32>
    %199 = arith.addf %193, %198 : vector<64x128xf32>
    %c0_224 = arith.constant 0 : index
    %c2_225 = arith.constant 2 : index
    %c0_226 = arith.constant 0 : index
    %200 = vector.load %arg9[%c0_224, %c2_225, %c0_226] : memref<10x10x128xf32, #tpu.memory_space<vmem>>, vector<8x8x128xf32>
    %201 = vector.shape_cast %200 : vector<8x8x128xf32> to vector<64x128xf32>
    %c2_227 = arith.constant 2 : index
    %c0_228 = arith.constant 0 : index
    %c2_229 = arith.constant 2 : index
    %c0_230 = arith.constant 0 : index
    %c0_231 = arith.constant 0 : index
    %202 = vector.load %arg3[%c2_227, %c0_228, %c2_229, %c0_230, %c0_231] : memref<3x3x3x128x128xf32, #tpu.memory_space<vmem>>, vector<1x1x1x128x128xf32>
    %203 = vector.shape_cast %202 : vector<1x1x1x128x128xf32> to vector<128x128xf32>
    %cst_232 = arith.constant dense<0.000000e+00> : vector<64x128xf32>
    %204 = tpu.matmul %201, %203, %cst_232 {dimension_numbers = #tpu.dot_dimension_numbers<[1], [0], [0], [1], [0, 0, 1, 1], [], []>} : vector<64x128xf32>, vector<128x128xf32>, vector<64x128xf32> -> vector<64x128xf32>
    %205 = arith.addf %199, %204 : vector<64x128xf32>
    %c1_233 = arith.constant 1 : index
    %c0_234 = arith.constant 0 : index
    %c0_235 = arith.constant 0 : index
    %206 = vector.load %arg9[%c1_233, %c0_234, %c0_235] : memref<10x10x128xf32, #tpu.memory_space<vmem>>, vector<8x8x128xf32>
    %207 = vector.shape_cast %206 : vector<8x8x128xf32> to vector<64x128xf32>
    %c2_236 = arith.constant 2 : index
    %c1_237 = arith.constant 1 : index
    %c0_238 = arith.constant 0 : index
    %c0_239 = arith.constant 0 : index
    %c0_240 = arith.constant 0 : index
    %208 = vector.load %arg3[%c2_236, %c1_237, %c0_238, %c0_239, %c0_240] : memref<3x3x3x128x128xf32, #tpu.memory_space<vmem>>, vector<1x1x1x128x128xf32>
    %209 = vector.shape_cast %208 : vector<1x1x1x128x128xf32> to vector<128x128xf32>
    %cst_241 = arith.constant dense<0.000000e+00> : vector<64x128xf32>
    %210 = tpu.matmul %207, %209, %cst_241 {dimension_numbers = #tpu.dot_dimension_numbers<[1], [0], [0], [1], [0, 0, 1, 1], [], []>} : vector<64x128xf32>, vector<128x128xf32>, vector<64x128xf32> -> vector<64x128xf32>
    %211 = arith.addf %205, %210 : vector<64x128xf32>
    %c1_242 = arith.constant 1 : index
    %c1_243 = arith.constant 1 : index
    %c0_244 = arith.constant 0 : index
    %212 = vector.load %arg9[%c1_242, %c1_243, %c0_244] : memref<10x10x128xf32, #tpu.memory_space<vmem>>, vector<8x8x128xf32>
    %213 = vector.shape_cast %212 : vector<8x8x128xf32> to vector<64x128xf32>
    %c2_245 = arith.constant 2 : index
    %c1_246 = arith.constant 1 : index
    %c1_247 = arith.constant 1 : index
    %c0_248 = arith.constant 0 : index
    %c0_249 = arith.constant 0 : index
    %214 = vector.load %arg3[%c2_245, %c1_246, %c1_247, %c0_248, %c0_249] : memref<3x3x3x128x128xf32, #tpu.memory_space<vmem>>, vector<1x1x1x128x128xf32>
    %215 = vector.shape_cast %214 : vector<1x1x1x128x128xf32> to vector<128x128xf32>
    %cst_250 = arith.constant dense<0.000000e+00> : vector<64x128xf32>
    %216 = tpu.matmul %213, %215, %cst_250 {dimension_numbers = #tpu.dot_dimension_numbers<[1], [0], [0], [1], [0, 0, 1, 1], [], []>} : vector<64x128xf32>, vector<128x128xf32>, vector<64x128xf32> -> vector<64x128xf32>
    %217 = arith.addf %211, %216 : vector<64x128xf32>
    %c1_251 = arith.constant 1 : index
    %c2_252 = arith.constant 2 : index
    %c0_253 = arith.constant 0 : index
    %218 = vector.load %arg9[%c1_251, %c2_252, %c0_253] : memref<10x10x128xf32, #tpu.memory_space<vmem>>, vector<8x8x128xf32>
    %219 = vector.shape_cast %218 : vector<8x8x128xf32> to vector<64x128xf32>
    %c2_254 = arith.constant 2 : index
    %c1_255 = arith.constant 1 : index
    %c2_256 = arith.constant 2 : index
    %c0_257 = arith.constant 0 : index
    %c0_258 = arith.constant 0 : index
    %220 = vector.load %arg3[%c2_254, %c1_255, %c2_256, %c0_257, %c0_258] : memref<3x3x3x128x128xf32, #tpu.memory_space<vmem>>, vector<1x1x1x128x128xf32>
    %221 = vector.shape_cast %220 : vector<1x1x1x128x128xf32> to vector<128x128xf32>
    %cst_259 = arith.constant dense<0.000000e+00> : vector<64x128xf32>
    %222 = tpu.matmul %219, %221, %cst_259 {dimension_numbers = #tpu.dot_dimension_numbers<[1], [0], [0], [1], [0, 0, 1, 1], [], []>} : vector<64x128xf32>, vector<128x128xf32>, vector<64x128xf32> -> vector<64x128xf32>
    %223 = arith.addf %217, %222 : vector<64x128xf32>
    %c2_260 = arith.constant 2 : index
    %c0_261 = arith.constant 0 : index
    %c0_262 = arith.constant 0 : index
    %224 = vector.load %arg9[%c2_260, %c0_261, %c0_262] : memref<10x10x128xf32, #tpu.memory_space<vmem>>, vector<8x8x128xf32>
    %225 = vector.shape_cast %224 : vector<8x8x128xf32> to vector<64x128xf32>
    %c2_263 = arith.constant 2 : index
    %c2_264 = arith.constant 2 : index
    %c0_265 = arith.constant 0 : index
    %c0_266 = arith.constant 0 : index
    %c0_267 = arith.constant 0 : index
    %226 = vector.load %arg3[%c2_263, %c2_264, %c0_265, %c0_266, %c0_267] : memref<3x3x3x128x128xf32, #tpu.memory_space<vmem>>, vector<1x1x1x128x128xf32>
    %227 = vector.shape_cast %226 : vector<1x1x1x128x128xf32> to vector<128x128xf32>
    %cst_268 = arith.constant dense<0.000000e+00> : vector<64x128xf32>
    %228 = tpu.matmul %225, %227, %cst_268 {dimension_numbers = #tpu.dot_dimension_numbers<[1], [0], [0], [1], [0, 0, 1, 1], [], []>} : vector<64x128xf32>, vector<128x128xf32>, vector<64x128xf32> -> vector<64x128xf32>
    %229 = arith.addf %223, %228 : vector<64x128xf32>
    %c2_269 = arith.constant 2 : index
    %c1_270 = arith.constant 1 : index
    %c0_271 = arith.constant 0 : index
    %230 = vector.load %arg9[%c2_269, %c1_270, %c0_271] : memref<10x10x128xf32, #tpu.memory_space<vmem>>, vector<8x8x128xf32>
    %231 = vector.shape_cast %230 : vector<8x8x128xf32> to vector<64x128xf32>
    %c2_272 = arith.constant 2 : index
    %c2_273 = arith.constant 2 : index
    %c1_274 = arith.constant 1 : index
    %c0_275 = arith.constant 0 : index
    %c0_276 = arith.constant 0 : index
    %232 = vector.load %arg3[%c2_272, %c2_273, %c1_274, %c0_275, %c0_276] : memref<3x3x3x128x128xf32, #tpu.memory_space<vmem>>, vector<1x1x1x128x128xf32>
    %233 = vector.shape_cast %232 : vector<1x1x1x128x128xf32> to vector<128x128xf32>
    %cst_277 = arith.constant dense<0.000000e+00> : vector<64x128xf32>
    %234 = tpu.matmul %231, %233, %cst_277 {dimension_numbers = #tpu.dot_dimension_numbers<[1], [0], [0], [1], [0, 0, 1, 1], [], []>} : vector<64x128xf32>, vector<128x128xf32>, vector<64x128xf32> -> vector<64x128xf32>
    %235 = arith.addf %229, %234 : vector<64x128xf32>
    %c2_278 = arith.constant 2 : index
    %c2_279 = arith.constant 2 : index
    %c0_280 = arith.constant 0 : index
    %236 = vector.load %arg9[%c2_278, %c2_279, %c0_280] : memref<10x10x128xf32, #tpu.memory_space<vmem>>, vector<8x8x128xf32>
    %237 = vector.shape_cast %236 : vector<8x8x128xf32> to vector<64x128xf32>
    %c2_281 = arith.constant 2 : index
    %c2_282 = arith.constant 2 : index
    %c2_283 = arith.constant 2 : index
    %c0_284 = arith.constant 0 : index
    %c0_285 = arith.constant 0 : index
    %238 = vector.load %arg3[%c2_281, %c2_282, %c2_283, %c0_284, %c0_285] : memref<3x3x3x128x128xf32, #tpu.memory_space<vmem>>, vector<1x1x1x128x128xf32>
    %239 = vector.shape_cast %238 : vector<1x1x1x128x128xf32> to vector<128x128xf32>
    %cst_286 = arith.constant dense<0.000000e+00> : vector<64x128xf32>
    %240 = tpu.matmul %237, %239, %cst_286 {dimension_numbers = #tpu.dot_dimension_numbers<[1], [0], [0], [1], [0, 0, 1, 1], [], []>} : vector<64x128xf32>, vector<128x128xf32>, vector<64x128xf32> -> vector<64x128xf32>
    %241 = arith.addf %235, %240 : vector<64x128xf32>
    %c0_287 = arith.constant 0 : index
    %c0_288 = arith.constant 0 : index
    %c0_289 = arith.constant 0 : index
    %c0_290 = arith.constant 0 : index
    %242 = vector.load %arg6[%c0_287, %c0_288, %c0_289, %c0_290] : memref<1x1x64x128xf32, #tpu.memory_space<vmem>>, vector<1x1x64x128xf32>
    %243 = vector.shape_cast %242 : vector<1x1x64x128xf32> to vector<64x128xf32>
    %244 = vector.shape_cast %241 : vector<64x128xf32> to vector<1x1x64x128xf32>
    tpu.vector_store %arg6[%c0_287, %c0_288, %c0_289, %c0_290], %244 {strides = array<i32>} : memref<1x1x64x128xf32, #tpu.memory_space<vmem>>, vector<1x1x64x128xf32>,
    %c0_291 = arith.constant 0 : index
    %c0_292 = arith.constant 0 : index
    %c0_293 = arith.constant 0 : index
    %245 = vector.load %arg7[%c0_291, %c0_292, %c0_293] : memref<1x1x128xf32, #tpu.memory_space<vmem>>, vector<1x1x128xf32>
    %cst_294 = arith.constant dense<0.000000e+00> : vector<128xf32>
    %246 = vector.multi_reduction <add>, %241, %cst_294 [0] : vector<64x128xf32> to vector<128xf32>
    %247 = vector.shape_cast %246 : vector<128xf32> to vector<1x1x128xf32>
    %248 = arith.addf %245, %247 : vector<1x1x128xf32>
    %c0_295 = arith.constant 0 : index
    %c0_296 = arith.constant 0 : index
    %c0_297 = arith.constant 0 : index
    %249 = vector.load %arg7[%c0_295, %c0_296, %c0_297] : memref<1x1x128xf32, #tpu.memory_space<vmem>>, vector<1x1x128xf32>
    tpu.vector_store %arg7[%c0_295, %c0_296, %c0_297], %248 {strides = array<i32>} : memref<1x1x128xf32, #tpu.memory_space<vmem>>, vector<1x1x128xf32>,
    %c0_298 = arith.constant 0 : index
    %c0_299 = arith.constant 0 : index
    %c0_300 = arith.constant 0 : index
    %250 = vector.load %arg8[%c0_298, %c0_299, %c0_300] : memref<1x1x128xf32, #tpu.memory_space<vmem>>, vector<1x1x128xf32>
    %251 = arith.mulf %241, %241 : vector<64x128xf32>
    %cst_301 = arith.constant dense<0.000000e+00> : vector<128xf32>
    %252 = vector.multi_reduction <add>, %251, %cst_301 [0] : vector<64x128xf32> to vector<128xf32>
    %253 = vector.shape_cast %252 : vector<128xf32> to vector<1x1x128xf32>
    %254 = arith.addf %250, %253 : vector<1x1x128xf32>
    %c0_302 = arith.constant 0 : index
    %c0_303 = arith.constant 0 : index
    %c0_304 = arith.constant 0 : index
    %255 = vector.load %arg8[%c0_302, %c0_303, %c0_304] : memref<1x1x128xf32, #tpu.memory_space<vmem>>, vector<1x1x128xf32>
    tpu.vector_store %arg8[%c0_302, %c0_303, %c0_304], %254 {strides = array<i32>} : memref<1x1x128xf32, #tpu.memory_space<vmem>>, vector<1x1x128xf32>,
    return
  }
  func.func @transform_0(%arg0: i32, %arg1: i32) -> (i32, i32, i32, i32, i32) {
    %c0_i32 = arith.constant 0 : i32
    %c0_i32_0 = arith.constant 0 : i32
    %c0_i32_1 = arith.constant 0 : i32
    %c0_i32_2 = arith.constant 0 : i32
    %c0_i32_3 = arith.constant 0 : i32
    return %arg0, %c0_i32, %c0_i32_0, %c0_i32_1, %c0_i32_2 : i32, i32, i32, i32, i32
  }
  func.func @transform_1(%arg0: i32, %arg1: i32) -> (i32, i32, i32, i32, i32) {
    %c0_i32 = arith.constant 0 : i32
    %c0_i32_0 = arith.constant 0 : i32
    %c0_i32_1 = arith.constant 0 : i32
    %c0_i32_2 = arith.constant 0 : i32
    %c0_i32_3 = arith.constant 0 : i32
    %c0_i32_4 = arith.constant 0 : i32
    return %c0_i32, %c0_i32_0, %c0_i32_1, %c0_i32_2, %c0_i32_3 : i32, i32, i32, i32, i32
  }
  func.func @transform_2(%arg0: i32, %arg1: i32) -> (i32, i32) {
    %c0_i32 = arith.constant 0 : i32
    %c0_i32_0 = arith.constant 0 : i32
    %c0_i32_1 = arith.constant 0 : i32
    return %c0_i32, %c0_i32_0 : i32, i32
  }
  func.func @transform_3(%arg0: i32, %arg1: i32) -> (i32, i32) {
    %c0_i32 = arith.constant 0 : i32
    %c0_i32_0 = arith.constant 0 : i32
    %c0_i32_1 = arith.constant 0 : i32
    return %c0_i32, %c0_i32_0 : i32, i32
  }
  func.func @transform_4(%arg0: i32, %arg1: i32) -> (i32, i32, i32, i32) {
    %c0_i32 = arith.constant 0 : i32
    %c0_i32_0 = arith.constant 0 : i32
    %c0_i32_1 = arith.constant 0 : i32
    return %arg0, %arg1, %c0_i32, %c0_i32_0 : i32, i32, i32, i32
  }
  func.func @transform_5(%arg0: i32, %arg1: i32) -> (i32, i32, i32) {
    %c0_i32 = arith.constant 0 : i32
    %c0_i32_0 = arith.constant 0 : i32
    %c0_i32_1 = arith.constant 0 : i32
    return %arg0, %c0_i32, %c0_i32_0 : i32, i32, i32
  }
  func.func @transform_6(%arg0: i32, %arg1: i32) -> (i32, i32, i32) {
    %c0_i32 = arith.constant 0 : i32
    %c0_i32_0 = arith.constant 0 : i32
    %c0_i32_1 = arith.constant 0 : i32
    return %arg0, %c0_i32, %c0_i32_0 : i32, i32, i32
  }
}

module attributes {stable_mosaic.version = 11 : i64} {
  func.func @_bn_relu_pool_kernel(%arg0: i32, %arg1: i32, %arg2: memref<1x1x2x4x2x4x2x128xf32, #tpu.memory_space<vmem>>, %arg3: memref<1x128xf32, #tpu.memory_space<vmem>>, %arg4: memref<1x128xf32, #tpu.memory_space<vmem>>, %arg5: memref<1x1x4x4x128xf32, #tpu.memory_space<vmem>>) attributes {dimension_semantics = [#tpu.dimension_semantics<parallel>, #tpu.dimension_semantics<parallel>], iteration_bounds = array<i64: 2, 4>, scalar_prefetch = 0 : i64, scratch_operands = 0 : i64, tpu.core_type = #tpu.core_type<tc>, window_params = [{transform_indices = @transform_0, window_bounds = array<i64: 1, 1, 2, 4, 2, 4, 2, 128>}, {pipeline_mode = #tpu.pipeline_mode<synchronous>, transform_indices = @transform_1, window_bounds = array<i64: 1, 128>}, {pipeline_mode = #tpu.pipeline_mode<synchronous>, transform_indices = @transform_2, window_bounds = array<i64: 1, 128>}, {transform_indices = @transform_3, window_bounds = array<i64: 1, 1, 4, 4, 128>}]} {
    %c0 = arith.constant 0 : index
    %c0_0 = arith.constant 0 : index
    %c0_1 = arith.constant 0 : index
    %c0_2 = arith.constant 0 : index
    %c0_3 = arith.constant 0 : index
    %c0_4 = arith.constant 0 : index
    %c0_5 = arith.constant 0 : index
    %c0_6 = arith.constant 0 : index
    %0 = vector.load %arg2[%c0, %c0_0, %c0_1, %c0_2, %c0_3, %c0_4, %c0_5, %c0_6] : memref<1x1x2x4x2x4x2x128xf32, #tpu.memory_space<vmem>>, vector<1x1x2x4x2x4x2x128xf32>
    %c0_7 = arith.constant 0 : index
    %c0_8 = arith.constant 0 : index
    %1 = vector.load %arg3[%c0_7, %c0_8] : memref<1x128xf32, #tpu.memory_space<vmem>>, vector<1x128xf32>
    %2 = vector.shape_cast %1 : vector<1x128xf32> to vector<1x1x1x1x1x1x1x128xf32>
    %3 = vector.broadcast %2 : vector<1x1x1x1x1x1x1x128xf32> to vector<1x1x2x4x2x4x2x128xf32>
    %4 = arith.mulf %0, %3 : vector<1x1x2x4x2x4x2x128xf32>
    %c0_9 = arith.constant 0 : index
    %c0_10 = arith.constant 0 : index
    %5 = vector.load %arg4[%c0_9, %c0_10] : memref<1x128xf32, #tpu.memory_space<vmem>>, vector<1x128xf32>
    %6 = vector.shape_cast %5 : vector<1x128xf32> to vector<1x1x1x1x1x1x1x128xf32>
    %7 = vector.broadcast %6 : vector<1x1x1x1x1x1x1x128xf32> to vector<1x1x2x4x2x4x2x128xf32>
    %8 = arith.addf %4, %7 : vector<1x1x2x4x2x4x2x128xf32>
    %cst = arith.constant 0.000000e+00 : f32
    %9 = vector.broadcast %cst : f32 to vector<1x1x2x4x2x4x2x128xf32>
    %10 = arith.maximumf %8, %9 : vector<1x1x2x4x2x4x2x128xf32>
    %11 = vector.extract_strided_slice %10 {offsets = [0, 0, 0, 0, 0, 0, 0, 0], sizes = [1, 1, 1, 4, 2, 4, 2, 128], strides = [1, 1, 1, 1, 1, 1, 1, 1]} : vector<1x1x2x4x2x4x2x128xf32> to vector<1x1x1x4x2x4x2x128xf32>
    %12 = vector.shape_cast %11 : vector<1x1x1x4x2x4x2x128xf32> to vector<1x1x4x2x4x2x128xf32>
    %13 = vector.extract_strided_slice %10 {offsets = [0, 0, 1, 0, 0, 0, 0, 0], sizes = [1, 1, 1, 4, 2, 4, 2, 128], strides = [1, 1, 1, 1, 1, 1, 1, 1]} : vector<1x1x2x4x2x4x2x128xf32> to vector<1x1x1x4x2x4x2x128xf32>
    %14 = vector.shape_cast %13 : vector<1x1x1x4x2x4x2x128xf32> to vector<1x1x4x2x4x2x128xf32>
    %15 = arith.maximumf %12, %14 : vector<1x1x4x2x4x2x128xf32>
    %16 = vector.extract_strided_slice %15 {offsets = [0, 0, 0, 0, 0, 0, 0], sizes = [1, 1, 4, 1, 4, 2, 128], strides = [1, 1, 1, 1, 1, 1, 1]} : vector<1x1x4x2x4x2x128xf32> to vector<1x1x4x1x4x2x128xf32>
    %17 = vector.shape_cast %16 : vector<1x1x4x1x4x2x128xf32> to vector<1x1x4x4x2x128xf32>
    %18 = vector.extract_strided_slice %15 {offsets = [0, 0, 0, 1, 0, 0, 0], sizes = [1, 1, 4, 1, 4, 2, 128], strides = [1, 1, 1, 1, 1, 1, 1]} : vector<1x1x4x2x4x2x128xf32> to vector<1x1x4x1x4x2x128xf32>
    %19 = vector.shape_cast %18 : vector<1x1x4x1x4x2x128xf32> to vector<1x1x4x4x2x128xf32>
    %20 = arith.maximumf %17, %19 : vector<1x1x4x4x2x128xf32>
    %cst_11 = arith.constant dense<0xFF800000> : vector<1x1x4x4x128xf32>
    %21 = vector.multi_reduction <maximumf>, %20, %cst_11 [4] : vector<1x1x4x4x2x128xf32> to vector<1x1x4x4x128xf32>
    %c0_12 = arith.constant 0 : index
    %c0_13 = arith.constant 0 : index
    %c0_14 = arith.constant 0 : index
    %c0_15 = arith.constant 0 : index
    %c0_16 = arith.constant 0 : index
    %22 = vector.load %arg5[%c0_12, %c0_13, %c0_14, %c0_15, %c0_16] : memref<1x1x4x4x128xf32, #tpu.memory_space<vmem>>, vector<1x1x4x4x128xf32>
    tpu.vector_store %arg5[%c0_12, %c0_13, %c0_14, %c0_15, %c0_16], %21 {strides = array<i32>} : memref<1x1x4x4x128xf32, #tpu.memory_space<vmem>>, vector<1x1x4x4x128xf32>,
    return
  }
  func.func @transform_0(%arg0: i32, %arg1: i32) -> (i32, i32, i32, i32, i32, i32, i32, i32) {
    %c0_i32 = arith.constant 0 : i32
    %c0_i32_0 = arith.constant 0 : i32
    %c0_i32_1 = arith.constant 0 : i32
    %c0_i32_2 = arith.constant 0 : i32
    %c0_i32_3 = arith.constant 0 : i32
    %c0_i32_4 = arith.constant 0 : i32
    %c0_i32_5 = arith.constant 0 : i32
    return %arg0, %arg1, %c0_i32, %c0_i32_0, %c0_i32_1, %c0_i32_2, %c0_i32_3, %c0_i32_4 : i32, i32, i32, i32, i32, i32, i32, i32
  }
  func.func @transform_1(%arg0: i32, %arg1: i32) -> (i32, i32) {
    %c0_i32 = arith.constant 0 : i32
    %c0_i32_0 = arith.constant 0 : i32
    %c0_i32_1 = arith.constant 0 : i32
    return %c0_i32, %c0_i32_0 : i32, i32
  }
  func.func @transform_2(%arg0: i32, %arg1: i32) -> (i32, i32) {
    %c0_i32 = arith.constant 0 : i32
    %c0_i32_0 = arith.constant 0 : i32
    %c0_i32_1 = arith.constant 0 : i32
    return %c0_i32, %c0_i32_0 : i32, i32
  }
  func.func @transform_3(%arg0: i32, %arg1: i32) -> (i32, i32, i32, i32, i32) {
    %c0_i32 = arith.constant 0 : i32
    %c0_i32_0 = arith.constant 0 : i32
    %c0_i32_1 = arith.constant 0 : i32
    %c0_i32_2 = arith.constant 0 : i32
    return %arg0, %arg1, %c0_i32, %c0_i32_0, %c0_i32_1 : i32, i32, i32, i32, i32
  }
}

</mosaic_0001>

<bundles_post_ra>
// kernel: downscaling_block.5
= control target key start
LH: loop header
LB: loop body
LE: loop exit
PB: predicated region body
PF: predicated region fallthrough
CT: control target
= control target key end

     0   :  { %s887_s12 = smov 0   ;;  %s889_s13 = smov 0   ;;  %s1629_s0 = inlined_call_operand.vmem [shape: f32[2,4,2,4,2,4,2,128], index: 0, kind: input, shape index: {}]   ;;  %s1630_s1 = inlined_call_operand.vmem [shape: f32[1,128], index: 1, kind: input, shape index: {}]   ;;  %s1631_s2 = inlined_call_operand.vmem [shape: f32[1,128], index: 2, kind: input, shape index: {}]   ;;  %s1632_s3 = inlined_call_operand.vmem [shape: f32[2,4,4,4,128], index: 3, kind: output, shape index: {}]  }
   0x1   :  { %s891_s14 = smov 0   ;;  %s893_s15 = smov 0  }
   0x2   :  { %s895_s16 = smov 0  }
   0x3 LB: > { %s22_s17 = sadd.s32 1, %s857_s14  ;;  %s25_s18 = sadd.s32 1, %s861_s15  ;;  %s865_s16 = sphi %s895_s16, %s13_s16   ;;  %s861_s15 = sphi %s893_s15, %s1763_s15   ;;  %s857_s14 = sphi %s891_s14, %s1762_s14   ;;  %s853_s13 = sphi %s889_s13, %s1761_s13   ;;  %s849_s12 = sphi %s887_s12, %s1760_s12  }
   0x4   : > { %p23_p0 = scmp.ge.s32.totalorder %s22_s17, 4  ;;  %p776_p1 = scmp.ge.s32.totalorder %s865_s16, 1 }
   0x5   : > { %p157_p2 = scmp.lt.s32.totalorder %s865_s16, 9 }
   0x6   : > { %s1765_s17 = smov (%p23_p0, %s22_s17), 0  ;;  %s1767_s18 = smov (!%p23_p0, %s25_s18), %s861_s15 }
   0x7   : > { %p158_p3 = pnand %p776_p1, %p157_p2  ;;  %p27_p4 = scmp.ge.s32.totalorder %s1767_s18, 2 }
   0x9   : > { %s1769_s18 = smov (%p27_p4, %s1767_s18), 0  ;;  %161 = sbr.rel (%p158_p3) target bundleno = 123 (0x7b), region = 32 }
  0x10   : > { %p189_p5 = scmp.lt.s32.totalorder %s853_s13, 1  ;;  %p191_p6 = scmp.lt.s32.totalorder %s849_s12, 3  ;;  %v926_v0 = vld [vmem:[%s1630_s1] ss:$0 sm:$0xff]  ;;  %vm525_vm0 = vcmask 1041408   ;;  %vm654_vm1 = vcmask 1041409  }
  0x11   : > { %v936_v1 = vld [vmem:[%s1631_s2] ss:$0 sm:$0xff]  ;;  %vm656_vm2 = vcmask 1042434   ;;  %vm658_vm3 = vcmask 1043459  }
  0x12   : > { %s1771_s13 = smov (!%p189_p5, %s853_s13), 1  ;;  %s1773_s12 = smov (!%p191_p6, %s849_s12), 3 }
  0x13   : > { %s778_s19 = sshll.u32 %s1771_s13, 8  ;;  %s777_s20 = sshll.u32 %s1773_s12, 6 }
  0x14   : > { %s195_s21 = sadd.s32 %s778_s19, %s777_s20  ;;  %s780_s30 = sshll.u32 %s1773_s12, 2 }
  0x15   : > { %s779_s22 = sshll.u32 %s195_s21, 1  ;;  %s781_s4 = sshll.u32 %s1771_s13, 4 }
  0x16   : > { %s931_s27 = scalar_lea.vmem %s1629_s0, %s779_s22  ;;  %s204_s5 = sadd.s32 %s781_s4, %s780_s30 }
  0x17   : > { %v207_v2 = vld [vmem:[%s931_s27] sm:$0x3]  ;;  %v208_v3 = vld [vmem:[%s931_s27 + $0x2] sm:$0x3]  ;;  %v209_v4 = vld [vmem:[%s931_s27 + $0x4] sm:$0x3] }
  0x18   : > { %v210_v5 = vld [vmem:[%s931_s27 + $0x6] sm:$0x3]  ;;  %v211_v6 = vld [vmem:[%s931_s27 + $0x8] sm:$0x3]  ;;  %v212_v7 = vld [vmem:[%s931_s27 + $0xa] sm:$0x3]  ;;  %v278_v8 = vmul.f32 %v926_v0, %v207_v2  ;;  %v279_v9 = vmul.f32 %v926_v0, %v208_v3  ;;  %v280_v10 = vmul.f32 %v926_v0, %v209_v4 }
  0x19   : > { %v213_v11 = vld [vmem:[%s931_s27 + $0xc] sm:$0x3]  ;;  %v214_v12 = vld [vmem:[%s931_s27 + $0xe] sm:$0x3]  ;;  %v215_v13 = vld [vmem:[%s931_s27 + $0x10] sm:$0x3]  ;;  %v281_v14 = vmul.f32 %v926_v0, %v210_v5  ;;  %v282_v15 = vmul.f32 %v926_v0, %v211_v6  ;;  %v283_v16 = vmul.f32 %v926_v0, %v212_v7 }
  0x1a   : > { %v216_v17 = vld [vmem:[%s931_s27 + $0x12] sm:$0x3]  ;;  %v217_v18 = vld [vmem:[%s931_s27 + $0x14] sm:$0x3]  ;;  %v218_v19 = vld [vmem:[%s931_s27 + $0x16] sm:$0x3]  ;;  %v284_v20 = vmul.f32 %v926_v0, %v213_v11  ;;  %v285_v21 = vmul.f32 %v926_v0, %v214_v12  ;;  %v286_v22 = vmul.f32 %v926_v0, %v215_v13  ;;  %v960_v23 = vadd.f32 %v936_v1, %v278_v8 }
  0x1b   : > { %v219_v24 = vld [vmem:[%s931_s27 + $0x18] sm:$0x3]  ;;  %v220_v25 = vld [vmem:[%s931_s27 + $0x1a] sm:$0x3]  ;;  %v221_v26 = vld [vmem:[%s931_s27 + $0x1c] sm:$0x3]  ;;  %v287_v27 = vmul.f32 %v926_v0, %v216_v17  ;;  %v967_v28 = vmul.f32 %v926_v0, %v217_v18  ;;  %v970_v29 = vmul.f32 %v926_v0, %v218_v19  ;;  %v973_v30 = vadd.f32 %v936_v1, %v279_v9 }
  0x1c   : > { %1662 = vst [vmem:[#allocation2_spill] sm:$0xff] %v960_v23  ;;  %v222_v31 = vld [vmem:[%s931_s27 + $0x1e] sm:$0x3]  ;;  %v223_v32 = vld [vmem:[%s931_s27 + $0x20] sm:$0x3]  ;;  %v979_v34 = vmul.f32 %v926_v0, %v219_v24  ;;  %v982_v35 = vmul.f32 %v926_v0, %v220_v25  ;;  %v985_v36 = vmul.f32 %v926_v0, %v221_v26  ;;  %v988_v37 = vadd.f32 %v936_v1, %v280_v10  ;;  %s782_s6 = sshll.u32 %s204_s5, 2 }
  0x1d   : > { %1663 = vst [vmem:[#allocation3_spill] sm:$0xff] %v973_v30  ;;  %v224_v33 = vld [vmem:[%s931_s27 + $0x22] sm:$0x3]  ;;  %v225_v38 = vld [vmem:[%s931_s27 + $0x24] sm:$0x3]  ;;  %v994_v41 = vmul.f32 %v926_v0, %v222_v31  ;;  %v997_v42 = vmul.f32 %v926_v0, %v223_v32  ;;  %v1003_v44 = vadd.f32 %v936_v1, %v281_v14  ;;  %v1018_v51 = vadd.f32 %v936_v1, %v282_v15  ;;  %s206_s9 = scalar_lea.vmem %s1632_s3, %s782_s6 }
  0x1e   : > { %1664 = vst [vmem:[#allocation4_spill] sm:$0xff] %v988_v37  ;;  %v226_v39 = vld [vmem:[%s931_s27 + $0x26] sm:$0x3]  ;;  %v227_v40 = vld [vmem:[%s931_s27 + $0x28] sm:$0x3]  ;;  %v1000_v43 = vmul.f32 %v926_v0, %v224_v33  ;;  %v1009_v48 = vmul.f32 %v926_v0, %v225_v38  ;;  %v1033_v58 = vadd.f32 %v936_v1, %v283_v16  ;;  %v1048_v3 = vadd.f32 %v936_v1, %v284_v20 }
  0x1f   : > { %1665 = vst [vmem:[#allocation5_spill] sm:$0xff] %v1003_v44  ;;  %v228_v45 = vld [vmem:[%s931_s27 + $0x2a] sm:$0x3]  ;;  %v229_v46 = vld [vmem:[%s931_s27 + $0x2c] sm:$0x3]  ;;  %v1012_v49 = vmul.f32 %v926_v0, %v226_v39  ;;  %v1015_v50 = vmul.f32 %v926_v0, %v227_v40  ;;  %1666 = vst [vmem:[#allocation6_spill] sm:$0xff] %v1018_v51  ;;  %v1063_v10 = vadd.f32 %v936_v1, %v285_v21 }
  0x20   : > { %v230_v47 = vld [vmem:[%s931_s27 + $0x2e] sm:$0x3]  ;;  %v231_v52 = vld [vmem:[%s931_s27 + $0x30] sm:$0x3]  ;;  %v232_v53 = vld [vmem:[%s931_s27 + $0x32] sm:$0x3]  ;;  %v1024_v55 = vmul.f32 %v926_v0, %v228_v45  ;;  %v1027_v56 = vmul.f32 %v926_v0, %v229_v46  ;;  %v1078_v17 = vadd.f32 %v936_v1, %v286_v22  ;;  %v1093_v26 = vadd.f32 %v936_v1, %v287_v27 }
  0x21   : > { %v233_v54 = vld [vmem:[%s931_s27 + $0x34] sm:$0x3]  ;;  %v1030_v57 = vmul.f32 %v926_v0, %v230_v47  ;;  %1667 = vst [vmem:[#allocation7_spill] sm:$0xff] %v1033_v58  ;;  %v234_v59 = vld [vmem:[%s931_s27 + $0x36] sm:$0x3]  ;;  %v1039_v62 = vmul.f32 %v926_v0, %v231_v52  ;;  %v1042_v63 = vmul.f32 %v926_v0, %v232_v53  ;;  %1668 = vst [vmem:[#allocation8_spill] sm:$0xff] %v1063_v10 }
  0x22   : > { %v235_v60 = vld [vmem:[%s931_s27 + $0x38] sm:$0x3]  ;;  %v236_v61 = vld [vmem:[%s931_s27 + $0x3a] sm:$0x3]  ;;  %v1045_v2 = vmul.f32 %v926_v0, %v233_v54  ;;  %v237_v4 = vld [vmem:[%s931_s27 + $0x3c] sm:$0x3]  ;;  %v1054_v7 = vmul.f32 %v926_v0, %v234_v59  ;;  %v1109_v40 = vadd.f32 %v936_v1, %v967_v28  ;;  %v1125_v54 = vadd.f32 %v936_v1, %v970_v29 }
  0x23   : > { %v238_v5 = vld [vmem:[%s931_s27 + $0x3e] sm:$0x3]  ;;  %v239_v6 = vld [vmem:[%s931_s27 + $0x40] sm:$0x3]  ;;  %v1057_v8 = vmul.f32 %v926_v0, %v235_v60  ;;  %v1060_v9 = vmul.f32 %v926_v0, %v236_v61  ;;  %v240_v11 = vld [vmem:[%s931_s27 + $0x42] sm:$0x3]  ;;  %v1069_v14 = vmul.f32 %v926_v0, %v237_v4 }
  0x24   : > { %v241_v12 = vld [vmem:[%s931_s27 + $0x44] sm:$0x3]  ;;  %v242_v13 = vld [vmem:[%s931_s27 + $0x46] sm:$0x3]  ;;  %v1072_v15 = vmul.f32 %v926_v0, %v238_v5  ;;  %v1075_v16 = vmul.f32 %v926_v0, %v239_v6  ;;  %1669 = vst [vmem:[#allocation9_spill] sm:$0xff] %v1078_v17  ;;  %v1084_v21 = vmul.f32 %v926_v0, %v240_v11  ;;  %1670 = vst [vmem:[#allocation10_spill] sm:$0xff] %v1093_v26 }
  0x25   : > { %v243_v18 = vld [vmem:[%s931_s27 + $0x48] sm:$0x3]  ;;  %v244_v19 = vld [vmem:[%s931_s27 + $0x4a] sm:$0x3]  ;;  %v245_v20 = vld [vmem:[%s931_s27 + $0x4c] sm:$0x3]  ;;  %v1087_v24 = vmul.f32 %v926_v0, %v241_v12  ;;  %v1090_v25 = vmul.f32 %v926_v0, %v242_v13  ;;  %v1141_v6 = vadd.f32 %v936_v1, %v979_v34 }
  0x26   : > { %v246_v22 = vld [vmem:[%s931_s27 + $0x4e] sm:$0x3]  ;;  %v247_v31 = vld [vmem:[%s931_s27 + $0x50] sm:$0x3]  ;;  %v248_v32 = vld [vmem:[%s931_s27 + $0x52] sm:$0x3]  ;;  %v1099_v33 = vmul.f32 %v926_v0, %v243_v18  ;;  %v1102_v38 = vmul.f32 %v926_v0, %v244_v19  ;;  %v1105_v39 = vmul.f32 %v926_v0, %v245_v20  ;;  %v1157_v20 = vadd.f32 %v936_v1, %v982_v35 }
  0x27   : > { %1671 = vst [vmem:[#allocation11_spill] sm:$0xff] %v1109_v40  ;;  %v249_v27 = vld [vmem:[%s931_s27 + $0x54] sm:$0x3]  ;;  %v250_v45 = vld [vmem:[%s931_s27 + $0x56] sm:$0x3]  ;;  %v1115_v47 = vmul.f32 %v926_v0, %v246_v22  ;;  %v1118_v52 = vmul.f32 %v926_v0, %v247_v31  ;;  %v1121_v53 = vmul.f32 %v926_v0, %v248_v32  ;;  %1672 = vst [vmem:[#allocation12_spill] sm:$0xff] %v1125_v54 }
  0x28   : > { %v251_v46 = vld [vmem:[%s931_s27 + $0x58] sm:$0x3]  ;;  %v252_v28 = vld [vmem:[%s931_s27 + $0x5a] sm:$0x3]  ;;  %v253_v59 = vld [vmem:[%s931_s27 + $0x5c] sm:$0x3]  ;;  %v1131_v61 = vmul.f32 %v926_v0, %v249_v27  ;;  %v1134_v4 = vmul.f32 %v926_v0, %v250_v45 }
  0x29   : > { %v254_v60 = vld [vmem:[%s931_s27 + $0x5e] sm:$0x3]  ;;  %v1137_v5 = vmul.f32 %v926_v0, %v251_v46  ;;  %1673 = vst [vmem:[#allocation13_spill] sm:$0xff] %v1141_v6  ;;  %v255_v29 = vld [vmem:[%s931_s27 + $0x60] sm:$0x3]  ;;  %v1147_v13 = vmul.f32 %v926_v0, %v252_v28  ;;  %v1150_v18 = vmul.f32 %v926_v0, %v253_v59  ;;  %1674 = vst [vmem:[#allocation14_spill] sm:$0xff] %v1157_v20 }
  0x2a   : > { %v256_v11 = vld [vmem:[%s931_s27 + $0x62] sm:$0x3]  ;;  %v257_v12 = vld [vmem:[%s931_s27 + $0x64] sm:$0x3]  ;;  %v1153_v19 = vmul.f32 %v926_v0, %v254_v60  ;;  %v258_v34 = vld [vmem:[%s931_s27 + $0x66] sm:$0x3]  ;;  %v326_v32 = vmul.f32 %v926_v0, %v255_v29  ;;  %v1167_v46 = vadd.f32 %v936_v1, %v985_v36 }
  0x2b   : > { %v259_v22 = vld [vmem:[%s931_s27 + $0x68] sm:$0x3]  ;;  %v260_v31 = vld [vmem:[%s931_s27 + $0x6a] sm:$0x3]  ;;  %v327_v27 = vmul.f32 %v926_v0, %v256_v11  ;;  %v328_v45 = vmul.f32 %v926_v0, %v257_v12  ;;  %v261_v28 = vld [vmem:[%s931_s27 + $0x6c] sm:$0x3]  ;;  %v329_v60 = vmul.f32 %v926_v0, %v258_v34  ;;  %v1177_v11 = vadd.f32 %v936_v1, %v994_v41 }
  0x2c   : > { %1675 = vst [vmem:[#allocation15_spill] sm:$0xff] %v1167_v46  ;;  %v262_v35 = vld [vmem:[%s931_s27 + $0x6e] sm:$0x3]  ;;  %v263_v59 = vld [vmem:[%s931_s27 + $0x70] sm:$0x3]  ;;  %v330_v20 = vmul.f32 %v926_v0, %v259_v22  ;;  %v331_v29 = vmul.f32 %v926_v0, %v260_v31  ;;  %v332_v46 = vmul.f32 %v926_v0, %v261_v28  ;;  %v1187_v34 = vadd.f32 %v936_v1, %v997_v42 }
  0x2d   : > { %1676 = vst [vmem:[#allocation16_spill] sm:$0xff] %v1177_v11  ;;  %v264_v12 = vld [vmem:[%s931_s27 + $0x72] sm:$0x3]  ;;  %v265_v6 = vld [vmem:[%s931_s27 + $0x74] sm:$0x3]  ;;  %v333_v54 = vmul.f32 %v926_v0, %v262_v35  ;;  %v334_v40 = vmul.f32 %v926_v0, %v263_v59  ;;  %v1197_v28 = vadd.f32 %v936_v1, %v1000_v43  ;;  %v1214_v43 = vadd.f32 %v936_v1, %v1015_v50 }
  0x2e   : > { %v266_v36 = vld [vmem:[%s931_s27 + $0x76] sm:$0x3]  ;;  %1677 = vst [vmem:[#allocation17_spill] sm:$0xff] %v1187_v34  ;;  %v267_v22 = vld [vmem:[%s931_s27 + $0x78] sm:$0x3]  ;;  %v335_v17 = vmul.f32 %v926_v0, %v264_v12  ;;  %v336_v41 = vmul.f32 %v926_v0, %v265_v6  ;;  %v1205_v34 = vadd.f32 %v936_v1, %v1009_v48  ;;  %v1210_v6 = vadd.f32 %v936_v1, %v1012_v49 }
  0x2f   : > { %v268_v31 = vld [vmem:[%s931_s27 + $0x7a] sm:$0x3]  ;;  %v269_v26 = vld [vmem:[%s931_s27 + $0x7c] sm:$0x3]  ;;  %v337_v11 = vmul.f32 %v926_v0, %v266_v36  ;;  %v270_v35 = vld [vmem:[%s931_s27 + $0x7e] sm:$0x3]  ;;  %v338_v59 = vmul.f32 %v926_v0, %v267_v22  ;;  %v1218_v36 = vadd.f32 %v936_v1, %v1024_v55  ;;  %v1226_v48 = vadd.f32 %v936_v1, %v1030_v57 }
  0x30   : > { %v339_v10 = vmul.f32 %v926_v0, %v268_v31  ;;  %v340_v42 = vmul.f32 %v926_v0, %v269_v26  ;;  %v341_v12 = vmul.f32 %v926_v0, %v270_v35  ;;  %1678 = vst [vmem:[#allocation18_spill] sm:$0xff] %v1210_v6  ;;  %1679 = vst [vmem:[#allocation19_spill] sm:$0xff] %v1214_v43  ;;  %v1699_v23 = vld [vmem:[#allocation12_spill] sm:$0xff]  ;;  %v1700_v30 = vld [vmem:[#allocation13_spill] sm:$0xff] }
  0x31   : > { %1680 = vst [vmem:[#allocation20_spill] sm:$0xff] %v1218_v36  ;;  %v1222_v26 = vadd.f32 %v936_v1, %v1027_v56  ;;  %1682 = vst [vmem:[#allocation22_spill] sm:$0xff] %v1226_v48  ;;  %v1230_v0 = vadd.f32 %v936_v1, %v1039_v62  ;;  %v1234_v49 = vadd.f32 %v936_v1, %v1042_v63  ;;  %v1701_v37 = vld [vmem:[#allocation14_spill] sm:$0xff] }
  0x32   : > { %v1238_v50 = vadd.f32 %v936_v1, %v1045_v2  ;;  %v1242_v55 = vadd.f32 %v936_v1, %v1054_v7  ;;  %v1246_v56 = vadd.f32 %v936_v1, %v1057_v8  ;;  %v1250_v57 = vadd.f32 %v936_v1, %v1060_v9  ;;  %v1717_v36 = vld [vmem:[#allocation6_spill] sm:$0xff] }
  0x33   : > { %1681 = vst [vmem:[#allocation21_spill] sm:$0xff] %v1222_v26  ;;  %1683 = vst [vmem:[#allocation23_spill] sm:$0xff] %v1230_v0  ;;  %v1254_v62 = vadd.f32 %v936_v1, %v1069_v14  ;;  %v1258_v63 = vadd.f32 %v936_v1, %v1072_v15  ;;  %v1262_v2 = vadd.f32 %v936_v1, %v1075_v16  ;;  %v1702_v44 = vld [vmem:[#allocation15_spill] sm:$0xff]  ;;  %v1713_v0 = vld [vmem:[#allocation4_spill] sm:$0xff] }
  0x34   : > { %1684 = vst [vmem:[#allocation24_spill] sm:$0xff] %v1234_v49  ;;  %1685 = vst [vmem:[#allocation25_spill] sm:$0xff] %v1238_v50  ;;  %v1266_v7 = vadd.f32 %v936_v1, %v1084_v21  ;;  %v1270_v8 = vadd.f32 %v936_v1, %v1087_v24  ;;  %v1274_v9 = vadd.f32 %v936_v1, %v1090_v25  ;;  %v1703_v51 = vld [vmem:[#allocation16_spill] sm:$0xff] }
  0x35   : > { %1686 = vst [vmem:[#allocation26_spill] sm:$0xff] %v1242_v55  ;;  %1687 = vst [vmem:[#allocation27_spill] sm:$0xff] %v1246_v56  ;;  %v1278_v14 = vadd.f32 %v936_v1, %v1099_v33  ;;  %v1282_v15 = vadd.f32 %v936_v1, %v1102_v38  ;;  %v1286_v16 = vadd.f32 %v936_v1, %v1105_v39  ;;  %v1704_v58 = vld [vmem:[#allocation17_spill] sm:$0xff]  ;;  %v1709_v55 = vld [vmem:[#allocation2_spill] sm:$0xff] }
  0x36   : > { %1688 = vst [vmem:[#allocation28_spill] sm:$0xff] %v1250_v57  ;;  %1689 = vst [vmem:[#allocation29_spill] sm:$0xff] %v1254_v62  ;;  %v1290_v21 = vadd.f32 %v936_v1, %v1115_v47  ;;  %v1294_v24 = vadd.f32 %v936_v1, %v1118_v52  ;;  %v1298_v25 = vadd.f32 %v936_v1, %v1121_v53  ;;  %v447_v35 = vmax.f32 %v1270_v8, 0.0 }
  0x37   : > { %1690 = vst [vmem:[#allocation30_spill] sm:$0xff] %v1258_v63  ;;  %v1302_v33 = vadd.f32 %v936_v1, %v1131_v61  ;;  %v1306_v38 = vadd.f32 %v936_v1, %v1134_v4  ;;  %v1310_v39 = vadd.f32 %v936_v1, %v1137_v5  ;;  %v1314_v47 = vadd.f32 %v936_v1, %v1147_v13 }
  0x38   : > { %v1318_v52 = vadd.f32 %v936_v1, %v1150_v18  ;;  %v1322_v53 = vadd.f32 %v936_v1, %v1153_v19  ;;  %v1325_v61 = vadd.f32 %v936_v1, %v326_v32  ;;  %v1328_v4 = vadd.f32 %v936_v1, %v327_v27 }
  0x39   : > { %v1331_v5 = vadd.f32 %v936_v1, %v328_v45  ;;  %v1334_v13 = vadd.f32 %v936_v1, %v329_v60  ;;  %v1337_v22 = vadd.f32 %v936_v1, %v330_v20  ;;  %v1340_v18 = vadd.f32 %v936_v1, %v331_v29 }
  0x3a   : > { %v1343_v19 = vadd.f32 %v936_v1, %v332_v46  ;;  %v1346_v32 = vadd.f32 %v936_v1, %v333_v54  ;;  %v1349_v27 = vadd.f32 %v936_v1, %v334_v40  ;;  %v1352_v45 = vadd.f32 %v936_v1, %v335_v17 }
  0x3b   : > { %v1355_v60 = vadd.f32 %v936_v1, %v336_v41  ;;  %v1358_v20 = vadd.f32 %v936_v1, %v337_v11  ;;  %v1361_v29 = vadd.f32 %v936_v1, %v338_v59  ;;  %v1364_v46 = vadd.f32 %v936_v1, %v339_v10 }
  0x3c   : > { %v1367_v54 = vadd.f32 %v936_v1, %v340_v42  ;;  %v1370_v40 = vadd.f32 %v936_v1, %v341_v12  ;;  %v1697_v1 = vld [vmem:[#allocation10_spill] sm:$0xff]  ;;  %v445_v41 = vmax.f32 %v1262_v2, 0.0  ;;  %v446_v11 = vmax.f32 %v1266_v7, 0.0 }
  0x3d   : > { %1691 = vst [vmem:[#allocation31_spill] sm:$0xff] %v1361_v29  ;;  %1692 = vst [vmem:[#allocation32_spill] sm:$0xff] %v1364_v46  ;;  %v1695_v46 = vld [vmem:[#allocation8_spill] sm:$0xff]  ;;  %v448_v59 = vmax.f32 %v1274_v9, 0.0  ;;  %v449_v10 = vmax.f32 %v1278_v14, 0.0  ;;  %v450_v42 = vmax.f32 %v1282_v15, 0.0 }
  0x3e   : > { %1693 = vst [vmem:[#allocation33_spill] sm:$0xff] %v1367_v54  ;;  %1694 = vst [vmem:[#allocation34_spill] sm:$0xff] %v1370_v40  ;;  %v1696_v54 = vld [vmem:[#allocation9_spill] sm:$0xff]  ;;  %v1698_v40 = vld [vmem:[#allocation11_spill] sm:$0xff]  ;;  %v451_v29 = vmax.f32 %v1286_v16, 0.0  ;;  %v452_v12 = vmax.f32 %v1290_v21, 0.0 }
  0x3f   : > { %v453_v17 = vmax.f32 %v1294_v24, 0.0  ;;  %v454_v31 = vmax.f32 %v1298_v25, 0.0  ;;  %v455_v2 = vmax.f32 %v1302_v33, 0.0  ;;  %v456_v7 = vmax.f32 %v1306_v38, 0.0 }
  0x40   : > { %v457_v8 = vmax.f32 %v1310_v39, 0.0  ;;  %v458_v9 = vmax.f32 %v1314_v47, 0.0  ;;  %v459_v14 = vmax.f32 %v1318_v52, 0.0  ;;  %v460_v15 = vmax.f32 %v1322_v53, 0.0 }
  0x41   : > { %v461_v16 = vmax.f32 %v1325_v61, 0.0  ;;  %v462_v21 = vmax.f32 %v1328_v4, 0.0  ;;  %v463_v24 = vmax.f32 %v1331_v5, 0.0  ;;  %v464_v25 = vmax.f32 %v1334_v13, 0.0 }
  0x42   : > { %v465_v33 = vmax.f32 %v1337_v22, 0.0  ;;  %v466_v38 = vmax.f32 %v1340_v18, 0.0  ;;  %v467_v39 = vmax.f32 %v1343_v19, 0.0  ;;  %v468_v47 = vmax.f32 %v1346_v32, 0.0  ;;  %v1711_v32 = vld [vmem:[#allocation3_spill] sm:$0xff] }
  0x43   : > { %v469_v52 = vmax.f32 %v1349_v27, 0.0  ;;  %v470_v53 = vmax.f32 %v1352_v45, 0.0  ;;  %v471_v61 = vmax.f32 %v1355_v60, 0.0  ;;  %v472_v4 = vmax.f32 %v1358_v20, 0.0  ;;  %v1715_v60 = vld [vmem:[#allocation5_spill] sm:$0xff] }
  0x44   : > { %v1705_v63 = vld [vmem:[#allocation31_spill] sm:$0xff]  ;;  %v1706_v62 = vld [vmem:[#allocation32_spill] sm:$0xff]  ;;  %v1710_v19 = vmax.f32 %v1709_v55, 0.0  ;;  %v1712_v49 = vmax.f32 %v1711_v32, 0.0  ;;  %v1714_v45 = vmax.f32 %v1713_v0, 0.0  ;;  %v1716_v26 = vmax.f32 %v1715_v60, 0.0 }
  0x45   : > { %v473_v5 = vmax.f32 %v1705_v63, 0.0  ;;  %v474_v13 = vmax.f32 %v1706_v62, 0.0  ;;  %v1707_v57 = vld [vmem:[#allocation33_spill] sm:$0xff]  ;;  %v1708_v56 = vld [vmem:[#allocation34_spill] sm:$0xff]  ;;  %v1718_v63 = vmax.f32 %v1717_v36, 0.0  ;;  %v1719_v62 = vld [vmem:[#allocation7_spill] sm:$0xff] }
  0x46   : > { %v475_v22 = vmax.f32 %v1707_v57, 0.0  ;;  %v476_v18 = vmax.f32 %v1708_v56, 0.0  ;;  %v477_v50 = vmax.f32 %v1710_v19, %v445_v41  ;;  %v478_v27 = vmax.f32 %v1712_v49, %v446_v11  ;;  %v1742_v32 = vld [vmem:[#allocation22_spill] sm:$0xff] }
  0x47   : > { %v479_v48 = vmax.f32 %v1714_v45, %v447_v35  ;;  %v480_v20 = vmax.f32 %v1716_v26, %v448_v59  ;;  %v481_v43 = vmax.f32 %v1718_v63, %v449_v10  ;;  %v1720_v6 = vmax.f32 %v1719_v62, 0.0  ;;  %v1744_v45 = vld [vmem:[#allocation23_spill] sm:$0xff]  ;;  %v1746_v63 = vld [vmem:[#allocation24_spill] sm:$0xff] }
  0x48   : > { %v1721_v56 = vmax.f32 %v1048_v3, 0.0  ;;  %v1722_v41 = vmax.f32 %v1695_v46, 0.0  ;;  %v1723_v49 = vmax.f32 %v1696_v54, 0.0  ;;  %v1724_v11 = vmax.f32 %v1697_v1, 0.0 }
  0x49   : > { %v482_v57 = vmax.f32 %v1720_v6, %v450_v42  ;;  %v1725_v26 = vmax.f32 %v1698_v40, 0.0  ;;  %v1726_v59 = vmax.f32 %v1699_v23, 0.0  ;;  %v1727_v6 = vmax.f32 %v1700_v30, 0.0 }
  0x4a   : > { %v483_v55 = vmax.f32 %v1721_v56, %v451_v29  ;;  %v484_v19 = vmax.f32 %v1722_v41, %v452_v12  ;;  %v485_v0 = vmax.f32 %v1723_v49, %v453_v17  ;;  %v486_v35 = vmax.f32 %v1724_v11, %v454_v31  ;;  %v1748_v56 = vld [vmem:[#allocation25_spill] sm:$0xff]  ;;  %v1750_v49 = vld [vmem:[#allocation26_spill] sm:$0xff] }
  0x4b   : > { %v487_v36 = vmax.f32 %v1725_v26, %v455_v2  ;;  %v488_v10 = vmax.f32 %v1726_v59, %v456_v7  ;;  %v489_v42 = vmax.f32 %v1727_v6, %v457_v8  ;;  %v1728_v3 = vmax.f32 %v1701_v37, 0.0  ;;  %v1734_v37 = vld [vmem:[#allocation18_spill] sm:$0xff]  ;;  %v1752_v26 = vld [vmem:[#allocation27_spill] sm:$0xff]  ;;  %v1754_v6 = vld [vmem:[#allocation28_spill] sm:$0xff] }
  0x4c   : > { %v1729_v46 = vmax.f32 %v1702_v44, 0.0  ;;  %v1730_v54 = vmax.f32 %v1703_v51, 0.0  ;;  %v1731_v31 = vmax.f32 %v1704_v58, 0.0  ;;  %v1732_v40 = vmax.f32 %v1197_v28, 0.0  ;;  %v1736_v44 = vld [vmem:[#allocation19_spill] sm:$0xff] }
  0x4d   : > { %v490_v29 = vmax.f32 %v1728_v3, %v458_v9  ;;  %v1733_v30 = vmax.f32 %v1205_v34, 0.0  ;;  %v1735_v7 = vmax.f32 %v1734_v37, 0.0  ;;  %v1737_v9 = vmax.f32 %v1736_v44, 0.0 }
  0x4e   : > { %v491_v12 = vmax.f32 %v1729_v46, %v459_v14  ;;  %v492_v17 = vmax.f32 %v1730_v54, %v460_v15  ;;  %v1470_v1 = vmax.f32 %v1731_v31, %v461_v16  ;;  %v1474_v23 = vmax.f32 %v1732_v40, %v462_v21  ;;  %v1738_v14 = vld [vmem:[#allocation20_spill] sm:$0xff]  ;;  %v1740_v16 = vld [vmem:[#allocation21_spill] sm:$0xff]  ;;  %v1758_v31 = vld [vmem:[#allocation30_spill] sm:$0xff] }
  0x4f   : > { %v1478_v2 = vmax.f32 %v1733_v30, %v463_v24  ;;  %v1482_v8 = vmax.f32 %v1735_v7, %v464_v25  ;;  %v1486_v51 = vmax.f32 %v1737_v9, %v465_v33  ;;  %v1739_v58 = vmax.f32 %v1738_v14, 0.0  ;;  %v1756_v46 = vld [vmem:[#allocation29_spill] sm:$0xff] }
  0x50   : > { %v1741_v28 = vmax.f32 %v1740_v16, 0.0  ;;  %v1743_v34 = vmax.f32 %v1742_v32, 0.0  ;;  %v1745_v60 = vmax.f32 %v1744_v45, 0.0  ;;  %v1747_v62 = vmax.f32 %v1746_v63, 0.0 }
  0x51   : > { %v1490_v15 = vmax.f32 %v1739_v58, %v466_v38  ;;  %v1749_v41 = vmax.f32 %v1748_v56, 0.0  ;;  %v1751_v11 = vmax.f32 %v1750_v49, 0.0  ;;  %v1753_v59 = vmax.f32 %v1752_v26, 0.0 }
  0x52   : > { %v1494_v21 = vmax.f32 %v1741_v28, %v467_v39  ;;  %v1498_v24 = vmax.f32 %v1743_v34, %v468_v47  ;;  %v1502_v25 = vmax.f32 %v1745_v60, %v469_v52  ;;  %v1506_v33 = vmax.f32 %v1747_v62, %v470_v53 }
  0x53   : > { %v1510_v38 = vmax.f32 %v1749_v41, %v471_v61  ;;  %v1514_v39 = vmax.f32 %v1751_v11, %v472_v4  ;;  %v1518_v47 = vmax.f32 %v1753_v59, %v473_v5  ;;  %v1755_v3 = vmax.f32 %v1754_v6, 0.0 }
  0x54   : > { %v1757_v54 = vmax.f32 %v1756_v46, 0.0  ;;  %v1759_v40 = vmax.f32 %v1758_v31, 0.0  ;;  %v509_v30 = vmax.f32 %v477_v50, %v481_v43  ;;  %v510_v37 = vmax.f32 %v478_v27, %v482_v57 }
  0x55   : > { %v1522_v52 = vmax.f32 %v1755_v3, %v474_v13  ;;  %v511_v4 = vmax.f32 %v479_v48, %v483_v55  ;;  %v512_v7 = vmax.f32 %v480_v20, %v484_v19  ;;  %v513_v44 = vmax.f32 %v485_v0, %v489_v42 }
  0x56   : > { %v1526_v53 = vmax.f32 %v1757_v54, %v475_v22  ;;  %v1530_v61 = vmax.f32 %v1759_v40, %v476_v18  ;;  %v514_v9 = vmax.f32 %v486_v35, %v490_v29  ;;  %v515_v5 = vmax.f32 %v487_v36, %v491_v12 }
  0x57   : > { %v516_v14 = vmax.f32 %v488_v10, %v492_v17  ;;  %v517_v13 = vmax.f32 %v1470_v1, %v1486_v51  ;;  %v518_v58 = vmax.f32 %v1474_v23, %v1490_v15  ;;  %v519_v22 = vmax.f32 %v1478_v2, %v1494_v21 }
  0x58   : > { %v520_v18 = vmax.f32 %v1482_v8, %v1498_v24  ;;  %v521_v43 = vmax.f32 %v1502_v25, %v1518_v47  ;;  %v522_v48 = vmax.f32 %v1506_v33, %v1522_v52  ;;  %v523_v50 = vmax.f32 %v1510_v38, %v1526_v53 }
  0x59   : > { %v524_v27 = vmax.f32 %v1514_v39, %v1530_v61  ;;  %v526_v20 = vsel %vm525_vm0, %v509_v30, -inf  ;;  %v533_v57 = vsel %vm525_vm0, %v510_v37, -inf  ;;  %v540_v0 = vsel %vm525_vm0, %v511_v4, -inf }
  0x5a   : > { %v527_v55 = vrot.slane %v526_v20, 4  ;;  %v534_v19 = vrot.slane %v533_v57, 4  ;;  %v547_v35 = vsel %vm525_vm0, %v512_v7, -inf  ;;  %v541_v36 = vrot.slane %v540_v0, 4 }
  0x5b   : > { %v548_v10 = vrot.slane %v547_v35, 4  ;;  %v554_v42 = vsel %vm525_vm0, %v513_v44, -inf  ;;  %v561_v29 = vsel %vm525_vm0, %v514_v9, -inf  ;;  %v568_v16 = vsel %vm525_vm0, %v515_v5, -inf }
  0x5c   : > { %v528_v12 = vmax.f32 %v526_v20, %v527_v55  ;;  %v535_v17 = vmax.f32 %v533_v57, %v534_v19  ;;  %v555_v1 = vrot.slane %v554_v42, 4  ;;  %v562_v23 = vrot.slane %v561_v29, 4 }
  0x5d   : > { %v542_v51 = vmax.f32 %v540_v0, %v541_v36  ;;  %v549_v15 = vmax.f32 %v547_v35, %v548_v10  ;;  %v575_v28 = vsel %vm525_vm0, %v516_v14, -inf  ;;  %v569_v56 = vrot.slane %v568_v16, 4 }
  0x5e   : > { %v529_v32 = vrot.slane %v528_v12, 2  ;;  %v536_v34 = vrot.slane %v535_v17, 2  ;;  %v556_v45 = vmax.f32 %v554_v42, %v555_v1  ;;  %v563_v60 = vmax.f32 %v561_v29, %v562_v23 }
  0x5f   : > { %v543_v63 = vrot.slane %v542_v51, 2  ;;  %v550_v62 = vrot.slane %v549_v15, 2  ;;  %v576_v41 = vrot.slane %v575_v28, 4  ;;  %v570_v46 = vmax.f32 %v568_v16, %v569_v56 }
  0x60   : > { %v530_v49 = vmax.f32 %v528_v12, %v529_v32  ;;  %v537_v11 = vmax.f32 %v535_v17, %v536_v34  ;;  %v557_v26 = vrot.slane %v556_v45, 2  ;;  %v564_v59 = vrot.slane %v563_v60, 2 }
  0x61   : > { %v544_v6 = vmax.f32 %v542_v51, %v543_v63  ;;  %v551_v3 = vmax.f32 %v549_v15, %v550_v62  ;;  %v577_v54 = vmax.f32 %v575_v28, %v576_v41  ;;  %v571_v44 = vrot.slane %v570_v46, 2 }
  0x62   : > { %v531_v31 = vrot.slane %v530_v49, 1  ;;  %v538_v40 = vrot.slane %v537_v11, 1  ;;  %v558_v30 = vmax.f32 %v556_v45, %v557_v26  ;;  %v565_v37 = vmax.f32 %v563_v60, %v564_v59 }
  0x63   : > { %v545_v4 = vrot.slane %v544_v6, 1  ;;  %v552_v7 = vrot.slane %v551_v3, 1  ;;  %v578_v9 = vrot.slane %v577_v54, 2  ;;  %v572_v0 = vmax.f32 %v570_v46, %v571_v44 }
  0x64   : > { %v1556_v5 = vmax.f32 %v530_v49, %v531_v31  ;;  %v1558_v14 = vmax.f32 %v537_v11, %v538_v40  ;;  %v559_v20 = vrot.slane %v558_v30, 1  ;;  %v566_v57 = vrot.slane %v565_v37, 1 }
  0x65   : > { %v1560_v55 = vmax.f32 %v544_v6, %v545_v4  ;;  %v1562_v19 = vmax.f32 %v551_v3, %v552_v7  ;;  %v579_v35 = vmax.f32 %v577_v54, %v578_v9  ;;  %v582_v42 = vsel %vm525_vm0, %v517_v13, -inf }
  0x66   : > { %v1564_v36 = vmax.f32 %v558_v30, %v559_v20  ;;  %v567_v10 = vmax.f32 %v565_v37, %v566_v57  ;;  %v589_v29 = vsel %vm525_vm0, %v518_v58, -inf  ;;  %v573_v12 = vrot.slane %v572_v0, 1 }
  0x67   : > { %v580_v17 = vrot.slane %v579_v35, 1  ;;  %v583_v1 = vrot.slane %v582_v42, 4  ;;  %v590_v23 = vrot.slane %v589_v29, 4  ;;  %v596_v51 = vsel %vm525_vm0, %v519_v22, -inf }
  0x68   : > { %v603_v15 = vsel %vm525_vm0, %v520_v18, -inf  ;;  %v610_v13 = vsel %vm525_vm0, %v521_v43, -inf  ;;  %v617_v58 = vsel %vm525_vm0, %v522_v48, -inf  ;;  %v574_v2 = vmax.f32 %v572_v0, %v573_v12 }
  0x69   : > { %v581_v21 = vmax.f32 %v579_v35, %v580_v17  ;;  %v584_v16 = vmax.f32 %v582_v42, %v583_v1  ;;  %v591_v22 = vmax.f32 %v589_v29, %v590_v23  ;;  %v597_v28 = vrot.slane %v596_v51, 4 }
  0x6a   : > { %v604_v32 = vrot.slane %v603_v15, 4  ;;  %v611_v8 = vrot.slane %v610_v13, 4  ;;  %v618_v24 = vrot.slane %v617_v58, 4  ;;  %v624_v33 = vsel %vm525_vm0, %v523_v50, -inf }
  0x6b   : > { %v585_v25 = vrot.slane %v584_v16, 2  ;;  %v592_v47 = vrot.slane %v591_v22, 2  ;;  %v631_v52 = vsel %vm525_vm0, %v524_v27, -inf  ;;  %v598_v18 = vmax.f32 %v596_v51, %v597_v28 }
  0x6c   : > { %v605_v43 = vmax.f32 %v603_v15, %v604_v32  ;;  %v612_v48 = vmax.f32 %v610_v13, %v611_v8  ;;  %v619_v34 = vmax.f32 %v617_v58, %v618_v24  ;;  %v625_v63 = vrot.slane %v624_v33, 4 }
  0x6d   : > { %v586_v45 = vmax.f32 %v584_v16, %v585_v25  ;;  %v593_v60 = vmax.f32 %v591_v22, %v592_v47  ;;  %v632_v62 = vrot.slane %v631_v52, 4  ;;  %v599_v56 = vrot.slane %v598_v18, 2 }
  0x6e   : > { %v606_v41 = vrot.slane %v605_v43, 2  ;;  %v613_v38 = vrot.slane %v612_v48, 2  ;;  %v620_v53 = vrot.slane %v619_v34, 2  ;;  %v626_v11 = vmax.f32 %v624_v33, %v625_v63 }
  0x6f   : > { %v587_v50 = vrot.slane %v586_v45, 1  ;;  %v594_v49 = vrot.slane %v593_v60, 1  ;;  %v633_v39 = vmax.f32 %v631_v52, %v632_v62  ;;  %v600_v61 = vmax.f32 %v598_v18, %v599_v56 }
  0x70   : > { %v607_v27 = vmax.f32 %v605_v43, %v606_v41  ;;  %v614_v26 = vmax.f32 %v612_v48, %v613_v38  ;;  %v621_v59 = vmax.f32 %v619_v34, %v620_v53  ;;  %v627_v46 = vrot.slane %v626_v11, 2 }
  0x71   : > { %v588_v6 = vmax.f32 %v586_v45, %v587_v50  ;;  %v595_v3 = vmax.f32 %v593_v60, %v594_v49  ;;  %v634_v54 = vrot.slane %v633_v39, 2  ;;  %v601_v31 = vrot.slane %v600_v61, 1 }
  0x72   : > { %v608_v40 = vrot.slane %v607_v27, 1  ;;  %v615_v30 = vrot.slane %v614_v26, 1  ;;  %v622_v37 = vrot.slane %v621_v59, 1  ;;  %v628_v4 = vmax.f32 %v626_v11, %v627_v46 }
  0x73   : > { %v635_v7 = vmax.f32 %v633_v39, %v634_v54  ;;  %v655_v44 = vsel %vm654_vm1, %v1558_v14, %v1556_v5  ;;  %v660_v9 = vsel %vm654_vm1, %v567_v10, %v1564_v36  ;;  %v602_v20 = vmax.f32 %v600_v61, %v601_v31 }
  0x74   : > { %v609_v57 = vmax.f32 %v607_v27, %v608_v40  ;;  %v616_v0 = vmax.f32 %v614_v26, %v615_v30  ;;  %v623_v35 = vmax.f32 %v621_v59, %v622_v37  ;;  %v629_v42 = vrot.slane %v628_v4, 1 }
  0x75   : > { %v636_v29 = vrot.slane %v635_v7, 1  ;;  %v657_v12 = vsel %vm656_vm2, %v1560_v55, %v655_v44  ;;  %v661_v17 = vsel %vm656_vm2, %v574_v2, %v660_v9  ;;  %v663_v36 = vsel %vm654_vm1, %v595_v3, %v588_v6 }
  0x76   : > { %v659_v5 = vsel %vm658_vm3, %v1562_v19, %v657_v12  ;;  %v662_v14 = vsel %vm658_vm3, %v581_v21, %v661_v17  ;;  %v666_v10 = vsel %vm654_vm1, %v623_v35, %v616_v0  ;;  %v630_v1 = vmax.f32 %v628_v4, %v629_v42 }
  0x77   : > { %v637_v23 = vmax.f32 %v635_v7, %v636_v29  ;;  %v664_v51 = vsel %vm656_vm2, %v602_v20, %v663_v36  ;;  %673 = vst [vmem:[%s206_s9] sm:$0xf] %v659_v5  ;;  %674 = vst [vmem:[%s206_s9 + $0x4] sm:$0xf] %v662_v14 }
  0x78   : > { %v665_v15 = vsel %vm658_vm3, %v609_v57, %v664_v51  ;;  %v667_v55 = vsel %vm656_vm2, %v630_v1, %v666_v10 }
  0x79   : > { %675 = vst [vmem:[%s206_s9 + $0x8] sm:$0xf] %v665_v15  ;;  %v668_v13 = vsel %vm658_vm3, %v637_v23, %v667_v55 }
  0x7a   : > { %676 = vst [vmem:[%s206_s9 + $0xc] sm:$0xf] %v668_v13 }
  0x7b PF: > { %s13_s16 = sadd.s32 1, %s865_s16   ;;  %s1760_s12 = smov %s857_s14 }
  0x7c   : > { %p10_p7 = scmp.ge.s32.totalorder %s13_s16, 10   ;;  %s1761_s13 = smov %s861_s15 }
  0x7d   : > { %s1762_s14 = smov %s1765_s17  ;;  %s1763_s15 = smov %s1769_s18 }
  0x7e   :  { %12 = sbr.rel (!%p10_p7) target bundleno = 3 (0x3), region = 62 }

// kernel: downscaling_block.4
= control target key start
LH: loop header
LB: loop body
LE: loop exit
PB: predicated region body
PF: predicated region fallthrough
CT: control target
= control target key end

     0   :  { %s7931_s21 = smov 0   ;;  %s7933_s22 = smov 0   ;;  %s9894_s0 = inlined_call_operand.vmem [shape: f32[2,8,8,8,128], index: 0, kind: input, shape index: {}]   ;;  %s9895_s1 = inlined_call_operand.vmem [shape: f32[3,3,3,128,128], index: 1, kind: input, shape index: {}]   ;;  %s9896_s2 = inlined_call_operand.vmem [shape: f32[1,128], index: 2, kind: input, shape index: {}]   ;;  %s9897_s3 = inlined_call_operand.vmem [shape: f32[1,128], index: 3, kind: input, shape index: {}]   ;;  %s9898_s4 = inlined_call_operand.vmem [shape: f32[2,8,64,128], index: 4, kind: output, shape index: {0}]   ;;  %s9899_s5 = inlined_call_operand.vmem [shape: f32[2,1,128], index: 5, kind: output, shape index: {1}]   ;;  %s9900_s6 = inlined_call_operand.vmem [shape: f32[2,1,128], index: 6, kind: output, shape index: {2}]  }
   0x1   :  { %s7935_s23 = smov 0   ;;  %s7937_s24 = smov 0  }
   0x2   :  { %s7939_s25 = smov 0  }
   0x3 LB: > { %s26_s26 = sadd.s32 1, %s7884_s23  ;;  %s29_s27 = sadd.s32 1, %s7888_s24  ;;  %s7892_s25 = sphi %s7939_s25, %s17_s25   ;;  %s7888_s24 = sphi %s7937_s24, %s9940_s24   ;;  %s7884_s23 = sphi %s7935_s23, %s9939_s23   ;;  %s7880_s22 = sphi %s7933_s22, %s9938_s22   ;;  %s7876_s21 = sphi %s7931_s21, %s9937_s21  }
   0x4   : > { %p27_p0 = scmp.ge.s32.totalorder %s26_s26, 8  ;;  %p4421_p1 = scmp.ge.s32.totalorder %s7892_s25, 1 }
   0x5   : > { %p231_p2 = scmp.lt.s32.totalorder %s7892_s25, 17 }
   0x6   : > { %s9942_s26 = smov (%p27_p0, %s26_s26), 0  ;;  %s9944_s27 = smov (!%p27_p0, %s29_s27), %s7888_s24 }
   0x7   : > { %p232_p3 = pnand %p4421_p1, %p231_p2  ;;  %p31_p4 = scmp.ge.s32.totalorder %s9944_s27, 2 }
   0x9   : > { %s9946_s27 = smov (%p31_p4, %s9944_s27), 0  ;;  %235 = sbr.rel (%p232_p3) target bundleno = 731 (0x2db), region = 36 }
   0xa   : > { %9912 = sst [smem:[#allocation3_spill]] %s9946_s27 }
  0x10   : > { %p271_p5 = scmp.lt.s32.totalorder %s7880_s22, 1  ;;  %p278_p6 = scmp.lt.s32.totalorder %s7876_s21, 7 }
  0x11   : > { %p4427_p7 = scmp.ne.s32.totalorder %s7876_s21, 0 }
  0x12   : > { %s9948_s22 = smov (!%p271_p5, %s7880_s22), 1  ;;  %v7894_v0 = vmov (!%p4427_p7), 0.0  }
  0x13   : > { %s279_s28 = scalar_select %p278_p6, %s7876_s21, 7 }
  0x14   : > { %s4869_s29 = sshll.u32 %s9948_s22, 9  ;;  %s4425_s30 = sshll.u32 %s9948_s22, 6 }
  0x15   : > { %s7970_s9 = scalar_lea.vmem %s9894_s0, %s4869_s29  ;;  %s4424_s10 = sshll.u32 %s279_s28, 3 }
  0x16   : > { %s282_s11 = sadd.s32 %s4425_s30, %s4424_s10  ;;  %s7975_s14 = scalar_lea.vmem %s9899_s5, %s9948_s22 }
  0x17   : > { %s4426_s15 = sshll.u32 %s282_s11, 3  ;;  %s7980_s18 = scalar_lea.vmem %s9900_s6, %s9948_s22  ;;  %295 = vst [vmem:[%s7975_s14] sm:$0x1] (!%p4427_p7), %v7894_v0 }
  0x18   : > { %s7985_s27 = scalar_lea.vmem %s9898_s4, %s4426_s15  ;;  %294 = sbr.rel (%p4427_p7) target bundleno = 31 (0x1f), region = 40  ;;  %296 = vst [vmem:[%s7980_s18] sm:$0x1] (!%p4427_p7), %v7894_v0 }
  0x1f PF: > { %v4437_v1 = vld [vmem:[%s9895_s1 + $0x80] sm:$0xff]  ;;  %v4438_v2 = vld [vmem:[%s9895_s1 + $0x88] sm:$0xff]  ;;  %s8000_s10 = sadd.s32 4294967295, %s7876_s21  ;;  %p1620_p8 = scmp.ge.s32.totalorder %s7876_s21, 0  ;;  %v4439_v6 = vld [vmem:[%s9895_s1 + $0x90] sm:$0xff]  ;;  %v7895_v8 = vmov 0.0  }
  0x20   : > { %v4636_v3 = vld [vmem:[%s9895_s1 + $0x680] sm:$0xff]  ;;  %v6712_v4 = vpack.c.bf16 %v4438_v2, %v4437_v1  ;;  %v4637_v5 = vld [vmem:[%s9895_s1 + $0x688] sm:$0xff]  ;;  %v4440_v7 = vld [vmem:[%s9895_s1 + $0x98] sm:$0xff]  ;;  %297 = vst [vmem:[#allocation2] sm:$0xff] %v7895_v8  ;;  %p320_p9 = scmp.ge.s32.totalorder %s8000_s10, 0  ;;  %p321_p10 = scmp.lt.s32.totalorder %s8000_s10, 8 }
  0x21   : > { %298 = vst [vmem:[#allocation2 + $0x8] sm:$0x3] %v7895_v8  ;;  %299 = vst [vmem:[#allocation2 + $0x10] sm:$0xff] %v7895_v8  ;;  %v7128_v9 = vpack.c.bf16 %v4637_v5, %v4636_v3  ;;  %v6716_v10 = vpack.c.bf16 %v4440_v7, %v4439_v6  ;;  %v4638_v11 = vld [vmem:[%s9895_s1 + $0x690] sm:$0xff]  ;;  %v4639_v12 = vld [vmem:[%s9895_s1 + $0x698] sm:$0xff]  ;;  %p324_p11 = scmp.gt.s32.totalorder %s8000_s10, 0 }
  0x22   : > { %300 = vst [vmem:[#allocation2 + $0x18] sm:$0x3] %v7895_v8  ;;  %301 = vst [vmem:[#allocation2 + $0x20] sm:$0xff] %v7895_v8  ;;  %v4441_v13 = vld [vmem:[%s9895_s1 + $0xa0] sm:$0xff]  ;;  %p4428_p12 = scmp.lt.s32.totalorder %s8000_s10, 7  ;;  %6713 = vmatprep.subr.bf16.mxu1 %v6712_v4  ;;  %v7132_v14 = vpack.c.bf16 %v4639_v12, %v4638_v11  ;;  %v4442_v15 = vld [vmem:[%s9895_s1 + $0xa8] sm:$0xff]  ;;  %p8058_p13 = pnand %p321_p10, %p320_p9 }
  0x23   : > { %302 = vst [vmem:[#allocation2 + $0x28] sm:$0x3] %v7895_v8  ;;  %303 = vst [vmem:[#allocation2 + $0x30] sm:$0xff] %v7895_v8  ;;  %v4640_v16 = vld [vmem:[%s9895_s1 + $0x6a0] sm:$0xff]  ;;  %v4641_v17 = vld [vmem:[%s9895_s1 + $0x6a8] sm:$0xff]  ;;  %p1621_p0 = scmp.lt.s32.totalorder %s7876_s21, 8  ;;  %7129 = vmatprep.subr.bf16.mxu0 %v7128_v9  ;;  %6715 = vmatpush3.bf16.msra.mxu1 %v6712_v4  ;;  %v6720_v18 = vpack.c.bf16 %v4442_v15, %v4441_v13 }
  0x24   : > { %304 = vst [vmem:[#allocation2 + $0x38] sm:$0x3] %v7895_v8  ;;  %305 = vst [vmem:[#allocation2 + $0x40] sm:$0xff] %v7895_v8  ;;  %s325_s17 = scalar_select %p324_p11, %s8000_s10, 0  ;;  %7131 = vmatpush3.bf16.msra.mxu0 %v7128_v9  ;;  %6717 = vmatprep.subr.bf16.mxu1 %v6716_v10  ;;  %v7136_v19 = vpack.c.bf16 %v4641_v17, %v4640_v16  ;;  %v4443_v20 = vld [vmem:[%s9895_s1 + $0xb0] sm:$0xff]  ;;  %v4444_v21 = vld [vmem:[%s9895_s1 + $0xb8] sm:$0xff] }
  0x25   : > { %306 = vst [vmem:[#allocation2 + $0x48] sm:$0x3] %v7895_v8  ;;  %307 = vst [vmem:[#allocation2 + $0x50] sm:$0xff] %v7895_v8  ;;  %s4436_s19 = scalar_select %p8058_p13, 0, 1  ;;  %7133 = vmatprep.subr.bf16.mxu0 %v7132_v14  ;;  %v4642_v22 = vld [vmem:[%s9895_s1 + $0x6b0] sm:$0xff]  ;;  %v6724_v24 = vpack.c.bf16 %v4444_v21, %v4443_v20 }
  0x26   : > { %308 = vst [vmem:[#allocation2 + $0x58] sm:$0x3] %v7895_v8  ;;  %309 = vst [vmem:[#allocation2 + $0x60] sm:$0xff] %v7895_v8  ;;  %s9950_s17 = smov (!%p4428_p12, %s325_s17), 7  ;;  %v4643_v23 = vld [vmem:[%s9895_s1 + $0x6b8] sm:$0xff]  ;;  %p8084_p1 = pnand %p1621_p0, %p1620_p8  ;;  %v4445_v26 = vld [vmem:[%s9895_s1 + $0xc0] sm:$0xff] }
  0x27   : > { %310 = vst [vmem:[#allocation2 + $0x68] sm:$0x3] %v7895_v8  ;;  %311 = vst [vmem:[#allocation2 + $0x70] sm:$0xff] %v7895_v8  ;;  %6719 = vmatpush3.bf16.msra.mxu1 %v6716_v10  ;;  %s4433_s13 = sshll.u32 %s9950_s17, 6  ;;  %p1624_p2 = scmp.gt.s32.totalorder %s7876_s21, 0  ;;  %v7140_v25 = vpack.c.bf16 %v4643_v23, %v4642_v22  ;;  %v4446_v27 = vld [vmem:[%s9895_s1 + $0xc8] sm:$0xff] }
  0x28   : > { %312 = vst [vmem:[#allocation2 + $0x78] sm:$0x3] %v7895_v8  ;;  %313 = vst [vmem:[#allocation2 + $0x80] sm:$0xff] %v7895_v8  ;;  %7135 = vmatpush3.bf16.msra.mxu0 %v7132_v14  ;;  %6721 = vmatprep.subr.bf16.mxu1 %v6720_v18  ;;  %s8090_s10 = scalar_lea.vmem %s7970_s9, %s4433_s13  ;;  %s8092_s15 = scvt.s32.f32 %s4436_s19  ;;  %v418_v28 = vld [vmem:[#allocation2 + $0x1] sm:$0xff]  ;;  %v8110_v31 = vld [vmem:[%s9896_s2] ss:$0 sm:$0xff]  ;;  %v6728_v34 = vpack.c.bf16 %v4446_v27, %v4445_v26 }
  0x29   : > { %314 = vst [vmem:[#allocation2 + $0x88] sm:$0x3] %v7895_v8  ;;  %315 = vst [vmem:[#allocation2 + $0x90] sm:$0xff] %v7895_v8  ;;  %7137 = vmatprep.subr.bf16.mxu0 %v7136_v19  ;;  %s1625_s17 = scalar_select %p1624_p2, %s7876_s21, 0  ;;  %v4644_v29 = vld [vmem:[%s9895_s1 + $0x6c0] sm:$0xff]  ;;  %v4645_v30 = vld [vmem:[%s9895_s1 + $0x6c8] sm:$0xff]  ;;  %5556 = vmatprep.mubr.f32.mxu1 %v418_v28 }
  0x2a   : > { %316 = vst [vmem:[#allocation2 + $0x98] sm:$0x3] %v7895_v8  ;;  %s4571_s13 = scalar_select %p8084_p1, 0, 1  ;;  %v8117_v32 = vld [vmem:[%s9897_s3] ss:$0 sm:$0xff]  ;;  %v7144_v37 = vpack.c.bf16 %v4645_v30, %v4644_v29  ;;  %v8142_v44 = vstv %s8092_s15 }
  0x2b   : > { %6723 = vmatpush3.bf16.msra.mxu1 %v6720_v18  ;;  %v330_v33 = vld [vmem:[%s8090_s10] sm:$0xff]  ;;  %s9952_s17 = smov (!%p278_p6, %s1625_s17), 7  ;;  %v331_v36 = vld [vmem:[%s8090_s10 + $0x8] sm:$0xff]  ;;  %v4447_v38 = vld [vmem:[%s9895_s1 + $0xd0] sm:$0xff] }
  0x2c   : > { %7139 = vmatpush3.bf16.msra.mxu0 %v7136_v19  ;;  %6725 = vmatprep.subr.bf16.mxu1 %v6724_v24  ;;  %v344_v35 = vmul.f32 %v8110_v31, %v330_v33  ;;  %v4448_v39 = vld [vmem:[%s9895_s1 + $0xd8] sm:$0xff]  ;;  %s4570_s30 = sshll.u32 %s9952_s17, 6  ;;  %v345_v40 = vmul.f32 %v8110_v31, %v331_v36  ;;  %v4646_v41 = vld [vmem:[%s9895_s1 + $0x6d0] sm:$0xff]  ;;  %s1663_s17 = scvt.s32.f32 %s4571_s13  ;;  %v4449_v53 = vld [vmem:[%s9895_s1 + $0xe0] sm:$0xff] }
  0x2d   : > { %7141 = vmatprep.subr.bf16.mxu0 %v7140_v25  ;;  %v4647_v42 = vld [vmem:[%s9895_s1 + $0x6d8] sm:$0xff]  ;;  %s8139_s16 = scalar_lea.vmem %s7970_s9, %s4570_s30  ;;  %v6732_v48 = vpack.c.bf16 %v4448_v39, %v4447_v38  ;;  %v4450_v54 = vld [vmem:[%s9895_s1 + $0xe8] sm:$0xff]  ;;  %v4648_v56 = vld [vmem:[%s9895_s1 + $0x6e0] sm:$0xff] }
  0x2e   : > { %v358_v43 = vadd.f32 %v8117_v32, %v344_v35  ;;  %v1630_v45 = vld [vmem:[%s8139_s16] sm:$0xff]  ;;  %v359_v46 = vadd.f32 %v8117_v32, %v345_v40  ;;  %v1631_v47 = vld [vmem:[%s8139_s16 + $0x8] sm:$0xff]  ;;  %v7148_v52 = vpack.c.bf16 %v4647_v42, %v4646_v41  ;;  %v8166_v61 = vstv %s1663_s17  ;;  %v332_v63 = vld [vmem:[%s8090_s10 + $0x10] sm:$0xff] }
  0x2f   : > { %6727 = vmatpush3.bf16.msra.mxu1 %v6724_v24  ;;  %v1638_v50 = vmul.f32 %v8110_v31, %v1630_v45  ;;  %v1639_v51 = vmul.f32 %v8110_v31, %v1631_v47  ;;  %v4649_v57 = vld [vmem:[%s9895_s1 + $0x6e8] sm:$0xff]  ;;  %v1632_v0 = vld [vmem:[%s8139_s16 + $0x10] sm:$0xff]  ;;  %v6736_v1 = vpack.c.bf16 %v4450_v54, %v4449_v53  ;;  %v4452_v3 = vld [vmem:[%s9895_s1 + $0xf8] sm:$0xff]  ;;  %v346_v5 = vmul.f32 %v8110_v31, %v332_v63 }
  0x30   : > { %7143 = vmatpush3.bf16.msra.mxu0 %v7140_v25  ;;  %6729 = vmatprep.subr.bf16.mxu1 %v6728_v34  ;;  %v366_v49 = vmax.f32 %v358_v43, 0.0  ;;  %v367_v55 = vmax.f32 %v359_v46, 0.0  ;;  %v4451_v2 = vld [vmem:[%s9895_s1 + $0xf0] sm:$0xff]  ;;  %v333_v6 = vld [vmem:[%s8090_s10 + $0x18] sm:$0xff]  ;;  %v7152_v7 = vpack.c.bf16 %v4649_v57, %v4648_v56  ;;  %v1640_v16 = vmul.f32 %v8110_v31, %v1632_v0  ;;  %v334_v18 = vld [vmem:[%s8090_s10 + $0x20] sm:$0xff] }
  0x31   : > { %7145 = vmatprep.subr.bf16.mxu0 %v7144_v37  ;;  %v1646_v59 = vadd.f32 %v8117_v32, %v1638_v50  ;;  %v1647_v60 = vadd.f32 %v8117_v32, %v1639_v51  ;;  %v4650_v9 = vld [vmem:[%s9895_s1 + $0x6f0] sm:$0xff]  ;;  %v4651_v10 = vld [vmem:[%s9895_s1 + $0x6f8] sm:$0xff]  ;;  %v347_v12 = vmul.f32 %v8110_v31, %v333_v6  ;;  %v360_v15 = vadd.f32 %v8117_v32, %v346_v5  ;;  %v1634_v19 = vld [vmem:[%s8139_s16 + $0x20] sm:$0xff] }
  0x32   : > { %v8162_v58 = vmul.f32 %v8142_v44, %v366_v49  ;;  %v8169_v62 = vmul.f32 %v8142_v44, %v367_v55  ;;  %v1633_v13 = vld [vmem:[%s8139_s16 + $0x18] sm:$0xff]  ;;  %v348_v21 = vmul.f32 %v8110_v31, %v334_v18  ;;  %v335_v22 = vld [vmem:[%s8090_s10 + $0x28] sm:$0xff]  ;;  %v6740_v23 = vpack.c.bf16 %v4452_v3, %v4451_v2  ;;  %v402_v25 = vld [vmem:[%s9895_s1] sm:$0xff] }
  0x33   : > { %6731 = vmatpush3.bf16.msra.mxu1 %v6728_v34  ;;  %v1654_v4 = vmax.f32 %v1646_v59, 0.0  ;;  %v1655_v11 = vmax.f32 %v1647_v60, 0.0  ;;  %v1641_v17 = vmul.f32 %v8110_v31, %v1633_v13  ;;  %v361_v20 = vadd.f32 %v8117_v32, %v347_v12  ;;  %v1635_v27 = vld [vmem:[%s8139_s16 + $0x28] sm:$0xff]  ;;  %v4652_v29 = vld [vmem:[%s9895_s1 + $0x700] sm:$0xff]  ;;  %v336_v41 = vld [vmem:[%s8090_s10 + $0x30] sm:$0xff] }
  0x34   : > { %7147 = vmatpush3.bf16.msra.mxu0 %v7144_v37  ;;  %6733 = vmatprep.subr.bf16.mxu1 %v6732_v48  ;;  %386 = vst [vmem:[#allocation2 + $0x11] sm:$0xff] %v8162_v58  ;;  %387 = vst [vmem:[#allocation2 + $0x21] sm:$0xff] %v8169_v62  ;;  %v7156_v24 = vpack.c.bf16 %v4651_v10, %v4650_v9  ;;  %v368_v26 = vmax.f32 %v360_v15, 0.0  ;;  %v403_v28 = vld [vmem:[%s9895_s1 + $0x8] sm:$0xff]  ;;  %v362_v34 = vadd.f32 %v8117_v32, %v348_v21  ;;  %v1636_v42 = vld [vmem:[%s8139_s16 + $0x30] sm:$0xff] }
  0x35   : > { %7149 = vmatprep.subr.bf16.mxu0 %v7148_v52  ;;  %v8192_v14 = vmul.f32 %v8166_v61, %v1654_v4  ;;  %v4653_v30 = vld [vmem:[%s9895_s1 + $0x708] sm:$0xff]  ;;  %v369_v33 = vmax.f32 %v361_v20, 0.0  ;;  %v1642_v35 = vmul.f32 %v8110_v31, %v1634_v19  ;;  %v349_v36 = vmul.f32 %v8110_v31, %v335_v22  ;;  %v337_v50 = vld [vmem:[%s8090_s10 + $0x38] sm:$0xff]  ;;  %v404_v56 = vld [vmem:[%s9895_s1 + $0x10] sm:$0xff] }
  0x36   : > { %v8220_v37 = vmul.f32 %v8166_v61, %v1655_v11  ;;  %v8223_v38 = vmul.f32 %v8142_v44, %v368_v26  ;;  %v1648_v39 = vadd.f32 %v8117_v32, %v1640_v16  ;;  %v1649_v40 = vadd.f32 %v8117_v32, %v1641_v17  ;;  %v1637_v55 = vld [vmem:[%s8139_s16 + $0x38] sm:$0xff]  ;;  %v406_v16 = vld [vmem:[%s9895_s1 + $0x20] sm:$0xff]  ;;  %v407_v17 = vld [vmem:[%s9895_s1 + $0x28] sm:$0xff]  ;;  %s8437_s16 = sadd.s32 1, %s7876_s21 }
  0x37   : > { %9915 = vst [vmem:[#allocation4_spill] sm:$0xff] %v8192_v14  ;;  %6735 = vmatpush3.bf16.msra.mxu1 %v6732_v48  ;;  %6128 = vmatprep.mubr.f32.mxu0 %v8192_v14  ;;  %v8234_v46 = vmul.f32 %v8142_v44, %v369_v33  ;;  %v370_v47 = vmax.f32 %v362_v34, 0.0  ;;  %v363_v48 = vadd.f32 %v8117_v32, %v349_v36  ;;  %v405_v57 = vld [vmem:[%s9895_s1 + $0x18] sm:$0xff]  ;;  %v4656_v20 = vld [vmem:[%s9895_s1 + $0x720] sm:$0xff]  ;;  %v4657_v21 = vld [vmem:[%s9895_s1 + $0x728] sm:$0xff]  ;;  %p2928_p3 = scmp.gt.s32.totalorder %s8437_s16, 0 }
  0x38   : > { %7151 = vmatpush3.bf16.msra.mxu0 %v7148_v52  ;;  %6737 = vmatprep.subr.bf16.mxu1 %v6736_v1  ;;  %v1643_v49 = vmul.f32 %v8110_v31, %v1635_v27  ;;  %v6744_v51 = vpack.c.bf16 %v403_v28, %v402_v25  ;;  %v7160_v52 = vpack.c.bf16 %v4653_v30, %v4652_v29  ;;  %v4655_v2 = vld [vmem:[%s9895_s1 + $0x718] sm:$0xff]  ;;  %v1656_v3 = vmax.f32 %v1648_v39, 0.0  ;;  %v408_v33 = vld [vmem:[%s9895_s1 + $0x30] sm:$0xff]  ;;  %p4716_p4 = scmp.lt.s32.totalorder %s8437_s16, 7  ;;  %p2924_p5 = scmp.ge.s32.totalorder %s8437_s16, 0 }
  0x39   : > { %7153 = vmatprep.subr.bf16.mxu0 %v7152_v7  ;;  %388 = vst [vmem:[#allocation2 + $0x31] sm:$0xff] %v8223_v38  ;;  %389 = vst [vmem:[#allocation2 + $0x41] sm:$0xff] %v8234_v46  ;;  %v8255_v59 = vmul.f32 %v8142_v44, %v370_v47  ;;  %v1650_v60 = vadd.f32 %v8117_v32, %v1642_v35  ;;  %v371_v63 = vmax.f32 %v363_v48, 0.0  ;;  %v1657_v4 = vmax.f32 %v1649_v40, 0.0  ;;  %v409_v34 = vld [vmem:[%s9895_s1 + $0x38] sm:$0xff]  ;;  %v4658_v40 = vld [vmem:[%s9895_s1 + $0x730] sm:$0xff] }
  0x3a   : > { %v350_v0 = vmul.f32 %v8110_v31, %v336_v41  ;;  %v1644_v5 = vmul.f32 %v8110_v31, %v1636_v42  ;;  %v351_v6 = vmul.f32 %v8110_v31, %v337_v50  ;;  %v1651_v9 = vadd.f32 %v8117_v32, %v1643_v49  ;;  %s2929_s13 = scalar_select %p2928_p3, %s8437_s16, 0 }
  0x3b   : > { %6739 = vmatpush3.bf16.msra.mxu1 %v6736_v1  ;;  %v8229_v43 = vld [vmem:[#allocation2 + $0x10] sm:$0xff]  ;;  %v8240_v53 = vld [vmem:[#allocation2 + $0x20] sm:$0xff]  ;;  %390 = vst [vmem:[#allocation2 + $0x51] sm:$0xff] %v8255_v59  ;;  %v1645_v11 = vmul.f32 %v8110_v31, %v1637_v55  ;;  %v6748_v12 = vpack.c.bf16 %v405_v57, %v404_v56  ;;  %v1658_v18 = vmax.f32 %v1650_v60, 0.0  ;;  %v8290_v22 = vmul.f32 %v8166_v61, %v1656_v3  ;;  %p2925_p6 = scmp.lt.s32.totalorder %s8437_s16, 8 }
  0x3c   : > { %v8231_v45 = vld [vmem:[#allocation2 + $0x12] sm:$0xff]  ;;  %7155 = vmatpush3.bf16.msra.mxu0 %v7152_v7  ;;  %6741 = vmatprep.subr.bf16.mxu1 %v6740_v23  ;;  %v8242_v54 = vld [vmem:[#allocation2 + $0x22] sm:$0xff]  ;;  %v8269_v7 = vmul.f32 %v8142_v44, %v371_v63  ;;  %v364_v10 = vadd.f32 %v8117_v32, %v350_v0  ;;  %v365_v13 = vadd.f32 %v8117_v32, %v351_v6  ;;  %v1659_v27 = vmax.f32 %v1651_v9, 0.0  ;;  %s9954_s13 = smov (!%p4716_p4, %s2929_s13), 7 }
  0x3d   : > { %1673 = vst [vmem:[#allocation2 + $0x11] sm:$0xff] %v8192_v14  ;;  %7157 = vmatprep.subr.bf16.mxu0 %v7156_v24  ;;  %1674 = vst [vmem:[#allocation2 + $0x21] sm:$0xff] %v8220_v37  ;;  %v4654_v1 = vld [vmem:[%s9895_s1 + $0x710] sm:$0xff]  ;;  %v8297_v26 = vmul.f32 %v8166_v61, %v1657_v4  ;;  %v1653_v29 = vadd.f32 %v8117_v32, %v1645_v11  ;;  %v6752_v30 = vpack.c.bf16 %v407_v17, %v406_v16  ;;  %v410_v63 = vld [vmem:[%s9895_s1 + $0x40] sm:$0xff]  ;;  %p8521_p7 = pnand %p2925_p6, %p2924_p5  ;;  %s4721_s22 = sshll.u32 %s9954_s13, 6 }
  0x3e   : > { %v7164_v15 = vpack.c.bf16 %v4655_v2, %v4654_v1  ;;  %391 = vst [vmem:[#allocation2 + $0x61] sm:$0xff] %v8269_v7  ;;  %v372_v19 = vmax.f32 %v364_v10, 0.0  ;;  %v7168_v39 = vpack.c.bf16 %v4657_v21, %v4656_v20  ;;  %v8324_v47 = vmul.f32 %v8166_v61, %v1658_v18  ;;  %v411_v0 = vld [vmem:[%s9895_s1 + $0x48] sm:$0xff]  ;;  %v4660_v1 = vld [vmem:[%s9895_s1 + $0x740] sm:$0xff]  ;;  %v412_v10 = vld [vmem:[%s9895_s1 + $0x50] sm:$0xff]  ;;  %s8561_s30 = scalar_lea.vmem %s7970_s9, %s4721_s22 }
  0x3f   : > { %6743 = vmatpush3.bf16.msra.mxu1 %v6740_v23  ;;  %v1652_v23 = vadd.f32 %v8117_v32, %v1644_v5  ;;  %v6756_v55 = vpack.c.bf16 %v409_v34, %v408_v33  ;;  %v4661_v2 = vld [vmem:[%s9895_s1 + $0x748] sm:$0xff]  ;;  %v6760_v5 = vpack.c.bf16 %v411_v0, %v410_v63  ;;  %v413_v11 = vld [vmem:[%s9895_s1 + $0x58] sm:$0xff]  ;;  %v414_v20 = vld [vmem:[%s9895_s1 + $0x60] sm:$0xff]  ;;  %s4722_s17 = scalar_select %p8521_p7, 0, 1 }
  0x40   : > { %7159 = vmatpush3.bf16.msra.mxu0 %v7156_v24  ;;  %6745 = vmatprep.subr.bf16.mxu1 %v6744_v51  ;;  %v373_v24 = vmax.f32 %v365_v13, 0.0  ;;  %v8294_v25 = vld [vmem:[#allocation2 + $0x30] sm:$0xff]  ;;  %v8300_v28 = vmul.f32 %v8142_v44, %v372_v19  ;;  %v8319_v41 = vld [vmem:[#allocation2 + $0x40] sm:$0xff]  ;;  %v7176_v9 = vpack.c.bf16 %v4661_v2, %v4660_v1  ;;  %v4663_v13 = vld [vmem:[%s9895_s1 + $0x758] sm:$0xff]  ;;  %v6764_v18 = vpack.c.bf16 %v413_v11, %v412_v10 }
  0x41   : > { %7161 = vmatprep.subr.bf16.mxu0 %v7160_v52  ;;  %v8309_v35 = vld [vmem:[#allocation2 + $0x32] sm:$0xff]  ;;  %v8321_v42 = vld [vmem:[#allocation2 + $0x42] sm:$0xff]  ;;  %v1660_v50 = vmax.f32 %v1652_v23, 0.0  ;;  %s2967_s9 = scvt.s32.f32 %s4722_s17 }
  0x42   : > { %5557 = vmatmul.mubr.f32.vlgmr.msra.gmra.mrb[0].mxu1 %v8162_v58  ;;  %v8312_v36 = vmul.f32 %v8142_v44, %v373_v24  ;;  %1675 = vst [vmem:[#allocation2 + $0x31] sm:$0xff] %v8290_v22  ;;  %392 = vst [vmem:[#allocation2 + $0x71] sm:$0xff] %v8300_v28  ;;  %v4659_v44 = vld [vmem:[%s9895_s1 + $0x738] sm:$0xff]  ;;  %v8333_v48 = vld [vmem:[#allocation2 + $0x50] sm:$0xff] }
  0x43   : > { %6747 = vmatpush3.bf16.msra.mxu1 %v6744_v51  ;;  %6129 = vmatmul.mubr.f32.vlgmr.msra.gmra.mrb[0].mxu0 %v8220_v37  ;;  %1676 = vst [vmem:[#allocation2 + $0x41] sm:$0xff] %v8297_v26  ;;  %v8335_v49 = vld [vmem:[#allocation2 + $0x52] sm:$0xff]  ;;  %v8341_v51 = vmul.f32 %v8166_v61, %v1659_v27  ;;  %v7172_v60 = vpack.c.bf16 %v4659_v44, %v4658_v40  ;;  %v415_v21 = vld [vmem:[%s9895_s1 + $0x68] sm:$0xff]  ;;  %v4664_v23 = vld [vmem:[%s9895_s1 + $0x760] sm:$0xff] }
  0x44   : > { %7163 = vmatpush3.bf16.msra.mxu0 %v7160_v52  ;;  %6749 = vmatprep.subr.bf16.mxu1 %v6748_v12  ;;  %393 = vst [vmem:[#allocation2 + $0x81] sm:$0xff] %v8312_v36  ;;  %1677 = vst [vmem:[#allocation2 + $0x51] sm:$0xff] %v8324_v47  ;;  %v1661_v52 = vmax.f32 %v1653_v29, 0.0  ;;  %v8364_v3 = vmul.f32 %v8166_v61, %v1660_v50  ;;  %v8392_v16 = vld [vmem:[#allocation2 + $0x12] sm:$0xff]  ;;  %v4665_v24 = vld [vmem:[%s9895_s1 + $0x768] sm:$0xff]  ;;  %v6768_v27 = vpack.c.bf16 %v415_v21, %v414_v20 }
  0x45   : > { %7165 = vmatprep.subr.bf16.mxu0 %v7164_v15  ;;  %5559 = vmatprep.mubr.f32.mxu1 %v8169_v62  ;;  %v8343_v56 = vld [vmem:[#allocation2 + $0x60] sm:$0xff]  ;;  %9916 = vst [vmem:[#allocation5_spill] sm:$0xff] %v8392_v16  ;;  %v7184_v29 = vpack.c.bf16 %v4665_v24, %v4664_v23  ;;  %v4666_v33 = vld [vmem:[%s9895_s1 + $0x770] sm:$0xff]  ;;  %v4667_v34 = vld [vmem:[%s9895_s1 + $0x778] sm:$0xff] }
  0x46   : > { %6131 = vmatprep.mubr.f32.mxu0 %v8290_v22  ;;  %5560 = vmatmul.mubr.f32.gmra.mrb[2].mxu1 %v8223_v38  ;;  %v8345_v57 = vld [vmem:[#allocation2 + $0x62] sm:$0xff]  ;;  %v8368_v4 = vmul.f32 %v8166_v61, %v1661_v52  ;;  %v4662_v61 = vld [vmem:[%s9895_s1 + $0x750] sm:$0xff]  ;;  %v7188_v40 = vpack.c.bf16 %v4667_v34, %v4666_v33  ;;  %v4456_v1 = vld [vmem:[%s9895_s1 + $0x118] sm:$0xff] }
  0x47   : > { %6751 = vmatpush3.bf16.msra.mxu1 %v6748_v12  ;;  %6132 = vmatmul.mubr.f32.gmra.mrb[2].mxu0 %v8297_v26  ;;  %1678 = vst [vmem:[#allocation2 + $0x61] sm:$0xff] %v8341_v51  ;;  %v7180_v19 = vpack.c.bf16 %v4663_v13, %v4662_v61  ;;  %v4453_v44 = vld [vmem:[%s9895_s1 + $0x100] sm:$0xff]  ;;  %v4454_v50 = vld [vmem:[%s9895_s1 + $0x108] sm:$0xff]  ;;  %v4455_v0 = vld [vmem:[%s9895_s1 + $0x110] sm:$0xff] }
  0x48   : > { %7167 = vmatpush3.bf16.msra.mxu0 %v7164_v15  ;;  %6753 = vmatprep.subr.bf16.mxu1 %v6752_v30  ;;  %v4668_v52 = vld [vmem:[%s9895_s1 + $0x780] sm:$0xff]  ;;  %v4670_v2 = vld [vmem:[%s9895_s1 + $0x790] sm:$0xff]  ;;  %v6780_v10 = vpack.c.bf16 %v4456_v1, %v4455_v0  ;;  %v4458_v13 = vld [vmem:[%s9895_s1 + $0x128] sm:$0xff] }
  0x49   : > { %7169 = vmatprep.subr.bf16.mxu0 %v7168_v39  ;;  %5562 = vmatprep.mubr.f32.mxu1 %v8234_v46  ;;  %v8370_v6 = vld [vmem:[#allocation2 + $0x70] sm:$0xff]  ;;  %v4457_v61 = vld [vmem:[%s9895_s1 + $0x120] sm:$0xff] }
  0x4a   : > { %6134 = vmatprep.mubr.f32.mxu0 %v8324_v47  ;;  %5563 = vmatmul.mubr.f32.gmra.mrb[4].mxu1 %v8255_v59  ;;  %v8379_v12 = vld [vmem:[#allocation2 + $0x72] sm:$0xff]  ;;  %v8473_v21 = vld [vmem:[#allocation2 + $0x42] sm:$0xff]  ;;  %v6784_v23 = vpack.c.bf16 %v4458_v13, %v4457_v61 }
  0x4b   : > { %6755 = vmatpush3.bf16.msra.mxu1 %v6752_v30  ;;  %6135 = vmatmul.mubr.f32.gmra.mrb[4].mxu0 %v8341_v51  ;;  %1679 = vst [vmem:[#allocation2 + $0x71] sm:$0xff] %v8364_v3  ;;  %v8390_v15 = vld [vmem:[#allocation2 + $0x80] sm:$0xff]  ;;  %v417_v30 = vld [vmem:[%s9895_s1 + $0x78] sm:$0xff]  ;;  %9918 = vst [vmem:[#allocation7_spill] sm:$0xff] %v8473_v21 }
  0x4c   : > { %7171 = vmatpush3.bf16.msra.mxu0 %v7168_v39  ;;  %6757 = vmatprep.subr.bf16.mxu1 %v6756_v55  ;;  %v8394_v17 = vld [vmem:[#allocation2 + $0x82] sm:$0xff]  ;;  %v8467_v20 = vld [vmem:[#allocation2 + $0x32] sm:$0xff] }
  0x4d   : > { %7173 = vmatprep.subr.bf16.mxu0 %v7172_v60  ;;  %5565 = vmatprep.mubr.f32.mxu1 %v8269_v7  ;;  %1680 = vst [vmem:[#allocation2 + $0x81] sm:$0xff] %v8368_v4  ;;  %v8493_v33 = vld [vmem:[#allocation2 + $0x52] sm:$0xff]  ;;  %v8531_v1 = vld [vmem:[#allocation2 + $0x20] sm:$0xff] }
  0x4e   : > { %6137 = vmatprep.mubr.f32.mxu0 %v8364_v3  ;;  %5566 = vmatmul.mubr.f32.gmra.mrb[6].mxu1 %v8300_v28  ;;  %9919 = vst [vmem:[#allocation8_spill] sm:$0xff] %v8493_v33  ;;  %v8496_v34 = vld [vmem:[#allocation2 + $0x62] sm:$0xff]  ;;  %9923 = vst [vmem:[#allocation11_spill] sm:$0xff] %v8531_v1  ;;  %v4679_v61 = vld [vmem:[%s9895_s1 + $0x7d8] sm:$0xff] }
  0x4f   : > { %6759 = vmatpush3.bf16.msra.mxu1 %v6756_v55  ;;  %6138 = vmatmul.mubr.f32.gmra.mrb[6].mxu0 %v8368_v4  ;;  %v4669_v55 = vld [vmem:[%s9895_s1 + $0x788] sm:$0xff]  ;;  %9920 = vst [vmem:[#allocation9_spill] sm:$0xff] %v8496_v34 }
  0x50   : > { %7175 = vmatpush3.bf16.msra.mxu0 %v7172_v60  ;;  %6761 = vmatprep.subr.bf16.mxu1 %v6760_v5  ;;  %v6776_v60 = vpack.c.bf16 %v4454_v50, %v4453_v44  ;;  %v7192_v63 = vpack.c.bf16 %v4669_v55, %v4668_v52  ;;  %v4461_v44 = vld [vmem:[%s9895_s1 + $0x140] sm:$0xff]  ;;  %v4462_v50 = vld [vmem:[%s9895_s1 + $0x148] sm:$0xff] }
  0x51   : > { %7177 = vmatprep.subr.bf16.mxu0 %v7176_v9  ;;  %5600 = vmatprep.mubr.f32.mxu1 %v7895_v8  ;;  %v416_v8 = vld [vmem:[%s9895_s1 + $0x70] sm:$0xff]  ;;  %v4676_v52 = vld [vmem:[%s9895_s1 + $0x7c0] sm:$0xff]  ;;  %v4677_v55 = vld [vmem:[%s9895_s1 + $0x7c8] sm:$0xff] }
  0x52   : > { %6172 = vmatprep.mubr.f32.mxu0 %v8392_v16  ;;  %v6772_v39 = vpack.c.bf16 %v417_v30, %v416_v8  ;;  %v4674_v8 = vld [vmem:[%s9895_s1 + $0x7b0] sm:$0xff]  ;;  %v4675_v30 = vld [vmem:[%s9895_s1 + $0x7b8] sm:$0xff]  ;;  %v653_v13 = vld [vmem:[#allocation2 + $0x2] sm:$0xff] }
  0x53   : > { %6763 = vmatpush3.bf16.msra.mxu1 %v6760_v5  ;;  %v4671_v5 = vld [vmem:[%s9895_s1 + $0x798] sm:$0xff] }
  0x54   : > { %7179 = vmatpush3.bf16.msra.mxu0 %v7176_v9  ;;  %6765 = vmatprep.subr.bf16.mxu1 %v6764_v18  ;;  %v8452_v9 = vld [vmem:[#allocation2 + $0x22] sm:$0xff]  ;;  %v7196_v11 = vpack.c.bf16 %v4671_v5, %v4670_v2  ;;  %v7208_v2 = vpack.c.bf16 %v4677_v55, %v4676_v52  ;;  %v4463_v5 = vld [vmem:[%s9895_s1 + $0x150] sm:$0xff] }
  0x55   : > { %7181 = vmatprep.subr.bf16.mxu0 %v7180_v19  ;;  %9917 = vst [vmem:[#allocation6_spill] sm:$0xff] %v8452_v9  ;;  %v8528_v0 = vld [vmem:[#allocation2 + $0x82] sm:$0xff]  ;;  %v2936_v55 = vld [vmem:[%s8561_s30 + $0x10] sm:$0xff] }
  0x56   : > { %v2935_v52 = vld [vmem:[%s8561_s30 + $0x8] sm:$0xff]  ;;  %v2944_v16 = vmul.f32 %v8110_v31, %v2936_v55  ;;  %v8599_v55 = vstv %s2967_s9 }
  0x57   : > { %6767 = vmatpush3.bf16.msra.mxu1 %v6764_v18  ;;  %v4672_v18 = vld [vmem:[%s9895_s1 + $0x7a0] sm:$0xff] }
  0x58   : > { %7183 = vmatpush3.bf16.msra.mxu0 %v7180_v19  ;;  %6769 = vmatprep.subr.bf16.mxu1 %v6768_v27  ;;  %v4673_v19 = vld [vmem:[%s9895_s1 + $0x7a8] sm:$0xff] }
  0x59   : > { %7185 = vmatprep.subr.bf16.mxu0 %v7184_v29  ;;  %v7200_v24 = vpack.c.bf16 %v4673_v19, %v4672_v18  ;;  %v4465_v18 = vld [vmem:[%s9895_s1 + $0x160] sm:$0xff]  ;;  %v4466_v19 = vld [vmem:[%s9895_s1 + $0x168] sm:$0xff] }
  0x5b   : > { %6771 = vmatpush3.bf16.msra.mxu1 %v6768_v27  ;;  %v4459_v27 = vld [vmem:[%s9895_s1 + $0x130] sm:$0xff] }
  0x5c   : > { %7187 = vmatpush3.bf16.msra.mxu0 %v7184_v29  ;;  %6773 = vmatprep.subr.bf16.mxu1 %v6772_v39  ;;  %v4460_v29 = vld [vmem:[%s9895_s1 + $0x138] sm:$0xff] }
  0x5d   : > { %7189 = vmatprep.subr.bf16.mxu0 %v7188_v40 }
  0x5f   : > { %6775 = vmatpush3.bf16.msra.mxu1 %v6772_v39  ;;  %v6788_v39 = vpack.c.bf16 %v4460_v29, %v4459_v27  ;;  %v4681_v27 = vld [vmem:[%s9895_s1 + $0x7e8] sm:$0xff]  ;;  %v4467_v29 = vld [vmem:[%s9895_s1 + $0x170] sm:$0xff] }
  0x60   : > { %7191 = vmatpush3.bf16.msra.mxu0 %v7188_v40  ;;  %6777 = vmatprep.subr.bf16.mxu1 %v6776_v60  ;;  %v7204_v40 = vpack.c.bf16 %v4675_v30, %v4674_v8  ;;  %v4468_v8 = vld [vmem:[%s9895_s1 + $0x178] sm:$0xff] }
  0x61   : > { %7193 = vmatprep.subr.bf16.mxu0 %v7192_v63 }
  0x62   : > { %5601 = vmatmul.mubr.f32.vlgmr.msra.gmra.mrb[0].mxu1 %v8229_v43 }
  0x63   : > { %6779 = vmatpush3.bf16.msra.mxu1 %v6776_v60  ;;  %6173 = vmatmul.mubr.f32.vlgmr.msra.gmra.mrb[0].mxu0 %v8452_v9  ;;  %v8525_v60 = vld [vmem:[#allocation2 + $0x72] sm:$0xff]  ;;  %v2943_v9 = vmul.f32 %v8110_v31, %v2935_v52 }
  0x64   : > { %7195 = vmatpush3.bf16.msra.mxu0 %v7192_v63  ;;  %6781 = vmatprep.subr.bf16.mxu1 %v6780_v10  ;;  %9922 = vst [vmem:[#allocation10_spill] sm:$0xff] %v8525_v60  ;;  %v6792_v63 = vpack.c.bf16 %v4462_v50, %v4461_v44  ;;  %v8574_v50 = vpack.c.bf16 %v4468_v8, %v4467_v29 }
  0x65   : > { %7197 = vmatprep.subr.bf16.mxu0 %v7196_v11  ;;  %5603 = vmatprep.mubr.f32.mxu1 %v8240_v53  ;;  %v2951_v8 = vadd.f32 %v8117_v32, %v2943_v9 }
  0x66   : > { %6175 = vmatprep.mubr.f32.mxu0 %v8467_v20  ;;  %5604 = vmatmul.mubr.f32.gmra.mrb[2].mxu1 %v8294_v25 }
  0x67   : > { %6783 = vmatpush3.bf16.msra.mxu1 %v6780_v10  ;;  %6176 = vmatmul.mubr.f32.gmra.mrb[2].mxu0 %v8473_v21  ;;  %v4464_v10 = vld [vmem:[%s9895_s1 + $0x158] sm:$0xff]  ;;  %v2959_v9 = vmax.f32 %v2951_v8, 0.0  ;;  %v8632_v8 = vld [vmem:[#allocation2 + $0x40] sm:$0xff] }
  0x68   : > { %7199 = vmatpush3.bf16.msra.mxu0 %v7196_v11  ;;  %6785 = vmatprep.subr.bf16.mxu1 %v6784_v23  ;;  %v4678_v11 = vld [vmem:[%s9895_s1 + $0x7d0] sm:$0xff] }
  0x69   : > { %7201 = vmatprep.subr.bf16.mxu0 %v7200_v24  ;;  %5606 = vmatprep.mubr.f32.mxu1 %v8319_v41  ;;  %v7212_v30 = vpack.c.bf16 %v4679_v61, %v4678_v11  ;;  %v2938_v11 = vld [vmem:[%s8561_s30 + $0x20] sm:$0xff]  ;;  %v2939_v61 = vld [vmem:[%s8561_s30 + $0x28] sm:$0xff] }
  0x6a   : > { %6178 = vmatprep.mubr.f32.mxu0 %v8493_v33  ;;  %5607 = vmatmul.mubr.f32.gmra.mrb[4].mxu1 %v8333_v48 }
  0x6b   : > { %6787 = vmatpush3.bf16.msra.mxu1 %v6784_v23  ;;  %6179 = vmatmul.mubr.f32.gmra.mrb[4].mxu0 %v8496_v34  ;;  %v4680_v23 = vld [vmem:[%s9895_s1 + $0x7e0] sm:$0xff] }
  0x6c   : > { %7203 = vmatpush3.bf16.msra.mxu0 %v7200_v24  ;;  %6789 = vmatprep.subr.bf16.mxu1 %v6788_v39  ;;  %v6796_v24 = vpack.c.bf16 %v4464_v10, %v4463_v5  ;;  %v7216_v44 = vpack.c.bf16 %v4681_v27, %v4680_v23  ;;  %v2937_v5 = vld [vmem:[%s8561_s30 + $0x18] sm:$0xff]  ;;  %v2947_v23 = vmul.f32 %v8110_v31, %v2939_v61 }
  0x6d   : > { %7205 = vmatprep.subr.bf16.mxu0 %v7204_v40  ;;  %5609 = vmatprep.mubr.f32.mxu1 %v8343_v56 }
  0x6e   : > { %6181 = vmatprep.mubr.f32.mxu0 %v8525_v60  ;;  %5610 = vmatmul.mubr.f32.gmra.mrb[6].mxu1 %v8370_v6  ;;  %v2955_v14 = vadd.f32 %v8117_v32, %v2947_v23 }
  0x6f   : > { %6791 = vmatpush3.bf16.msra.mxu1 %v6788_v39  ;;  %6182 = vmatmul.mubr.f32.gmra.mrb[6].mxu0 %v8528_v0  ;;  %v2934_v39 = vld [vmem:[%s8561_s30] sm:$0xff] }
  0x70   : > { %7207 = vmatpush3.bf16.msra.mxu0 %v7204_v40  ;;  %6793 = vmatprep.subr.bf16.mxu1 %v6792_v63  ;;  %v6800_v40 = vpack.c.bf16 %v4466_v19, %v4465_v18  ;;  %v2942_v10 = vmul.f32 %v8110_v31, %v2934_v39  ;;  %v4682_v18 = vld [vmem:[%s9895_s1 + $0x7f0] sm:$0xff]  ;;  %v4683_v19 = vld [vmem:[%s9895_s1 + $0x7f8] sm:$0xff]  ;;  %v2952_v39 = vadd.f32 %v8117_v32, %v2944_v16 }
  0x71   : > { %7209 = vmatprep.subr.bf16.mxu0 %v7208_v2  ;;  %5644 = vmatprep.mubr.f32.mxu1 %v653_v13  ;;  %v2940_v13 = vld [vmem:[%s8561_s30 + $0x30] sm:$0xff] }
  0x72   : > { %6216 = vmatprep.mubr.f32.mxu0 %v8531_v1  ;;  %v2948_v27 = vmul.f32 %v8110_v31, %v2940_v13  ;;  %v2950_v29 = vadd.f32 %v8117_v32, %v2942_v10  ;;  %v8604_v1 = vld [vmem:[#allocation2 + $0x10] sm:$0xff]  ;;  %v2960_v10 = vmax.f32 %v2952_v39, 0.0  ;;  %v4470_v13 = vld [vmem:[%s9895_s1 + $0x188] sm:$0xff] }
  0x73   : > { %6795 = vmatpush3.bf16.msra.mxu1 %v6792_v63  ;;  %v2945_v63 = vmul.f32 %v8110_v31, %v2937_v5  ;;  %9924 = vst [vmem:[#allocation12_spill] sm:$0xff] %v8604_v1  ;;  %v8634_v39 = vld [vmem:[#allocation2 + $0x22] sm:$0xff] }
  0x74   : > { %7211 = vmatpush3.bf16.msra.mxu0 %v7208_v2  ;;  %6797 = vmatprep.subr.bf16.mxu1 %v6796_v24  ;;  %v2946_v2 = vmul.f32 %v8110_v31, %v2938_v11  ;;  %v2956_v11 = vadd.f32 %v8117_v32, %v2948_v27  ;;  %v2958_v61 = vmax.f32 %v2950_v29, 0.0  ;;  %v7220_v31 = vpack.c.bf16 %v4683_v19, %v4682_v18  ;;  %v4685_v18 = vld [vmem:[%s9895_s1 + $0x808] sm:$0xff]  ;;  %v8630_v29 = vld [vmem:[#allocation2 + $0x30] sm:$0xff]  ;;  %v4688_v1 = vld [vmem:[%s9895_s1 + $0x820] sm:$0xff] }
  0x75   : > { %7213 = vmatprep.subr.bf16.mxu0 %v7212_v30  ;;  %v2953_v52 = vadd.f32 %v8117_v32, %v2945_v63  ;;  %v8622_v19 = vmul.f32 %v8599_v55, %v2959_v9  ;;  %v8625_v27 = vmul.f32 %v8599_v55, %v2960_v10  ;;  %v8648_v9 = vld [vmem:[#allocation2 + $0x60] sm:$0xff]  ;;  %v8650_v10 = vld [vmem:[#allocation2 + $0x70] sm:$0xff] }
  0x76   : > { %v2954_v5 = vadd.f32 %v8117_v32, %v2946_v2  ;;  %v2963_v32 = vmax.f32 %v2955_v14, 0.0  ;;  %v2964_v2 = vmax.f32 %v2956_v11, 0.0  ;;  %v8613_v23 = vmul.f32 %v8599_v55, %v2958_v61  ;;  %v8646_v61 = vld [vmem:[#allocation2 + $0x50] sm:$0xff] }
  0x77   : > { %6799 = vmatpush3.bf16.msra.mxu1 %v6796_v24  ;;  %v2961_v16 = vmax.f32 %v2953_v52, 0.0  ;;  %v4469_v24 = vld [vmem:[%s9895_s1 + $0x180] sm:$0xff]  ;;  %2978 = vst [vmem:[#allocation2 + $0x21] sm:$0xff] %v8622_v19  ;;  %2979 = vst [vmem:[#allocation2 + $0x31] sm:$0xff] %v8625_v27 }
  0x78   : > { %7215 = vmatpush3.bf16.msra.mxu0 %v7212_v30  ;;  %6801 = vmatprep.subr.bf16.mxu1 %v6800_v40  ;;  %v2962_v63 = vmax.f32 %v2954_v5, 0.0  ;;  %v4684_v30 = vld [vmem:[%s9895_s1 + $0x800] sm:$0xff]  ;;  %v8640_v5 = vmul.f32 %v8599_v55, %v2963_v32  ;;  %v8643_v11 = vmul.f32 %v8599_v55, %v2964_v2  ;;  %2977 = vst [vmem:[#allocation2 + $0x11] sm:$0xff] %v8613_v23  ;;  %v4472_v32 = vld [vmem:[%s9895_s1 + $0x198] sm:$0xff] }
  0x79   : > { %7217 = vmatprep.subr.bf16.mxu0 %v7216_v44  ;;  %v8628_v14 = vmul.f32 %v8599_v55, %v2961_v16  ;;  %v7224_v16 = vpack.c.bf16 %v4685_v18, %v4684_v30  ;;  %v4473_v30 = vld [vmem:[%s9895_s1 + $0x1a0] sm:$0xff]  ;;  %v4474_v18 = vld [vmem:[%s9895_s1 + $0x1a8] sm:$0xff] }
  0x7a   : > { %v8637_v52 = vmul.f32 %v8599_v55, %v2962_v63  ;;  %v4471_v63 = vld [vmem:[%s9895_s1 + $0x190] sm:$0xff]  ;;  %2982 = vst [vmem:[#allocation2 + $0x61] sm:$0xff] %v8640_v5  ;;  %2983 = vst [vmem:[#allocation2 + $0x71] sm:$0xff] %v8643_v11 }
  0x7b   : > { %6803 = vmatpush3.bf16.msra.mxu1 %v6800_v40  ;;  %v6808_v40 = vpack.c.bf16 %v4470_v13, %v4469_v24  ;;  %2980 = vst [vmem:[#allocation2 + $0x41] sm:$0xff] %v8628_v14  ;;  %v4687_v24 = vld [vmem:[%s9895_s1 + $0x818] sm:$0xff]  ;;  %v6812_v13 = vpack.c.bf16 %v4472_v32, %v4471_v63  ;;  %v4475_v32 = vld [vmem:[%s9895_s1 + $0x1b0] sm:$0xff] }
  0x7c   : > { %7219 = vmatpush3.bf16.msra.mxu0 %v7216_v44  ;;  %6805 = vmatprep.subr.bf16.mxu1 %v8574_v50  ;;  %2981 = vst [vmem:[#allocation2 + $0x51] sm:$0xff] %v8637_v52  ;;  %v4686_v44 = vld [vmem:[%s9895_s1 + $0x810] sm:$0xff] }
  0x7d   : > { %7221 = vmatprep.subr.bf16.mxu0 %v7220_v31  ;;  %v7228_v2 = vpack.c.bf16 %v4687_v24, %v4686_v44  ;;  %v4476_v44 = vld [vmem:[%s9895_s1 + $0x1b8] sm:$0xff] }
  0x7f   : > { %6807 = vmatpush3.bf16.msra.mxu1 %v8574_v50  ;;  %v4689_v50 = vld [vmem:[%s9895_s1 + $0x828] sm:$0xff] }
  0x80   : > { %7223 = vmatpush3.bf16.msra.mxu0 %v7220_v31  ;;  %6809 = vmatprep.subr.bf16.mxu1 %v6808_v40  ;;  %v6816_v31 = vpack.c.bf16 %v4474_v18, %v4473_v30  ;;  %v7232_v63 = vpack.c.bf16 %v4689_v50, %v4688_v1  ;;  %v6820_v1 = vpack.c.bf16 %v4476_v44, %v4475_v32  ;;  %v4477_v30 = vld [vmem:[%s9895_s1 + $0x1c0] sm:$0xff]  ;;  %v4478_v18 = vld [vmem:[%s9895_s1 + $0x1c8] sm:$0xff] }
  0x81   : > { %7225 = vmatprep.subr.bf16.mxu0 %v7224_v16  ;;  %v8717_v50 = vld [vmem:[#allocation2 + $0x80] sm:$0xff]  ;;  %v6824_v32 = vpack.c.bf16 %v4478_v18, %v4477_v30 }
  0x82   : > { %5645 = vmatmul.mubr.f32.vlgmr.msra.gmra.mrb[0].mxu1 %v8231_v45  ;;  %9925 = vst [vmem:[#allocation13_spill] sm:$0xff] %v8717_v50  ;;  %v8735_v30 = vld [vmem:[#allocation2] sm:$0xff] }
  0x83   : > { %6811 = vmatpush3.bf16.msra.mxu1 %v6808_v40  ;;  %6217 = vmatmul.mubr.f32.vlgmr.msra.gmra.mrb[0].mxu0 %v8630_v29  ;;  %v4690_v40 = vld [vmem:[%s9895_s1 + $0x830] sm:$0xff] }
  0x84   : > { %7227 = vmatpush3.bf16.msra.mxu0 %v7224_v16  ;;  %6813 = vmatprep.subr.bf16.mxu1 %v6812_v13  ;;  %v4691_v16 = vld [vmem:[%s9895_s1 + $0x838] sm:$0xff] }
  0x85   : > { %7229 = vmatprep.subr.bf16.mxu0 %v7228_v2  ;;  %5647 = vmatprep.mubr.f32.mxu1 %v8242_v54  ;;  %v7236_v24 = vpack.c.bf16 %v4691_v16, %v4690_v40  ;;  %v4479_v40 = vld [vmem:[%s9895_s1 + $0x1d0] sm:$0xff]  ;;  %v4480_v16 = vld [vmem:[%s9895_s1 + $0x1d8] sm:$0xff] }
  0x86   : > { %6219 = vmatprep.mubr.f32.mxu0 %v8632_v8  ;;  %5648 = vmatmul.mubr.f32.gmra.mrb[2].mxu1 %v8309_v35  ;;  %v6828_v18 = vpack.c.bf16 %v4480_v16, %v4479_v40 }
  0x87   : > { %6815 = vmatpush3.bf16.msra.mxu1 %v6812_v13  ;;  %6220 = vmatmul.mubr.f32.gmra.mrb[2].mxu0 %v8646_v61  ;;  %v4692_v13 = vld [vmem:[%s9895_s1 + $0x840] sm:$0xff] }
  0x88   : > { %7231 = vmatpush3.bf16.msra.mxu0 %v7228_v2  ;;  %6817 = vmatprep.subr.bf16.mxu1 %v6816_v31  ;;  %v4693_v2 = vld [vmem:[%s9895_s1 + $0x848] sm:$0xff] }
  0x89   : > { %7233 = vmatprep.subr.bf16.mxu0 %v7232_v63  ;;  %5650 = vmatprep.mubr.f32.mxu1 %v8321_v42  ;;  %v7240_v44 = vpack.c.bf16 %v4693_v2, %v4692_v13  ;;  %v4481_v2 = vld [vmem:[%s9895_s1 + $0x1e0] sm:$0xff] }
  0x8a   : > { %6222 = vmatprep.mubr.f32.mxu0 %v8648_v9  ;;  %5651 = vmatmul.mubr.f32.gmra.mrb[4].mxu1 %v8335_v49 }
  0x8b   : > { %6819 = vmatpush3.bf16.msra.mxu1 %v6816_v31  ;;  %6223 = vmatmul.mubr.f32.gmra.mrb[4].mxu0 %v8650_v10  ;;  %v4694_v31 = vld [vmem:[%s9895_s1 + $0x850] sm:$0xff] }
  0x8c   : > { %7235 = vmatpush3.bf16.msra.mxu0 %v7232_v63  ;;  %6821 = vmatprep.subr.bf16.mxu1 %v6820_v1  ;;  %v4695_v63 = vld [vmem:[%s9895_s1 + $0x858] sm:$0xff] }
  0x8d   : > { %7237 = vmatprep.subr.bf16.mxu0 %v7236_v24  ;;  %5653 = vmatprep.mubr.f32.mxu1 %v8345_v57  ;;  %v7244_v13 = vpack.c.bf16 %v4695_v63, %v4694_v31  ;;  %v4484_v31 = vld [vmem:[%s9895_s1 + $0x1f8] sm:$0xff]  ;;  %v4698_v63 = vld [vmem:[%s9895_s1 + $0x870] sm:$0xff] }
  0x8e   : > { %6225 = vmatprep.mubr.f32.mxu0 %v8717_v50  ;;  %5654 = vmatmul.mubr.f32.gmra.mrb[6].mxu1 %v8379_v12  ;;  %v4482_v50 = vld [vmem:[%s9895_s1 + $0x1e8] sm:$0xff] }
  0x8f   : > { %6823 = vmatpush3.bf16.msra.mxu1 %v6820_v1  ;;  %6226 = vmatmul.mubr.f32.gmra.mrb[6].mxu0 %v8735_v30  ;;  %v4696_v1 = vld [vmem:[%s9895_s1 + $0x860] sm:$0xff]  ;;  %v6832_v40 = vpack.c.bf16 %v4482_v50, %v4481_v2 }
  0x90   : > { %7239 = vmatpush3.bf16.msra.mxu0 %v7236_v24  ;;  %6825 = vmatprep.subr.bf16.mxu1 %v6824_v32  ;;  %v4697_v24 = vld [vmem:[%s9895_s1 + $0x868] sm:$0xff]  ;;  %v4485_v2 = vld [vmem:[%s9895_s1 + $0x200] sm:$0xff] }
  0x91   : > { %7241 = vmatprep.subr.bf16.mxu0 %v7240_v44  ;;  %5688 = vmatprep.mubr.f32.mxu1 %v8229_v43  ;;  %v7248_v16 = vpack.c.bf16 %v4697_v24, %v4696_v1  ;;  %v4483_v43 = vld [vmem:[%s9895_s1 + $0x1f0] sm:$0xff]  ;;  %v4486_v1 = vld [vmem:[%s9895_s1 + $0x208] sm:$0xff]  ;;  %v4700_v24 = vld [vmem:[%s9895_s1 + $0x880] sm:$0xff] }
  0x92   : > { %6260 = vmatprep.mubr.f32.mxu0 %v8220_v37  ;;  %v6836_v50 = vpack.c.bf16 %v4484_v31, %v4483_v43  ;;  %v4487_v31 = vld [vmem:[%s9895_s1 + $0x210] sm:$0xff] }
  0x93   : > { %6827 = vmatpush3.bf16.msra.mxu1 %v6824_v32  ;;  %v4699_v32 = vld [vmem:[%s9895_s1 + $0x878] sm:$0xff] }
  0x94   : > { %7243 = vmatpush3.bf16.msra.mxu0 %v7240_v44  ;;  %6829 = vmatprep.subr.bf16.mxu1 %v6828_v18  ;;  %v7252_v44 = vpack.c.bf16 %v4699_v32, %v4698_v63  ;;  %v4488_v63 = vld [vmem:[%s9895_s1 + $0x218] sm:$0xff]  ;;  %v4702_v32 = vld [vmem:[%s9895_s1 + $0x890] sm:$0xff] }
  0x95   : > { %7245 = vmatprep.subr.bf16.mxu0 %v7244_v13 }
  0x97   : > { %6831 = vmatpush3.bf16.msra.mxu1 %v6828_v18  ;;  %v4701_v18 = vld [vmem:[%s9895_s1 + $0x888] sm:$0xff] }
  0x98   : > { %7247 = vmatpush3.bf16.msra.mxu0 %v7244_v13  ;;  %6833 = vmatprep.subr.bf16.mxu1 %v6832_v40  ;;  %v6840_v13 = vpack.c.bf16 %v4486_v1, %v4485_v2  ;;  %v7256_v43 = vpack.c.bf16 %v4701_v18, %v4700_v24  ;;  %v4489_v1 = vld [vmem:[%s9895_s1 + $0x220] sm:$0xff]  ;;  %v4490_v24 = vld [vmem:[%s9895_s1 + $0x228] sm:$0xff] }
  0x99   : > { %7249 = vmatprep.subr.bf16.mxu0 %v7248_v16  ;;  %v4704_v18 = vld [vmem:[%s9895_s1 + $0x8a0] sm:$0xff] }
  0x9b   : > { %6835 = vmatpush3.bf16.msra.mxu1 %v6832_v40  ;;  %v4703_v40 = vld [vmem:[%s9895_s1 + $0x898] sm:$0xff] }
  0x9c   : > { %7251 = vmatpush3.bf16.msra.mxu0 %v7248_v16  ;;  %6837 = vmatprep.subr.bf16.mxu1 %v6836_v50  ;;  %v6844_v16 = vpack.c.bf16 %v4488_v63, %v4487_v31  ;;  %v7260_v2 = vpack.c.bf16 %v4703_v40, %v4702_v32  ;;  %v4491_v63 = vld [vmem:[%s9895_s1 + $0x230] sm:$0xff]  ;;  %v4492_v32 = vld [vmem:[%s9895_s1 + $0x238] sm:$0xff] }
  0x9d   : > { %7253 = vmatprep.subr.bf16.mxu0 %v7252_v44  ;;  %v6852_v40 = vpack.c.bf16 %v4492_v32, %v4491_v63  ;;  %v8834_v63 = vld [vmem:[#allocation2 + $0x91] sm:$0xff] }
  0x9f   : > { %6839 = vmatpush3.bf16.msra.mxu1 %v6836_v50  ;;  %v4705_v50 = vld [vmem:[%s9895_s1 + $0x8a8] sm:$0xff] }
  0xa0   : > { %7255 = vmatpush3.bf16.msra.mxu0 %v7252_v44  ;;  %6841 = vmatprep.subr.bf16.mxu1 %v6840_v13  ;;  %v6848_v44 = vpack.c.bf16 %v4490_v24, %v4489_v1  ;;  %v7264_v31 = vpack.c.bf16 %v4705_v50, %v4704_v18  ;;  %v4493_v24 = vld [vmem:[%s9895_s1 + $0x240] sm:$0xff]  ;;  %v4494_v18 = vld [vmem:[%s9895_s1 + $0x248] sm:$0xff] }
  0xa1   : > { %7257 = vmatprep.subr.bf16.mxu0 %v7256_v43  ;;  %v6856_v50 = vpack.c.bf16 %v4494_v18, %v4493_v24 }
  0xa2   : > { %5689 = vmatmul.mubr.f32.vlgmr.msra.gmra.mrb[0].mxu1 %v8240_v53 }
  0xa3   : > { %6843 = vmatpush3.bf16.msra.mxu1 %v6840_v13  ;;  %6261 = vmatmul.mubr.f32.vlgmr.msra.gmra.mrb[0].mxu0 %v8290_v22  ;;  %v4706_v13 = vld [vmem:[%s9895_s1 + $0x8b0] sm:$0xff] }
  0xa4   : > { %7259 = vmatpush3.bf16.msra.mxu0 %v7256_v43  ;;  %6845 = vmatprep.subr.bf16.mxu1 %v6844_v16  ;;  %v4707_v43 = vld [vmem:[%s9895_s1 + $0x8b8] sm:$0xff] }
  0xa5   : > { %7261 = vmatprep.subr.bf16.mxu0 %v7260_v2  ;;  %5691 = vmatprep.mubr.f32.mxu1 %v8294_v25  ;;  %v7268_v1 = vpack.c.bf16 %v4707_v43, %v4706_v13  ;;  %v4495_v13 = vld [vmem:[%s9895_s1 + $0x250] sm:$0xff]  ;;  %v4496_v43 = vld [vmem:[%s9895_s1 + $0x258] sm:$0xff] }
  0xa6   : > { %6263 = vmatprep.mubr.f32.mxu0 %v8297_v26  ;;  %5692 = vmatmul.mubr.f32.gmra.mrb[2].mxu1 %v8319_v41  ;;  %v6860_v24 = vpack.c.bf16 %v4496_v43, %v4495_v13  ;;  %v4500_v43 = vld [vmem:[%s9895_s1 + $0x278] sm:$0xff] }
  0xa7   : > { %6847 = vmatpush3.bf16.msra.mxu1 %v6844_v16  ;;  %6264 = vmatmul.mubr.f32.gmra.mrb[2].mxu0 %v8324_v47  ;;  %v4708_v16 = vld [vmem:[%s9895_s1 + $0x8c0] sm:$0xff] }
  0xa8   : > { %7263 = vmatpush3.bf16.msra.mxu0 %v7260_v2  ;;  %6849 = vmatprep.subr.bf16.mxu1 %v6848_v44  ;;  %v4709_v2 = vld [vmem:[%s9895_s1 + $0x8c8] sm:$0xff] }
  0xa9   : > { %7265 = vmatprep.subr.bf16.mxu0 %v7264_v31  ;;  %5694 = vmatprep.mubr.f32.mxu1 %v8333_v48  ;;  %v7272_v32 = vpack.c.bf16 %v4709_v2, %v4708_v16  ;;  %v4497_v16 = vld [vmem:[%s9895_s1 + $0x260] sm:$0xff]  ;;  %v4498_v2 = vld [vmem:[%s9895_s1 + $0x268] sm:$0xff] }
  0xaa   : > { %6266 = vmatprep.mubr.f32.mxu0 %v8341_v51  ;;  %5695 = vmatmul.mubr.f32.gmra.mrb[4].mxu1 %v8343_v56 }
  0xab   : > { %6851 = vmatpush3.bf16.msra.mxu1 %v6848_v44  ;;  %6267 = vmatmul.mubr.f32.gmra.mrb[4].mxu0 %v8364_v3  ;;  %v4710_v44 = vld [vmem:[%s9895_s1 + $0x8d0] sm:$0xff] }
  0xac   : > { %7267 = vmatpush3.bf16.msra.mxu0 %v7264_v31  ;;  %6853 = vmatprep.subr.bf16.mxu1 %v6852_v40  ;;  %v4711_v31 = vld [vmem:[%s9895_s1 + $0x8d8] sm:$0xff] }
  0xad   : > { %7269 = vmatprep.subr.bf16.mxu0 %v7268_v1  ;;  %5697 = vmatprep.mubr.f32.mxu1 %v8370_v6  ;;  %v7276_v18 = vpack.c.bf16 %v4711_v31, %v4710_v44  ;;  %v4714_v44 = vld [vmem:[%s9895_s1 + $0x8f0] sm:$0xff]  ;;  %v4501_v31 = vld [vmem:[%s9895_s1 + $0x280] sm:$0xff] }
  0xae   : > { %6269 = vmatprep.mubr.f32.mxu0 %v8368_v4  ;;  %5698 = vmatmul.mubr.f32.gmra.mrb[6].mxu1 %v8390_v15  ;;  %v4712_v4 = vld [vmem:[%s9895_s1 + $0x8e0] sm:$0xff] }
  0xaf   : > { %6855 = vmatpush3.bf16.msra.mxu1 %v6852_v40  ;;  %6270 = vmatmul.mubr.f32.gmra.mrb[6].mxu0 %v8834_v63  ;;  %v4713_v40 = vld [vmem:[%s9895_s1 + $0x8e8] sm:$0xff] }
  0xb0   : > { %7271 = vmatpush3.bf16.msra.mxu0 %v7268_v1  ;;  %6857 = vmatprep.subr.bf16.mxu1 %v6856_v50  ;;  %v6864_v1 = vpack.c.bf16 %v4498_v2, %v4497_v16  ;;  %v7280_v13 = vpack.c.bf16 %v4713_v40, %v4712_v4  ;;  %v4502_v16 = vld [vmem:[%s9895_s1 + $0x288] sm:$0xff]  ;;  %v4723_v2 = vld [vmem:[%s9895_s1 + $0x900] sm:$0xff]  ;;  %v4503_v40 = vld [vmem:[%s9895_s1 + $0x290] sm:$0xff] }
  0xb1   : > { %7273 = vmatprep.subr.bf16.mxu0 %v7272_v32  ;;  %5732 = vmatprep.mubr.f32.mxu1 %v8162_v58  ;;  %v4499_v58 = vld [vmem:[%s9895_s1 + $0x270] sm:$0xff] }
  0xb2   : > { %6304 = vmatprep.mubr.f32.mxu0 %v8634_v39  ;;  %v4715_v39 = vld [vmem:[%s9895_s1 + $0x8f8] sm:$0xff] }
  0xb3   : > { %6859 = vmatpush3.bf16.msra.mxu1 %v6856_v50  ;;  %v6868_v50 = vpack.c.bf16 %v4500_v43, %v4499_v58  ;;  %v4504_v58 = vld [vmem:[%s9895_s1 + $0x298] sm:$0xff]  ;;  %v4725_v43 = vld [vmem:[%s9895_s1 + $0x910] sm:$0xff] }
  0xb4   : > { %7275 = vmatpush3.bf16.msra.mxu0 %v7272_v32  ;;  %6861 = vmatprep.subr.bf16.mxu1 %v6860_v24  ;;  %v7284_v32 = vpack.c.bf16 %v4715_v39, %v4714_v44  ;;  %v4505_v39 = vld [vmem:[%s9895_s1 + $0x2a0] sm:$0xff] }
  0xb5   : > { %7277 = vmatprep.subr.bf16.mxu0 %v7276_v18 }
  0xb7   : > { %6863 = vmatpush3.bf16.msra.mxu1 %v6860_v24  ;;  %v4724_v24 = vld [vmem:[%s9895_s1 + $0x908] sm:$0xff] }
  0xb8   : > { %7279 = vmatpush3.bf16.msra.mxu0 %v7276_v18  ;;  %6865 = vmatprep.subr.bf16.mxu1 %v6864_v1  ;;  %v6872_v18 = vpack.c.bf16 %v4502_v16, %v4501_v31  ;;  %v7288_v4 = vpack.c.bf16 %v4724_v24, %v4723_v2  ;;  %v4506_v31 = vld [vmem:[%s9895_s1 + $0x2a8] sm:$0xff]  ;;  %v4727_v16 = vld [vmem:[%s9895_s1 + $0x920] sm:$0xff]  ;;  %v4507_v24 = vld [vmem:[%s9895_s1 + $0x2b0] sm:$0xff] }
  0xb9   : > { %7281 = vmatprep.subr.bf16.mxu0 %v7280_v13 }
  0xbb   : > { %6867 = vmatpush3.bf16.msra.mxu1 %v6864_v1  ;;  %v4726_v1 = vld [vmem:[%s9895_s1 + $0x918] sm:$0xff] }
  0xbc   : > { %7283 = vmatpush3.bf16.msra.mxu0 %v7280_v13  ;;  %6869 = vmatprep.subr.bf16.mxu1 %v6868_v50  ;;  %v6876_v13 = vpack.c.bf16 %v4504_v58, %v4503_v40  ;;  %v7292_v44 = vpack.c.bf16 %v4726_v1, %v4725_v43  ;;  %v4508_v40 = vld [vmem:[%s9895_s1 + $0x2b8] sm:$0xff]  ;;  %v4509_v1 = vld [vmem:[%s9895_s1 + $0x2c0] sm:$0xff] }
  0xbd   : > { %7285 = vmatprep.subr.bf16.mxu0 %v7284_v32  ;;  %v6884_v58 = vpack.c.bf16 %v4508_v40, %v4507_v24  ;;  %v4511_v24 = vld [vmem:[%s9895_s1 + $0x2d0] sm:$0xff]  ;;  %v4512_v40 = vld [vmem:[%s9895_s1 + $0x2d8] sm:$0xff] }
  0xbf   : > { %6871 = vmatpush3.bf16.msra.mxu1 %v6868_v50  ;;  %v4728_v50 = vld [vmem:[%s9895_s1 + $0x928] sm:$0xff] }
  0xc0   : > { %7287 = vmatpush3.bf16.msra.mxu0 %v7284_v32  ;;  %6873 = vmatprep.subr.bf16.mxu1 %v6872_v18  ;;  %v6880_v32 = vpack.c.bf16 %v4506_v31, %v4505_v39  ;;  %v7296_v2 = vpack.c.bf16 %v4728_v50, %v4727_v16  ;;  %v4510_v39 = vld [vmem:[%s9895_s1 + $0x2c8] sm:$0xff]  ;;  %v8948_v16 = vld [vmem:[#allocation2 + $0x92] sm:$0xff] }
  0xc1   : > { %7289 = vmatprep.subr.bf16.mxu0 %v7288_v4  ;;  %v6888_v31 = vpack.c.bf16 %v4510_v39, %v4509_v1  ;;  %v7843_v1 = vld [vmem:[%s9896_s2] ss:$0 sm:$0xff] }
  0xc2   : > { %5733 = vmatmul.mubr.f32.vlgmr.msra.gmra.mrb[0].mxu1 %v8169_v62 }
  0xc3   : > { %6875 = vmatpush3.bf16.msra.mxu1 %v6872_v18  ;;  %6305 = vmatmul.mubr.f32.vlgmr.msra.gmra.mrb[0].mxu0 %v8467_v20  ;;  %v4729_v18 = vld [vmem:[%s9895_s1 + $0x930] sm:$0xff] }
  0xc4   : > { %7291 = vmatpush3.bf16.msra.mxu0 %v7288_v4  ;;  %6877 = vmatprep.subr.bf16.mxu1 %v6876_v13  ;;  %v4730_v4 = vld [vmem:[%s9895_s1 + $0x938] sm:$0xff] }
  0xc5   : > { %7293 = vmatprep.subr.bf16.mxu0 %v7292_v44  ;;  %5735 = vmatprep.mubr.f32.mxu1 %v8223_v38  ;;  %v7300_v43 = vpack.c.bf16 %v4730_v4, %v4729_v18  ;;  %v2941_v18 = vld [vmem:[%s8561_s30 + $0x38] sm:$0xff]  ;;  %v6892_v4 = vpack.c.bf16 %v4512_v40, %v4511_v24  ;;  %v7844_v24 = vld [vmem:[%s9897_s3] ss:$0 sm:$0xff] }
  0xc6   : > { %6307 = vmatprep.mubr.f32.mxu0 %v8473_v21  ;;  %5736 = vmatmul.mubr.f32.gmra.mrb[2].mxu1 %v8234_v46  ;;  %v2949_v39 = vmul.f32 %v7843_v1, %v2941_v18  ;;  %v4515_v18 = vld [vmem:[%s9895_s1 + $0x2f0] sm:$0xff]  ;;  %v4516_v1 = vld [vmem:[%s9895_s1 + $0x2f8] sm:$0xff]  ;;  %v4530_v21 = vld [vmem:[%s9895_s1 + $0x368] sm:$0xff] }
  0xc7   : > { %6879 = vmatpush3.bf16.msra.mxu1 %v6876_v13  ;;  %6308 = vmatmul.mubr.f32.gmra.mrb[2].mxu0 %v8493_v33  ;;  %v4731_v13 = vld [vmem:[%s9895_s1 + $0x940] sm:$0xff]  ;;  %v4528_v33 = vld [vmem:[%s9895_s1 + $0x358] sm:$0xff] }
  0xc8   : > { %7295 = vmatpush3.bf16.msra.mxu0 %v7292_v44  ;;  %6881 = vmatprep.subr.bf16.mxu1 %v6880_v32  ;;  %v4732_v44 = vld [vmem:[%s9895_s1 + $0x948] sm:$0xff]  ;;  %v2957_v40 = vadd.f32 %v7844_v24, %v2949_v39  ;;  %v6900_v39 = vpack.c.bf16 %v4516_v1, %v4515_v18  ;;  %v4520_v24 = vld [vmem:[%s9895_s1 + $0x318] sm:$0xff]  ;;  %v4521_v1 = vld [vmem:[%s9895_s1 + $0x320] sm:$0xff] }
  0xc9   : > { %7297 = vmatprep.subr.bf16.mxu0 %v7296_v2  ;;  %5738 = vmatprep.mubr.f32.mxu1 %v8255_v59  ;;  %v7304_v50 = vpack.c.bf16 %v4732_v44, %v4731_v13  ;;  %v4736_v44 = vld [vmem:[%s9895_s1 + $0x968] sm:$0xff] }
  0xca   : > { %6310 = vmatprep.mubr.f32.mxu0 %v8496_v34  ;;  %5739 = vmatmul.mubr.f32.gmra.mrb[4].mxu1 %v8269_v7  ;;  %v4527_v34 = vld [vmem:[%s9895_s1 + $0x350] sm:$0xff] }
  0xcb   : > { %6883 = vmatpush3.bf16.msra.mxu1 %v6880_v32  ;;  %6311 = vmatmul.mubr.f32.gmra.mrb[4].mxu0 %v8525_v60  ;;  %v4733_v32 = vld [vmem:[%s9895_s1 + $0x950] sm:$0xff] }
  0xcc   : > { %7299 = vmatpush3.bf16.msra.mxu0 %v7296_v2  ;;  %6885 = vmatprep.subr.bf16.mxu1 %v6884_v58  ;;  %v4734_v2 = vld [vmem:[%s9895_s1 + $0x958] sm:$0xff]  ;;  %v4737_v60 = vld [vmem:[%s9895_s1 + $0x970] sm:$0xff] }
  0xcd   : > { %7301 = vmatprep.subr.bf16.mxu0 %v7300_v43  ;;  %5741 = vmatprep.mubr.f32.mxu1 %v8300_v28  ;;  %v7308_v13 = vpack.c.bf16 %v4734_v2, %v4733_v32 }
  0xce   : > { %6313 = vmatprep.mubr.f32.mxu0 %v8528_v0  ;;  %5742 = vmatmul.mubr.f32.gmra.mrb[6].mxu1 %v8312_v36  ;;  %v4513_v0 = vld [vmem:[%s9895_s1 + $0x2e0] sm:$0xff] }
  0xcf   : > { %6887 = vmatpush3.bf16.msra.mxu1 %v6884_v58  ;;  %6314 = vmatmul.mubr.f32.gmra.mrb[6].mxu0 %v8948_v16  ;;  %v4514_v58 = vld [vmem:[%s9895_s1 + $0x2e8] sm:$0xff] }
  0xd0   : > { %7303 = vmatpush3.bf16.msra.mxu0 %v7300_v43  ;;  %6889 = vmatprep.subr.bf16.mxu1 %v6888_v31  ;;  %v4735_v43 = vld [vmem:[%s9895_s1 + $0x960] sm:$0xff]  ;;  %v6896_v32 = vpack.c.bf16 %v4514_v58, %v4513_v0 }
  0xd1   : > { %7305 = vmatprep.subr.bf16.mxu0 %v7304_v50  ;;  %5776 = vmatprep.mubr.f32.mxu1 %v8231_v45  ;;  %v2965_v45 = vmax.f32 %v2957_v40, 0.0  ;;  %v7312_v2 = vpack.c.bf16 %v4736_v44, %v4735_v43  ;;  %v4517_v58 = vld [vmem:[%s9895_s1 + $0x300] sm:$0xff]  ;;  %v4518_v43 = vld [vmem:[%s9895_s1 + $0x308] sm:$0xff]  ;;  %v4519_v44 = vld [vmem:[%s9895_s1 + $0x310] sm:$0xff] }
  0xd2   : > { %6348 = vmatprep.mubr.f32.mxu0 %v8735_v30  ;;  %v4741_v40 = vld [vmem:[%s9895_s1 + $0x990] sm:$0xff] }
  0xd3   : > { %6891 = vmatpush3.bf16.msra.mxu1 %v6888_v31  ;;  %v4738_v31 = vld [vmem:[%s9895_s1 + $0x978] sm:$0xff] }
  0xd4   : > { %7307 = vmatpush3.bf16.msra.mxu0 %v7304_v50  ;;  %6893 = vmatprep.subr.bf16.mxu1 %v6892_v4  ;;  %v9000_v50 = vmul.f32 %v8599_v55, %v2965_v45  ;;  %v7316_v0 = vpack.c.bf16 %v4738_v31, %v4737_v60  ;;  %v4739_v55 = vld [vmem:[%s9895_s1 + $0x980] sm:$0xff]  ;;  %v6904_v60 = vpack.c.bf16 %v4518_v43, %v4517_v58  ;;  %v9027_v45 = vld [vmem:[#allocation2 + $0x10] sm:$0xff]  ;;  %v4522_v31 = vld [vmem:[%s9895_s1 + $0x328] sm:$0xff] }
  0xd5   : > { %7309 = vmatprep.subr.bf16.mxu0 %v7308_v13  ;;  %v9043_v58 = vld [vmem:[#allocation2 + $0x20] sm:$0xff]  ;;  %v6912_v43 = vpack.c.bf16 %v4522_v31, %v4521_v1  ;;  %v9065_v1 = vld [vmem:[#allocation2 + $0x50] sm:$0xff] }
  0xd6   : > { %2984 = vst [vmem:[#allocation2 + $0x81] sm:$0xff] %v9000_v50 }
  0xd7   : > { %6895 = vmatpush3.bf16.msra.mxu1 %v6892_v4  ;;  %v4740_v4 = vld [vmem:[%s9895_s1 + $0x988] sm:$0xff] }
  0xd8   : > { %7311 = vmatpush3.bf16.msra.mxu0 %v7308_v13  ;;  %6897 = vmatprep.subr.bf16.mxu1 %v6896_v32  ;;  %v7320_v13 = vpack.c.bf16 %v4740_v4, %v4739_v55  ;;  %v9045_v55 = vld [vmem:[#allocation2 + $0x30] sm:$0xff] }
  0xd9   : > { %7313 = vmatprep.subr.bf16.mxu0 %v7312_v2 }
  0xdb   : > { %6899 = vmatpush3.bf16.msra.mxu1 %v6896_v32  ;;  %v4742_v32 = vld [vmem:[%s9895_s1 + $0x998] sm:$0xff] }
  0xdc   : > { %7315 = vmatpush3.bf16.msra.mxu0 %v7312_v2  ;;  %6901 = vmatprep.subr.bf16.mxu1 %v6900_v39  ;;  %v6908_v2 = vpack.c.bf16 %v4520_v24, %v4519_v44  ;;  %v7324_v18 = vpack.c.bf16 %v4742_v32, %v4741_v40  ;;  %v4523_v44 = vld [vmem:[%s9895_s1 + $0x330] sm:$0xff]  ;;  %v4524_v24 = vld [vmem:[%s9895_s1 + $0x338] sm:$0xff]  ;;  %v9063_v40 = vld [vmem:[#allocation2 + $0x40] sm:$0xff] }
  0xdd   : > { %7317 = vmatprep.subr.bf16.mxu0 %v7316_v0  ;;  %v6916_v32 = vpack.c.bf16 %v4524_v24, %v4523_v44  ;;  %v9083_v44 = vld [vmem:[#allocation2 + $0x60] sm:$0xff] }
  0xdf   : > { %6903 = vmatpush3.bf16.msra.mxu1 %v6900_v39  ;;  %v4743_v39 = vld [vmem:[%s9895_s1 + $0x9a0] sm:$0xff] }
  0xe0   : > { %7319 = vmatpush3.bf16.msra.mxu0 %v7316_v0  ;;  %6905 = vmatprep.subr.bf16.mxu1 %v6904_v60  ;;  %v4744_v0 = vld [vmem:[%s9895_s1 + $0x9a8] sm:$0xff] }
  0xe1   : > { %7321 = vmatprep.subr.bf16.mxu0 %v7320_v13  ;;  %v7328_v4 = vpack.c.bf16 %v4744_v0, %v4743_v39  ;;  %v4525_v39 = vld [vmem:[%s9895_s1 + $0x340] sm:$0xff]  ;;  %v4526_v0 = vld [vmem:[%s9895_s1 + $0x348] sm:$0xff] }
  0xe2   : > { %5777 = vmatmul.mubr.f32.vlgmr.msra.gmra.mrb[0].mxu1 %v8242_v54  ;;  %v6920_v24 = vpack.c.bf16 %v4526_v0, %v4525_v39  ;;  %v9103_v39 = vld [vmem:[#allocation2 + $0x1] sm:$0xff]  ;;  %v6924_v0 = vpack.c.bf16 %v4528_v33, %v4527_v34 }
  0xe3   : > { %6907 = vmatpush3.bf16.msra.mxu1 %v6904_v60  ;;  %6349 = vmatmul.mubr.f32.vlgmr.msra.gmra.mrb[0].mxu0 %v9027_v45  ;;  %v4745_v60 = vld [vmem:[%s9895_s1 + $0x9b0] sm:$0xff]  ;;  %v4752_v33 = vld [vmem:[%s9895_s1 + $0x9e8] sm:$0xff] }
  0xe4   : > { %7323 = vmatpush3.bf16.msra.mxu0 %v7320_v13  ;;  %6909 = vmatprep.subr.bf16.mxu1 %v6908_v2  ;;  %v4746_v13 = vld [vmem:[%s9895_s1 + $0x9b8] sm:$0xff] }
  0xe5   : > { %7325 = vmatprep.subr.bf16.mxu0 %v7324_v18  ;;  %5779 = vmatprep.mubr.f32.mxu1 %v8309_v35  ;;  %v7332_v31 = vpack.c.bf16 %v4746_v13, %v4745_v60  ;;  %v9085_v60 = vld [vmem:[#allocation2 + $0x70] sm:$0xff] }
  0xe6   : > { %6351 = vmatprep.mubr.f32.mxu0 %v9043_v58  ;;  %5780 = vmatmul.mubr.f32.gmra.mrb[2].mxu1 %v8321_v42 }
  0xe7   : > { %6911 = vmatpush3.bf16.msra.mxu1 %v6908_v2  ;;  %6352 = vmatmul.mubr.f32.gmra.mrb[2].mxu0 %v9045_v55  ;;  %v4747_v2 = vld [vmem:[%s9895_s1 + $0x9c0] sm:$0xff] }
  0xe8   : > { %7327 = vmatpush3.bf16.msra.mxu0 %v7324_v18  ;;  %6913 = vmatprep.subr.bf16.mxu1 %v6912_v43  ;;  %v4748_v18 = vld [vmem:[%s9895_s1 + $0x9c8] sm:$0xff] }
  0xe9   : > { %7329 = vmatprep.subr.bf16.mxu0 %v7328_v4  ;;  %5782 = vmatprep.mubr.f32.mxu1 %v8335_v49  ;;  %v7336_v13 = vpack.c.bf16 %v4748_v18, %v4747_v2  ;;  %v4529_v18 = vld [vmem:[%s9895_s1 + $0x360] sm:$0xff] }
  0xea   : > { %6354 = vmatprep.mubr.f32.mxu0 %v9063_v40  ;;  %5783 = vmatmul.mubr.f32.gmra.mrb[4].mxu1 %v8345_v57  ;;  %v6928_v34 = vpack.c.bf16 %v4530_v21, %v4529_v18  ;;  %v4533_v18 = vld [vmem:[%s9895_s1 + $0x380] sm:$0xff] }
  0xeb   : > { %6915 = vmatpush3.bf16.msra.mxu1 %v6912_v43  ;;  %6355 = vmatmul.mubr.f32.gmra.mrb[4].mxu0 %v9065_v1  ;;  %v4749_v43 = vld [vmem:[%s9895_s1 + $0x9d0] sm:$0xff] }
  0xec   : > { %7331 = vmatpush3.bf16.msra.mxu0 %v7328_v4  ;;  %6917 = vmatprep.subr.bf16.mxu1 %v6916_v32  ;;  %v4750_v4 = vld [vmem:[%s9895_s1 + $0x9d8] sm:$0xff] }
  0xed   : > { %7333 = vmatprep.subr.bf16.mxu0 %v7332_v31  ;;  %5785 = vmatprep.mubr.f32.mxu1 %v8379_v12  ;;  %v7340_v2 = vpack.c.bf16 %v4750_v4, %v4749_v43  ;;  %v4532_v43 = vld [vmem:[%s9895_s1 + $0x378] sm:$0xff]  ;;  %v4753_v4 = vld [vmem:[%s9895_s1 + $0x9f0] sm:$0xff] }
  0xee   : > { %6357 = vmatprep.mubr.f32.mxu0 %v9083_v44  ;;  %5786 = vmatmul.mubr.f32.gmra.mrb[6].mxu1 %v8394_v17 }
  0xef   : > { %6919 = vmatpush3.bf16.msra.mxu1 %v6916_v32  ;;  %6358 = vmatmul.mubr.f32.gmra.mrb[6].mxu0 %v9085_v60  ;;  %v4751_v32 = vld [vmem:[%s9895_s1 + $0x9e0] sm:$0xff] }
  0xf0   : > { %7335 = vmatpush3.bf16.msra.mxu0 %v7332_v31  ;;  %6921 = vmatprep.subr.bf16.mxu1 %v6920_v24  ;;  %v7344_v31 = vpack.c.bf16 %v4752_v33, %v4751_v32  ;;  %v4534_v32 = vld [vmem:[%s9895_s1 + $0x388] sm:$0xff]  ;;  %v4755_v33 = vld [vmem:[%s9895_s1 + $0xa00] sm:$0xff] }
  0xf1   : > { %7337 = vmatprep.subr.bf16.mxu0 %v7336_v13  ;;  %5820 = vmatprep.mubr.f32.mxu1 %v8240_v53  ;;  %v4531_v53 = vld [vmem:[%s9895_s1 + $0x370] sm:$0xff] }
  0xf2   : > { %6392 = vmatprep.mubr.f32.mxu0 %v9103_v39  ;;  %v6932_v21 = vpack.c.bf16 %v4532_v43, %v4531_v53  ;;  %v4535_v43 = vld [vmem:[%s9895_s1 + $0x390] sm:$0xff] }
  0xf3   : > { %6923 = vmatpush3.bf16.msra.mxu1 %v6920_v24  ;;  %v4754_v24 = vld [vmem:[%s9895_s1 + $0x9f8] sm:$0xff] }
  0xf4   : > { %7339 = vmatpush3.bf16.msra.mxu0 %v7336_v13  ;;  %6925 = vmatprep.subr.bf16.mxu1 %v6924_v0  ;;  %v7348_v13 = vpack.c.bf16 %v4754_v24, %v4753_v4  ;;  %v4536_v4 = vld [vmem:[%s9895_s1 + $0x398] sm:$0xff]  ;;  %v4757_v24 = vld [vmem:[%s9895_s1 + $0xa10] sm:$0xff] }
  0xf5   : > { %7341 = vmatprep.subr.bf16.mxu0 %v7340_v2 }
  0xf7   : > { %6927 = vmatpush3.bf16.msra.mxu1 %v6924_v0  ;;  %v4756_v0 = vld [vmem:[%s9895_s1 + $0xa08] sm:$0xff] }
  0xf8   : > { %7343 = vmatpush3.bf16.msra.mxu0 %v7340_v2  ;;  %6929 = vmatprep.subr.bf16.mxu1 %v6928_v34  ;;  %v6936_v2 = vpack.c.bf16 %v4534_v32, %v4533_v18  ;;  %v7352_v53 = vpack.c.bf16 %v4756_v0, %v4755_v33  ;;  %v4537_v32 = vld [vmem:[%s9895_s1 + $0x3a0] sm:$0xff]  ;;  %v4538_v33 = vld [vmem:[%s9895_s1 + $0x3a8] sm:$0xff] }
  0xf9   : > { %7345 = vmatprep.subr.bf16.mxu0 %v7344_v31  ;;  %v4759_v0 = vld [vmem:[%s9895_s1 + $0xa20] sm:$0xff] }
  0xfb   : > { %6931 = vmatpush3.bf16.msra.mxu1 %v6928_v34  ;;  %v4758_v34 = vld [vmem:[%s9895_s1 + $0xa18] sm:$0xff] }
  0xfc   : > { %7347 = vmatpush3.bf16.msra.mxu0 %v7344_v31  ;;  %6933 = vmatprep.subr.bf16.mxu1 %v6932_v21  ;;  %v6940_v31 = vpack.c.bf16 %v4536_v4, %v4535_v43  ;;  %v7356_v18 = vpack.c.bf16 %v4758_v34, %v4757_v24  ;;  %v4540_v4 = vld [vmem:[%s9895_s1 + $0x3b8] sm:$0xff]  ;;  %v4541_v24 = vld [vmem:[%s9895_s1 + $0x3c0] sm:$0xff]  ;;  %v4542_v34 = vld [vmem:[%s9895_s1 + $0x3c8] sm:$0xff] }
  0xfd   : > { %7349 = vmatprep.subr.bf16.mxu0 %v7348_v13 }
  0xff   : > { %6935 = vmatpush3.bf16.msra.mxu1 %v6932_v21  ;;  %v4760_v21 = vld [vmem:[%s9895_s1 + $0xa28] sm:$0xff] }
 0x100   : > { %7351 = vmatpush3.bf16.msra.mxu0 %v7348_v13  ;;  %6937 = vmatprep.subr.bf16.mxu1 %v6936_v2  ;;  %v6944_v13 = vpack.c.bf16 %v4538_v33, %v4537_v32  ;;  %v7360_v43 = vpack.c.bf16 %v4760_v21, %v4759_v0  ;;  %v4545_v33 = vld [vmem:[%s9895_s1 + $0x3e0] sm:$0xff] }
 0x101   : > { %7353 = vmatprep.subr.bf16.mxu0 %v7352_v53 }
 0x102   : > { %5821 = vmatmul.mubr.f32.vlgmr.msra.gmra.mrb[0].mxu1 %v8294_v25  ;;  %v4539_v25 = vld [vmem:[%s9895_s1 + $0x3b0] sm:$0xff] }
 0x103   : > { %6939 = vmatpush3.bf16.msra.mxu1 %v6936_v2  ;;  %6393 = vmatmul.mubr.f32.vlgmr.msra.gmra.mrb[0].mxu0 %v8613_v23  ;;  %v4761_v2 = vld [vmem:[%s9895_s1 + $0xa30] sm:$0xff]  ;;  %v4762_v23 = vld [vmem:[%s9895_s1 + $0xa38] sm:$0xff] }
 0x104   : > { %7355 = vmatpush3.bf16.msra.mxu0 %v7352_v53  ;;  %6941 = vmatprep.subr.bf16.mxu1 %v6940_v31  ;;  %v6948_v53 = vpack.c.bf16 %v4540_v4, %v4539_v25  ;;  %v4770_v25 = vld [vmem:[%s9895_s1 + $0xa78] sm:$0xff] }
 0x105   : > { %7357 = vmatprep.subr.bf16.mxu0 %v7356_v18  ;;  %5823 = vmatprep.mubr.f32.mxu1 %v8319_v41  ;;  %v7364_v41 = vpack.c.bf16 %v4762_v23, %v4761_v2  ;;  %v4549_v23 = vld [vmem:[%s9895_s1 + $0x400] sm:$0xff] }
 0x106   : > { %6395 = vmatprep.mubr.f32.mxu0 %v8622_v19  ;;  %5824 = vmatmul.mubr.f32.gmra.mrb[2].mxu1 %v8333_v48  ;;  %v4763_v48 = vld [vmem:[%s9895_s1 + $0xa40] sm:$0xff]  ;;  %v4764_v19 = vld [vmem:[%s9895_s1 + $0xa48] sm:$0xff] }
 0x107   : > { %6943 = vmatpush3.bf16.msra.mxu1 %v6940_v31  ;;  %6396 = vmatmul.mubr.f32.gmra.mrb[2].mxu0 %v8625_v27  ;;  %v6952_v27 = vpack.c.bf16 %v4542_v34, %v4541_v24  ;;  %v4543_v31 = vld [vmem:[%s9895_s1 + $0x3d0] sm:$0xff]  ;;  %v4772_v24 = vld [vmem:[%s9895_s1 + $0xa88] sm:$0xff] }
 0x108   : > { %7359 = vmatpush3.bf16.msra.mxu0 %v7356_v18  ;;  %6945 = vmatprep.subr.bf16.mxu1 %v6944_v13  ;;  %v4544_v18 = vld [vmem:[%s9895_s1 + $0x3d8] sm:$0xff] }
 0x109   : > { %7361 = vmatprep.subr.bf16.mxu0 %v7360_v43  ;;  %5826 = vmatprep.mubr.f32.mxu1 %v8343_v56  ;;  %v7368_v56 = vpack.c.bf16 %v4764_v19, %v4763_v48  ;;  %v4551_v19 = vld [vmem:[%s9895_s1 + $0x410] sm:$0xff] }
 0x10a   : > { %6398 = vmatprep.mubr.f32.mxu0 %v8628_v14  ;;  %5827 = vmatmul.mubr.f32.gmra.mrb[4].mxu1 %v8370_v6  ;;  %v4765_v6 = vld [vmem:[%s9895_s1 + $0xa50] sm:$0xff]  ;;  %v4766_v14 = vld [vmem:[%s9895_s1 + $0xa58] sm:$0xff] }
 0x10b   : > { %6947 = vmatpush3.bf16.msra.mxu1 %v6944_v13  ;;  %6399 = vmatmul.mubr.f32.gmra.mrb[4].mxu0 %v8637_v52  ;;  %v9217_v52 = vld [vmem:[#allocation2 + $0x2] sm:$0xff]  ;;  %v7372_v32 = vpack.c.bf16 %v4766_v14, %v4765_v6  ;;  %v4548_v13 = vld [vmem:[%s9895_s1 + $0x3f8] sm:$0xff] }
 0x10c   : > { %7363 = vmatpush3.bf16.msra.mxu0 %v7360_v43  ;;  %6949 = vmatprep.subr.bf16.mxu1 %v6948_v53  ;;  %v4769_v43 = vld [vmem:[%s9895_s1 + $0xa70] sm:$0xff] }
 0x10d   : > { %7365 = vmatprep.subr.bf16.mxu0 %v7364_v41  ;;  %5829 = vmatprep.mubr.f32.mxu1 %v8390_v15  ;;  %v6956_v15 = vpack.c.bf16 %v4544_v18, %v4543_v31  ;;  %v7380_v2 = vpack.c.bf16 %v4770_v25, %v4769_v43  ;;  %v4774_v31 = vld [vmem:[%s9895_s1 + $0xa98] sm:$0xff]  ;;  %v9305_v25 = vld [vmem:[#allocation2 + $0x42] sm:$0xff] }
 0x10e   : > { %6401 = vmatprep.mubr.f32.mxu0 %v8640_v5  ;;  %5830 = vmatmul.mubr.f32.gmra.mrb[6].mxu1 %v8735_v30  ;;  %v4546_v5 = vld [vmem:[%s9895_s1 + $0x3e8] sm:$0xff]  ;;  %v9269_v18 = vld [vmem:[#allocation2 + $0x12] sm:$0xff] }
 0x10f   : > { %6951 = vmatpush3.bf16.msra.mxu1 %v6948_v53  ;;  %6402 = vmatmul.mubr.f32.gmra.mrb[6].mxu0 %v8643_v11  ;;  %v4767_v11 = vld [vmem:[%s9895_s1 + $0xa60] sm:$0xff]  ;;  %v4768_v30 = vld [vmem:[%s9895_s1 + $0xa68] sm:$0xff]  ;;  %v6960_v0 = vpack.c.bf16 %v4546_v5, %v4545_v33  ;;  %v4778_v43 = vld [vmem:[%s9895_s1 + $0xab8] sm:$0xff] }
 0x110   : > { %7367 = vmatpush3.bf16.msra.mxu0 %v7364_v41  ;;  %6953 = vmatprep.subr.bf16.mxu1 %v6952_v27  ;;  %v7376_v21 = vpack.c.bf16 %v4768_v30, %v4767_v11  ;;  %v4550_v53 = vld [vmem:[%s9895_s1 + $0x408] sm:$0xff]  ;;  %v4771_v41 = vld [vmem:[%s9895_s1 + $0xa80] sm:$0xff] }
 0x111   : > { %7369 = vmatprep.subr.bf16.mxu0 %v7368_v56  ;;  %5864 = vmatprep.mubr.f32.mxu1 %v8169_v62  ;;  %v4547_v62 = vld [vmem:[%s9895_s1 + $0x3f0] sm:$0xff]  ;;  %v6968_v34 = vpack.c.bf16 %v4550_v53, %v4549_v23  ;;  %v7384_v48 = vpack.c.bf16 %v4772_v24, %v4771_v41  ;;  %v4775_v33 = vld [vmem:[%s9895_s1 + $0xaa0] sm:$0xff]  ;;  %v4776_v5 = vld [vmem:[%s9895_s1 + $0xaa8] sm:$0xff] }
 0x112   : > { %6436 = vmatprep.mubr.f32.mxu0 %v9217_v52  ;;  %v6964_v4 = vpack.c.bf16 %v4548_v13, %v4547_v62  ;;  %v9285_v11 = vld [vmem:[#allocation2 + $0x22] sm:$0xff]  ;;  %v4556_v62 = vld [vmem:[%s9895_s1 + $0x438] sm:$0xff]  ;;  %v4777_v13 = vld [vmem:[%s9895_s1 + $0xab0] sm:$0xff] }
 0x113   : > { %6955 = vmatpush3.bf16.msra.mxu1 %v6952_v27  ;;  %v4552_v27 = vld [vmem:[%s9895_s1 + $0x418] sm:$0xff]  ;;  %v4557_v23 = vld [vmem:[%s9895_s1 + $0x440] sm:$0xff]  ;;  %v4780_v41 = vld [vmem:[%s9895_s1 + $0xac8] sm:$0xff] }
 0x114   : > { %7371 = vmatpush3.bf16.msra.mxu0 %v7368_v56  ;;  %6957 = vmatprep.subr.bf16.mxu1 %v6956_v15  ;;  %v4773_v56 = vld [vmem:[%s9895_s1 + $0xa90] sm:$0xff]  ;;  %v6972_v6 = vpack.c.bf16 %v4552_v27, %v4551_v19  ;;  %v4779_v53 = vld [vmem:[%s9895_s1 + $0xac0] sm:$0xff] }
 0x115   : > { %7373 = vmatprep.subr.bf16.mxu0 %v7372_v32  ;;  %v7388_v14 = vpack.c.bf16 %v4774_v31, %v4773_v56  ;;  %v9325_v24 = vld [vmem:[#allocation2 + $0x62] sm:$0xff]  ;;  %v4559_v19 = vld [vmem:[%s9895_s1 + $0x450] sm:$0xff]  ;;  %v4782_v56 = vld [vmem:[%s9895_s1 + $0xad8] sm:$0xff] }
 0x116   : > { %v4781_v27 = vld [vmem:[%s9895_s1 + $0xad0] sm:$0xff] }
 0x117   : > { %6959 = vmatpush3.bf16.msra.mxu1 %v6956_v15  ;;  %v4553_v15 = vld [vmem:[%s9895_s1 + $0x420] sm:$0xff] }
 0x118   : > { %7375 = vmatpush3.bf16.msra.mxu0 %v7372_v32  ;;  %6961 = vmatprep.subr.bf16.mxu1 %v6960_v0  ;;  %v4554_v32 = vld [vmem:[%s9895_s1 + $0x428] sm:$0xff] }
 0x119   : > { %7377 = vmatprep.subr.bf16.mxu0 %v7376_v21  ;;  %v6976_v30 = vpack.c.bf16 %v4554_v32, %v4553_v15  ;;  %v4784_v15 = vld [vmem:[%s9895_s1 + $0xae8] sm:$0xff] }
 0x11b   : > { %6963 = vmatpush3.bf16.msra.mxu1 %v6960_v0  ;;  %v9287_v0 = vld [vmem:[#allocation2 + $0x32] sm:$0xff] }
 0x11c   : > { %7379 = vmatpush3.bf16.msra.mxu0 %v7376_v21  ;;  %6965 = vmatprep.subr.bf16.mxu1 %v6964_v4  ;;  %v4555_v21 = vld [vmem:[%s9895_s1 + $0x430] sm:$0xff] }
 0x11d   : > { %7381 = vmatprep.subr.bf16.mxu0 %v7380_v2 }
 0x11f   : > { %6967 = vmatpush3.bf16.msra.mxu1 %v6964_v4  ;;  %v9307_v4 = vld [vmem:[#allocation2 + $0x52] sm:$0xff] }
 0x120   : > { %7383 = vmatpush3.bf16.msra.mxu0 %v7380_v2  ;;  %6969 = vmatprep.subr.bf16.mxu1 %v6968_v34  ;;  %v7396_v2 = vpack.c.bf16 %v4778_v43, %v4777_v13  ;;  %v4573_v13 = vld [vmem:[%s9895_s1 + $0x488] sm:$0xff]  ;;  %v4787_v43 = vld [vmem:[%s9895_s1 + $0xb00] sm:$0xff] }
 0x121   : > { %7385 = vmatprep.subr.bf16.mxu0 %v7384_v48 }
 0x122   : > { %5865 = vmatmul.mubr.f32.vlgmr.msra.gmra.mrb[0].mxu1 %v8223_v38  ;;  %v7392_v38 = vpack.c.bf16 %v4776_v5, %v4775_v33  ;;  %v4564_v5 = vld [vmem:[%s9895_s1 + $0x478] sm:$0xff] }
 0x123   : > { %6971 = vmatpush3.bf16.msra.mxu1 %v6968_v34  ;;  %6437 = vmatmul.mubr.f32.vlgmr.msra.gmra.mrb[0].mxu0 %v9269_v18  ;;  %v9327_v34 = vld [vmem:[#allocation2 + $0x72] sm:$0xff] }
 0x124   : > { %7387 = vmatpush3.bf16.msra.mxu0 %v7384_v48  ;;  %6973 = vmatprep.subr.bf16.mxu1 %v6972_v6  ;;  %v7400_v48 = vpack.c.bf16 %v4780_v41, %v4779_v53  ;;  %v4575_v53 = vld [vmem:[%s9895_s1 + $0x498] sm:$0xff]  ;;  %v4789_v41 = vld [vmem:[%s9895_s1 + $0xb10] sm:$0xff] }
 0x125   : > { %7389 = vmatprep.subr.bf16.mxu0 %v7388_v14  ;;  %5867 = vmatprep.mubr.f32.mxu1 %v8234_v46  ;;  %v6980_v46 = vpack.c.bf16 %v4556_v62, %v4555_v21  ;;  %v4572_v62 = vld [vmem:[%s9895_s1 + $0x480] sm:$0xff] }
 0x126   : > { %6439 = vmatprep.mubr.f32.mxu0 %v9285_v11  ;;  %5868 = vmatmul.mubr.f32.gmra.mrb[2].mxu1 %v8255_v59  ;;  %v4558_v59 = vld [vmem:[%s9895_s1 + $0x448] sm:$0xff] }
 0x127   : > { %6975 = vmatpush3.bf16.msra.mxu1 %v6972_v6  ;;  %6440 = vmatmul.mubr.f32.gmra.mrb[2].mxu0 %v9287_v0  ;;  %v4561_v6 = vld [vmem:[%s9895_s1 + $0x460] sm:$0xff] }
 0x128   : > { %7391 = vmatpush3.bf16.msra.mxu0 %v7388_v14  ;;  %6977 = vmatprep.subr.bf16.mxu1 %v6976_v30  ;;  %v4562_v14 = vld [vmem:[%s9895_s1 + $0x468] sm:$0xff] }
 0x129   : > { %7393 = vmatprep.subr.bf16.mxu0 %v7392_v38  ;;  %5870 = vmatprep.mubr.f32.mxu1 %v8269_v7  ;;  %v6984_v7 = vpack.c.bf16 %v4558_v59, %v4557_v23  ;;  %v6992_v32 = vpack.c.bf16 %v4562_v14, %v4561_v6  ;;  %v4574_v59 = vld [vmem:[%s9895_s1 + $0x490] sm:$0xff]  ;;  %v4579_v14 = vld [vmem:[%s9895_s1 + $0x4b8] sm:$0xff] }
 0x12a   : > { %6442 = vmatprep.mubr.f32.mxu0 %v9305_v25  ;;  %5871 = vmatmul.mubr.f32.gmra.mrb[4].mxu1 %v8300_v28  ;;  %v4560_v28 = vld [vmem:[%s9895_s1 + $0x458] sm:$0xff] }
 0x12b   : > { %6979 = vmatpush3.bf16.msra.mxu1 %v6976_v30  ;;  %6443 = vmatmul.mubr.f32.gmra.mrb[4].mxu0 %v9307_v4  ;;  %v6988_v31 = vpack.c.bf16 %v4560_v28, %v4559_v19  ;;  %v4785_v30 = vld [vmem:[%s9895_s1 + $0xaf0] sm:$0xff]  ;;  %v4576_v28 = vld [vmem:[%s9895_s1 + $0x4a0] sm:$0xff] }
 0x12c   : > { %7395 = vmatpush3.bf16.msra.mxu0 %v7392_v38  ;;  %6981 = vmatprep.subr.bf16.mxu1 %v6980_v46 }
 0x12d   : > { %7397 = vmatprep.subr.bf16.mxu0 %v7396_v2  ;;  %5873 = vmatprep.mubr.f32.mxu1 %v8312_v36  ;;  %v7404_v36 = vpack.c.bf16 %v4782_v56, %v4781_v27  ;;  %v4577_v27 = vld [vmem:[%s9895_s1 + $0x4a8] sm:$0xff]  ;;  %v4791_v56 = vld [vmem:[%s9895_s1 + $0xb20] sm:$0xff] }
 0x12e   : > { %6445 = vmatprep.mubr.f32.mxu0 %v9325_v24  ;;  %5874 = vmatmul.mubr.f32.gmra.mrb[6].mxu1 %v8834_v63  ;;  %v4783_v63 = vld [vmem:[%s9895_s1 + $0xae0] sm:$0xff] }
 0x12f   : > { %6983 = vmatpush3.bf16.msra.mxu1 %v6980_v46  ;;  %6446 = vmatmul.mubr.f32.gmra.mrb[6].mxu0 %v9327_v34  ;;  %v7408_v33 = vpack.c.bf16 %v4784_v15, %v4783_v63  ;;  %v4788_v46 = vld [vmem:[%s9895_s1 + $0xb08] sm:$0xff]  ;;  %v4793_v63 = vld [vmem:[%s9895_s1 + $0xb30] sm:$0xff] }
 0x130   : > { %7399 = vmatpush3.bf16.msra.mxu0 %v7396_v2  ;;  %6985 = vmatprep.subr.bf16.mxu1 %v6984_v7  ;;  %v7000_v2 = vpack.c.bf16 %v4573_v13, %v4572_v62  ;;  %v7416_v23 = vpack.c.bf16 %v4788_v46, %v4787_v43  ;;  %v7846_v62 = vld [vmem:[#allocation2 + $0x11] sm:$0xff] }
 0x131   : > { %7401 = vmatprep.subr.bf16.mxu0 %v7400_v48  ;;  %5908 = vmatprep.mubr.f32.mxu1 %v8242_v54  ;;  %v4563_v54 = vld [vmem:[%s9895_s1 + $0x470] sm:$0xff] }
 0x132   : > { %6480 = vmatprep.mubr.f32.mxu0 %v9027_v45  ;;  %v4786_v45 = vld [vmem:[%s9895_s1 + $0xaf8] sm:$0xff]  ;;  %v6996_v38 = vpack.c.bf16 %v4564_v5, %v4563_v54  ;;  %v9441_v54 = vld [vmem:[#allocation2 + $0x80] sm:$0xff]  ;;  %v4582_v5 = vld [vmem:[%s9895_s1 + $0x4d0] sm:$0xff] }
 0x133   : > { %6987 = vmatpush3.bf16.msra.mxu1 %v6984_v7  ;;  %v7412_v21 = vpack.c.bf16 %v4786_v45, %v4785_v30  ;;  %v4790_v7 = vld [vmem:[%s9895_s1 + $0xb18] sm:$0xff]  ;;  %v4584_v45 = vld [vmem:[%s9895_s1 + $0x4e0] sm:$0xff]  ;;  %v4586_v46 = vld [vmem:[%s9895_s1 + $0x4f0] sm:$0xff] }
 0x134   : > { %7403 = vmatpush3.bf16.msra.mxu0 %v7400_v48  ;;  %6989 = vmatprep.subr.bf16.mxu1 %v6988_v31  ;;  %v7004_v48 = vpack.c.bf16 %v4575_v53, %v4574_v59  ;;  %v7420_v19 = vpack.c.bf16 %v4790_v7, %v4789_v41  ;;  %v4802_v59 = vld [vmem:[%s9895_s1 + $0xb78] sm:$0xff]  ;;  %v4588_v7 = vld [vmem:[%s9895_s1 + $0x500] sm:$0xff] }
 0x135   : > { %7405 = vmatprep.subr.bf16.mxu0 %v7404_v36 }
 0x137   : > { %6991 = vmatpush3.bf16.msra.mxu1 %v6988_v31  ;;  %v4792_v31 = vld [vmem:[%s9895_s1 + $0xb28] sm:$0xff] }
 0x138   : > { %7407 = vmatpush3.bf16.msra.mxu0 %v7404_v36  ;;  %6993 = vmatprep.subr.bf16.mxu1 %v6992_v32  ;;  %v7008_v36 = vpack.c.bf16 %v4577_v27, %v4576_v28  ;;  %v7424_v6 = vpack.c.bf16 %v4792_v31, %v4791_v56  ;;  %v4804_v28 = vld [vmem:[%s9895_s1 + $0xb88] sm:$0xff]  ;;  %v4590_v31 = vld [vmem:[%s9895_s1 + $0x510] sm:$0xff] }
 0x139   : > { %7409 = vmatprep.subr.bf16.mxu0 %v7408_v33 }
 0x13b   : > { %6995 = vmatpush3.bf16.msra.mxu1 %v6992_v32  ;;  %v4580_v32 = vld [vmem:[%s9895_s1 + $0x4c0] sm:$0xff] }
 0x13c   : > { %7411 = vmatpush3.bf16.msra.mxu0 %v7408_v33  ;;  %6997 = vmatprep.subr.bf16.mxu1 %v6996_v38  ;;  %v4581_v33 = vld [vmem:[%s9895_s1 + $0x4c8] sm:$0xff] }
 0x13d   : > { %7413 = vmatprep.subr.bf16.mxu0 %v7412_v21 }
 0x13f   : > { %6999 = vmatpush3.bf16.msra.mxu1 %v6996_v38  ;;  %v4585_v38 = vld [vmem:[%s9895_s1 + $0x4e8] sm:$0xff] }
 0x140   : > { %7415 = vmatpush3.bf16.msra.mxu0 %v7412_v21  ;;  %7001 = vmatprep.subr.bf16.mxu1 %v7000_v2  ;;  %v9465_v21 = vld [vmem:[#allocation2] sm:$0xff]  ;;  %v7024_v13 = vpack.c.bf16 %v4585_v38, %v4584_v45 }
 0x141   : > { %7417 = vmatprep.subr.bf16.mxu0 %v7416_v23 }
 0x142   : > { %5909 = vmatmul.mubr.f32.vlgmr.msra.gmra.mrb[0].mxu1 %v8309_v35  ;;  %v4578_v35 = vld [vmem:[%s9895_s1 + $0x4b0] sm:$0xff] }
 0x143   : > { %7003 = vmatpush3.bf16.msra.mxu1 %v7000_v2  ;;  %6481 = vmatmul.mubr.f32.vlgmr.msra.gmra.mrb[0].mxu0 %v9043_v58  ;;  %v4794_v58 = vld [vmem:[%s9895_s1 + $0xb38] sm:$0xff]  ;;  %v7012_v15 = vpack.c.bf16 %v4579_v14, %v4578_v35 }
 0x144   : > { %7419 = vmatpush3.bf16.msra.mxu0 %v7416_v23  ;;  %7005 = vmatprep.subr.bf16.mxu1 %v7004_v48  ;;  %v4587_v2 = vld [vmem:[%s9895_s1 + $0x4f8] sm:$0xff]  ;;  %v4801_v23 = vld [vmem:[%s9895_s1 + $0xb70] sm:$0xff] }
 0x145   : > { %7421 = vmatprep.subr.bf16.mxu0 %v7420_v19  ;;  %5911 = vmatprep.mubr.f32.mxu1 %v8321_v42  ;;  %v7428_v42 = vpack.c.bf16 %v4794_v58, %v4793_v63  ;;  %v7028_v53 = vpack.c.bf16 %v4587_v2, %v4586_v46  ;;  %v7444_v41 = vpack.c.bf16 %v4802_v59, %v4801_v23  ;;  %v4806_v35 = vld [vmem:[%s9895_s1 + $0xb98] sm:$0xff]  ;;  %v4592_v58 = vld [vmem:[%s9895_s1 + $0x520] sm:$0xff]  ;;  %v4598_v59 = vld [vmem:[%s9895_s1 + $0x550] sm:$0xff] }
 0x146   : > { %6483 = vmatprep.mubr.f32.mxu0 %v9045_v55  ;;  %5912 = vmatmul.mubr.f32.gmra.mrb[2].mxu1 %v8335_v49  ;;  %v4795_v49 = vld [vmem:[%s9895_s1 + $0xb40] sm:$0xff]  ;;  %v4796_v55 = vld [vmem:[%s9895_s1 + $0xb48] sm:$0xff] }
 0x147   : > { %7007 = vmatpush3.bf16.msra.mxu1 %v7004_v48  ;;  %6484 = vmatmul.mubr.f32.gmra.mrb[2].mxu0 %v9063_v40  ;;  %v7016_v40 = vpack.c.bf16 %v4581_v33, %v4580_v32  ;;  %v4589_v48 = vld [vmem:[%s9895_s1 + $0x508] sm:$0xff]  ;;  %v4807_v32 = vld [vmem:[%s9895_s1 + $0xba0] sm:$0xff] }
 0x148   : > { %7423 = vmatpush3.bf16.msra.mxu0 %v7420_v19  ;;  %7009 = vmatprep.subr.bf16.mxu1 %v7008_v36  ;;  %v4803_v19 = vld [vmem:[%s9895_s1 + $0xb80] sm:$0xff]  ;;  %v7032_v27 = vpack.c.bf16 %v4589_v48, %v4588_v7  ;;  %v4808_v33 = vld [vmem:[%s9895_s1 + $0xba8] sm:$0xff]  ;;  %v4814_v7 = vld [vmem:[%s9895_s1 + $0xbd8] sm:$0xff] }
 0x149   : > { %7425 = vmatprep.subr.bf16.mxu0 %v7424_v6  ;;  %5914 = vmatprep.mubr.f32.mxu1 %v8345_v57  ;;  %v7432_v57 = vpack.c.bf16 %v4796_v55, %v4795_v49  ;;  %v7448_v56 = vpack.c.bf16 %v4804_v28, %v4803_v19  ;;  %v7847_v49 = vld [vmem:[#allocation2 + $0x21] sm:$0xff]  ;;  %v7852_v48 = vld [vmem:[#allocation2 + $0x71] sm:$0xff] }
 0x14a   : > { %6486 = vmatprep.mubr.f32.mxu0 %v9065_v1  ;;  %5915 = vmatmul.mubr.f32.gmra.mrb[4].mxu1 %v8379_v12  ;;  %v4583_v1 = vld [vmem:[%s9895_s1 + $0x4d8] sm:$0xff]  ;;  %v4797_v12 = vld [vmem:[%s9895_s1 + $0xb50] sm:$0xff]  ;;  %v7851_v46 = vld [vmem:[#allocation2 + $0x61] sm:$0xff] }
 0x14b   : > { %7011 = vmatpush3.bf16.msra.mxu1 %v7008_v36  ;;  %6487 = vmatmul.mubr.f32.gmra.mrb[4].mxu0 %v9083_v44  ;;  %v4798_v44 = vld [vmem:[%s9895_s1 + $0xb58] sm:$0xff]  ;;  %v7020_v30 = vpack.c.bf16 %v4583_v1, %v4582_v5 }
 0x14c   : > { %7427 = vmatpush3.bf16.msra.mxu0 %v7424_v6  ;;  %7013 = vmatprep.subr.bf16.mxu1 %v7012_v15  ;;  %v4591_v36 = vld [vmem:[%s9895_s1 + $0x518] sm:$0xff]  ;;  %v4805_v6 = vld [vmem:[%s9895_s1 + $0xb90] sm:$0xff] }
 0x14d   : > { %7429 = vmatprep.subr.bf16.mxu0 %v7428_v42  ;;  %5917 = vmatprep.mubr.f32.mxu1 %v8394_v17  ;;  %v7436_v17 = vpack.c.bf16 %v4798_v44, %v4797_v12  ;;  %v7036_v14 = vpack.c.bf16 %v4591_v36, %v4590_v31  ;;  %v7452_v63 = vpack.c.bf16 %v4806_v35, %v4805_v6  ;;  %v4595_v5 = vld [vmem:[%s9895_s1 + $0x538] sm:$0xff]  ;;  %v4809_v12 = vld [vmem:[%s9895_s1 + $0xbb0] sm:$0xff]  ;;  %v4815_v31 = vld [vmem:[%s9895_s1 + $0xbe0] sm:$0xff] }
 0x14e   : > { %6489 = vmatprep.mubr.f32.mxu0 %v9085_v60  ;;  %5918 = vmatmul.mubr.f32.gmra.mrb[6].mxu1 %v8948_v16  ;;  %v4799_v16 = vld [vmem:[%s9895_s1 + $0xb60] sm:$0xff]  ;;  %v4800_v60 = vld [vmem:[%s9895_s1 + $0xb68] sm:$0xff]  ;;  %v9927_v1 = vld [vmem:[#allocation11_spill] sm:$0xff] }
 0x14f   : > { %7015 = vmatpush3.bf16.msra.mxu1 %v7012_v15  ;;  %6490 = vmatmul.mubr.f32.gmra.mrb[6].mxu0 %v9441_v54  ;;  %v7440_v43 = vpack.c.bf16 %v4800_v60, %v4799_v16  ;;  %v4593_v15 = vld [vmem:[%s9895_s1 + $0x528] sm:$0xff]  ;;  %v4810_v44 = vld [vmem:[%s9895_s1 + $0xbb8] sm:$0xff]  ;;  %v4596_v16 = vld [vmem:[%s9895_s1 + $0x540] sm:$0xff] }
 0x150   : > { %7431 = vmatpush3.bf16.msra.mxu0 %v7428_v42  ;;  %7017 = vmatprep.subr.bf16.mxu1 %v7016_v40  ;;  %v9926_v42 = vld [vmem:[#allocation12_spill] sm:$0xff]  ;;  %v7040_v55 = vpack.c.bf16 %v4593_v15, %v4592_v58  ;;  %v7460_v38 = vpack.c.bf16 %v4810_v44, %v4809_v12  ;;  %v4597_v60 = vld [vmem:[%s9895_s1 + $0x548] sm:$0xff]  ;;  %v4603_v35 = vld [vmem:[%s9895_s1 + $0x578] sm:$0xff] }
 0x151   : > { %7433 = vmatprep.subr.bf16.mxu0 %v7432_v57  ;;  %5952 = vmatprep.mubr.f32.mxu1 %v9465_v21  ;;  %v7048_v2 = vpack.c.bf16 %v4597_v60, %v4596_v16  ;;  %v4604_v15 = vld [vmem:[%s9895_s1 + $0x580] sm:$0xff]  ;;  %v4821_v12 = vld [vmem:[%s9895_s1 + $0xc10] sm:$0xff]  ;;  %v4822_v44 = vld [vmem:[%s9895_s1 + $0xc18] sm:$0xff] }
 0x152   : > { %6524 = vmatprep.mubr.f32.mxu0 %v7846_v62  ;;  %v4811_v62 = vld [vmem:[%s9895_s1 + $0xbc0] sm:$0xff] }
 0x153   : > { %7019 = vmatpush3.bf16.msra.mxu1 %v7016_v40  ;;  %v7456_v40 = vpack.c.bf16 %v4808_v33, %v4807_v32  ;;  %v4605_v32 = vld [vmem:[%s9895_s1 + $0x588] sm:$0xff]  ;;  %v4819_v33 = vld [vmem:[%s9895_s1 + $0xc00] sm:$0xff] }
 0x154   : > { %7435 = vmatpush3.bf16.msra.mxu0 %v7432_v57  ;;  %7021 = vmatprep.subr.bf16.mxu1 %v7020_v30  ;;  %v4594_v57 = vld [vmem:[%s9895_s1 + $0x530] sm:$0xff]  ;;  %v9928_v16 = vld [vmem:[#allocation4_spill] sm:$0xff] }
 0x155   : > { %7437 = vmatprep.subr.bf16.mxu0 %v7436_v17  ;;  %v7044_v45 = vpack.c.bf16 %v4595_v5, %v4594_v57  ;;  %v4606_v57 = vld [vmem:[%s9895_s1 + $0x590] sm:$0xff]  ;;  %v4607_v5 = vld [vmem:[%s9895_s1 + $0x598] sm:$0xff]  ;;  %v4823_v60 = vld [vmem:[%s9895_s1 + $0xc20] sm:$0xff] }
 0x157   : > { %7023 = vmatpush3.bf16.msra.mxu1 %v7020_v30  ;;  %v7848_v30 = vld [vmem:[#allocation2 + $0x31] sm:$0xff] }
 0x158   : > { %7439 = vmatpush3.bf16.msra.mxu0 %v7436_v17  ;;  %7025 = vmatprep.subr.bf16.mxu1 %v7024_v13  ;;  %v7849_v17 = vld [vmem:[#allocation2 + $0x41] sm:$0xff] }
 0x159   : > { %7441 = vmatprep.subr.bf16.mxu0 %v7440_v43 }
 0x15b   : > { %7027 = vmatpush3.bf16.msra.mxu1 %v7024_v13  ;;  %v4812_v13 = vld [vmem:[%s9895_s1 + $0xbc8] sm:$0xff] }
 0x15c   : > { %7443 = vmatpush3.bf16.msra.mxu0 %v7440_v43  ;;  %7029 = vmatprep.subr.bf16.mxu1 %v7028_v53  ;;  %v7850_v43 = vld [vmem:[#allocation2 + $0x51] sm:$0xff]  ;;  %v7464_v23 = vpack.c.bf16 %v4812_v13, %v4811_v62  ;;  %v4824_v62 = vld [vmem:[%s9895_s1 + $0xc28] sm:$0xff] }
 0x15d   : > { %7445 = vmatprep.subr.bf16.mxu0 %v7444_v41 }
 0x15f   : > { %7031 = vmatpush3.bf16.msra.mxu1 %v7028_v53  ;;  %v4599_v53 = vld [vmem:[%s9895_s1 + $0x558] sm:$0xff] }
 0x160   : > { %7447 = vmatpush3.bf16.msra.mxu0 %v7444_v41  ;;  %7033 = vmatprep.subr.bf16.mxu1 %v7032_v27  ;;  %v4813_v41 = vld [vmem:[%s9895_s1 + $0xbd0] sm:$0xff]  ;;  %v7052_v19 = vpack.c.bf16 %v4599_v53, %v4598_v59  ;;  %v4612_v53 = vld [vmem:[%s9895_s1 + $0x5c0] sm:$0xff] }
 0x161   : > { %7449 = vmatprep.subr.bf16.mxu0 %v7448_v56  ;;  %v7468_v28 = vpack.c.bf16 %v4814_v7, %v4813_v41  ;;  %v4613_v41 = vld [vmem:[%s9895_s1 + $0x5c8] sm:$0xff] }
 0x162   : > { %5953 = vmatmul.mubr.f32.vlgmr.msra.gmra.mrb[0].mxu1 %v9926_v42  ;;  %v9662_v7 = vld [vmem:[#allocation2 + $0x82] sm:$0xff] }
 0x163   : > { %7035 = vmatpush3.bf16.msra.mxu1 %v7032_v27  ;;  %6525 = vmatmul.mubr.f32.vlgmr.msra.gmra.mrb[0].mxu0 %v7847_v49  ;;  %v4600_v27 = vld [vmem:[%s9895_s1 + $0x560] sm:$0xff]  ;;  %v4820_v49 = vld [vmem:[%s9895_s1 + $0xc08] sm:$0xff] }
 0x164   : > { %7451 = vmatpush3.bf16.msra.mxu0 %v7448_v56  ;;  %7037 = vmatprep.subr.bf16.mxu1 %v7036_v14  ;;  %v4601_v56 = vld [vmem:[%s9895_s1 + $0x568] sm:$0xff] }
 0x165   : > { %7453 = vmatprep.subr.bf16.mxu0 %v7452_v63  ;;  %5955 = vmatprep.mubr.f32.mxu1 %v9927_v1  ;;  %v7056_v36 = vpack.c.bf16 %v4601_v56, %v4600_v27  ;;  %v4616_v27 = vld [vmem:[%s9895_s1 + $0x5e0] sm:$0xff]  ;;  %v4617_v56 = vld [vmem:[%s9895_s1 + $0x5e8] sm:$0xff] }
 0x166   : > { %6527 = vmatprep.mubr.f32.mxu0 %v7848_v30  ;;  %5956 = vmatmul.mubr.f32.gmra.mrb[2].mxu1 %v8630_v29  ;;  %v7068_v30 = vpack.c.bf16 %v4607_v5, %v4606_v57  ;;  %v4838_v57 = vld [vmem:[%s9895_s1 + $0xc98] sm:$0xff]  ;;  %v3814_v5 = vld [vmem:[#allocation2 + $0x30] sm:$0xff] }
 0x167   : > { %7039 = vmatpush3.bf16.msra.mxu1 %v7036_v14  ;;  %6528 = vmatmul.mubr.f32.gmra.mrb[2].mxu0 %v7849_v17  ;;  %v4817_v14 = vld [vmem:[%s9895_s1 + $0xbf0] sm:$0xff]  ;;  %v7484_v17 = vpack.c.bf16 %v4822_v44, %v4821_v12 }
 0x168   : > { %7455 = vmatpush3.bf16.msra.mxu0 %v7452_v63  ;;  %7041 = vmatprep.subr.bf16.mxu1 %v7040_v55 }
 0x169   : > { %7457 = vmatprep.subr.bf16.mxu0 %v7456_v40  ;;  %5958 = vmatprep.mubr.f32.mxu1 %v8632_v8 }
 0x16a   : > { %6530 = vmatprep.mubr.f32.mxu0 %v7850_v43  ;;  %5959 = vmatmul.mubr.f32.gmra.mrb[4].mxu1 %v8646_v61  ;;  %v7488_v43 = vpack.c.bf16 %v4824_v62, %v4823_v60  ;;  %v3815_v60 = vld [vmem:[#allocation2 + $0x40] sm:$0xff] }
 0x16b   : > { %7043 = vmatpush3.bf16.msra.mxu1 %v7040_v55  ;;  %6531 = vmatmul.mubr.f32.gmra.mrb[4].mxu0 %v7851_v46  ;;  %v7064_v55 = vpack.c.bf16 %v4605_v32, %v4604_v15  ;;  %v4610_v46 = vld [vmem:[%s9895_s1 + $0x5b0] sm:$0xff]  ;;  %v4836_v15 = vld [vmem:[%s9895_s1 + $0xc88] sm:$0xff] }
 0x16c   : > { %7459 = vmatpush3.bf16.msra.mxu0 %v7456_v40  ;;  %7045 = vmatprep.subr.bf16.mxu1 %v7044_v45  ;;  %v7480_v40 = vpack.c.bf16 %v4820_v49, %v4819_v33  ;;  %v4622_v49 = vld [vmem:[%s9895_s1 + $0x610] sm:$0xff] }
 0x16d   : > { %7461 = vmatprep.subr.bf16.mxu0 %v7460_v38  ;;  %5961 = vmatprep.mubr.f32.mxu1 %v8648_v9 }
 0x16e   : > { %6533 = vmatprep.mubr.f32.mxu0 %v7852_v48  ;;  %5962 = vmatmul.mubr.f32.gmra.mrb[6].mxu1 %v8650_v10  ;;  %v4614_v48 = vld [vmem:[%s9895_s1 + $0x5d0] sm:$0xff] }
 0x16f   : > { %7047 = vmatpush3.bf16.msra.mxu1 %v7044_v45  ;;  %6534 = vmatmul.mubr.f32.gmra.mrb[6].mxu0 %v9000_v50  ;;  %v4816_v50 = vld [vmem:[%s9895_s1 + $0xbe8] sm:$0xff]  ;;  %v4608_v45 = vld [vmem:[%s9895_s1 + $0x5a0] sm:$0xff] }
 0x170   : > { %7463 = vmatpush3.bf16.msra.mxu0 %v7460_v38  ;;  %7049 = vmatprep.subr.bf16.mxu1 %v7048_v2  ;;  %v7472_v6 = vpack.c.bf16 %v4816_v50, %v4815_v31  ;;  %v4609_v38 = vld [vmem:[%s9895_s1 + $0x5a8] sm:$0xff]  ;;  %v7088_v31 = vpack.c.bf16 %v4617_v56, %v4616_v27  ;;  %v4845_v27 = vld [vmem:[%s9895_s1 + $0xcd0] sm:$0xff]  ;;  %v4846_v56 = vld [vmem:[%s9895_s1 + $0xcd8] sm:$0xff] }
 0x171   : > { %7465 = vmatprep.subr.bf16.mxu0 %v7464_v23  ;;  %5996 = vmatprep.mubr.f32.mxu1 %v9103_v39  ;;  %v4602_v39 = vld [vmem:[%s9895_s1 + $0x570] sm:$0xff]  ;;  %v7072_v13 = vpack.c.bf16 %v4609_v38, %v4608_v45  ;;  %v9929_v45 = vld [vmem:[#allocation5_spill] sm:$0xff]  ;;  %v4839_v38 = vld [vmem:[%s9895_s1 + $0xca0] sm:$0xff] }
 0x172   : > { %6568 = vmatprep.mubr.f32.mxu0 %v9269_v18  ;;  %v4818_v18 = vld [vmem:[%s9895_s1 + $0xbf8] sm:$0xff]  ;;  %v7060_v63 = vpack.c.bf16 %v4603_v35, %v4602_v39 }
 0x173   : > { %7051 = vmatpush3.bf16.msra.mxu1 %v7048_v2  ;;  %v7476_v58 = vpack.c.bf16 %v4818_v18, %v4817_v14  ;;  %v4611_v2 = vld [vmem:[%s9895_s1 + $0x5b8] sm:$0xff]  ;;  %v4620_v18 = vld [vmem:[%s9895_s1 + $0x600] sm:$0xff] }
 0x174   : > { %7467 = vmatpush3.bf16.msra.mxu0 %v7464_v23  ;;  %7053 = vmatprep.subr.bf16.mxu1 %v7052_v19  ;;  %v4825_v23 = vld [vmem:[%s9895_s1 + $0xc30] sm:$0xff]  ;;  %v7076_v59 = vpack.c.bf16 %v4611_v2, %v4610_v46  ;;  %v4834_v39 = vld [vmem:[%s9895_s1 + $0xc78] sm:$0xff] }
 0x175   : > { %7469 = vmatprep.subr.bf16.mxu0 %v7468_v28  ;;  %v4626_v46 = vld [vmem:[%s9895_s1 + $0x630] sm:$0xff]  ;;  %v4627_v2 = vld [vmem:[%s9895_s1 + $0x638] sm:$0xff] }
 0x177   : > { %7055 = vmatpush3.bf16.msra.mxu1 %v7052_v19  ;;  %v3813_v19 = vld [vmem:[#allocation2 + $0x20] sm:$0xff] }
 0x178   : > { %7471 = vmatpush3.bf16.msra.mxu0 %v7468_v28  ;;  %7057 = vmatprep.subr.bf16.mxu1 %v7056_v36 }
 0x179   : > { %7473 = vmatprep.subr.bf16.mxu0 %v7472_v6 }
 0x17b   : > { %7059 = vmatpush3.bf16.msra.mxu1 %v7056_v36  ;;  %v4618_v36 = vld [vmem:[%s9895_s1 + $0x5f0] sm:$0xff] }
 0x17c   : > { %7475 = vmatpush3.bf16.msra.mxu0 %v7472_v6  ;;  %7061 = vmatprep.subr.bf16.mxu1 %v7060_v63  ;;  %v4833_v6 = vld [vmem:[%s9895_s1 + $0xc70] sm:$0xff] }
 0x17d   : > { %7477 = vmatprep.subr.bf16.mxu0 %v7476_v58  ;;  %v7508_v14 = vpack.c.bf16 %v4834_v39, %v4833_v6 }
 0x17f   : > { %7063 = vmatpush3.bf16.msra.mxu1 %v7060_v63  ;;  %v4621_v63 = vld [vmem:[%s9895_s1 + $0x608] sm:$0xff] }
 0x180   : > { %7479 = vmatpush3.bf16.msra.mxu0 %v7476_v58  ;;  %7065 = vmatprep.subr.bf16.mxu1 %v7064_v55  ;;  %v4835_v58 = vld [vmem:[%s9895_s1 + $0xc80] sm:$0xff]  ;;  %v7096_v32 = vpack.c.bf16 %v4621_v63, %v4620_v18  ;;  %v4850_v18 = vld [vmem:[%s9895_s1 + $0xcf8] sm:$0xff] }
 0x181   : > { %7481 = vmatprep.subr.bf16.mxu0 %v7480_v40  ;;  %v7512_v33 = vpack.c.bf16 %v4836_v15, %v4835_v58  ;;  %v4851_v15 = vld [vmem:[%s9895_s1 + $0xd00] sm:$0xff] }
 0x182   : > { %5997 = vmatmul.mubr.f32.vlgmr.msra.gmra.mrb[0].mxu1 %v9928_v16  ;;  %v4840_v16 = vld [vmem:[%s9895_s1 + $0xca8] sm:$0xff] }
 0x183   : > { %7067 = vmatpush3.bf16.msra.mxu1 %v7064_v55  ;;  %6569 = vmatmul.mubr.f32.vlgmr.msra.gmra.mrb[0].mxu0 %v9285_v11  ;;  %v4826_v11 = vld [vmem:[%s9895_s1 + $0xc38] sm:$0xff] }
 0x184   : > { %7483 = vmatpush3.bf16.msra.mxu0 %v7480_v40  ;;  %7069 = vmatprep.subr.bf16.mxu1 %v7068_v30  ;;  %v4623_v55 = vld [vmem:[%s9895_s1 + $0x618] sm:$0xff]  ;;  %v4837_v40 = vld [vmem:[%s9895_s1 + $0xc90] sm:$0xff] }
 0x185   : > { %7485 = vmatprep.subr.bf16.mxu0 %v7484_v17  ;;  %5999 = vmatprep.mubr.f32.mxu1 %v8220_v37  ;;  %v7492_v37 = vpack.c.bf16 %v4826_v11, %v4825_v23  ;;  %v7100_v12 = vpack.c.bf16 %v4623_v55, %v4622_v49  ;;  %v7516_v44 = vpack.c.bf16 %v4838_v57, %v4837_v40  ;;  %v9930_v23 = vld [vmem:[#allocation6_spill] sm:$0xff]  ;;  %v4854_v55 = vld [vmem:[%s9895_s1 + $0xd18] sm:$0xff] }
 0x186   : > { %6571 = vmatprep.mubr.f32.mxu0 %v9287_v0  ;;  %6000 = vmatmul.mubr.f32.gmra.mrb[2].mxu1 %v8290_v22  ;;  %v4827_v22 = vld [vmem:[%s9895_s1 + $0xc40] sm:$0xff]  ;;  %v4828_v0 = vld [vmem:[%s9895_s1 + $0xc48] sm:$0xff]  ;;  %v4841_v11 = vld [vmem:[%s9895_s1 + $0xcb0] sm:$0xff] }
 0x187   : > { %7071 = vmatpush3.bf16.msra.mxu1 %v7068_v30  ;;  %6572 = vmatmul.mubr.f32.gmra.mrb[2].mxu0 %v9305_v25  ;;  %v7080_v25 = vpack.c.bf16 %v4613_v41, %v4612_v53  ;;  %v4624_v30 = vld [vmem:[%s9895_s1 + $0x620] sm:$0xff]  ;;  %v7108_v53 = vpack.c.bf16 %v4627_v2, %v4626_v46  ;;  %v3818_v41 = vld [vmem:[#allocation2 + $0x70] sm:$0xff]  ;;  %v4862_v46 = vld [vmem:[%s9895_s1 + $0xd58] sm:$0xff] }
 0x188   : > { %7487 = vmatpush3.bf16.msra.mxu0 %v7484_v17  ;;  %7073 = vmatprep.subr.bf16.mxu1 %v7072_v13  ;;  %v4625_v17 = vld [vmem:[%s9895_s1 + $0x628] sm:$0xff]  ;;  %v4853_v49 = vld [vmem:[%s9895_s1 + $0xd10] sm:$0xff] }
 0x189   : > { %7489 = vmatprep.subr.bf16.mxu0 %v7488_v43  ;;  %6002 = vmatprep.mubr.f32.mxu1 %v8297_v26  ;;  %v7496_v26 = vpack.c.bf16 %v4828_v0, %v4827_v22  ;;  %v7104_v62 = vpack.c.bf16 %v4625_v17, %v4624_v30  ;;  %v4628_v0 = vld [vmem:[%s9895_s1 + $0x640] sm:$0xff]  ;;  %v3952_v40 = vld [vmem:[#allocation2 + $0x31] sm:$0xff]  ;;  %v7548_v57 = vpack.c.bf16 %v4854_v55, %v4853_v49 }
 0x18a   : > { %6574 = vmatprep.mubr.f32.mxu0 %v9307_v4  ;;  %6003 = vmatmul.mubr.f32.gmra.mrb[4].mxu1 %v8324_v47  ;;  %v4615_v4 = vld [vmem:[%s9895_s1 + $0x5d8] sm:$0xff]  ;;  %v4829_v47 = vld [vmem:[%s9895_s1 + $0xc50] sm:$0xff]  ;;  %v4089_v2 = vld [vmem:[#allocation2 + $0x22] sm:$0xff] }
 0x18b   : > { %7075 = vmatpush3.bf16.msra.mxu1 %v7072_v13  ;;  %6575 = vmatmul.mubr.f32.gmra.mrb[4].mxu0 %v9325_v24  ;;  %v4830_v24 = vld [vmem:[%s9895_s1 + $0xc58] sm:$0xff]  ;;  %v7084_v28 = vpack.c.bf16 %v4615_v4, %v4614_v48  ;;  %v3816_v13 = vld [vmem:[#allocation2 + $0x50] sm:$0xff]  ;;  %v4844_v48 = vld [vmem:[%s9895_s1 + $0xcc8] sm:$0xff] }
 0x18c   : > { %7491 = vmatpush3.bf16.msra.mxu0 %v7488_v43  ;;  %7077 = vmatprep.subr.bf16.mxu1 %v7076_v59  ;;  %v7520_v43 = vpack.c.bf16 %v4840_v16, %v4839_v38  ;;  %v9932_v4 = vld [vmem:[#allocation8_spill] sm:$0xff]  ;;  %v3954_v30 = vld [vmem:[#allocation2 + $0x51] sm:$0xff] }
 0x18d   : > { %7493 = vmatprep.subr.bf16.mxu0 %v7492_v37  ;;  %6005 = vmatprep.mubr.f32.mxu1 %v8341_v51  ;;  %v7500_v51 = vpack.c.bf16 %v4830_v24, %v4829_v47  ;;  %v4858_v38 = vld [vmem:[%s9895_s1 + $0xd38] sm:$0xff] }
 0x18e   : > { %6577 = vmatprep.mubr.f32.mxu0 %v9327_v34  ;;  %6006 = vmatmul.mubr.f32.gmra.mrb[6].mxu1 %v8364_v3  ;;  %v4831_v3 = vld [vmem:[%s9895_s1 + $0xc60] sm:$0xff]  ;;  %v4832_v34 = vld [vmem:[%s9895_s1 + $0xc68] sm:$0xff] }
 0x18f   : > { %7079 = vmatpush3.bf16.msra.mxu1 %v7076_v59  ;;  %6578 = vmatmul.mubr.f32.gmra.mrb[6].mxu0 %v9662_v7  ;;  %v7504_v50 = vpack.c.bf16 %v4832_v34, %v4831_v3  ;;  %v4842_v59 = vld [vmem:[%s9895_s1 + $0xcb8] sm:$0xff]  ;;  %v9934_v3 = vld [vmem:[#allocation10_spill] sm:$0xff]  ;;  %v3951_v34 = vld [vmem:[#allocation2 + $0x21] sm:$0xff] }
 0x190   : > { %7495 = vmatpush3.bf16.msra.mxu0 %v7492_v37  ;;  %7081 = vmatprep.subr.bf16.mxu1 %v7080_v25  ;;  %v3817_v37 = vld [vmem:[#allocation2 + $0x60] sm:$0xff]  ;;  %v7524_v22 = vpack.c.bf16 %v4842_v59, %v4841_v11  ;;  %v4864_v59 = vld [vmem:[%s9895_s1 + $0xd68] sm:$0xff] }
 0x191   : > { %7497 = vmatprep.subr.bf16.mxu0 %v7496_v26  ;;  %6040 = vmatprep.mubr.f32.mxu1 %v9217_v52  ;;  %v4619_v52 = vld [vmem:[%s9895_s1 + $0x5f8] sm:$0xff]  ;;  %v4863_v11 = vld [vmem:[%s9895_s1 + $0xd60] sm:$0xff] }
 0x192   : > { %6612 = vmatprep.mubr.f32.mxu0 %v3813_v19  ;;  %v7092_v35 = vpack.c.bf16 %v4619_v52, %v4618_v36  ;;  %v4630_v19 = vld [vmem:[%s9895_s1 + $0x650] sm:$0xff]  ;;  %v4632_v36 = vld [vmem:[%s9895_s1 + $0x660] sm:$0xff]  ;;  %v4633_v52 = vld [vmem:[%s9895_s1 + $0x668] sm:$0xff] }
 0x193   : > { %7083 = vmatpush3.bf16.msra.mxu1 %v7080_v25  ;;  %v4629_v25 = vld [vmem:[%s9895_s1 + $0x648] sm:$0xff]  ;;  %v7120_v6 = vpack.c.bf16 %v4633_v52, %v4632_v36 }
 0x194   : > { %7499 = vmatpush3.bf16.msra.mxu0 %v7496_v26  ;;  %7085 = vmatprep.subr.bf16.mxu1 %v7084_v28  ;;  %v9931_v26 = vld [vmem:[#allocation7_spill] sm:$0xff]  ;;  %v7112_v47 = vpack.c.bf16 %v4629_v25, %v4628_v0 }
 0x195   : > { %7501 = vmatprep.subr.bf16.mxu0 %v7500_v51  ;;  %v4094_v0 = vld [vmem:[#allocation2 + $0x72] sm:$0xff] }
 0x196   : > { %v4090_v25 = vld [vmem:[#allocation2 + $0x32] sm:$0xff] }
 0x197   : > { %7087 = vmatpush3.bf16.msra.mxu1 %v7084_v28  ;;  %v4631_v28 = vld [vmem:[%s9895_s1 + $0x658] sm:$0xff] }
 0x198   : > { %7503 = vmatpush3.bf16.msra.mxu0 %v7500_v51  ;;  %7089 = vmatprep.subr.bf16.mxu1 %v7088_v31  ;;  %v9933_v51 = vld [vmem:[#allocation9_spill] sm:$0xff] }
 0x199   : > { %7505 = vmatprep.subr.bf16.mxu0 %v7504_v50 }
 0x19b   : > { %7091 = vmatpush3.bf16.msra.mxu1 %v7088_v31  ;;  %v7116_v31 = vpack.c.bf16 %v4631_v28, %v4630_v19 }
 0x19c   : > { %7507 = vmatpush3.bf16.msra.mxu0 %v7504_v50  ;;  %7093 = vmatprep.subr.bf16.mxu1 %v7092_v35  ;;  %v7532_v50 = vpack.c.bf16 %v4846_v56, %v4845_v27 }
 0x19d   : > { %7509 = vmatprep.subr.bf16.mxu0 %v7508_v14 }
 0x19f   : > { %7095 = vmatpush3.bf16.msra.mxu1 %v7092_v35  ;;  %v4634_v35 = vld [vmem:[%s9895_s1 + $0x670] sm:$0xff] }
 0x1a0   : > { %7511 = vmatpush3.bf16.msra.mxu0 %v7508_v14  ;;  %7097 = vmatprep.subr.bf16.mxu1 %v7096_v32  ;;  %v4849_v14 = vld [vmem:[%s9895_s1 + $0xcf0] sm:$0xff] }
 0x1a1   : > { %7513 = vmatprep.subr.bf16.mxu0 %v7512_v33  ;;  %v7540_v58 = vpack.c.bf16 %v4850_v18, %v4849_v14 }
 0x1a2   : > { %6041 = vmatmul.mubr.f32.vlgmr.msra.gmra.mrb[0].mxu1 %v9929_v45  ;;  %v4857_v45 = vld [vmem:[%s9895_s1 + $0xd30] sm:$0xff] }
 0x1a3   : > { %7099 = vmatpush3.bf16.msra.mxu1 %v7096_v32  ;;  %6613 = vmatmul.mubr.f32.vlgmr.msra.gmra.mrb[0].mxu0 %v3814_v5  ;;  %v4852_v32 = vld [vmem:[%s9895_s1 + $0xd08] sm:$0xff]  ;;  %v7556_v16 = vpack.c.bf16 %v4858_v38, %v4857_v45 }
 0x1a4   : > { %7515 = vmatpush3.bf16.msra.mxu0 %v7512_v33  ;;  %7101 = vmatprep.subr.bf16.mxu1 %v7100_v12  ;;  %v7544_v33 = vpack.c.bf16 %v4852_v32, %v4851_v15  ;;  %v3953_v5 = vld [vmem:[#allocation2 + $0x41] sm:$0xff] }
 0x1a5   : > { %7517 = vmatprep.subr.bf16.mxu0 %v7516_v44  ;;  %6043 = vmatprep.mubr.f32.mxu1 %v9930_v23 }
 0x1a6   : > { %6615 = vmatprep.mubr.f32.mxu0 %v3815_v60  ;;  %6044 = vmatmul.mubr.f32.gmra.mrb[2].mxu1 %v8467_v20  ;;  %v4843_v20 = vld [vmem:[%s9895_s1 + $0xcc0] sm:$0xff]  ;;  %v4860_v60 = vld [vmem:[%s9895_s1 + $0xd48] sm:$0xff] }
 0x1a7   : > { %7103 = vmatpush3.bf16.msra.mxu1 %v7100_v12  ;;  %6616 = vmatmul.mubr.f32.gmra.mrb[2].mxu0 %v3816_v13  ;;  %v7528_v24 = vpack.c.bf16 %v4844_v48, %v4843_v20  ;;  %v4855_v12 = vld [vmem:[%s9895_s1 + $0xd20] sm:$0xff]  ;;  %v4096_v20 = vld [vmem:[#allocation2 + $0x92] sm:$0xff] }
 0x1a8   : > { %7519 = vmatpush3.bf16.msra.mxu0 %v7516_v44  ;;  %7105 = vmatprep.subr.bf16.mxu1 %v7104_v62  ;;  %v4856_v44 = vld [vmem:[%s9895_s1 + $0xd28] sm:$0xff]  ;;  %v4092_v48 = vld [vmem:[#allocation2 + $0x52] sm:$0xff] }
 0x1a9   : > { %7521 = vmatprep.subr.bf16.mxu0 %v7520_v43  ;;  %6046 = vmatprep.mubr.f32.mxu1 %v9931_v26  ;;  %v7552_v17 = vpack.c.bf16 %v4856_v44, %v4855_v12  ;;  %v7853_v13 = vld [vmem:[#allocation2 + $0x81] sm:$0xff] }
 0x1aa   : > { %6618 = vmatprep.mubr.f32.mxu0 %v3817_v37  ;;  %6047 = vmatmul.mubr.f32.gmra.mrb[4].mxu1 %v9932_v4  ;;  %v7568_v37 = vpack.c.bf16 %v4864_v59, %v4863_v11  ;;  %v4091_v26 = vld [vmem:[#allocation2 + $0x42] sm:$0xff] }
 0x1ab   : > { %7107 = vmatpush3.bf16.msra.mxu1 %v7104_v62  ;;  %6619 = vmatmul.mubr.f32.gmra.mrb[4].mxu0 %v3818_v41  ;;  %v4866_v41 = vld [vmem:[%s9895_s1 + $0xd78] sm:$0xff] }
 0x1ac   : > { %7523 = vmatpush3.bf16.msra.mxu0 %v7520_v43  ;;  %7109 = vmatprep.subr.bf16.mxu1 %v7108_v53  ;;  %v4861_v43 = vld [vmem:[%s9895_s1 + $0xd50] sm:$0xff] }
 0x1ad   : > { %7525 = vmatprep.subr.bf16.mxu0 %v7524_v22  ;;  %6049 = vmatprep.mubr.f32.mxu1 %v9933_v51  ;;  %v7564_v23 = vpack.c.bf16 %v4862_v46, %v4861_v43 }
 0x1ae   : > { %6621 = vmatprep.mubr.f32.mxu0 %v9441_v54  ;;  %6050 = vmatmul.mubr.f32.gmra.mrb[6].mxu1 %v9934_v3  ;;  %v4847_v54 = vld [vmem:[%s9895_s1 + $0xce0] sm:$0xff] }
 0x1af   : > { %7111 = vmatpush3.bf16.msra.mxu1 %v7108_v53  ;;  %6622 = vmatmul.mubr.f32.gmra.mrb[6].mxu0 %v9465_v21  ;;  %v4848_v21 = vld [vmem:[%s9895_s1 + $0xce8] sm:$0xff]  ;;  %v4865_v53 = vld [vmem:[%s9895_s1 + $0xd70] sm:$0xff] }
 0x1b0   : > { %7527 = vmatpush3.bf16.msra.mxu0 %v7524_v22  ;;  %7113 = vmatprep.subr.bf16.mxu1 %v7112_v47  ;;  %v7536_v39 = vpack.c.bf16 %v4848_v21, %v4847_v54  ;;  %v7572_v22 = vpack.c.bf16 %v4866_v41, %v4865_v53 }
 0x1b1   : > { %7529 = vmatprep.subr.bf16.mxu0 %v7528_v24  ;;  %6084 = vmatprep.mubr.f32.mxu1 %v9926_v42  ;;  %v4635_v42 = vld [vmem:[%s9895_s1 + $0x678] sm:$0xff] }
 0x1b2   : > { %6656 = vmatprep.mubr.f32.mxu0 %v3951_v34  ;;  %v7124_v63 = vpack.c.bf16 %v4635_v42, %v4634_v35 }
 0x1b3   : > { %7115 = vmatpush3.bf16.msra.mxu1 %v7112_v47 }
 0x1b4   : > { %7531 = vmatpush3.bf16.msra.mxu0 %v7528_v24  ;;  %7117 = vmatprep.subr.bf16.mxu1 %v7116_v31 }
 0x1b5   : > { %7533 = vmatprep.subr.bf16.mxu0 %v7532_v50 }
 0x1b7   : > { %7119 = vmatpush3.bf16.msra.mxu1 %v7116_v31 }
 0x1b8   : > { %7535 = vmatpush3.bf16.msra.mxu0 %v7532_v50  ;;  %7121 = vmatprep.subr.bf16.mxu1 %v7120_v6 }
 0x1b9   : > { %7537 = vmatprep.subr.bf16.mxu0 %v7536_v39 }
 0x1bb   : > { %7123 = vmatpush3.bf16.msra.mxu1 %v7120_v6 }
 0x1bc   : > { %7539 = vmatpush3.bf16.msra.mxu0 %v7536_v39  ;;  %7125 = vmatprep.subr.bf16.mxu1 %v7124_v63 }
 0x1bd   : > { %7541 = vmatprep.subr.bf16.mxu0 %v7540_v58 }
 0x1bf   : > { %7127 = vmatpush3.bf16.msra.mxu1 %v7124_v63 }
 0x1c0   : > { %7543 = vmatpush3.bf16.msra.mxu0 %v7540_v58  ;;  %7576 = vmatprep.subr.bf16.mxu1 %v7544_v33 }
 0x1c1   : > { %7545 = vmatprep.subr.bf16.mxu0 %v7544_v33 }
 0x1c2   : > { %6085 = vmatmul.mubr.f32.vlgmr.msra.gmra.mrb[0].mxu1 %v9927_v1  ;;  %v3955_v1 = vld [vmem:[#allocation2 + $0x61] sm:$0xff] }
 0x1c3   : > { %6657 = vmatmul.mubr.f32.vlgmr.msra.gmra.mrb[0].mxu0 %v3952_v40  ;;  %7584 = vmatpush3.bf16.msra.mxu1 %v7544_v33 }
 0x1c4   : > { %7547 = vmatpush3.bf16.msra.mxu0 %v7544_v33  ;;  %6087 = vmatprep.mubr.f32.mxu1 %v8630_v29  ;;  %v3956_v29 = vld [vmem:[#allocation2 + $0x71] sm:$0xff] }
 0x1c5   : > { %6659 = vmatprep.mubr.f32.mxu0 %v3953_v5  ;;  %7549 = vmatprep.subr.bf16.mxu0 %v7548_v57 }
 0x1c6   : > { %6088 = vmatmul.mubr.f32.gmra.mrb[2].mxu1 %v8632_v8  ;;  %7577 = vmatprep.subr.bf16.mxu1 %v7548_v57  ;;  %v4859_v8 = vld [vmem:[%s9895_s1 + $0xd40] sm:$0xff] }
 0x1c7   : > { %6660 = vmatmul.mubr.f32.gmra.mrb[2].mxu0 %v3954_v30  ;;  %7585 = vmatpush3.bf16.msra.mxu1 %v7548_v57  ;;  %v7560_v62 = vpack.c.bf16 %v4860_v60, %v4859_v8 }
 0x1c8   : > { %7551 = vmatpush3.bf16.msra.mxu0 %v7548_v57  ;;  %6090 = vmatprep.mubr.f32.mxu1 %v8646_v61  ;;  %v3958_v61 = vld [vmem:[#allocation2 + $0x91] sm:$0xff] }
 0x1c9   : > { %6662 = vmatprep.mubr.f32.mxu0 %v3955_v1  ;;  %7553 = vmatprep.subr.bf16.mxu0 %v7552_v17 }
 0x1ca   : > { %6091 = vmatmul.mubr.f32.gmra.mrb[4].mxu1 %v8648_v9  ;;  %7578 = vmatprep.subr.bf16.mxu1 %v7552_v17  ;;  %v9935_v9 = vld [vmem:[#allocation13_spill] sm:$0xff] }
 0x1cb   : > { %6663 = vmatmul.mubr.f32.gmra.mrb[4].mxu0 %v3956_v29  ;;  %7586 = vmatpush3.bf16.msra.mxu1 %v7552_v17 }
 0x1cc   : > { %7555 = vmatpush3.bf16.msra.mxu0 %v7552_v17  ;;  %6093 = vmatprep.mubr.f32.mxu1 %v8650_v10  ;;  %v4093_v10 = vld [vmem:[#allocation2 + $0x62] sm:$0xff] }
 0x1cd   : > { %6665 = vmatprep.mubr.f32.mxu0 %v7853_v13  ;;  %7557 = vmatprep.subr.bf16.mxu0 %v7556_v16 }
 0x1ce   : > { %6094 = vmatmul.mubr.f32.gmra.mrb[6].mxu1 %v9935_v9  ;;  %7579 = vmatprep.subr.bf16.mxu1 %v7556_v16 }
 0x1cf   : > { %6666 = vmatmul.mubr.f32.gmra.mrb[6].mxu0 %v3958_v61  ;;  %7587 = vmatpush3.bf16.msra.mxu1 %v7556_v16 }
 0x1d0   : > { %7559 = vmatpush3.bf16.msra.mxu0 %v7556_v16  ;;  %7580 = vmatprep.subr.bf16.mxu1 %v7560_v62 }
 0x1d1   : > { %7561 = vmatprep.subr.bf16.mxu0 %v7560_v62  ;;  %6700 = vmatprep.mubr.f32.mxu0 %v4089_v2 }
 0x1d2   : > { %6706 = vmatprep.mubr.f32.mxu1 %v4093_v10 }
 0x1d3   : > { %7588 = vmatpush3.bf16.msra.mxu1 %v7560_v62 }
 0x1d4   : > { %7563 = vmatpush3.bf16.msra.mxu0 %v7560_v62  ;;  %7581 = vmatprep.subr.bf16.mxu1 %v7564_v23 }
 0x1d5   : > { %7565 = vmatprep.subr.bf16.mxu0 %v7564_v23 }
 0x1d7   : > { %7589 = vmatpush3.bf16.msra.mxu1 %v7564_v23 }
 0x1d8   : > { %7567 = vmatpush3.bf16.msra.mxu0 %v7564_v23  ;;  %7582 = vmatprep.subr.bf16.mxu1 %v7568_v37 }
 0x1d9   : > { %7569 = vmatprep.subr.bf16.mxu0 %v7568_v37 }
 0x1db   : > { %7590 = vmatpush3.bf16.msra.mxu1 %v7568_v37 }
 0x1dc   : > { %7571 = vmatpush3.bf16.msra.mxu0 %v7568_v37  ;;  %7583 = vmatprep.subr.bf16.mxu1 %v7572_v22 }
 0x1dd   : > { %7573 = vmatprep.subr.bf16.mxu0 %v7572_v22 }
 0x1df   : > { %7591 = vmatpush3.bf16.msra.mxu1 %v7572_v22 }
 0x1e0   : > { %7575 = vmatpush3.bf16.msra.mxu0 %v7572_v22 }
 0x1e2   : > { %6707 = vmatmul.mubr.f32.vlgmr.msra.gmra.mrb[8].mxu1 %v4094_v0 }
 0x1e3   : > { %6701 = vmatmul.mubr.f32.vlgmr.msra.gmra.mrb[0].mxu0 %v4090_v25  ;;  %6709 = vmatprep.mubr.f32.mxu1 %v9662_v7 }
 0x1e4   : > { %6703 = vmatprep.mubr.f32.mxu0 %v4091_v26 }
 0x1e6   : > { %6710 = vmatmul.mubr.f32.gmra.mrb[10].mxu1 %v4096_v20 }
 0x1e7   : > { %6704 = vmatmul.mubr.f32.gmra.mrb[2].mxu0 %v4092_v48  ;;  %v4235_v48 = vld [vmem:[%s7975_s14] sm:$0x1] }
 0x295   : > { %v6086_v4 = vpop.f32.mrb[0].mxu1 }
 0x296   : > { %v2186_v47 = vpop.f32.mrb[1].mxu1 }
 0x299   : > { %v6089_v24 = vpop.f32.mrb[2].mxu1 }
 0x29a   : > { %v2196_v19 = vpop.f32.mrb[3].mxu1 }
 0x29d   : > { %v6092_v28 = vpop.f32.mrb[4].mxu1 }
 0x29e   : > { %v6664_v51 = vpop.f32.mrb[4].mxu0  ;;  %v2206_v27 = vpop.f32.mrb[5].mxu1 }
 0x29f   : > { %v7596_v56 = vadd.f32 %v6664_v51, %v6092_v28  ;;  %v4062_v3 = vpop.f32.mrb[5].mxu0 }
 0x2a0   : > { %v7598_v34 = vadd.f32 %v4062_v3, %v2206_v27 }
 0x2a1   : > { %v6095_v31 = vpop.f32.mrb[6].mxu1 }
 0x2a2   : > { %v6667_v50 = vpop.f32.mrb[6].mxu0  ;;  %v2216_v7 = vpop.f32.mrb[7].mxu1 }
 0x2a3   : > { %v7600_v36 = vadd.f32 %v6667_v50, %v6095_v31  ;;  %v4072_v52 = vpop.f32.mrb[7].mxu0 }
 0x2a4   : > { %v7602_v54 = vadd.f32 %v4072_v52, %v2216_v7 }
 0x2b5   : > { %v6708_v21 = vpop.f32.mrb[8].mxu1 }
 0x2b6   : > { %v6702_v6 = vpop.f32.mrb[0].mxu0  ;;  %v7597_v39 = vadd.f32 %v7596_v56, %v6708_v21  ;;  %v4200_v35 = vpop.f32.mrb[9].mxu1 }
 0x2b7   : > { %v7592_v42 = vadd.f32 %v6702_v6, %v6086_v4  ;;  %v4180_v14 = vpop.f32.mrb[1].mxu0  ;;  %v7599_v18 = vadd.f32 %v7598_v34, %v4200_v35 }
 0x2b8   : > { %4232 = vst [vmem:[%s7985_s27 + $0x28] sm:$0xff] %v7597_v39  ;;  %v7593_v63 = vadd.f32 %v4180_v14, %v2186_v47  ;;  %v4257_v61 = vmul.f32 %v7597_v39, %v7597_v39 }
 0x2b9   : > { %4228 = vst [vmem:[%s7985_s27 + $0x8] sm:$0xff] %v7592_v42  ;;  %v4253_v58 = vmul.f32 %v7592_v42, %v7592_v42  ;;  %4231 = vst [vmem:[%s7985_s27 + $0x20] sm:$0xff] %v7599_v18  ;;  %v6711_v15 = vpop.f32.mrb[10].mxu1  ;;  %v4256_v16 = vmul.f32 %v7599_v18, %v7599_v18 }
 0x2ba   : > { %4227 = vst [vmem:[%s7985_s27] sm:$0xff] %v7593_v63  ;;  %v4236_v32 = vadd.f32 %v7593_v63, %v7592_v42  ;;  %v4252_v33 = vmul.f32 %v7593_v63, %v7593_v63  ;;  %v6705_v49 = vpop.f32.mrb[2].mxu0  ;;  %v7601_v55 = vadd.f32 %v7600_v36, %v6711_v15  ;;  %v4210_v40 = vpop.f32.mrb[11].mxu1 }
 0x2bb   : > { %v7594_v57 = vadd.f32 %v6705_v49, %v6089_v24  ;;  %v4190_v5 = vpop.f32.mrb[3].mxu0  ;;  %v7603_v12 = vadd.f32 %v7602_v54, %v4210_v40  ;;  %v4251_v24 = vld [vmem:[%s7980_s18] sm:$0x1] }
 0x2bc   : > { %v4260_v44 = vadd.f32 %v4253_v58, %v4252_v33  ;;  %4234 = vst [vmem:[%s7985_s27 + $0x38] sm:$0xff] %v7601_v55  ;;  %v7595_v30 = vadd.f32 %v4190_v5, %v2196_v19  ;;  %v4259_v2 = vmul.f32 %v7601_v55, %v7601_v55 }
 0x2bd   : > { %4230 = vst [vmem:[%s7985_s27 + $0x18] sm:$0xff] %v7594_v57  ;;  %4233 = vst [vmem:[%s7985_s27 + $0x30] sm:$0xff] %v7603_v12  ;;  %v4255_v45 = vmul.f32 %v7594_v57, %v7594_v57  ;;  %v4258_v46 = vmul.f32 %v7603_v12, %v7603_v12 }
 0x2be   : > { %4229 = vst [vmem:[%s7985_s27 + $0x10] sm:$0xff] %v7595_v30  ;;  %v4237_v17 = vadd.f32 %v7595_v30, %v4236_v32  ;;  %v4254_v1 = vmul.f32 %v7595_v30, %v7595_v30 }
 0x2c0   : > { %v4238_v38 = vadd.f32 %v7594_v57, %v4237_v17  ;;  %v4261_v29 = vadd.f32 %v4260_v44, %v4254_v1 }
 0x2c2   : > { %v4262_v8 = vadd.f32 %v4261_v29, %v4255_v45  ;;  %v4239_v60 = vadd.f32 %v7599_v18, %v4238_v38 }
 0x2c4   : > { %v4240_v62 = vadd.f32 %v7597_v39, %v4239_v60  ;;  %v4263_v13 = vadd.f32 %v4262_v8, %v4256_v16 }
 0x2c6   : > { %v4241_v43 = vadd.f32 %v7603_v12, %v4240_v62  ;;  %v4264_v9 = vadd.f32 %v4263_v13, %v4257_v61 }
 0x2c8   : > { %v4242_v10 = vadd.f32 %v7601_v55, %v4241_v43  ;;  %v4265_v23 = vadd.f32 %v4264_v9, %v4258_v46 }
 0x2ca   : > { %v4243_v11 = vrot.slane %v4242_v10, 4  ;;  %v4266_v59 = vadd.f32 %v4265_v23, %v4259_v2 }
 0x2cc   : > { %v4244_v37 = vadd.f32 %v4243_v11, %v4242_v10  ;;  %v4267_v53 = vrot.slane %v4266_v59, 4 }
 0x2ce   : > { %v4245_v41 = vrot.slane %v4244_v37, 2  ;;  %v4268_v22 = vadd.f32 %v4267_v53, %v4266_v59 }
 0x2d0   : > { %v4246_v0 = vadd.f32 %v4245_v41, %v4244_v37  ;;  %v4269_v25 = vrot.slane %v4268_v22, 2 }
 0x2d2   : > { %v4247_v26 = vrot.slane %v4246_v0, 1  ;;  %v4270_v20 = vadd.f32 %v4269_v25, %v4268_v22 }
 0x2d4   : > { %v4248_v4 = vadd.f32 %v4247_v26, %v4246_v0  ;;  %v4271_v47 = vrot.slane %v4270_v20, 1 }
 0x2d6   : > { %v4249_v19 = vadd.f32 %v4248_v4, %v4235_v48  ;;  %v4272_v28 = vadd.f32 %v4271_v47, %v4270_v20 }
 0x2d8   : > { %4250 = vst [vmem:[%s7975_s14] sm:$0x1] %v4249_v19  ;;  %v4273_v51 = vadd.f32 %v4272_v28, %v4251_v24 }
 0x2da   : > { %4274 = vst [vmem:[%s7980_s18] sm:$0x1] %v4273_v51 }
 0x2db PF: > { %s17_s25 = sadd.s32 1, %s7892_s25   ;;  %s9936_s27 = sld [smem:[#allocation3_spill]] }
 0x2dc   : > { %p14_p8 = scmp.ge.s32.totalorder %s17_s25, 18   ;;  %s9937_s21 = smov %s7884_s23 }
 0x2dd   : > { %s9938_s22 = smov %s7888_s24  ;;  %s9939_s23 = smov %s9942_s26 }
 0x2de   :  { %16 = sbr.rel (!%p14_p8) target bundleno = 3 (0x3), region = 125 }
 0x2e1   : > { %s9940_s24 = smov %s9936_s27 }

// kernel: downscaling_block.3
= control target key start
LH: loop header
LB: loop body
LE: loop exit
PB: predicated region body
PF: predicated region fallthrough
CT: control target
= control target key end

     0   :  { %s7778_s15 = smov 0   ;;  %s7780_s16 = smov 0   ;;  %s9669_s0 = inlined_call_operand.vmem [shape: f32[2,8,8,8,128], index: 0, kind: input, shape index: {}]   ;;  %s9670_s1 = inlined_call_operand.vmem [shape: f32[3,3,3,128,128], index: 1, kind: input, shape index: {}]   ;;  %s9671_s2 = inlined_call_operand.vmem [shape: f32[2,8,64,128], index: 2, kind: output, shape index: {0}]   ;;  %s9672_s3 = inlined_call_operand.vmem [shape: f32[2,1,128], index: 3, kind: output, shape index: {1}]   ;;  %s9673_s4 = inlined_call_operand.vmem [shape: f32[2,1,128], index: 4, kind: output, shape index: {2}]  }
   0x1   :  { %s7782_s17 = smov 0   ;;  %s7784_s18 = smov 0  }
   0x2   :  { %s7786_s19 = smov 0  }
   0x3 LB: > { %s24_s20 = sadd.s32 1, %s7741_s17  ;;  %s27_s21 = sadd.s32 1, %s7745_s18  ;;  %s7749_s19 = sphi %s7786_s19, %s15_s19   ;;  %s7745_s18 = sphi %s7784_s18, %s9714_s18   ;;  %s7741_s17 = sphi %s7782_s17, %s9713_s17   ;;  %s7737_s16 = sphi %s7780_s16, %s9712_s16   ;;  %s7733_s15 = sphi %s7778_s15, %s9711_s15  }
   0x4   : > { %p25_p0 = scmp.ge.s32.totalorder %s24_s20, 8  ;;  %p4281_p1 = scmp.ge.s32.totalorder %s7749_s19, 1 }
   0x5   : > { %p181_p2 = scmp.lt.s32.totalorder %s7749_s19, 17 }
   0x6   : > { %s9716_s20 = smov (%p25_p0, %s24_s20), 0  ;;  %s9718_s21 = smov (!%p25_p0, %s27_s21), %s7745_s18 }
   0x7   : > { %p182_p3 = pnand %p4281_p1, %p181_p2  ;;  %p29_p4 = scmp.ge.s32.totalorder %s9718_s21, 2 }
   0x9   : > { %s9720_s21 = smov (%p29_p4, %s9718_s21), 0  ;;  %185 = sbr.rel (%p182_p3) target bundleno = 731 (0x2db), region = 28 }
  0x10   : > { %p217_p5 = scmp.lt.s32.totalorder %s7737_s16, 1  ;;  %p224_p6 = scmp.lt.s32.totalorder %s7733_s15, 7 }
  0x11   : > { %p4287_p7 = scmp.ne.s32.totalorder %s7733_s15, 0 }
  0x12   : > { %s9722_s16 = smov (!%p217_p5, %s7737_s16), 1  ;;  %v7751_v0 = vmov (!%p4287_p7), 0.0  }
  0x13   : > { %s225_s22 = scalar_select %p224_p6, %s7733_s15, 7 }
  0x14   : > { %s4727_s23 = sshll.u32 %s9722_s16, 9  ;;  %s4285_s24 = sshll.u32 %s9722_s16, 6 }
  0x15   : > { %s7817_s27 = scalar_lea.vmem %s9669_s0, %s4727_s23  ;;  %s4284_s28 = sshll.u32 %s225_s22, 3 }
  0x16   : > { %s228_s29 = sadd.s32 %s4285_s24, %s4284_s28  ;;  %s7822_s6 = scalar_lea.vmem %s9672_s3, %s9722_s16 }
  0x17   : > { %s4286_s7 = sshll.u32 %s228_s29, 3  ;;  %s7827_s10 = scalar_lea.vmem %s9673_s4, %s9722_s16  ;;  %241 = vst [vmem:[%s7822_s6] sm:$0x1] (!%p4287_p7), %v7751_v0 }
  0x18   : > { %s7832_s13 = scalar_lea.vmem %s9671_s2, %s4286_s7  ;;  %240 = sbr.rel (%p4287_p7) target bundleno = 31 (0x1f), region = 32  ;;  %242 = vst [vmem:[%s7827_s10] sm:$0x1] (!%p4287_p7), %v7751_v0 }
  0x1f PF: > { %v4295_v1 = vld [vmem:[%s9670_s1 + $0x80] sm:$0xff]  ;;  %v4296_v2 = vld [vmem:[%s9670_s1 + $0x88] sm:$0xff]  ;;  %s7847_s26 = sadd.s32 4294967295, %s7733_s15  ;;  %p1528_p8 = scmp.ge.s32.totalorder %s7733_s15, 0  ;;  %v4297_v6 = vld [vmem:[%s9670_s1 + $0x90] sm:$0xff]  ;;  %v9674_v8 = vmov 0.0  }
  0x20   : > { %v4494_v3 = vld [vmem:[%s9670_s1 + $0x680] sm:$0xff]  ;;  %v6570_v4 = vpack.c.bf16 %v4296_v2, %v4295_v1  ;;  %v4495_v5 = vld [vmem:[%s9670_s1 + $0x688] sm:$0xff]  ;;  %v4298_v7 = vld [vmem:[%s9670_s1 + $0x98] sm:$0xff]  ;;  %243 = vst [vmem:[#allocation2] sm:$0xff] %v9674_v8  ;;  %p264_p9 = scmp.ge.s32.totalorder %s7847_s26, 0  ;;  %p265_p10 = scmp.lt.s32.totalorder %s7847_s26, 8 }
  0x21   : > { %244 = vst [vmem:[#allocation2 + $0x8] sm:$0x3] %v9674_v8  ;;  %245 = vst [vmem:[#allocation2 + $0x10] sm:$0xff] %v9674_v8  ;;  %v6986_v9 = vpack.c.bf16 %v4495_v5, %v4494_v3  ;;  %v6574_v10 = vpack.c.bf16 %v4298_v7, %v4297_v6  ;;  %v4496_v11 = vld [vmem:[%s9670_s1 + $0x690] sm:$0xff]  ;;  %v4497_v12 = vld [vmem:[%s9670_s1 + $0x698] sm:$0xff]  ;;  %p268_p11 = scmp.gt.s32.totalorder %s7847_s26, 0 }
  0x22   : > { %246 = vst [vmem:[#allocation2 + $0x18] sm:$0x3] %v9674_v8  ;;  %247 = vst [vmem:[#allocation2 + $0x20] sm:$0xff] %v9674_v8  ;;  %v4299_v13 = vld [vmem:[%s9670_s1 + $0xa0] sm:$0xff]  ;;  %p4288_p12 = scmp.lt.s32.totalorder %s7847_s26, 7  ;;  %6571 = vmatprep.subr.bf16.mxu1 %v6570_v4  ;;  %v6990_v14 = vpack.c.bf16 %v4497_v12, %v4496_v11  ;;  %v4300_v15 = vld [vmem:[%s9670_s1 + $0xa8] sm:$0xff]  ;;  %p7905_p13 = pnand %p265_p10, %p264_p9 }
  0x23   : > { %248 = vst [vmem:[#allocation2 + $0x28] sm:$0x3] %v9674_v8  ;;  %249 = vst [vmem:[#allocation2 + $0x30] sm:$0xff] %v9674_v8  ;;  %v4498_v16 = vld [vmem:[%s9670_s1 + $0x6a0] sm:$0xff]  ;;  %v4499_v17 = vld [vmem:[%s9670_s1 + $0x6a8] sm:$0xff]  ;;  %p1529_p0 = scmp.lt.s32.totalorder %s7733_s15, 8  ;;  %6987 = vmatprep.subr.bf16.mxu0 %v6986_v9  ;;  %6573 = vmatpush3.bf16.msra.mxu1 %v6570_v4  ;;  %v6578_v18 = vpack.c.bf16 %v4300_v15, %v4299_v13 }
  0x24   : > { %250 = vst [vmem:[#allocation2 + $0x38] sm:$0x3] %v9674_v8  ;;  %251 = vst [vmem:[#allocation2 + $0x40] sm:$0xff] %v9674_v8  ;;  %s269_s7 = scalar_select %p268_p11, %s7847_s26, 0  ;;  %6989 = vmatpush3.bf16.msra.mxu0 %v6986_v9  ;;  %6575 = vmatprep.subr.bf16.mxu1 %v6574_v10  ;;  %v6994_v19 = vpack.c.bf16 %v4499_v17, %v4498_v16  ;;  %v4301_v20 = vld [vmem:[%s9670_s1 + $0xb0] sm:$0xff]  ;;  %v4302_v21 = vld [vmem:[%s9670_s1 + $0xb8] sm:$0xff] }
  0x25   : > { %252 = vst [vmem:[#allocation2 + $0x48] sm:$0x3] %v9674_v8  ;;  %253 = vst [vmem:[#allocation2 + $0x50] sm:$0xff] %v9674_v8  ;;  %s4294_s8 = scalar_select %p7905_p13, 0, 1  ;;  %6991 = vmatprep.subr.bf16.mxu0 %v6990_v14  ;;  %v4500_v22 = vld [vmem:[%s9670_s1 + $0x6b0] sm:$0xff]  ;;  %v6582_v24 = vpack.c.bf16 %v4302_v21, %v4301_v20 }
  0x26   : > { %254 = vst [vmem:[#allocation2 + $0x58] sm:$0x3] %v9674_v8  ;;  %255 = vst [vmem:[#allocation2 + $0x60] sm:$0xff] %v9674_v8  ;;  %s9724_s7 = smov (!%p4288_p12, %s269_s7), 7  ;;  %v4501_v23 = vld [vmem:[%s9670_s1 + $0x6b8] sm:$0xff]  ;;  %p7931_p1 = pnand %p1529_p0, %p1528_p8  ;;  %v4303_v27 = vld [vmem:[%s9670_s1 + $0xc0] sm:$0xff] }
  0x27   : > { %256 = vst [vmem:[#allocation2 + $0x68] sm:$0x3] %v9674_v8  ;;  %257 = vst [vmem:[#allocation2 + $0x70] sm:$0xff] %v9674_v8  ;;  %s283_s25 = scvt.s32.f32 %s4294_s8  ;;  %6577 = vmatpush3.bf16.msra.mxu1 %v6574_v10  ;;  %s4293_s29 = sshll.u32 %s9724_s7, 6  ;;  %v6998_v26 = vpack.c.bf16 %v4501_v23, %v4500_v22  ;;  %v4304_v28 = vld [vmem:[%s9670_s1 + $0xc8] sm:$0xff]  ;;  %v4502_v30 = vld [vmem:[%s9670_s1 + $0x6c0] sm:$0xff] }
  0x28   : > { %258 = vst [vmem:[#allocation2 + $0x78] sm:$0x3] %v9674_v8  ;;  %259 = vst [vmem:[#allocation2 + $0x80] sm:$0xff] %v9674_v8  ;;  %p1532_p2 = scmp.gt.s32.totalorder %s7733_s15, 0  ;;  %6993 = vmatpush3.bf16.msra.mxu0 %v6990_v14  ;;  %6579 = vmatprep.subr.bf16.mxu1 %v6578_v18  ;;  %s7937_s26 = scalar_lea.vmem %s7817_s27, %s4293_s29  ;;  %v326_v29 = vld [vmem:[#allocation2 + $0x1] sm:$0xff]  ;;  %v6586_v35 = vpack.c.bf16 %v4304_v28, %v4303_v27  ;;  %v4305_v38 = vld [vmem:[%s9670_s1 + $0xd0] sm:$0xff] }
  0x29   : > { %260 = vst [vmem:[#allocation2 + $0x88] sm:$0x3] %v9674_v8  ;;  %261 = vst [vmem:[#allocation2 + $0x90] sm:$0xff] %v9674_v8  ;;  %v7939_v25 = vstv %s283_s25  ;;  %6995 = vmatprep.subr.bf16.mxu0 %v6994_v19  ;;  %v4503_v31 = vld [vmem:[%s9670_s1 + $0x6c8] sm:$0xff]  ;;  %5414 = vmatprep.mubr.f32.mxu1 %v326_v29  ;;  %v274_v32 = vld [vmem:[%s7937_s26] sm:$0xff]  ;;  %s8239_s5 = sadd.s32 1, %s7733_s15 }
  0x2a   : > { %262 = vst [vmem:[#allocation2 + $0x98] sm:$0x3] %v9674_v8  ;;  %s1533_s9 = scalar_select %p1532_p2, %s7733_s15, 0  ;;  %v7958_v33 = vmul.f32 %v7939_v25, %v274_v32  ;;  %v275_v34 = vld [vmem:[%s7937_s26 + $0x8] sm:$0xff]  ;;  %v7002_v37 = vpack.c.bf16 %v4503_v31, %v4502_v30  ;;  %v4306_v39 = vld [vmem:[%s9670_s1 + $0xd8] sm:$0xff]  ;;  %v4504_v40 = vld [vmem:[%s9670_s1 + $0x6d0] sm:$0xff] }
  0x2b   : > { %s4429_s16 = scalar_select %p7931_p1, 0, 1  ;;  %6581 = vmatpush3.bf16.msra.mxu1 %v6578_v18  ;;  %v7964_v36 = vmul.f32 %v7939_v25, %v275_v34  ;;  %v4505_v41 = vld [vmem:[%s9670_s1 + $0x6d8] sm:$0xff]  ;;  %v6590_v44 = vpack.c.bf16 %v4306_v39, %v4305_v38  ;;  %v4307_v47 = vld [vmem:[%s9670_s1 + $0xe0] sm:$0xff]  ;;  %v4308_v48 = vld [vmem:[%s9670_s1 + $0xe8] sm:$0xff] }
  0x2c   : > { %s9726_s9 = smov (!%p224_p6, %s1533_s9), 7  ;;  %6997 = vmatpush3.bf16.msra.mxu0 %v6994_v19  ;;  %6583 = vmatprep.subr.bf16.mxu1 %v6582_v24  ;;  %294 = vst [vmem:[#allocation2 + $0x11] sm:$0xff] %v7958_v33  ;;  %v7006_v46 = vpack.c.bf16 %v4505_v41, %v4504_v40  ;;  %v4506_v50 = vld [vmem:[%s9670_s1 + $0x6e0] sm:$0xff]  ;;  %v4507_v51 = vld [vmem:[%s9670_s1 + $0x6e8] sm:$0xff]  ;;  %v276_v52 = vld [vmem:[%s7937_s26 + $0x10] sm:$0xff]  ;;  %v6594_v55 = vpack.c.bf16 %v4308_v48, %v4307_v47  ;;  %p2808_p3 = scmp.ge.s32.totalorder %s8239_s5, 0 }
  0x2d   : > { %s1547_s23 = scvt.s32.f32 %s4429_s16  ;;  %6999 = vmatprep.subr.bf16.mxu0 %v6998_v26  ;;  %s4428_s30 = sshll.u32 %s9726_s9, 6  ;;  %295 = vst [vmem:[#allocation2 + $0x21] sm:$0xff] %v7964_v36  ;;  %v4309_v53 = vld [vmem:[%s9670_s1 + $0xf0] sm:$0xff]  ;;  %v8008_v54 = vmul.f32 %v7939_v25, %v276_v52  ;;  %v277_v59 = vld [vmem:[%s7937_s26 + $0x18] sm:$0xff]  ;;  %v7010_v60 = vpack.c.bf16 %v4507_v51, %v4506_v50  ;;  %v278_v3 = vld [vmem:[%s7937_s26 + $0x20] sm:$0xff] }
  0x2e   : > { %s7980_s12 = scalar_lea.vmem %s7817_s27, %s4428_s30  ;;  %v4310_v61 = vld [vmem:[%s9670_s1 + $0xf8] sm:$0xff]  ;;  %v8028_v0 = vmul.f32 %v7939_v25, %v277_v59  ;;  %v4508_v1 = vld [vmem:[%s9670_s1 + $0x6f0] sm:$0xff]  ;;  %v8040_v4 = vmul.f32 %v7939_v25, %v278_v3  ;;  %v310_v6 = vld [vmem:[%s9670_s1] sm:$0xff]  ;;  %p2809_p4 = scmp.lt.s32.totalorder %s8239_s5, 8 }
  0x2f   : > { %v7982_v42 = vstv %s1547_s23  ;;  %6585 = vmatpush3.bf16.msra.mxu1 %v6582_v24  ;;  %v1538_v43 = vld [vmem:[%s7980_s12] sm:$0xff]  ;;  %v1539_v49 = vld [vmem:[%s7980_s12 + $0x8] sm:$0xff]  ;;  %296 = vst [vmem:[#allocation2 + $0x31] sm:$0xff] %v8008_v54  ;;  %v4509_v2 = vld [vmem:[%s9670_s1 + $0x6f8] sm:$0xff]  ;;  %v6598_v5 = vpack.c.bf16 %v4310_v61, %v4309_v53  ;;  %p2812_p5 = scmp.gt.s32.totalorder %s8239_s5, 0  ;;  %p4574_p7 = scmp.lt.s32.totalorder %s8239_s5, 7 }
  0x30   : > { %7001 = vmatpush3.bf16.msra.mxu0 %v6998_v26  ;;  %6587 = vmatprep.subr.bf16.mxu1 %v6586_v35  ;;  %v7987_v45 = vmul.f32 %v7982_v42, %v1538_v43  ;;  %v8015_v58 = vmul.f32 %v7982_v42, %v1539_v49  ;;  %297 = vst [vmem:[#allocation2 + $0x41] sm:$0xff] %v8028_v0  ;;  %v311_v7 = vld [vmem:[%s9670_s1 + $0x8] sm:$0xff]  ;;  %v4510_v11 = vld [vmem:[%s9670_s1 + $0x700] sm:$0xff]  ;;  %v1540_v12 = vld [vmem:[%s7980_s12 + $0x10] sm:$0xff]  ;;  %p8278_p6 = pnand %p2809_p4, %p2808_p3 }
  0x31   : > { %7003 = vmatprep.subr.bf16.mxu0 %v7002_v37  ;;  %v279_v9 = vld [vmem:[%s7937_s26 + $0x28] sm:$0xff]  ;;  %v7014_v10 = vpack.c.bf16 %v4509_v2, %v4508_v1  ;;  %298 = vst [vmem:[#allocation2 + $0x51] sm:$0xff] %v8040_v4  ;;  %v280_v14 = vld [vmem:[%s7937_s26 + $0x30] sm:$0xff]  ;;  %v1541_v16 = vld [vmem:[%s7980_s12 + $0x18] sm:$0xff]  ;;  %v6602_v21 = vpack.c.bf16 %v311_v7, %v310_v6  ;;  %v8079_v24 = vmul.f32 %v7982_v42, %v1540_v12  ;;  %s2813_s7 = scalar_select %p2812_p5, %s8239_s5, 0 }
  0x32   : > { %9689 = vst [vmem:[#allocation3_spill] sm:$0xff] %v7987_v45  ;;  %5986 = vmatprep.mubr.f32.mxu0 %v7987_v45  ;;  %v8055_v13 = vmul.f32 %v7939_v25, %v279_v9  ;;  %v4511_v15 = vld [vmem:[%s9670_s1 + $0x708] sm:$0xff]  ;;  %v8063_v17 = vmul.f32 %v7939_v25, %v280_v14  ;;  %v281_v18 = vld [vmem:[%s7937_s26 + $0x38] sm:$0xff]  ;;  %v312_v19 = vld [vmem:[%s9670_s1 + $0x10] sm:$0xff]  ;;  %v8092_v30 = vmul.f32 %v7982_v42, %v1541_v16  ;;  %s4580_s24 = scalar_select %p8278_p6, 0, 1 }
  0x33   : > { %6589 = vmatpush3.bf16.msra.mxu1 %v6586_v35  ;;  %v8010_v56 = vld [vmem:[#allocation2 + $0x10] sm:$0xff]  ;;  %v8071_v20 = vmul.f32 %v7939_v25, %v281_v18  ;;  %v313_v22 = vld [vmem:[%s9670_s1 + $0x18] sm:$0xff]  ;;  %v1542_v26 = vld [vmem:[%s7980_s12 + $0x20] sm:$0xff]  ;;  %v7018_v25 = vpack.c.bf16 %v4511_v15, %v4510_v11  ;;  %s9728_s7 = smov (!%p4574_p7, %s2813_s7), 7 }
  0x34   : > { %7005 = vmatpush3.bf16.msra.mxu0 %v7002_v37  ;;  %6591 = vmatprep.subr.bf16.mxu1 %v6590_v44  ;;  %v8012_v57 = vld [vmem:[#allocation2 + $0x12] sm:$0xff]  ;;  %v8022_v62 = vld [vmem:[#allocation2 + $0x20] sm:$0xff]  ;;  %299 = vst [vmem:[#allocation2 + $0x61] sm:$0xff] %v8055_v13  ;;  %300 = vst [vmem:[#allocation2 + $0x71] sm:$0xff] %v8063_v17  ;;  %v8103_v35 = vmul.f32 %v7982_v42, %v1542_v26  ;;  %v6606_v38 = vpack.c.bf16 %v313_v22, %v312_v19  ;;  %s4579_s26 = sshll.u32 %s9728_s7, 6  ;;  %s2827_s9 = scvt.s32.f32 %s4580_s24 }
  0x35   : > { %7007 = vmatprep.subr.bf16.mxu0 %v7006_v46  ;;  %1557 = vst [vmem:[#allocation2 + $0x11] sm:$0xff] %v7987_v45  ;;  %v8024_v63 = vld [vmem:[#allocation2 + $0x22] sm:$0xff]  ;;  %v4512_v27 = vld [vmem:[%s9670_s1 + $0x710] sm:$0xff]  ;;  %v4513_v28 = vld [vmem:[%s9670_s1 + $0x718] sm:$0xff]  ;;  %s8354_s7 = scalar_lea.vmem %s7817_s27, %s4579_s26 }
  0x36   : > { %1558 = vst [vmem:[#allocation2 + $0x21] sm:$0xff] %v8015_v58  ;;  %v8076_v23 = vld [vmem:[#allocation2 + $0x30] sm:$0xff]  ;;  %301 = vst [vmem:[#allocation2 + $0x81] sm:$0xff] %v8071_v20  ;;  %v1543_v34 = vld [vmem:[%s7980_s12 + $0x28] sm:$0xff]  ;;  %v7022_v43 = vpack.c.bf16 %v4513_v28, %v4512_v27 }
  0x37   : > { %6593 = vmatpush3.bf16.msra.mxu1 %v6590_v44  ;;  %v8089_v29 = vld [vmem:[#allocation2 + $0x32] sm:$0xff]  ;;  %v8096_v31 = vld [vmem:[#allocation2 + $0x40] sm:$0xff]  ;;  %v8122_v48 = vmul.f32 %v7982_v42, %v1543_v34  ;;  %v4515_v49 = vld [vmem:[%s9670_s1 + $0x728] sm:$0xff] }
  0x38   : > { %7009 = vmatpush3.bf16.msra.mxu0 %v7006_v46  ;;  %6595 = vmatprep.subr.bf16.mxu1 %v6594_v55  ;;  %1559 = vst [vmem:[#allocation2 + $0x31] sm:$0xff] %v8079_v24  ;;  %v8098_v32 = vld [vmem:[#allocation2 + $0x42] sm:$0xff]  ;;  %v1544_v37 = vld [vmem:[%s7980_s12 + $0x30] sm:$0xff]  ;;  %v1545_v41 = vld [vmem:[%s7980_s12 + $0x38] sm:$0xff] }
  0x39   : > { %7011 = vmatprep.subr.bf16.mxu0 %v7010_v60  ;;  %1560 = vst [vmem:[#allocation2 + $0x41] sm:$0xff] %v8092_v30  ;;  %v8106_v39 = vld [vmem:[#allocation2 + $0x50] sm:$0xff]  ;;  %v314_v44 = vld [vmem:[%s9670_s1 + $0x20] sm:$0xff]  ;;  %v315_v46 = vld [vmem:[%s9670_s1 + $0x28] sm:$0xff]  ;;  %v8133_v52 = vmul.f32 %v7982_v42, %v1544_v37  ;;  %v8142_v59 = vmul.f32 %v7982_v42, %v1545_v41 }
  0x3a   : > { %v8108_v40 = vld [vmem:[#allocation2 + $0x52] sm:$0xff]  ;;  %v4514_v47 = vld [vmem:[%s9670_s1 + $0x720] sm:$0xff]  ;;  %v319_v11 = vld [vmem:[%s9670_s1 + $0x48] sm:$0xff] }
  0x3b   : > { %6597 = vmatpush3.bf16.msra.mxu1 %v6594_v55  ;;  %1561 = vst [vmem:[#allocation2 + $0x51] sm:$0xff] %v8103_v35  ;;  %v8128_v50 = vld [vmem:[#allocation2 + $0x60] sm:$0xff]  ;;  %v8137_v53 = vld [vmem:[#allocation2 + $0x70] sm:$0xff]  ;;  %v7026_v2 = vpack.c.bf16 %v4515_v49, %v4514_v47  ;;  %v317_v42 = vld [vmem:[%s9670_s1 + $0x38] sm:$0xff] }
  0x3c   : > { %7013 = vmatpush3.bf16.msra.mxu0 %v7010_v60  ;;  %6599 = vmatprep.subr.bf16.mxu1 %v6598_v5  ;;  %v8130_v51 = vld [vmem:[#allocation2 + $0x62] sm:$0xff]  ;;  %v8139_v55 = vld [vmem:[#allocation2 + $0x72] sm:$0xff]  ;;  %v6610_v60 = vpack.c.bf16 %v315_v46, %v314_v44 }
  0x3d   : > { %7015 = vmatprep.subr.bf16.mxu0 %v7014_v10  ;;  %1562 = vst [vmem:[#allocation2 + $0x61] sm:$0xff] %v8122_v48  ;;  %1563 = vst [vmem:[#allocation2 + $0x71] sm:$0xff] %v8133_v52  ;;  %v8145_v61 = vld [vmem:[#allocation2 + $0x80] sm:$0xff]  ;;  %v316_v3 = vld [vmem:[%s9670_s1 + $0x30] sm:$0xff] }
  0x3e   : > { %v8147_v1 = vld [vmem:[#allocation2 + $0x82] sm:$0xff]  ;;  %v4517_v6 = vld [vmem:[%s9670_s1 + $0x738] sm:$0xff]  ;;  %v6614_v7 = vpack.c.bf16 %v317_v42, %v316_v3  ;;  %v320_v18 = vld [vmem:[%s9670_s1 + $0x50] sm:$0xff] }
  0x3f   : > { %6601 = vmatpush3.bf16.msra.mxu1 %v6598_v5  ;;  %1564 = vst [vmem:[#allocation2 + $0x81] sm:$0xff] %v8142_v59  ;;  %v4516_v5 = vld [vmem:[%s9670_s1 + $0x730] sm:$0xff]  ;;  %v4518_v12 = vld [vmem:[%s9670_s1 + $0x740] sm:$0xff]  ;;  %v4519_v14 = vld [vmem:[%s9670_s1 + $0x748] sm:$0xff] }
  0x40   : > { %7017 = vmatpush3.bf16.msra.mxu0 %v7014_v10  ;;  %6603 = vmatprep.subr.bf16.mxu1 %v6602_v21  ;;  %v7030_v9 = vpack.c.bf16 %v4517_v6, %v4516_v5  ;;  %v318_v10 = vld [vmem:[%s9670_s1 + $0x40] sm:$0xff]  ;;  %v7034_v16 = vpack.c.bf16 %v4519_v14, %v4518_v12  ;;  %v321_v19 = vld [vmem:[%s9670_s1 + $0x58] sm:$0xff]  ;;  %v323_v34 = vld [vmem:[%s9670_s1 + $0x68] sm:$0xff] }
  0x41   : > { %7019 = vmatprep.subr.bf16.mxu0 %v7018_v25  ;;  %v6618_v15 = vpack.c.bf16 %v319_v11, %v318_v10  ;;  %v4521_v22 = vld [vmem:[%s9670_s1 + $0x758] sm:$0xff]  ;;  %v322_v28 = vld [vmem:[%s9670_s1 + $0x60] sm:$0xff]  ;;  %v324_v44 = vld [vmem:[%s9670_s1 + $0x70] sm:$0xff] }
  0x42   : > { %5415 = vmatmul.mubr.f32.vlgmr.msra.gmra.mrb[0].mxu1 %v7958_v33  ;;  %v8197_v26 = vld [vmem:[#allocation2 + $0x12] sm:$0xff]  ;;  %v4522_v37 = vld [vmem:[%s9670_s1 + $0x760] sm:$0xff]  ;;  %v6626_v41 = vpack.c.bf16 %v323_v34, %v322_v28  ;;  %v4312_v42 = vld [vmem:[%s9670_s1 + $0x108] sm:$0xff] }
  0x43   : > { %6605 = vmatpush3.bf16.msra.mxu1 %v6602_v21  ;;  %5987 = vmatmul.mubr.f32.vlgmr.msra.gmra.mrb[0].mxu0 %v8015_v58  ;;  %v4520_v21 = vld [vmem:[%s9670_s1 + $0x750] sm:$0xff]  ;;  %9690 = vst [vmem:[#allocation4_spill] sm:$0xff] %v8197_v26  ;;  %v325_v46 = vld [vmem:[%s9670_s1 + $0x78] sm:$0xff]  ;;  %v4311_v3 = vld [vmem:[%s9670_s1 + $0x100] sm:$0xff] }
  0x44   : > { %7021 = vmatpush3.bf16.msra.mxu0 %v7018_v25  ;;  %6607 = vmatprep.subr.bf16.mxu1 %v6606_v38  ;;  %v6622_v25 = vpack.c.bf16 %v321_v19, %v320_v18  ;;  %v7038_v27 = vpack.c.bf16 %v4521_v22, %v4520_v21  ;;  %v4524_v47 = vld [vmem:[%s9670_s1 + $0x770] sm:$0xff]  ;;  %v4525_v49 = vld [vmem:[%s9670_s1 + $0x778] sm:$0xff]  ;;  %v4526_v5 = vld [vmem:[%s9670_s1 + $0x780] sm:$0xff] }
  0x45   : > { %7023 = vmatprep.subr.bf16.mxu0 %v7022_v43  ;;  %5417 = vmatprep.mubr.f32.mxu1 %v7964_v36  ;;  %v4527_v6 = vld [vmem:[%s9670_s1 + $0x788] sm:$0xff]  ;;  %v4313_v10 = vld [vmem:[%s9670_s1 + $0x110] sm:$0xff]  ;;  %v4314_v11 = vld [vmem:[%s9670_s1 + $0x118] sm:$0xff] }
  0x46   : > { %5989 = vmatprep.mubr.f32.mxu0 %v8079_v24  ;;  %5418 = vmatmul.mubr.f32.gmra.mrb[2].mxu1 %v8008_v54  ;;  %v4528_v12 = vld [vmem:[%s9670_s1 + $0x790] sm:$0xff]  ;;  %v4529_v14 = vld [vmem:[%s9670_s1 + $0x798] sm:$0xff]  ;;  %v4315_v19 = vld [vmem:[%s9670_s1 + $0x120] sm:$0xff] }
  0x47   : > { %6609 = vmatpush3.bf16.msra.mxu1 %v6606_v38  ;;  %5990 = vmatmul.mubr.f32.gmra.mrb[2].mxu0 %v8092_v30  ;;  %v4523_v38 = vld [vmem:[%s9670_s1 + $0x768] sm:$0xff]  ;;  %v7054_v18 = vpack.c.bf16 %v4529_v14, %v4528_v12  ;;  %v4530_v22 = vld [vmem:[%s9670_s1 + $0x7a0] sm:$0xff]  ;;  %v4322_v12 = vld [vmem:[%s9670_s1 + $0x158] sm:$0xff] }
  0x48   : > { %7025 = vmatpush3.bf16.msra.mxu0 %v7022_v43  ;;  %6611 = vmatprep.subr.bf16.mxu1 %v6610_v60  ;;  %v7042_v43 = vpack.c.bf16 %v4523_v38, %v4522_v37  ;;  %v4316_v21 = vld [vmem:[%s9670_s1 + $0x128] sm:$0xff]  ;;  %v4317_v38 = vld [vmem:[%s9670_s1 + $0x130] sm:$0xff]  ;;  %v4327_v45 = vld [vmem:[%s9670_s1 + $0x180] sm:$0xff] }
  0x49   : > { %7027 = vmatprep.subr.bf16.mxu0 %v7026_v2  ;;  %5420 = vmatprep.mubr.f32.mxu1 %v8028_v0  ;;  %v8283_v28 = vld [vmem:[#allocation2 + $0x42] sm:$0xff]  ;;  %v6642_v34 = vpack.c.bf16 %v4316_v21, %v4315_v19  ;;  %v4536_v14 = vld [vmem:[%s9670_s1 + $0x7d0] sm:$0xff] }
  0x4a   : > { %5992 = vmatprep.mubr.f32.mxu0 %v8103_v35  ;;  %5421 = vmatmul.mubr.f32.gmra.mrb[4].mxu1 %v8040_v4  ;;  %v8350_v19 = vld [vmem:[#allocation2 + $0x20] sm:$0xff] }
  0x4b   : > { %6613 = vmatpush3.bf16.msra.mxu1 %v6610_v60  ;;  %5993 = vmatmul.mubr.f32.gmra.mrb[4].mxu0 %v8122_v48  ;;  %v6630_v60 = vpack.c.bf16 %v325_v46, %v324_v44  ;;  %v4533_v44 = vld [vmem:[%s9670_s1 + $0x7b8] sm:$0xff]  ;;  %9696 = vst [vmem:[#allocation9_spill] sm:$0xff] %v8350_v19 }
  0x4c   : > { %7029 = vmatpush3.bf16.msra.mxu0 %v7026_v2  ;;  %6615 = vmatprep.subr.bf16.mxu1 %v6614_v7  ;;  %v7046_v2 = vpack.c.bf16 %v4525_v49, %v4524_v47  ;;  %v8303_v46 = vld [vmem:[#allocation2 + $0x52] sm:$0xff]  ;;  %v8308_v47 = vld [vmem:[#allocation2 + $0x62] sm:$0xff] }
  0x4d   : > { %7031 = vmatprep.subr.bf16.mxu0 %v7030_v9  ;;  %5423 = vmatprep.mubr.f32.mxu1 %v8055_v13  ;;  %9693 = vst [vmem:[#allocation6_spill] sm:$0xff] %v8303_v46  ;;  %9694 = vst [vmem:[#allocation7_spill] sm:$0xff] %v8308_v47 }
  0x4e   : > { %5995 = vmatprep.mubr.f32.mxu0 %v8133_v52  ;;  %5424 = vmatmul.mubr.f32.gmra.mrb[6].mxu1 %v8063_v17 }
  0x4f   : > { %6617 = vmatpush3.bf16.msra.mxu1 %v6614_v7  ;;  %5996 = vmatmul.mubr.f32.gmra.mrb[6].mxu0 %v8142_v59  ;;  %v6634_v7 = vpack.c.bf16 %v4312_v42, %v4311_v3  ;;  %v4320_v3 = vld [vmem:[%s9670_s1 + $0x148] sm:$0xff]  ;;  %v4534_v42 = vld [vmem:[%s9670_s1 + $0x7c0] sm:$0xff] }
  0x50   : > { %7033 = vmatpush3.bf16.msra.mxu0 %v7030_v9  ;;  %6619 = vmatprep.subr.bf16.mxu1 %v6618_v15  ;;  %v7050_v9 = vpack.c.bf16 %v4527_v6, %v4526_v5  ;;  %v4535_v5 = vld [vmem:[%s9670_s1 + $0x7c8] sm:$0xff]  ;;  %v8329_v6 = vld [vmem:[#allocation2 + $0x72] sm:$0xff] }
  0x51   : > { %7035 = vmatprep.subr.bf16.mxu0 %v7034_v16  ;;  %5458 = vmatprep.mubr.f32.mxu1 %v9674_v8  ;;  %9695 = vst [vmem:[#allocation8_spill] sm:$0xff] %v8329_v6  ;;  %v8392_v8 = vld [vmem:[#allocation2 + $0x50] sm:$0xff] }
  0x52   : > { %6030 = vmatprep.mubr.f32.mxu0 %v8197_v26  ;;  %v4326_v26 = vld [vmem:[%s9670_s1 + $0x178] sm:$0xff] }
  0x53   : > { %6621 = vmatpush3.bf16.msra.mxu1 %v6618_v15  ;;  %v8255_v15 = vld [vmem:[#allocation2 + $0x22] sm:$0xff] }
  0x54   : > { %7037 = vmatpush3.bf16.msra.mxu0 %v7034_v16  ;;  %6623 = vmatprep.subr.bf16.mxu1 %v6622_v25  ;;  %9691 = vst [vmem:[#allocation5_spill] sm:$0xff] %v8255_v15  ;;  %v6638_v16 = vpack.c.bf16 %v4314_v11, %v4313_v10  ;;  %v7066_v10 = vpack.c.bf16 %v4535_v5, %v4534_v42  ;;  %v4321_v11 = vld [vmem:[%s9670_s1 + $0x150] sm:$0xff]  ;;  %v2821_v5 = vld [vmem:[%s8354_s7 + $0x18] sm:$0xff] }
  0x55   : > { %7039 = vmatprep.subr.bf16.mxu0 %v7038_v27  ;;  %v6654_v21 = vpack.c.bf16 %v4322_v12, %v4321_v11  ;;  %v2822_v11 = vld [vmem:[%s8354_s7 + $0x20] sm:$0xff]  ;;  %v2823_v12 = vld [vmem:[%s8354_s7 + $0x28] sm:$0xff] }
  0x57   : > { %6625 = vmatpush3.bf16.msra.mxu1 %v6622_v25  ;;  %v4531_v25 = vld [vmem:[%s9670_s1 + $0x7a8] sm:$0xff] }
  0x58   : > { %7041 = vmatpush3.bf16.msra.mxu0 %v7038_v27  ;;  %6627 = vmatprep.subr.bf16.mxu1 %v6626_v41  ;;  %v8271_v27 = vld [vmem:[#allocation2 + $0x32] sm:$0xff]  ;;  %v7058_v37 = vpack.c.bf16 %v4531_v25, %v4530_v22  ;;  %v4323_v22 = vld [vmem:[%s9670_s1 + $0x160] sm:$0xff]  ;;  %v4324_v25 = vld [vmem:[%s9670_s1 + $0x168] sm:$0xff] }
  0x59   : > { %7043 = vmatprep.subr.bf16.mxu0 %v7042_v43  ;;  %v6658_v42 = vpack.c.bf16 %v4324_v25, %v4323_v22 }
  0x5b   : > { %6629 = vmatpush3.bf16.msra.mxu1 %v6626_v41  ;;  %v4318_v41 = vld [vmem:[%s9670_s1 + $0x138] sm:$0xff] }
  0x5c   : > { %7045 = vmatpush3.bf16.msra.mxu0 %v7042_v43  ;;  %6631 = vmatprep.subr.bf16.mxu1 %v6630_v60  ;;  %v4532_v43 = vld [vmem:[%s9670_s1 + $0x7b0] sm:$0xff]  ;;  %v6646_v49 = vpack.c.bf16 %v4318_v41, %v4317_v38  ;;  %v4538_v41 = vld [vmem:[%s9670_s1 + $0x7e0] sm:$0xff] }
  0x5d   : > { %7047 = vmatprep.subr.bf16.mxu0 %v7046_v2 }
  0x5f   : > { %6633 = vmatpush3.bf16.msra.mxu1 %v6630_v60  ;;  %v7062_v60 = vpack.c.bf16 %v4533_v44, %v4532_v43  ;;  %v4539_v43 = vld [vmem:[%s9670_s1 + $0x7e8] sm:$0xff]  ;;  %v8372_v44 = vld [vmem:[#allocation2 + $0x30] sm:$0xff] }
  0x60   : > { %7049 = vmatpush3.bf16.msra.mxu0 %v7046_v2  ;;  %6635 = vmatprep.subr.bf16.mxu1 %v6634_v7  ;;  %v4319_v2 = vld [vmem:[%s9670_s1 + $0x140] sm:$0xff] }
  0x61   : > { %7051 = vmatprep.subr.bf16.mxu0 %v7050_v9 }
  0x62   : > { %5459 = vmatmul.mubr.f32.vlgmr.msra.gmra.mrb[0].mxu1 %v8010_v56 }
  0x63   : > { %6637 = vmatpush3.bf16.msra.mxu1 %v6634_v7  ;;  %6031 = vmatmul.mubr.f32.vlgmr.msra.gmra.mrb[0].mxu0 %v8255_v15  ;;  %v6650_v7 = vpack.c.bf16 %v4320_v3, %v4319_v2  ;;  %v2820_v2 = vld [vmem:[%s8354_s7 + $0x10] sm:$0xff]  ;;  %v8378_v3 = vld [vmem:[#allocation2 + $0x40] sm:$0xff] }
  0x64   : > { %7053 = vmatpush3.bf16.msra.mxu0 %v7050_v9  ;;  %6639 = vmatprep.subr.bf16.mxu1 %v6638_v16  ;;  %v8332_v9 = vld [vmem:[#allocation2 + $0x82] sm:$0xff] }
  0x65   : > { %7055 = vmatprep.subr.bf16.mxu0 %v7054_v18  ;;  %5461 = vmatprep.mubr.f32.mxu1 %v8022_v62  ;;  %v8394_v15 = vld [vmem:[#allocation2 + $0x22] sm:$0xff] }
  0x66   : > { %6033 = vmatprep.mubr.f32.mxu0 %v8271_v27  ;;  %5462 = vmatmul.mubr.f32.gmra.mrb[2].mxu1 %v8076_v23 }
  0x67   : > { %6641 = vmatpush3.bf16.msra.mxu1 %v6638_v16  ;;  %6034 = vmatmul.mubr.f32.gmra.mrb[2].mxu0 %v8283_v28  ;;  %v4537_v16 = vld [vmem:[%s9670_s1 + $0x7d8] sm:$0xff] }
  0x68   : > { %7057 = vmatpush3.bf16.msra.mxu0 %v7054_v18  ;;  %6643 = vmatprep.subr.bf16.mxu1 %v6642_v34  ;;  %v561_v18 = vld [vmem:[#allocation2 + $0x2] sm:$0xff]  ;;  %v7070_v38 = vpack.c.bf16 %v4537_v16, %v4536_v14 }
  0x69   : > { %7059 = vmatprep.subr.bf16.mxu0 %v7058_v37  ;;  %5464 = vmatprep.mubr.f32.mxu1 %v8096_v31 }
  0x6a   : > { %6036 = vmatprep.mubr.f32.mxu0 %v8303_v46  ;;  %5465 = vmatmul.mubr.f32.gmra.mrb[4].mxu1 %v8106_v39 }
  0x6b   : > { %6645 = vmatpush3.bf16.msra.mxu1 %v6642_v34  ;;  %6037 = vmatmul.mubr.f32.gmra.mrb[4].mxu0 %v8308_v47  ;;  %v8362_v34 = vstv %s2827_s9 }
  0x6c   : > { %7061 = vmatpush3.bf16.msra.mxu0 %v7058_v37  ;;  %6647 = vmatprep.subr.bf16.mxu1 %v6646_v49  ;;  %v8364_v37 = vld [vmem:[#allocation2 + $0x10] sm:$0xff]  ;;  %v8398_v22 = vmul.f32 %v8362_v34, %v2821_v5  ;;  %v8401_v25 = vmul.f32 %v8362_v34, %v2822_v11 }
  0x6d   : > { %7063 = vmatprep.subr.bf16.mxu0 %v7062_v60  ;;  %5467 = vmatprep.mubr.f32.mxu1 %v8128_v50  ;;  %9697 = vst [vmem:[#allocation10_spill] sm:$0xff] %v8364_v37  ;;  %v8420_v11 = vld [vmem:[#allocation2 + $0x70] sm:$0xff]  ;;  %v4542_v37 = vld [vmem:[%s9670_s1 + $0x800] sm:$0xff] }
  0x6e   : > { %6039 = vmatprep.mubr.f32.mxu0 %v8329_v6  ;;  %5468 = vmatmul.mubr.f32.gmra.mrb[6].mxu1 %v8137_v53  ;;  %9698 = vst [vmem:[#allocation11_spill] sm:$0xff] %v8420_v11  ;;  %2840 = vst [vmem:[#allocation2 + $0x41] sm:$0xff] %v8398_v22 }
  0x6f   : > { %6649 = vmatpush3.bf16.msra.mxu1 %v6646_v49  ;;  %6040 = vmatmul.mubr.f32.gmra.mrb[6].mxu0 %v8332_v9  ;;  %v2818_v49 = vld [vmem:[%s8354_s7] sm:$0xff]  ;;  %2841 = vst [vmem:[#allocation2 + $0x51] sm:$0xff] %v8401_v25 }
  0x70   : > { %7065 = vmatpush3.bf16.msra.mxu0 %v7062_v60  ;;  %6651 = vmatprep.subr.bf16.mxu1 %v6650_v7  ;;  %v2819_v60 = vld [vmem:[%s8354_s7 + $0x8] sm:$0xff]  ;;  %v8384_v14 = vmul.f32 %v8362_v34, %v2818_v49  ;;  %v8404_v49 = vmul.f32 %v8362_v34, %v2823_v12 }
  0x71   : > { %7067 = vmatprep.subr.bf16.mxu0 %v7066_v10  ;;  %5502 = vmatprep.mubr.f32.mxu1 %v561_v18  ;;  %v8387_v16 = vmul.f32 %v8362_v34, %v2819_v60  ;;  %v8390_v18 = vmul.f32 %v8362_v34, %v2820_v2  ;;  %v8406_v60 = vld [vmem:[#allocation2 + $0x60] sm:$0xff]  ;;  %v7074_v2 = vpack.c.bf16 %v4539_v43, %v4538_v41  ;;  %v4540_v41 = vld [vmem:[%s9670_s1 + $0x7f0] sm:$0xff]  ;;  %v4541_v43 = vld [vmem:[%s9670_s1 + $0x7f8] sm:$0xff] }
  0x72   : > { %6074 = vmatprep.mubr.f32.mxu0 %v8350_v19  ;;  %2837 = vst [vmem:[#allocation2 + $0x11] sm:$0xff] %v8384_v14  ;;  %2842 = vst [vmem:[#allocation2 + $0x61] sm:$0xff] %v8404_v49  ;;  %v4328_v19 = vld [vmem:[%s9670_s1 + $0x188] sm:$0xff] }
  0x73   : > { %6653 = vmatpush3.bf16.msra.mxu1 %v6650_v7  ;;  %v2824_v7 = vld [vmem:[%s8354_s7 + $0x30] sm:$0xff]  ;;  %2838 = vst [vmem:[#allocation2 + $0x21] sm:$0xff] %v8387_v16  ;;  %2839 = vst [vmem:[#allocation2 + $0x31] sm:$0xff] %v8390_v18 }
  0x74   : > { %7069 = vmatpush3.bf16.msra.mxu0 %v7066_v10  ;;  %6655 = vmatprep.subr.bf16.mxu1 %v6654_v21  ;;  %v4325_v10 = vld [vmem:[%s9670_s1 + $0x170] sm:$0xff]  ;;  %v8415_v5 = vmul.f32 %v8362_v34, %v2824_v7  ;;  %v7078_v7 = vpack.c.bf16 %v4541_v43, %v4540_v41  ;;  %v4330_v41 = vld [vmem:[%s9670_s1 + $0x198] sm:$0xff] }
  0x75   : > { %7071 = vmatprep.subr.bf16.mxu0 %v7070_v38  ;;  %v6662_v12 = vpack.c.bf16 %v4326_v26, %v4325_v10  ;;  %v6666_v26 = vpack.c.bf16 %v4328_v19, %v4327_v45  ;;  %v4329_v10 = vld [vmem:[%s9670_s1 + $0x190] sm:$0xff] }
  0x76   : > { %2843 = vst [vmem:[#allocation2 + $0x71] sm:$0xff] %v8415_v5  ;;  %v4544_v43 = vld [vmem:[%s9670_s1 + $0x810] sm:$0xff]  ;;  %v6670_v45 = vpack.c.bf16 %v4330_v41, %v4329_v10 }
  0x77   : > { %6657 = vmatpush3.bf16.msra.mxu1 %v6654_v21  ;;  %v4543_v21 = vld [vmem:[%s9670_s1 + $0x808] sm:$0xff]  ;;  %v4333_v41 = vld [vmem:[%s9670_s1 + $0x1b0] sm:$0xff] }
  0x78   : > { %7073 = vmatpush3.bf16.msra.mxu0 %v7070_v38  ;;  %6659 = vmatprep.subr.bf16.mxu1 %v6658_v42  ;;  %v7082_v38 = vpack.c.bf16 %v4543_v21, %v4542_v37  ;;  %v4331_v37 = vld [vmem:[%s9670_s1 + $0x1a0] sm:$0xff] }
  0x79   : > { %7075 = vmatprep.subr.bf16.mxu0 %v7074_v2  ;;  %v4546_v21 = vld [vmem:[%s9670_s1 + $0x820] sm:$0xff] }
  0x7b   : > { %6661 = vmatpush3.bf16.msra.mxu1 %v6658_v42  ;;  %v4545_v42 = vld [vmem:[%s9670_s1 + $0x818] sm:$0xff] }
  0x7c   : > { %7077 = vmatpush3.bf16.msra.mxu0 %v7074_v2  ;;  %6663 = vmatprep.subr.bf16.mxu1 %v6662_v12  ;;  %v7086_v19 = vpack.c.bf16 %v4545_v42, %v4544_v43  ;;  %v4332_v2 = vld [vmem:[%s9670_s1 + $0x1a8] sm:$0xff]  ;;  %v4334_v43 = vld [vmem:[%s9670_s1 + $0x1b8] sm:$0xff] }
  0x7d   : > { %7079 = vmatprep.subr.bf16.mxu0 %v7078_v7  ;;  %v6678_v42 = vpack.c.bf16 %v4334_v43, %v4333_v41 }
  0x7f   : > { %6665 = vmatpush3.bf16.msra.mxu1 %v6662_v12  ;;  %v4547_v12 = vld [vmem:[%s9670_s1 + $0x828] sm:$0xff] }
  0x80   : > { %7081 = vmatpush3.bf16.msra.mxu0 %v7078_v7  ;;  %6667 = vmatprep.subr.bf16.mxu1 %v6666_v26  ;;  %v6674_v7 = vpack.c.bf16 %v4332_v2, %v4331_v37  ;;  %v7090_v10 = vpack.c.bf16 %v4547_v12, %v4546_v21  ;;  %v4335_v2 = vld [vmem:[%s9670_s1 + $0x1c0] sm:$0xff]  ;;  %v4336_v21 = vld [vmem:[%s9670_s1 + $0x1c8] sm:$0xff] }
  0x81   : > { %7083 = vmatprep.subr.bf16.mxu0 %v7082_v38  ;;  %v8501_v12 = vld [vmem:[#allocation2 + $0x80] sm:$0xff]  ;;  %v6682_v41 = vpack.c.bf16 %v4336_v21, %v4335_v2  ;;  %v9700_v2 = vmov 0.0  }
  0x82   : > { %5503 = vmatmul.mubr.f32.vlgmr.msra.gmra.mrb[0].mxu1 %v8012_v57  ;;  %9699 = vst [vmem:[#allocation12_spill] sm:$0xff] %v8501_v12 }
  0x83   : > { %6669 = vmatpush3.bf16.msra.mxu1 %v6666_v26  ;;  %6075 = vmatmul.mubr.f32.vlgmr.msra.gmra.mrb[0].mxu0 %v8372_v44  ;;  %v4548_v26 = vld [vmem:[%s9670_s1 + $0x830] sm:$0xff] }
  0x84   : > { %7085 = vmatpush3.bf16.msra.mxu0 %v7082_v38  ;;  %6671 = vmatprep.subr.bf16.mxu1 %v6670_v45  ;;  %v4549_v38 = vld [vmem:[%s9670_s1 + $0x838] sm:$0xff] }
  0x85   : > { %7087 = vmatprep.subr.bf16.mxu0 %v7086_v19  ;;  %5505 = vmatprep.mubr.f32.mxu1 %v8024_v63  ;;  %v7094_v37 = vpack.c.bf16 %v4549_v38, %v4548_v26  ;;  %v4337_v26 = vld [vmem:[%s9670_s1 + $0x1d0] sm:$0xff]  ;;  %v4338_v38 = vld [vmem:[%s9670_s1 + $0x1d8] sm:$0xff] }
  0x86   : > { %6077 = vmatprep.mubr.f32.mxu0 %v8378_v3  ;;  %5506 = vmatmul.mubr.f32.gmra.mrb[2].mxu1 %v8089_v29  ;;  %v6686_v21 = vpack.c.bf16 %v4338_v38, %v4337_v26 }
  0x87   : > { %6673 = vmatpush3.bf16.msra.mxu1 %v6670_v45  ;;  %6078 = vmatmul.mubr.f32.gmra.mrb[2].mxu0 %v8392_v8  ;;  %v4550_v45 = vld [vmem:[%s9670_s1 + $0x840] sm:$0xff] }
  0x88   : > { %7089 = vmatpush3.bf16.msra.mxu0 %v7086_v19  ;;  %6675 = vmatprep.subr.bf16.mxu1 %v6674_v7  ;;  %v4551_v19 = vld [vmem:[%s9670_s1 + $0x848] sm:$0xff] }
  0x89   : > { %7091 = vmatprep.subr.bf16.mxu0 %v7090_v10  ;;  %5508 = vmatprep.mubr.f32.mxu1 %v8098_v32  ;;  %v7098_v43 = vpack.c.bf16 %v4551_v19, %v4550_v45  ;;  %v4339_v19 = vld [vmem:[%s9670_s1 + $0x1e0] sm:$0xff] }
  0x8a   : > { %6080 = vmatprep.mubr.f32.mxu0 %v8406_v60  ;;  %5509 = vmatmul.mubr.f32.gmra.mrb[4].mxu1 %v8108_v40 }
  0x8b   : > { %6677 = vmatpush3.bf16.msra.mxu1 %v6674_v7  ;;  %6081 = vmatmul.mubr.f32.gmra.mrb[4].mxu0 %v8420_v11  ;;  %v4552_v7 = vld [vmem:[%s9670_s1 + $0x850] sm:$0xff]  ;;  %v4340_v11 = vld [vmem:[%s9670_s1 + $0x1e8] sm:$0xff] }
  0x8c   : > { %7093 = vmatpush3.bf16.msra.mxu0 %v7090_v10  ;;  %6679 = vmatprep.subr.bf16.mxu1 %v6678_v42  ;;  %v4553_v10 = vld [vmem:[%s9670_s1 + $0x858] sm:$0xff]  ;;  %v6690_v26 = vpack.c.bf16 %v4340_v11, %v4339_v19  ;;  %v4344_v19 = vld [vmem:[%s9670_s1 + $0x208] sm:$0xff] }
  0x8d   : > { %7095 = vmatprep.subr.bf16.mxu0 %v7094_v37  ;;  %5511 = vmatprep.mubr.f32.mxu1 %v8130_v51  ;;  %v7102_v45 = vpack.c.bf16 %v4553_v10, %v4552_v7  ;;  %v4342_v7 = vld [vmem:[%s9670_s1 + $0x1f8] sm:$0xff]  ;;  %v4556_v10 = vld [vmem:[%s9670_s1 + $0x870] sm:$0xff] }
  0x8e   : > { %6083 = vmatprep.mubr.f32.mxu0 %v8501_v12  ;;  %5512 = vmatmul.mubr.f32.gmra.mrb[6].mxu1 %v8139_v55  ;;  %v4384_v12 = vld [vmem:[%s9670_s1 + $0x348] sm:$0xff] }
  0x8f   : > { %6681 = vmatpush3.bf16.msra.mxu1 %v6678_v42  ;;  %6084 = vmatmul.mubr.f32.gmra.mrb[6].mxu0 %v9700_v2  ;;  %v4554_v42 = vld [vmem:[%s9670_s1 + $0x860] sm:$0xff] }
  0x90   : > { %7097 = vmatpush3.bf16.msra.mxu0 %v7094_v37  ;;  %6683 = vmatprep.subr.bf16.mxu1 %v6682_v41  ;;  %v4555_v37 = vld [vmem:[%s9670_s1 + $0x868] sm:$0xff]  ;;  %v4343_v2 = vld [vmem:[%s9670_s1 + $0x200] sm:$0xff] }
  0x91   : > { %7099 = vmatprep.subr.bf16.mxu0 %v7098_v43  ;;  %5546 = vmatprep.mubr.f32.mxu1 %v8010_v56  ;;  %v7106_v38 = vpack.c.bf16 %v4555_v37, %v4554_v42  ;;  %v4341_v56 = vld [vmem:[%s9670_s1 + $0x1f0] sm:$0xff]  ;;  %v4558_v42 = vld [vmem:[%s9670_s1 + $0x880] sm:$0xff] }
  0x92   : > { %6118 = vmatprep.mubr.f32.mxu0 %v8015_v58  ;;  %v6694_v11 = vpack.c.bf16 %v4342_v7, %v4341_v56  ;;  %v4345_v56 = vld [vmem:[%s9670_s1 + $0x210] sm:$0xff]  ;;  %v4346_v7 = vld [vmem:[%s9670_s1 + $0x218] sm:$0xff] }
  0x93   : > { %6685 = vmatpush3.bf16.msra.mxu1 %v6682_v41  ;;  %v4557_v41 = vld [vmem:[%s9670_s1 + $0x878] sm:$0xff] }
  0x94   : > { %7101 = vmatpush3.bf16.msra.mxu0 %v7098_v43  ;;  %6687 = vmatprep.subr.bf16.mxu1 %v6686_v21  ;;  %v7110_v43 = vpack.c.bf16 %v4557_v41, %v4556_v10  ;;  %v4560_v10 = vld [vmem:[%s9670_s1 + $0x890] sm:$0xff] }
  0x95   : > { %7103 = vmatprep.subr.bf16.mxu0 %v7102_v45 }
  0x97   : > { %6689 = vmatpush3.bf16.msra.mxu1 %v6686_v21  ;;  %v4559_v21 = vld [vmem:[%s9670_s1 + $0x888] sm:$0xff] }
  0x98   : > { %7105 = vmatpush3.bf16.msra.mxu0 %v7102_v45  ;;  %6691 = vmatprep.subr.bf16.mxu1 %v6690_v26  ;;  %v6698_v45 = vpack.c.bf16 %v4344_v19, %v4343_v2  ;;  %v7114_v37 = vpack.c.bf16 %v4559_v21, %v4558_v42  ;;  %v4347_v2 = vld [vmem:[%s9670_s1 + $0x220] sm:$0xff]  ;;  %v4348_v19 = vld [vmem:[%s9670_s1 + $0x228] sm:$0xff] }
  0x99   : > { %7107 = vmatprep.subr.bf16.mxu0 %v7106_v38  ;;  %v4562_v42 = vld [vmem:[%s9670_s1 + $0x8a0] sm:$0xff] }
  0x9b   : > { %6693 = vmatpush3.bf16.msra.mxu1 %v6690_v26  ;;  %v4561_v26 = vld [vmem:[%s9670_s1 + $0x898] sm:$0xff] }
  0x9c   : > { %7109 = vmatpush3.bf16.msra.mxu0 %v7106_v38  ;;  %6695 = vmatprep.subr.bf16.mxu1 %v6694_v11  ;;  %v6702_v38 = vpack.c.bf16 %v4346_v7, %v4345_v56  ;;  %v7118_v41 = vpack.c.bf16 %v4561_v26, %v4560_v10  ;;  %v4349_v56 = vld [vmem:[%s9670_s1 + $0x230] sm:$0xff]  ;;  %v4350_v7 = vld [vmem:[%s9670_s1 + $0x238] sm:$0xff] }
  0x9d   : > { %7111 = vmatprep.subr.bf16.mxu0 %v7110_v43  ;;  %v6710_v10 = vpack.c.bf16 %v4350_v7, %v4349_v56  ;;  %v4353_v7 = vld [vmem:[%s9670_s1 + $0x250] sm:$0xff] }
  0x9f   : > { %6697 = vmatpush3.bf16.msra.mxu1 %v6694_v11  ;;  %v4563_v11 = vld [vmem:[%s9670_s1 + $0x8a8] sm:$0xff] }
  0xa0   : > { %7113 = vmatpush3.bf16.msra.mxu0 %v7110_v43  ;;  %6699 = vmatprep.subr.bf16.mxu1 %v6698_v45  ;;  %v6706_v43 = vpack.c.bf16 %v4348_v19, %v4347_v2  ;;  %v7122_v21 = vpack.c.bf16 %v4563_v11, %v4562_v42  ;;  %v4351_v2 = vld [vmem:[%s9670_s1 + $0x240] sm:$0xff]  ;;  %v4352_v19 = vld [vmem:[%s9670_s1 + $0x248] sm:$0xff]  ;;  %v8616_v11 = vld [vmem:[#allocation2 + $0x91] sm:$0xff] }
  0xa1   : > { %7115 = vmatprep.subr.bf16.mxu0 %v7114_v37  ;;  %v6714_v42 = vpack.c.bf16 %v4352_v19, %v4351_v2  ;;  %v4355_v19 = vld [vmem:[%s9670_s1 + $0x260] sm:$0xff] }
  0xa2   : > { %5547 = vmatmul.mubr.f32.vlgmr.msra.gmra.mrb[0].mxu1 %v8022_v62 }
  0xa3   : > { %6701 = vmatpush3.bf16.msra.mxu1 %v6698_v45  ;;  %6119 = vmatmul.mubr.f32.vlgmr.msra.gmra.mrb[0].mxu0 %v8079_v24  ;;  %v4564_v45 = vld [vmem:[%s9670_s1 + $0x8b0] sm:$0xff] }
  0xa4   : > { %7117 = vmatpush3.bf16.msra.mxu0 %v7114_v37  ;;  %6703 = vmatprep.subr.bf16.mxu1 %v6702_v38  ;;  %v4565_v37 = vld [vmem:[%s9670_s1 + $0x8b8] sm:$0xff] }
  0xa5   : > { %7119 = vmatprep.subr.bf16.mxu0 %v7118_v41  ;;  %5549 = vmatprep.mubr.f32.mxu1 %v8076_v23  ;;  %v7126_v26 = vpack.c.bf16 %v4565_v37, %v4564_v45  ;;  %v4354_v45 = vld [vmem:[%s9670_s1 + $0x258] sm:$0xff] }
  0xa6   : > { %6121 = vmatprep.mubr.f32.mxu0 %v8092_v30  ;;  %5550 = vmatmul.mubr.f32.gmra.mrb[2].mxu1 %v8096_v31  ;;  %v6718_v37 = vpack.c.bf16 %v4354_v45, %v4353_v7  ;;  %v4358_v7 = vld [vmem:[%s9670_s1 + $0x278] sm:$0xff]  ;;  %v4572_v45 = vld [vmem:[%s9670_s1 + $0x8f0] sm:$0xff] }
  0xa7   : > { %6705 = vmatpush3.bf16.msra.mxu1 %v6702_v38  ;;  %6122 = vmatmul.mubr.f32.gmra.mrb[2].mxu0 %v8103_v35  ;;  %v4566_v38 = vld [vmem:[%s9670_s1 + $0x8c0] sm:$0xff] }
  0xa8   : > { %7121 = vmatpush3.bf16.msra.mxu0 %v7118_v41  ;;  %6707 = vmatprep.subr.bf16.mxu1 %v6706_v43  ;;  %v4567_v41 = vld [vmem:[%s9670_s1 + $0x8c8] sm:$0xff] }
  0xa9   : > { %7123 = vmatprep.subr.bf16.mxu0 %v7122_v21  ;;  %5552 = vmatprep.mubr.f32.mxu1 %v8106_v39  ;;  %v7130_v56 = vpack.c.bf16 %v4567_v41, %v4566_v38  ;;  %v4356_v38 = vld [vmem:[%s9670_s1 + $0x268] sm:$0xff] }
  0xaa   : > { %6124 = vmatprep.mubr.f32.mxu0 %v8122_v48  ;;  %5553 = vmatmul.mubr.f32.gmra.mrb[4].mxu1 %v8128_v50 }
  0xab   : > { %6709 = vmatpush3.bf16.msra.mxu1 %v6706_v43  ;;  %6125 = vmatmul.mubr.f32.gmra.mrb[4].mxu0 %v8133_v52  ;;  %v4568_v43 = vld [vmem:[%s9670_s1 + $0x8d0] sm:$0xff] }
  0xac   : > { %7125 = vmatpush3.bf16.msra.mxu0 %v7122_v21  ;;  %6711 = vmatprep.subr.bf16.mxu1 %v6710_v10  ;;  %v4569_v21 = vld [vmem:[%s9670_s1 + $0x8d8] sm:$0xff] }
  0xad   : > { %7127 = vmatprep.subr.bf16.mxu0 %v7126_v26  ;;  %5555 = vmatprep.mubr.f32.mxu1 %v8137_v53  ;;  %v7134_v2 = vpack.c.bf16 %v4569_v21, %v4568_v43  ;;  %v4359_v43 = vld [vmem:[%s9670_s1 + $0x280] sm:$0xff]  ;;  %v4360_v21 = vld [vmem:[%s9670_s1 + $0x288] sm:$0xff] }
  0xae   : > { %6127 = vmatprep.mubr.f32.mxu0 %v8142_v59  ;;  %5556 = vmatmul.mubr.f32.gmra.mrb[6].mxu1 %v8145_v61  ;;  %v4570_v59 = vld [vmem:[%s9670_s1 + $0x8e0] sm:$0xff] }
  0xaf   : > { %6713 = vmatpush3.bf16.msra.mxu1 %v6710_v10  ;;  %6128 = vmatmul.mubr.f32.gmra.mrb[6].mxu0 %v8616_v11  ;;  %v4571_v10 = vld [vmem:[%s9670_s1 + $0x8e8] sm:$0xff] }
  0xb0   : > { %7129 = vmatpush3.bf16.msra.mxu0 %v7126_v26  ;;  %6715 = vmatprep.subr.bf16.mxu1 %v6714_v42  ;;  %v6722_v26 = vpack.c.bf16 %v4356_v38, %v4355_v19  ;;  %v7138_v41 = vpack.c.bf16 %v4571_v10, %v4570_v59  ;;  %v4581_v19 = vld [vmem:[%s9670_s1 + $0x900] sm:$0xff]  ;;  %v4361_v59 = vld [vmem:[%s9670_s1 + $0x290] sm:$0xff]  ;;  %v4362_v10 = vld [vmem:[%s9670_s1 + $0x298] sm:$0xff] }
  0xb1   : > { %7131 = vmatprep.subr.bf16.mxu0 %v7130_v56  ;;  %5590 = vmatprep.mubr.f32.mxu1 %v7958_v33  ;;  %v4357_v33 = vld [vmem:[%s9670_s1 + $0x270] sm:$0xff] }
  0xb2   : > { %6162 = vmatprep.mubr.f32.mxu0 %v8394_v15  ;;  %v4573_v15 = vld [vmem:[%s9670_s1 + $0x8f8] sm:$0xff] }
  0xb3   : > { %6717 = vmatpush3.bf16.msra.mxu1 %v6714_v42  ;;  %v6726_v42 = vpack.c.bf16 %v4358_v7, %v4357_v33  ;;  %v4583_v33 = vld [vmem:[%s9670_s1 + $0x910] sm:$0xff] }
  0xb4   : > { %7133 = vmatpush3.bf16.msra.mxu0 %v7130_v56  ;;  %6719 = vmatprep.subr.bf16.mxu1 %v6718_v37  ;;  %v7142_v56 = vpack.c.bf16 %v4573_v15, %v4572_v45  ;;  %v4363_v45 = vld [vmem:[%s9670_s1 + $0x2a0] sm:$0xff]  ;;  %v4364_v15 = vld [vmem:[%s9670_s1 + $0x2a8] sm:$0xff] }
  0xb5   : > { %7135 = vmatprep.subr.bf16.mxu0 %v7134_v2 }
  0xb7   : > { %6721 = vmatpush3.bf16.msra.mxu1 %v6718_v37  ;;  %v4582_v37 = vld [vmem:[%s9670_s1 + $0x908] sm:$0xff] }
  0xb8   : > { %7137 = vmatpush3.bf16.msra.mxu0 %v7134_v2  ;;  %6723 = vmatprep.subr.bf16.mxu1 %v6722_v26  ;;  %v6730_v2 = vpack.c.bf16 %v4360_v21, %v4359_v43  ;;  %v7146_v38 = vpack.c.bf16 %v4582_v37, %v4581_v19  ;;  %v4585_v43 = vld [vmem:[%s9670_s1 + $0x920] sm:$0xff]  ;;  %v4365_v19 = vld [vmem:[%s9670_s1 + $0x2b0] sm:$0xff]  ;;  %v4366_v37 = vld [vmem:[%s9670_s1 + $0x2b8] sm:$0xff] }
  0xb9   : > { %7139 = vmatprep.subr.bf16.mxu0 %v7138_v41 }
  0xbb   : > { %6725 = vmatpush3.bf16.msra.mxu1 %v6722_v26  ;;  %v4584_v26 = vld [vmem:[%s9670_s1 + $0x918] sm:$0xff] }
  0xbc   : > { %7141 = vmatpush3.bf16.msra.mxu0 %v7138_v41  ;;  %6727 = vmatprep.subr.bf16.mxu1 %v6726_v42  ;;  %v6734_v41 = vpack.c.bf16 %v4362_v10, %v4361_v59  ;;  %v7150_v7 = vpack.c.bf16 %v4584_v26, %v4583_v33  ;;  %v6742_v59 = vpack.c.bf16 %v4366_v37, %v4365_v19  ;;  %v4367_v33 = vld [vmem:[%s9670_s1 + $0x2c0] sm:$0xff]  ;;  %v4368_v26 = vld [vmem:[%s9670_s1 + $0x2c8] sm:$0xff]  ;;  %v4370_v19 = vld [vmem:[%s9670_s1 + $0x2d8] sm:$0xff] }
  0xbd   : > { %7143 = vmatprep.subr.bf16.mxu0 %v7142_v56 }
  0xbf   : > { %6729 = vmatpush3.bf16.msra.mxu1 %v6726_v42  ;;  %v4586_v42 = vld [vmem:[%s9670_s1 + $0x928] sm:$0xff] }
  0xc0   : > { %7145 = vmatpush3.bf16.msra.mxu0 %v7142_v56  ;;  %6731 = vmatprep.subr.bf16.mxu1 %v6730_v2  ;;  %v6738_v56 = vpack.c.bf16 %v4364_v15, %v4363_v45  ;;  %v7154_v21 = vpack.c.bf16 %v4586_v42, %v4585_v43  ;;  %v6746_v45 = vpack.c.bf16 %v4368_v26, %v4367_v33  ;;  %v8730_v15 = vld [vmem:[#allocation2 + $0x92] sm:$0xff]  ;;  %v4372_v33 = vld [vmem:[%s9670_s1 + $0x2e8] sm:$0xff] }
  0xc1   : > { %7147 = vmatprep.subr.bf16.mxu0 %v7146_v38  ;;  %v4369_v42 = vld [vmem:[%s9670_s1 + $0x2d0] sm:$0xff] }
  0xc2   : > { %5591 = vmatmul.mubr.f32.vlgmr.msra.gmra.mrb[0].mxu1 %v7964_v36  ;;  %v6750_v37 = vpack.c.bf16 %v4370_v19, %v4369_v42  ;;  %v2825_v42 = vld [vmem:[%s8354_s7 + $0x38] sm:$0xff]  ;;  %v4595_v19 = vld [vmem:[%s9670_s1 + $0x970] sm:$0xff] }
  0xc3   : > { %6733 = vmatpush3.bf16.msra.mxu1 %v6730_v2  ;;  %6163 = vmatmul.mubr.f32.vlgmr.msra.gmra.mrb[0].mxu0 %v8271_v27  ;;  %v4587_v2 = vld [vmem:[%s9670_s1 + $0x930] sm:$0xff] }
  0xc4   : > { %7149 = vmatpush3.bf16.msra.mxu0 %v7146_v38  ;;  %6735 = vmatprep.subr.bf16.mxu1 %v6734_v41  ;;  %v4588_v38 = vld [vmem:[%s9670_s1 + $0x938] sm:$0xff] }
  0xc5   : > { %7151 = vmatprep.subr.bf16.mxu0 %v7150_v7  ;;  %5593 = vmatprep.mubr.f32.mxu1 %v8008_v54  ;;  %v7158_v10 = vpack.c.bf16 %v4588_v38, %v4587_v2  ;;  %v4371_v38 = vld [vmem:[%s9670_s1 + $0x2e0] sm:$0xff] }
  0xc6   : > { %6165 = vmatprep.mubr.f32.mxu0 %v8283_v28  ;;  %5594 = vmatmul.mubr.f32.gmra.mrb[2].mxu1 %v8028_v0  ;;  %v6754_v26 = vpack.c.bf16 %v4372_v33, %v4371_v38  ;;  %v4375_v38 = vld [vmem:[%s9670_s1 + $0x300] sm:$0xff]  ;;  %v4376_v33 = vld [vmem:[%s9670_s1 + $0x308] sm:$0xff] }
  0xc7   : > { %6737 = vmatpush3.bf16.msra.mxu1 %v6734_v41  ;;  %6166 = vmatmul.mubr.f32.gmra.mrb[2].mxu0 %v8303_v46  ;;  %v4589_v41 = vld [vmem:[%s9670_s1 + $0x940] sm:$0xff]  ;;  %v4388_v46 = vld [vmem:[%s9670_s1 + $0x368] sm:$0xff] }
  0xc8   : > { %7153 = vmatpush3.bf16.msra.mxu0 %v7150_v7  ;;  %6739 = vmatprep.subr.bf16.mxu1 %v6738_v56  ;;  %v4590_v7 = vld [vmem:[%s9670_s1 + $0x948] sm:$0xff] }
  0xc9   : > { %7155 = vmatprep.subr.bf16.mxu0 %v7154_v21  ;;  %5596 = vmatprep.mubr.f32.mxu1 %v8040_v4  ;;  %v7162_v43 = vpack.c.bf16 %v4590_v7, %v4589_v41  ;;  %v4374_v7 = vld [vmem:[%s9670_s1 + $0x2f8] sm:$0xff] }
  0xca   : > { %6168 = vmatprep.mubr.f32.mxu0 %v8308_v47  ;;  %5597 = vmatmul.mubr.f32.gmra.mrb[4].mxu1 %v8055_v13  ;;  %v4386_v47 = vld [vmem:[%s9670_s1 + $0x358] sm:$0xff] }
  0xcb   : > { %6741 = vmatpush3.bf16.msra.mxu1 %v6738_v56  ;;  %6169 = vmatmul.mubr.f32.gmra.mrb[4].mxu0 %v8329_v6  ;;  %v4591_v56 = vld [vmem:[%s9670_s1 + $0x950] sm:$0xff] }
  0xcc   : > { %7157 = vmatpush3.bf16.msra.mxu0 %v7154_v21  ;;  %6743 = vmatprep.subr.bf16.mxu1 %v6742_v59  ;;  %v4592_v21 = vld [vmem:[%s9670_s1 + $0x958] sm:$0xff]  ;;  %v4385_v6 = vld [vmem:[%s9670_s1 + $0x350] sm:$0xff] }
  0xcd   : > { %7159 = vmatprep.subr.bf16.mxu0 %v7158_v10  ;;  %5599 = vmatprep.mubr.f32.mxu1 %v8063_v17  ;;  %v7166_v2 = vpack.c.bf16 %v4592_v21, %v4591_v56 }
  0xce   : > { %6171 = vmatprep.mubr.f32.mxu0 %v8332_v9  ;;  %5600 = vmatmul.mubr.f32.gmra.mrb[6].mxu1 %v8071_v20  ;;  %v4593_v9 = vld [vmem:[%s9670_s1 + $0x960] sm:$0xff] }
  0xcf   : > { %6745 = vmatpush3.bf16.msra.mxu1 %v6742_v59  ;;  %6172 = vmatmul.mubr.f32.gmra.mrb[6].mxu0 %v8730_v15  ;;  %v4594_v59 = vld [vmem:[%s9670_s1 + $0x968] sm:$0xff] }
  0xd0   : > { %7161 = vmatpush3.bf16.msra.mxu0 %v7158_v10  ;;  %6747 = vmatprep.subr.bf16.mxu1 %v6746_v45  ;;  %v8761_v10 = vld [vmem:[#allocation2] sm:$0xff]  ;;  %v7170_v41 = vpack.c.bf16 %v4594_v59, %v4593_v9  ;;  %v4377_v59 = vld [vmem:[%s9670_s1 + $0x310] sm:$0xff] }
  0xd1   : > { %7163 = vmatprep.subr.bf16.mxu0 %v7162_v43  ;;  %5634 = vmatprep.mubr.f32.mxu1 %v8012_v57  ;;  %v4373_v57 = vld [vmem:[%s9670_s1 + $0x2f0] sm:$0xff] }
  0xd2   : > { %6206 = vmatprep.mubr.f32.mxu0 %v8761_v10  ;;  %v6758_v56 = vpack.c.bf16 %v4374_v7, %v4373_v57  ;;  %v4378_v57 = vld [vmem:[%s9670_s1 + $0x318] sm:$0xff]  ;;  %v4599_v7 = vld [vmem:[%s9670_s1 + $0x990] sm:$0xff] }
  0xd3   : > { %6749 = vmatpush3.bf16.msra.mxu1 %v6746_v45  ;;  %v4596_v45 = vld [vmem:[%s9670_s1 + $0x978] sm:$0xff] }
  0xd4   : > { %7165 = vmatpush3.bf16.msra.mxu0 %v7162_v43  ;;  %6751 = vmatprep.subr.bf16.mxu1 %v6750_v37  ;;  %v8778_v43 = vmul.f32 %v8362_v34, %v2825_v42  ;;  %v7174_v21 = vpack.c.bf16 %v4596_v45, %v4595_v19  ;;  %v4597_v34 = vld [vmem:[%s9670_s1 + $0x980] sm:$0xff]  ;;  %v6766_v42 = vpack.c.bf16 %v4378_v57, %v4377_v59  ;;  %v4381_v57 = vld [vmem:[%s9670_s1 + $0x330] sm:$0xff] }
  0xd5   : > { %7167 = vmatprep.subr.bf16.mxu0 %v7166_v2  ;;  %v4379_v45 = vld [vmem:[%s9670_s1 + $0x320] sm:$0xff] }
  0xd6   : > { %2844 = vst [vmem:[#allocation2 + $0x81] sm:$0xff] %v8778_v43 }
  0xd7   : > { %6753 = vmatpush3.bf16.msra.mxu1 %v6750_v37  ;;  %v4598_v37 = vld [vmem:[%s9670_s1 + $0x988] sm:$0xff] }
  0xd8   : > { %7169 = vmatpush3.bf16.msra.mxu0 %v7166_v2  ;;  %6755 = vmatprep.subr.bf16.mxu1 %v6754_v26  ;;  %v6762_v2 = vpack.c.bf16 %v4376_v33, %v4375_v38  ;;  %v7178_v9 = vpack.c.bf16 %v4598_v37, %v4597_v34  ;;  %v4380_v38 = vld [vmem:[%s9670_s1 + $0x328] sm:$0xff]  ;;  %v8821_v33 = vld [vmem:[#allocation2 + $0x20] sm:$0xff]  ;;  %v8823_v37 = vld [vmem:[#allocation2 + $0x30] sm:$0xff] }
  0xd9   : > { %7171 = vmatprep.subr.bf16.mxu0 %v7170_v41  ;;  %v6770_v34 = vpack.c.bf16 %v4380_v38, %v4379_v45  ;;  %v8843_v38 = vld [vmem:[#allocation2 + $0x50] sm:$0xff] }
  0xdb   : > { %6757 = vmatpush3.bf16.msra.mxu1 %v6754_v26  ;;  %v4600_v26 = vld [vmem:[%s9670_s1 + $0x998] sm:$0xff] }
  0xdc   : > { %7173 = vmatpush3.bf16.msra.mxu0 %v7170_v41  ;;  %6759 = vmatprep.subr.bf16.mxu1 %v6758_v56  ;;  %v8805_v41 = vld [vmem:[#allocation2 + $0x10] sm:$0xff]  ;;  %v7182_v19 = vpack.c.bf16 %v4600_v26, %v4599_v7  ;;  %v4382_v7 = vld [vmem:[%s9670_s1 + $0x338] sm:$0xff]  ;;  %v8841_v26 = vld [vmem:[#allocation2 + $0x40] sm:$0xff] }
  0xdd   : > { %7175 = vmatprep.subr.bf16.mxu0 %v7174_v21  ;;  %v6774_v45 = vpack.c.bf16 %v4382_v7, %v4381_v57  ;;  %v8861_v57 = vld [vmem:[#allocation2 + $0x60] sm:$0xff] }
  0xdf   : > { %6761 = vmatpush3.bf16.msra.mxu1 %v6758_v56  ;;  %v4601_v56 = vld [vmem:[%s9670_s1 + $0x9a0] sm:$0xff] }
  0xe0   : > { %7177 = vmatpush3.bf16.msra.mxu0 %v7174_v21  ;;  %6763 = vmatprep.subr.bf16.mxu1 %v6762_v2  ;;  %v4602_v21 = vld [vmem:[%s9670_s1 + $0x9a8] sm:$0xff] }
  0xe1   : > { %7179 = vmatprep.subr.bf16.mxu0 %v7178_v9  ;;  %v7186_v59 = vpack.c.bf16 %v4602_v21, %v4601_v56  ;;  %v4383_v21 = vld [vmem:[%s9670_s1 + $0x340] sm:$0xff] }
  0xe2   : > { %5635 = vmatmul.mubr.f32.vlgmr.msra.gmra.mrb[0].mxu1 %v8024_v63  ;;  %v6778_v7 = vpack.c.bf16 %v4384_v12, %v4383_v21  ;;  %v4608_v12 = vld [vmem:[%s9670_s1 + $0x9d8] sm:$0xff]  ;;  %v6782_v21 = vpack.c.bf16 %v4386_v47, %v4385_v6  ;;  %v4610_v47 = vld [vmem:[%s9670_s1 + $0x9e8] sm:$0xff] }
  0xe3   : > { %6765 = vmatpush3.bf16.msra.mxu1 %v6762_v2  ;;  %6207 = vmatmul.mubr.f32.vlgmr.msra.gmra.mrb[0].mxu0 %v8805_v41  ;;  %v4603_v2 = vld [vmem:[%s9670_s1 + $0x9b0] sm:$0xff] }
  0xe4   : > { %7181 = vmatpush3.bf16.msra.mxu0 %v7178_v9  ;;  %6767 = vmatprep.subr.bf16.mxu1 %v6766_v42  ;;  %v4604_v9 = vld [vmem:[%s9670_s1 + $0x9b8] sm:$0xff] }
  0xe5   : > { %7183 = vmatprep.subr.bf16.mxu0 %v7182_v19  ;;  %5637 = vmatprep.mubr.f32.mxu1 %v8089_v29  ;;  %v7190_v56 = vpack.c.bf16 %v4604_v9, %v4603_v2  ;;  %v8863_v2 = vld [vmem:[#allocation2 + $0x70] sm:$0xff] }
  0xe6   : > { %6209 = vmatprep.mubr.f32.mxu0 %v8821_v33  ;;  %5638 = vmatmul.mubr.f32.gmra.mrb[2].mxu1 %v8098_v32 }
  0xe7   : > { %6769 = vmatpush3.bf16.msra.mxu1 %v6766_v42  ;;  %6210 = vmatmul.mubr.f32.gmra.mrb[2].mxu0 %v8823_v37  ;;  %v4605_v42 = vld [vmem:[%s9670_s1 + $0x9c0] sm:$0xff] }
  0xe8   : > { %7185 = vmatpush3.bf16.msra.mxu0 %v7182_v19  ;;  %6771 = vmatprep.subr.bf16.mxu1 %v6770_v34  ;;  %v4606_v19 = vld [vmem:[%s9670_s1 + $0x9c8] sm:$0xff] }
  0xe9   : > { %7187 = vmatprep.subr.bf16.mxu0 %v7186_v59  ;;  %5640 = vmatprep.mubr.f32.mxu1 %v8108_v40  ;;  %v7194_v9 = vpack.c.bf16 %v4606_v19, %v4605_v42  ;;  %v4387_v19 = vld [vmem:[%s9670_s1 + $0x360] sm:$0xff] }
  0xea   : > { %6212 = vmatprep.mubr.f32.mxu0 %v8841_v26  ;;  %5641 = vmatmul.mubr.f32.gmra.mrb[4].mxu1 %v8130_v51  ;;  %v6786_v6 = vpack.c.bf16 %v4388_v46, %v4387_v19  ;;  %v4391_v19 = vld [vmem:[%s9670_s1 + $0x380] sm:$0xff] }
  0xeb   : > { %6773 = vmatpush3.bf16.msra.mxu1 %v6770_v34  ;;  %6213 = vmatmul.mubr.f32.gmra.mrb[4].mxu0 %v8843_v38  ;;  %v4607_v34 = vld [vmem:[%s9670_s1 + $0x9d0] sm:$0xff] }
  0xec   : > { %7189 = vmatpush3.bf16.msra.mxu0 %v7186_v59  ;;  %6775 = vmatprep.subr.bf16.mxu1 %v6774_v45  ;;  %v8881_v59 = vld [vmem:[#allocation2 + $0x1] sm:$0xff]  ;;  %v7198_v42 = vpack.c.bf16 %v4608_v12, %v4607_v34  ;;  %v4390_v34 = vld [vmem:[%s9670_s1 + $0x378] sm:$0xff]  ;;  %v4611_v12 = vld [vmem:[%s9670_s1 + $0x9f0] sm:$0xff] }
  0xed   : > { %7191 = vmatprep.subr.bf16.mxu0 %v7190_v56  ;;  %5643 = vmatprep.mubr.f32.mxu1 %v8139_v55 }
  0xee   : > { %6215 = vmatprep.mubr.f32.mxu0 %v8861_v57  ;;  %5644 = vmatmul.mubr.f32.gmra.mrb[6].mxu1 %v8147_v1 }
  0xef   : > { %6777 = vmatpush3.bf16.msra.mxu1 %v6774_v45  ;;  %6216 = vmatmul.mubr.f32.gmra.mrb[6].mxu0 %v8863_v2  ;;  %v4609_v45 = vld [vmem:[%s9670_s1 + $0x9e0] sm:$0xff] }
  0xf0   : > { %7193 = vmatpush3.bf16.msra.mxu0 %v7190_v56  ;;  %6779 = vmatprep.subr.bf16.mxu1 %v6778_v7  ;;  %v7202_v56 = vpack.c.bf16 %v4610_v47, %v4609_v45  ;;  %v4392_v45 = vld [vmem:[%s9670_s1 + $0x388] sm:$0xff]  ;;  %v4613_v47 = vld [vmem:[%s9670_s1 + $0xa00] sm:$0xff] }
  0xf1   : > { %7195 = vmatprep.subr.bf16.mxu0 %v7194_v9  ;;  %5678 = vmatprep.mubr.f32.mxu1 %v8022_v62  ;;  %v4389_v62 = vld [vmem:[%s9670_s1 + $0x370] sm:$0xff] }
  0xf2   : > { %6250 = vmatprep.mubr.f32.mxu0 %v8881_v59  ;;  %v6790_v46 = vpack.c.bf16 %v4390_v34, %v4389_v62  ;;  %v4393_v34 = vld [vmem:[%s9670_s1 + $0x390] sm:$0xff] }
  0xf3   : > { %6781 = vmatpush3.bf16.msra.mxu1 %v6778_v7  ;;  %v4612_v7 = vld [vmem:[%s9670_s1 + $0x9f8] sm:$0xff] }
  0xf4   : > { %7197 = vmatpush3.bf16.msra.mxu0 %v7194_v9  ;;  %6783 = vmatprep.subr.bf16.mxu1 %v6782_v21  ;;  %v7206_v9 = vpack.c.bf16 %v4612_v7, %v4611_v12  ;;  %v4394_v12 = vld [vmem:[%s9670_s1 + $0x398] sm:$0xff]  ;;  %v4615_v7 = vld [vmem:[%s9670_s1 + $0xa10] sm:$0xff] }
  0xf5   : > { %7199 = vmatprep.subr.bf16.mxu0 %v7198_v42 }
  0xf7   : > { %6785 = vmatpush3.bf16.msra.mxu1 %v6782_v21  ;;  %v4614_v21 = vld [vmem:[%s9670_s1 + $0xa08] sm:$0xff] }
  0xf8   : > { %7201 = vmatpush3.bf16.msra.mxu0 %v7198_v42  ;;  %6787 = vmatprep.subr.bf16.mxu1 %v6786_v6  ;;  %v6794_v42 = vpack.c.bf16 %v4392_v45, %v4391_v19  ;;  %v7210_v62 = vpack.c.bf16 %v4614_v21, %v4613_v47  ;;  %v4395_v45 = vld [vmem:[%s9670_s1 + $0x3a0] sm:$0xff]  ;;  %v4396_v47 = vld [vmem:[%s9670_s1 + $0x3a8] sm:$0xff] }
  0xf9   : > { %7203 = vmatprep.subr.bf16.mxu0 %v7202_v56  ;;  %v4617_v21 = vld [vmem:[%s9670_s1 + $0xa20] sm:$0xff] }
  0xfb   : > { %6789 = vmatpush3.bf16.msra.mxu1 %v6786_v6  ;;  %v4616_v6 = vld [vmem:[%s9670_s1 + $0xa18] sm:$0xff] }
  0xfc   : > { %7205 = vmatpush3.bf16.msra.mxu0 %v7202_v56  ;;  %6791 = vmatprep.subr.bf16.mxu1 %v6790_v46  ;;  %v6798_v56 = vpack.c.bf16 %v4394_v12, %v4393_v34  ;;  %v7214_v19 = vpack.c.bf16 %v4616_v6, %v4615_v7  ;;  %v4398_v12 = vld [vmem:[%s9670_s1 + $0x3b8] sm:$0xff]  ;;  %v4399_v7 = vld [vmem:[%s9670_s1 + $0x3c0] sm:$0xff]  ;;  %v4400_v6 = vld [vmem:[%s9670_s1 + $0x3c8] sm:$0xff] }
  0xfd   : > { %7207 = vmatprep.subr.bf16.mxu0 %v7206_v9 }
  0xff   : > { %6793 = vmatpush3.bf16.msra.mxu1 %v6790_v46  ;;  %v4618_v46 = vld [vmem:[%s9670_s1 + $0xa28] sm:$0xff] }
 0x100   : > { %7209 = vmatpush3.bf16.msra.mxu0 %v7206_v9  ;;  %6795 = vmatprep.subr.bf16.mxu1 %v6794_v42  ;;  %v6802_v9 = vpack.c.bf16 %v4396_v47, %v4395_v45  ;;  %v7218_v34 = vpack.c.bf16 %v4618_v46, %v4617_v21  ;;  %v4403_v47 = vld [vmem:[%s9670_s1 + $0x3e0] sm:$0xff]  ;;  %v4626_v21 = vld [vmem:[%s9670_s1 + $0xa68] sm:$0xff] }
 0x101   : > { %7211 = vmatprep.subr.bf16.mxu0 %v7210_v62 }
 0x102   : > { %5679 = vmatmul.mubr.f32.vlgmr.msra.gmra.mrb[0].mxu1 %v8076_v23  ;;  %v4397_v23 = vld [vmem:[%s9670_s1 + $0x3b0] sm:$0xff] }
 0x103   : > { %6797 = vmatpush3.bf16.msra.mxu1 %v6794_v42  ;;  %6251 = vmatmul.mubr.f32.vlgmr.msra.gmra.mrb[0].mxu0 %v8384_v14  ;;  %v4619_v42 = vld [vmem:[%s9670_s1 + $0xa30] sm:$0xff]  ;;  %v4620_v14 = vld [vmem:[%s9670_s1 + $0xa38] sm:$0xff] }
 0x104   : > { %7213 = vmatpush3.bf16.msra.mxu0 %v7210_v62  ;;  %6799 = vmatprep.subr.bf16.mxu1 %v6798_v56  ;;  %v6806_v62 = vpack.c.bf16 %v4398_v12, %v4397_v23  ;;  %v4627_v23 = vld [vmem:[%s9670_s1 + $0xa70] sm:$0xff]  ;;  %v4628_v12 = vld [vmem:[%s9670_s1 + $0xa78] sm:$0xff] }
 0x105   : > { %7215 = vmatprep.subr.bf16.mxu0 %v7214_v19  ;;  %5681 = vmatprep.mubr.f32.mxu1 %v8096_v31  ;;  %v7222_v31 = vpack.c.bf16 %v4620_v14, %v4619_v42  ;;  %v7238_v14 = vpack.c.bf16 %v4628_v12, %v4627_v23  ;;  %v4635_v23 = vld [vmem:[%s9670_s1 + $0xab0] sm:$0xff]  ;;  %v4636_v12 = vld [vmem:[%s9670_s1 + $0xab8] sm:$0xff] }
 0x106   : > { %6253 = vmatprep.mubr.f32.mxu0 %v8387_v16  ;;  %5682 = vmatmul.mubr.f32.gmra.mrb[2].mxu1 %v8106_v39  ;;  %v4621_v39 = vld [vmem:[%s9670_s1 + $0xa40] sm:$0xff]  ;;  %v4622_v16 = vld [vmem:[%s9670_s1 + $0xa48] sm:$0xff] }
 0x107   : > { %6801 = vmatpush3.bf16.msra.mxu1 %v6798_v56  ;;  %6254 = vmatmul.mubr.f32.gmra.mrb[2].mxu0 %v8390_v18  ;;  %v6810_v18 = vpack.c.bf16 %v4400_v6, %v4399_v7  ;;  %v4401_v56 = vld [vmem:[%s9670_s1 + $0x3d0] sm:$0xff]  ;;  %v4629_v7 = vld [vmem:[%s9670_s1 + $0xa80] sm:$0xff]  ;;  %v4630_v6 = vld [vmem:[%s9670_s1 + $0xa88] sm:$0xff] }
 0x108   : > { %7217 = vmatpush3.bf16.msra.mxu0 %v7214_v19  ;;  %6803 = vmatprep.subr.bf16.mxu1 %v6802_v9  ;;  %v4402_v19 = vld [vmem:[%s9670_s1 + $0x3d8] sm:$0xff] }
 0x109   : > { %7219 = vmatprep.subr.bf16.mxu0 %v7218_v34  ;;  %5684 = vmatprep.mubr.f32.mxu1 %v8128_v50  ;;  %v7226_v50 = vpack.c.bf16 %v4622_v16, %v4621_v39  ;;  %v7242_v16 = vpack.c.bf16 %v4630_v6, %v4629_v7  ;;  %v4637_v7 = vld [vmem:[%s9670_s1 + $0xac0] sm:$0xff]  ;;  %v4638_v6 = vld [vmem:[%s9670_s1 + $0xac8] sm:$0xff] }
 0x10a   : > { %6256 = vmatprep.mubr.f32.mxu0 %v8398_v22  ;;  %5685 = vmatmul.mubr.f32.gmra.mrb[4].mxu1 %v8137_v53  ;;  %v4623_v53 = vld [vmem:[%s9670_s1 + $0xa50] sm:$0xff]  ;;  %v4624_v22 = vld [vmem:[%s9670_s1 + $0xa58] sm:$0xff] }
 0x10b   : > { %6805 = vmatpush3.bf16.msra.mxu1 %v6802_v9  ;;  %6257 = vmatmul.mubr.f32.gmra.mrb[4].mxu0 %v8401_v25  ;;  %v8995_v25 = vld [vmem:[#allocation2 + $0x2] sm:$0xff]  ;;  %v7230_v45 = vpack.c.bf16 %v4624_v22, %v4623_v53  ;;  %v9047_v53 = vld [vmem:[#allocation2 + $0x12] sm:$0xff] }
 0x10c   : > { %7221 = vmatpush3.bf16.msra.mxu0 %v7218_v34  ;;  %6807 = vmatprep.subr.bf16.mxu1 %v6806_v62  ;;  %v4406_v34 = vld [vmem:[%s9670_s1 + $0x3f8] sm:$0xff] }
 0x10d   : > { %7223 = vmatprep.subr.bf16.mxu0 %v7222_v31  ;;  %5687 = vmatprep.mubr.f32.mxu1 %v8145_v61  ;;  %v6814_v61 = vpack.c.bf16 %v4402_v19, %v4401_v56  ;;  %v4631_v56 = vld [vmem:[%s9670_s1 + $0xa90] sm:$0xff]  ;;  %v4632_v19 = vld [vmem:[%s9670_s1 + $0xa98] sm:$0xff] }
 0x10e   : > { %6259 = vmatprep.mubr.f32.mxu0 %v8404_v49  ;;  %5688 = vmatmul.mubr.f32.gmra.mrb[6].mxu1 %v8761_v10  ;;  %v4404_v49 = vld [vmem:[%s9670_s1 + $0x3e8] sm:$0xff] }
 0x10f   : > { %6809 = vmatpush3.bf16.msra.mxu1 %v6806_v62  ;;  %6260 = vmatmul.mubr.f32.gmra.mrb[6].mxu0 %v8415_v5  ;;  %v4625_v5 = vld [vmem:[%s9670_s1 + $0xa60] sm:$0xff]  ;;  %v6818_v46 = vpack.c.bf16 %v4404_v49, %v4403_v47  ;;  %v4412_v47 = vld [vmem:[%s9670_s1 + $0x428] sm:$0xff] }
 0x110   : > { %7225 = vmatpush3.bf16.msra.mxu0 %v7222_v31  ;;  %6811 = vmatprep.subr.bf16.mxu1 %v6810_v18  ;;  %v7234_v9 = vpack.c.bf16 %v4626_v21, %v4625_v5  ;;  %v4407_v62 = vld [vmem:[%s9670_s1 + $0x400] sm:$0xff]  ;;  %v4408_v31 = vld [vmem:[%s9670_s1 + $0x408] sm:$0xff] }
 0x111   : > { %7227 = vmatprep.subr.bf16.mxu0 %v7226_v50  ;;  %5722 = vmatprep.mubr.f32.mxu1 %v7964_v36  ;;  %v4405_v36 = vld [vmem:[%s9670_s1 + $0x3f0] sm:$0xff]  ;;  %v6826_v39 = vpack.c.bf16 %v4408_v31, %v4407_v62  ;;  %v4633_v49 = vld [vmem:[%s9670_s1 + $0xaa0] sm:$0xff]  ;;  %v4634_v5 = vld [vmem:[%s9670_s1 + $0xaa8] sm:$0xff]  ;;  %v7254_v62 = vpack.c.bf16 %v4636_v12, %v4635_v23 }
 0x112   : > { %6294 = vmatprep.mubr.f32.mxu0 %v8995_v25  ;;  %v6822_v42 = vpack.c.bf16 %v4406_v34, %v4405_v36  ;;  %v9063_v21 = vld [vmem:[#allocation2 + $0x22] sm:$0xff]  ;;  %v4413_v36 = vld [vmem:[%s9670_s1 + $0x430] sm:$0xff]  ;;  %v4414_v34 = vld [vmem:[%s9670_s1 + $0x438] sm:$0xff] }
 0x113   : > { %6813 = vmatpush3.bf16.msra.mxu1 %v6810_v18  ;;  %v4409_v18 = vld [vmem:[%s9670_s1 + $0x410] sm:$0xff]  ;;  %v4415_v31 = vld [vmem:[%s9670_s1 + $0x440] sm:$0xff]  ;;  %v4431_v12 = vld [vmem:[%s9670_s1 + $0x488] sm:$0xff] }
 0x114   : > { %7229 = vmatpush3.bf16.msra.mxu0 %v7226_v50  ;;  %6815 = vmatprep.subr.bf16.mxu1 %v6814_v61  ;;  %v4410_v50 = vld [vmem:[%s9670_s1 + $0x418] sm:$0xff]  ;;  %v4430_v23 = vld [vmem:[%s9670_s1 + $0x480] sm:$0xff] }
 0x115   : > { %7231 = vmatprep.subr.bf16.mxu0 %v7230_v45  ;;  %v6830_v22 = vpack.c.bf16 %v4410_v50, %v4409_v18  ;;  %v7258_v18 = vpack.c.bf16 %v4638_v6, %v4637_v7  ;;  %v4417_v50 = vld [vmem:[%s9670_s1 + $0x450] sm:$0xff]  ;;  %v4433_v6 = vld [vmem:[%s9670_s1 + $0x498] sm:$0xff] }
 0x116   : > { %v4432_v7 = vld [vmem:[%s9670_s1 + $0x490] sm:$0xff] }
 0x117   : > { %6817 = vmatpush3.bf16.msra.mxu1 %v6814_v61  ;;  %v7246_v61 = vpack.c.bf16 %v4632_v19, %v4631_v56  ;;  %v4639_v56 = vld [vmem:[%s9670_s1 + $0xad0] sm:$0xff]  ;;  %v4640_v19 = vld [vmem:[%s9670_s1 + $0xad8] sm:$0xff] }
 0x118   : > { %7233 = vmatpush3.bf16.msra.mxu0 %v7230_v45  ;;  %6819 = vmatprep.subr.bf16.mxu1 %v6818_v46  ;;  %v4411_v45 = vld [vmem:[%s9670_s1 + $0x420] sm:$0xff] }
 0x119   : > { %7235 = vmatprep.subr.bf16.mxu0 %v7234_v9 }
 0x11b   : > { %6821 = vmatpush3.bf16.msra.mxu1 %v6818_v46  ;;  %v6834_v46 = vpack.c.bf16 %v4412_v47, %v4411_v45  ;;  %v4420_v45 = vld [vmem:[%s9670_s1 + $0x468] sm:$0xff] }
 0x11c   : > { %7237 = vmatpush3.bf16.msra.mxu0 %v7234_v9  ;;  %6823 = vmatprep.subr.bf16.mxu1 %v6822_v42  ;;  %v9065_v9 = vld [vmem:[#allocation2 + $0x32] sm:$0xff]  ;;  %v4642_v47 = vld [vmem:[%s9670_s1 + $0xae8] sm:$0xff] }
 0x11d   : > { %7239 = vmatprep.subr.bf16.mxu0 %v7238_v14 }
 0x11f   : > { %6825 = vmatpush3.bf16.msra.mxu1 %v6822_v42  ;;  %v9083_v42 = vld [vmem:[#allocation2 + $0x42] sm:$0xff] }
 0x120   : > { %7241 = vmatpush3.bf16.msra.mxu0 %v7238_v14  ;;  %6827 = vmatprep.subr.bf16.mxu1 %v6826_v39  ;;  %v9085_v14 = vld [vmem:[#allocation2 + $0x52] sm:$0xff] }
 0x121   : > { %7243 = vmatprep.subr.bf16.mxu0 %v7242_v16 }
 0x122   : > { %5723 = vmatmul.mubr.f32.vlgmr.msra.gmra.mrb[0].mxu1 %v8008_v54  ;;  %v7250_v54 = vpack.c.bf16 %v4634_v5, %v4633_v49 }
 0x123   : > { %6829 = vmatpush3.bf16.msra.mxu1 %v6826_v39  ;;  %6295 = vmatmul.mubr.f32.vlgmr.msra.gmra.mrb[0].mxu0 %v9047_v53  ;;  %v9103_v39 = vld [vmem:[#allocation2 + $0x62] sm:$0xff] }
 0x124   : > { %7245 = vmatpush3.bf16.msra.mxu0 %v7242_v16  ;;  %6831 = vmatprep.subr.bf16.mxu1 %v6830_v22  ;;  %v9105_v16 = vld [vmem:[#allocation2 + $0x72] sm:$0xff] }
 0x125   : > { %7247 = vmatprep.subr.bf16.mxu0 %v7246_v61  ;;  %5725 = vmatprep.mubr.f32.mxu1 %v8028_v0  ;;  %v6838_v0 = vpack.c.bf16 %v4414_v34, %v4413_v36 }
 0x126   : > { %6297 = vmatprep.mubr.f32.mxu0 %v9063_v21  ;;  %5726 = vmatmul.mubr.f32.gmra.mrb[2].mxu1 %v8040_v4  ;;  %v4416_v4 = vld [vmem:[%s9670_s1 + $0x448] sm:$0xff] }
 0x127   : > { %6833 = vmatpush3.bf16.msra.mxu1 %v6830_v22  ;;  %6298 = vmatmul.mubr.f32.gmra.mrb[2].mxu0 %v9065_v9 }
 0x128   : > { %7249 = vmatpush3.bf16.msra.mxu0 %v7246_v61  ;;  %6835 = vmatprep.subr.bf16.mxu1 %v6834_v46  ;;  %v4419_v61 = vld [vmem:[%s9670_s1 + $0x460] sm:$0xff] }
 0x129   : > { %7251 = vmatprep.subr.bf16.mxu0 %v7250_v54  ;;  %5728 = vmatprep.mubr.f32.mxu1 %v8055_v13  ;;  %v6842_v13 = vpack.c.bf16 %v4416_v4, %v4415_v31  ;;  %v6850_v49 = vpack.c.bf16 %v4420_v45, %v4419_v61  ;;  %v6858_v31 = vpack.c.bf16 %v4431_v12, %v4430_v23  ;;  %v7701_v23 = vld [vmem:[#allocation2 + $0x11] sm:$0xff] }
 0x12a   : > { %6300 = vmatprep.mubr.f32.mxu0 %v9083_v42  ;;  %5729 = vmatmul.mubr.f32.gmra.mrb[4].mxu1 %v8063_v17  ;;  %v4418_v17 = vld [vmem:[%s9670_s1 + $0x458] sm:$0xff] }
 0x12b   : > { %6837 = vmatpush3.bf16.msra.mxu1 %v6834_v46  ;;  %6301 = vmatmul.mubr.f32.gmra.mrb[4].mxu0 %v9085_v14  ;;  %v6846_v22 = vpack.c.bf16 %v4418_v17, %v4417_v50  ;;  %v4422_v46 = vld [vmem:[%s9670_s1 + $0x478] sm:$0xff]  ;;  %v6862_v50 = vpack.c.bf16 %v4433_v6, %v4432_v7 }
 0x12c   : > { %7253 = vmatpush3.bf16.msra.mxu0 %v7250_v54  ;;  %6839 = vmatprep.subr.bf16.mxu1 %v6838_v0  ;;  %v4643_v54 = vld [vmem:[%s9670_s1 + $0xaf0] sm:$0xff] }
 0x12d   : > { %7255 = vmatprep.subr.bf16.mxu0 %v7254_v62  ;;  %5731 = vmatprep.mubr.f32.mxu1 %v8071_v20  ;;  %v7262_v20 = vpack.c.bf16 %v4640_v19, %v4639_v56  ;;  %v4434_v56 = vld [vmem:[%s9670_s1 + $0x4a0] sm:$0xff]  ;;  %v4435_v19 = vld [vmem:[%s9670_s1 + $0x4a8] sm:$0xff] }
 0x12e   : > { %6303 = vmatprep.mubr.f32.mxu0 %v9103_v39  ;;  %5732 = vmatmul.mubr.f32.gmra.mrb[6].mxu1 %v8616_v11  ;;  %v4641_v11 = vld [vmem:[%s9670_s1 + $0xae0] sm:$0xff]  ;;  %v6866_v61 = vpack.c.bf16 %v4435_v19, %v4434_v56 }
 0x12f   : > { %6841 = vmatpush3.bf16.msra.mxu1 %v6838_v0  ;;  %6304 = vmatmul.mubr.f32.gmra.mrb[6].mxu0 %v9105_v16  ;;  %v7266_v5 = vpack.c.bf16 %v4642_v47, %v4641_v11  ;;  %v4645_v0 = vld [vmem:[%s9670_s1 + $0xb00] sm:$0xff]  ;;  %v4437_v11 = vld [vmem:[%s9670_s1 + $0x4b8] sm:$0xff]  ;;  %v4651_v47 = vld [vmem:[%s9670_s1 + $0xb30] sm:$0xff] }
 0x130   : > { %7257 = vmatpush3.bf16.msra.mxu0 %v7254_v62  ;;  %6843 = vmatprep.subr.bf16.mxu1 %v6842_v13  ;;  %v4646_v62 = vld [vmem:[%s9670_s1 + $0xb08] sm:$0xff] }
 0x131   : > { %7259 = vmatprep.subr.bf16.mxu0 %v7258_v18  ;;  %5766 = vmatprep.mubr.f32.mxu1 %v8024_v63  ;;  %v4421_v63 = vld [vmem:[%s9670_s1 + $0x470] sm:$0xff]  ;;  %v7274_v4 = vpack.c.bf16 %v4646_v62, %v4645_v0  ;;  %v4445_v62 = vld [vmem:[%s9670_s1 + $0x4f8] sm:$0xff] }
 0x132   : > { %6338 = vmatprep.mubr.f32.mxu0 %v8805_v41  ;;  %v4644_v41 = vld [vmem:[%s9670_s1 + $0xaf8] sm:$0xff]  ;;  %v6854_v36 = vpack.c.bf16 %v4422_v46, %v4421_v63  ;;  %v4439_v63 = vld [vmem:[%s9670_s1 + $0x4c8] sm:$0xff]  ;;  %v9219_v46 = vld [vmem:[#allocation2 + $0x80] sm:$0xff] }
 0x133   : > { %6845 = vmatpush3.bf16.msra.mxu1 %v6842_v13  ;;  %v7270_v34 = vpack.c.bf16 %v4644_v41, %v4643_v54  ;;  %v4647_v13 = vld [vmem:[%s9670_s1 + $0xb10] sm:$0xff] }
 0x134   : > { %7261 = vmatpush3.bf16.msra.mxu0 %v7258_v18  ;;  %6847 = vmatprep.subr.bf16.mxu1 %v6846_v22  ;;  %v4648_v18 = vld [vmem:[%s9670_s1 + $0xb18] sm:$0xff]  ;;  %v4440_v54 = vld [vmem:[%s9670_s1 + $0x4d0] sm:$0xff] }
 0x135   : > { %7263 = vmatprep.subr.bf16.mxu0 %v7262_v20  ;;  %v7278_v17 = vpack.c.bf16 %v4648_v18, %v4647_v13  ;;  %v4446_v13 = vld [vmem:[%s9670_s1 + $0x500] sm:$0xff]  ;;  %v4447_v18 = vld [vmem:[%s9670_s1 + $0x508] sm:$0xff] }
 0x136   : > { %v6890_v56 = vpack.c.bf16 %v4447_v18, %v4446_v13  ;;  %v7707_v13 = vld [vmem:[#allocation2 + $0x71] sm:$0xff]  ;;  %v9703_v18 = vld [vmem:[#allocation11_spill] sm:$0xff] }
 0x137   : > { %6849 = vmatpush3.bf16.msra.mxu1 %v6846_v22  ;;  %v4649_v22 = vld [vmem:[%s9670_s1 + $0xb20] sm:$0xff] }
 0x138   : > { %7265 = vmatpush3.bf16.msra.mxu0 %v7262_v20  ;;  %6851 = vmatprep.subr.bf16.mxu1 %v6850_v49  ;;  %v4650_v20 = vld [vmem:[%s9670_s1 + $0xb28] sm:$0xff] }
 0x139   : > { %7267 = vmatprep.subr.bf16.mxu0 %v7266_v5  ;;  %v7282_v45 = vpack.c.bf16 %v4650_v20, %v4649_v22  ;;  %v4448_v22 = vld [vmem:[%s9670_s1 + $0x510] sm:$0xff]  ;;  %v4449_v20 = vld [vmem:[%s9670_s1 + $0x518] sm:$0xff] }
 0x13b   : > { %6853 = vmatpush3.bf16.msra.mxu1 %v6850_v49 }
 0x13c   : > { %7269 = vmatpush3.bf16.msra.mxu0 %v7266_v5  ;;  %6855 = vmatprep.subr.bf16.mxu1 %v6854_v36  ;;  %v4438_v5 = vld [vmem:[%s9670_s1 + $0x4c0] sm:$0xff] }
 0x13d   : > { %7271 = vmatprep.subr.bf16.mxu0 %v7270_v34 }
 0x13f   : > { %6857 = vmatpush3.bf16.msra.mxu1 %v6854_v36  ;;  %v4442_v36 = vld [vmem:[%s9670_s1 + $0x4e0] sm:$0xff] }
 0x140   : > { %7273 = vmatpush3.bf16.msra.mxu0 %v7270_v34  ;;  %6859 = vmatprep.subr.bf16.mxu1 %v6858_v31  ;;  %v4443_v34 = vld [vmem:[%s9670_s1 + $0x4e8] sm:$0xff] }
 0x141   : > { %7275 = vmatprep.subr.bf16.mxu0 %v7274_v4  ;;  %v6882_v12 = vpack.c.bf16 %v4443_v34, %v4442_v36  ;;  %v4454_v34 = vld [vmem:[%s9670_s1 + $0x540] sm:$0xff] }
 0x142   : > { %5767 = vmatmul.mubr.f32.vlgmr.msra.gmra.mrb[0].mxu1 %v8089_v29  ;;  %v4436_v29 = vld [vmem:[%s9670_s1 + $0x4b0] sm:$0xff] }
 0x143   : > { %6861 = vmatpush3.bf16.msra.mxu1 %v6858_v31  ;;  %6339 = vmatmul.mubr.f32.vlgmr.msra.gmra.mrb[0].mxu0 %v8821_v33  ;;  %v4652_v33 = vld [vmem:[%s9670_s1 + $0xb38] sm:$0xff]  ;;  %v6870_v49 = vpack.c.bf16 %v4437_v11, %v4436_v29  ;;  %v4659_v31 = vld [vmem:[%s9670_s1 + $0xb70] sm:$0xff]  ;;  %v6894_v29 = vpack.c.bf16 %v4449_v20, %v4448_v22  ;;  %v4673_v22 = vld [vmem:[%s9670_s1 + $0xbe0] sm:$0xff] }
 0x144   : > { %7277 = vmatpush3.bf16.msra.mxu0 %v7274_v4  ;;  %6863 = vmatprep.subr.bf16.mxu1 %v6862_v50  ;;  %v4660_v4 = vld [vmem:[%s9670_s1 + $0xb78] sm:$0xff] }
 0x145   : > { %7279 = vmatprep.subr.bf16.mxu0 %v7278_v17  ;;  %5769 = vmatprep.mubr.f32.mxu1 %v8098_v32  ;;  %v7286_v32 = vpack.c.bf16 %v4652_v33, %v4651_v47  ;;  %v7302_v6 = vpack.c.bf16 %v4660_v4, %v4659_v31  ;;  %v4450_v47 = vld [vmem:[%s9670_s1 + $0x520] sm:$0xff]  ;;  %v4451_v33 = vld [vmem:[%s9670_s1 + $0x528] sm:$0xff]  ;;  %v4456_v31 = vld [vmem:[%s9670_s1 + $0x550] sm:$0xff] }
 0x146   : > { %6341 = vmatprep.mubr.f32.mxu0 %v8823_v37  ;;  %5770 = vmatmul.mubr.f32.gmra.mrb[2].mxu1 %v8108_v40  ;;  %v4653_v40 = vld [vmem:[%s9670_s1 + $0xb40] sm:$0xff]  ;;  %v4654_v37 = vld [vmem:[%s9670_s1 + $0xb48] sm:$0xff]  ;;  %v4457_v4 = vld [vmem:[%s9670_s1 + $0x558] sm:$0xff] }
 0x147   : > { %6865 = vmatpush3.bf16.msra.mxu1 %v6862_v50  ;;  %6342 = vmatmul.mubr.f32.gmra.mrb[2].mxu0 %v8841_v26  ;;  %v6874_v26 = vpack.c.bf16 %v4439_v63, %v4438_v5  ;;  %v4661_v50 = vld [vmem:[%s9670_s1 + $0xb80] sm:$0xff]  ;;  %v4666_v5 = vld [vmem:[%s9670_s1 + $0xba8] sm:$0xff] }
 0x148   : > { %7281 = vmatpush3.bf16.msra.mxu0 %v7278_v17  ;;  %6867 = vmatprep.subr.bf16.mxu1 %v6866_v61  ;;  %v4662_v17 = vld [vmem:[%s9670_s1 + $0xb88] sm:$0xff] }
 0x149   : > { %7283 = vmatprep.subr.bf16.mxu0 %v7282_v45  ;;  %5772 = vmatprep.mubr.f32.mxu1 %v8130_v51  ;;  %v7290_v51 = vpack.c.bf16 %v4654_v37, %v4653_v40  ;;  %v7306_v19 = vpack.c.bf16 %v4662_v17, %v4661_v50  ;;  %v7702_v63 = vld [vmem:[#allocation2 + $0x21] sm:$0xff]  ;;  %v6898_v40 = vpack.c.bf16 %v4451_v33, %v4450_v47 }
 0x14a   : > { %6344 = vmatprep.mubr.f32.mxu0 %v8843_v38  ;;  %5773 = vmatmul.mubr.f32.gmra.mrb[4].mxu1 %v8139_v55  ;;  %v4441_v38 = vld [vmem:[%s9670_s1 + $0x4d8] sm:$0xff]  ;;  %v4655_v55 = vld [vmem:[%s9670_s1 + $0xb50] sm:$0xff]  ;;  %v6910_v50 = vpack.c.bf16 %v4457_v4, %v4456_v31  ;;  %v4462_v33 = vld [vmem:[%s9670_s1 + $0x580] sm:$0xff] }
 0x14b   : > { %6869 = vmatpush3.bf16.msra.mxu1 %v6866_v61  ;;  %6345 = vmatmul.mubr.f32.gmra.mrb[4].mxu0 %v8861_v57  ;;  %v4656_v57 = vld [vmem:[%s9670_s1 + $0xb58] sm:$0xff]  ;;  %v6878_v41 = vpack.c.bf16 %v4441_v38, %v4440_v54  ;;  %v4663_v61 = vld [vmem:[%s9670_s1 + $0xb90] sm:$0xff]  ;;  %v4470_v4 = vld [vmem:[%s9670_s1 + $0x5c0] sm:$0xff] }
 0x14c   : > { %7285 = vmatpush3.bf16.msra.mxu0 %v7282_v45  ;;  %6871 = vmatprep.subr.bf16.mxu1 %v6870_v49  ;;  %v4664_v45 = vld [vmem:[%s9670_s1 + $0xb98] sm:$0xff]  ;;  %v9702_v54 = vld [vmem:[#allocation9_spill] sm:$0xff] }
 0x14d   : > { %7287 = vmatprep.subr.bf16.mxu0 %v7286_v32  ;;  %5775 = vmatprep.mubr.f32.mxu1 %v8147_v1  ;;  %v7294_v1 = vpack.c.bf16 %v4656_v57, %v4655_v55  ;;  %v7310_v11 = vpack.c.bf16 %v4664_v45, %v4663_v61  ;;  %v4667_v38 = vld [vmem:[%s9670_s1 + $0xbb0] sm:$0xff]  ;;  %v4668_v55 = vld [vmem:[%s9670_s1 + $0xbb8] sm:$0xff] }
 0x14e   : > { %6347 = vmatprep.mubr.f32.mxu0 %v8863_v2  ;;  %5776 = vmatmul.mubr.f32.gmra.mrb[6].mxu1 %v8730_v15  ;;  %v4657_v15 = vld [vmem:[%s9670_s1 + $0xb60] sm:$0xff]  ;;  %v4658_v2 = vld [vmem:[%s9670_s1 + $0xb68] sm:$0xff]  ;;  %v7703_v57 = vld [vmem:[#allocation2 + $0x31] sm:$0xff]  ;;  %v7318_v36 = vpack.c.bf16 %v4668_v55, %v4667_v38 }
 0x14f   : > { %6873 = vmatpush3.bf16.msra.mxu1 %v6870_v49  ;;  %6348 = vmatmul.mubr.f32.gmra.mrb[6].mxu0 %v9219_v46  ;;  %v7298_v0 = vpack.c.bf16 %v4658_v2, %v4657_v15  ;;  %v9701_v49 = vld [vmem:[#allocation10_spill] sm:$0xff]  ;;  %v4455_v15 = vld [vmem:[%s9670_s1 + $0x548] sm:$0xff]  ;;  %v4669_v2 = vld [vmem:[%s9670_s1 + $0xbc0] sm:$0xff] }
 0x150   : > { %7289 = vmatpush3.bf16.msra.mxu0 %v7286_v32  ;;  %6875 = vmatprep.subr.bf16.mxu1 %v6874_v26  ;;  %v4665_v32 = vld [vmem:[%s9670_s1 + $0xba0] sm:$0xff]  ;;  %v4461_v45 = vld [vmem:[%s9670_s1 + $0x578] sm:$0xff]  ;;  %v4679_v38 = vld [vmem:[%s9670_s1 + $0xc10] sm:$0xff] }
 0x151   : > { %7291 = vmatprep.subr.bf16.mxu0 %v7290_v51  ;;  %5810 = vmatprep.mubr.f32.mxu1 %v8761_v10  ;;  %v4444_v10 = vld [vmem:[%s9670_s1 + $0x4f0] sm:$0xff]  ;;  %v7314_v37 = vpack.c.bf16 %v4666_v5, %v4665_v32  ;;  %v4463_v32 = vld [vmem:[%s9670_s1 + $0x588] sm:$0xff]  ;;  %v4677_v5 = vld [vmem:[%s9670_s1 + $0xc00] sm:$0xff] }
 0x152   : > { %6382 = vmatprep.mubr.f32.mxu0 %v7701_v23  ;;  %v6886_v7 = vpack.c.bf16 %v4445_v62, %v4444_v10  ;;  %v4670_v23 = vld [vmem:[%s9670_s1 + $0xbc8] sm:$0xff]  ;;  %v6906_v10 = vpack.c.bf16 %v4455_v15, %v4454_v34  ;;  %v4680_v55 = vld [vmem:[%s9670_s1 + $0xc18] sm:$0xff]  ;;  %v9704_v34 = vld [vmem:[#allocation3_spill] sm:$0xff] }
 0x153   : > { %6877 = vmatpush3.bf16.msra.mxu1 %v6874_v26  ;;  %v4452_v26 = vld [vmem:[%s9670_s1 + $0x530] sm:$0xff]  ;;  %v7322_v62 = vpack.c.bf16 %v4670_v23, %v4669_v2  ;;  %v4681_v15 = vld [vmem:[%s9670_s1 + $0xc20] sm:$0xff]  ;;  %v4682_v2 = vld [vmem:[%s9670_s1 + $0xc28] sm:$0xff] }
 0x154   : > { %7293 = vmatpush3.bf16.msra.mxu0 %v7290_v51  ;;  %6879 = vmatprep.subr.bf16.mxu1 %v6878_v41  ;;  %v4453_v51 = vld [vmem:[%s9670_s1 + $0x538] sm:$0xff] }
 0x155   : > { %7295 = vmatprep.subr.bf16.mxu0 %v7294_v1 }
 0x157   : > { %6881 = vmatpush3.bf16.msra.mxu1 %v6878_v41  ;;  %v7704_v41 = vld [vmem:[#allocation2 + $0x41] sm:$0xff] }
 0x158   : > { %7297 = vmatpush3.bf16.msra.mxu0 %v7294_v1  ;;  %6883 = vmatprep.subr.bf16.mxu1 %v6882_v12  ;;  %v6902_v1 = vpack.c.bf16 %v4453_v51, %v4452_v26  ;;  %v4464_v26 = vld [vmem:[%s9670_s1 + $0x590] sm:$0xff]  ;;  %v4465_v51 = vld [vmem:[%s9670_s1 + $0x598] sm:$0xff] }
 0x159   : > { %7299 = vmatprep.subr.bf16.mxu0 %v7298_v0 }
 0x15b   : > { %6885 = vmatpush3.bf16.msra.mxu1 %v6882_v12  ;;  %v7705_v12 = vld [vmem:[#allocation2 + $0x51] sm:$0xff] }
 0x15c   : > { %7301 = vmatpush3.bf16.msra.mxu0 %v7298_v0  ;;  %6887 = vmatprep.subr.bf16.mxu1 %v6886_v7  ;;  %v7706_v0 = vld [vmem:[#allocation2 + $0x61] sm:$0xff] }
 0x15d   : > { %7303 = vmatprep.subr.bf16.mxu0 %v7302_v6 }
 0x15f   : > { %6889 = vmatpush3.bf16.msra.mxu1 %v6886_v7  ;;  %v4671_v7 = vld [vmem:[%s9670_s1 + $0xbd0] sm:$0xff] }
 0x160   : > { %7305 = vmatpush3.bf16.msra.mxu0 %v7302_v6  ;;  %6891 = vmatprep.subr.bf16.mxu1 %v6890_v56  ;;  %v4672_v6 = vld [vmem:[%s9670_s1 + $0xbd8] sm:$0xff] }
 0x161   : > { %7307 = vmatprep.subr.bf16.mxu0 %v7306_v19  ;;  %v7326_v17 = vpack.c.bf16 %v4672_v6, %v4671_v7  ;;  %v4471_v7 = vld [vmem:[%s9670_s1 + $0x5c8] sm:$0xff] }
 0x162   : > { %5811 = vmatmul.mubr.f32.vlgmr.msra.gmra.mrb[0].mxu1 %v9701_v49  ;;  %v9438_v6 = vld [vmem:[#allocation2 + $0x82] sm:$0xff] }
 0x163   : > { %6893 = vmatpush3.bf16.msra.mxu1 %v6890_v56  ;;  %6383 = vmatmul.mubr.f32.vlgmr.msra.gmra.mrb[0].mxu0 %v7702_v63  ;;  %v4458_v56 = vld [vmem:[%s9670_s1 + $0x560] sm:$0xff]  ;;  %v4678_v63 = vld [vmem:[%s9670_s1 + $0xc08] sm:$0xff] }
 0x164   : > { %7309 = vmatpush3.bf16.msra.mxu0 %v7306_v19  ;;  %6895 = vmatprep.subr.bf16.mxu1 %v6894_v29  ;;  %v4459_v19 = vld [vmem:[%s9670_s1 + $0x568] sm:$0xff] }
 0x165   : > { %7311 = vmatprep.subr.bf16.mxu0 %v7310_v11  ;;  %5813 = vmatprep.mubr.f32.mxu1 %v9702_v54  ;;  %v6914_v20 = vpack.c.bf16 %v4459_v19, %v4458_v56  ;;  %v4474_v56 = vld [vmem:[%s9670_s1 + $0x5e0] sm:$0xff]  ;;  %v4475_v19 = vld [vmem:[%s9670_s1 + $0x5e8] sm:$0xff] }
 0x166   : > { %6385 = vmatprep.mubr.f32.mxu0 %v7703_v57  ;;  %5814 = vmatmul.mubr.f32.gmra.mrb[2].mxu1 %v8372_v44  ;;  %v6926_v57 = vpack.c.bf16 %v4465_v51, %v4464_v26  ;;  %v4696_v26 = vld [vmem:[%s9670_s1 + $0xc98] sm:$0xff]  ;;  %v3674_v51 = vld [vmem:[#allocation2 + $0x30] sm:$0xff] }
 0x167   : > { %6897 = vmatpush3.bf16.msra.mxu1 %v6894_v29  ;;  %6386 = vmatmul.mubr.f32.gmra.mrb[2].mxu0 %v7704_v41  ;;  %v4675_v29 = vld [vmem:[%s9670_s1 + $0xbf0] sm:$0xff]  ;;  %v7342_v41 = vpack.c.bf16 %v4680_v55, %v4679_v38 }
 0x168   : > { %7313 = vmatpush3.bf16.msra.mxu0 %v7310_v11  ;;  %6899 = vmatprep.subr.bf16.mxu1 %v6898_v40 }
 0x169   : > { %7315 = vmatprep.subr.bf16.mxu0 %v7314_v37  ;;  %5816 = vmatprep.mubr.f32.mxu1 %v8378_v3 }
 0x16a   : > { %6388 = vmatprep.mubr.f32.mxu0 %v7705_v12  ;;  %5817 = vmatmul.mubr.f32.gmra.mrb[4].mxu1 %v8392_v8  ;;  %v7346_v12 = vpack.c.bf16 %v4682_v2, %v4681_v15  ;;  %v3675_v15 = vld [vmem:[#allocation2 + $0x40] sm:$0xff] }
 0x16b   : > { %6901 = vmatpush3.bf16.msra.mxu1 %v6898_v40  ;;  %6389 = vmatmul.mubr.f32.gmra.mrb[4].mxu0 %v7706_v0  ;;  %v6922_v40 = vpack.c.bf16 %v4463_v32, %v4462_v33  ;;  %v4468_v0 = vld [vmem:[%s9670_s1 + $0x5b0] sm:$0xff]  ;;  %v4694_v33 = vld [vmem:[%s9670_s1 + $0xc88] sm:$0xff] }
 0x16c   : > { %7317 = vmatpush3.bf16.msra.mxu0 %v7314_v37  ;;  %6903 = vmatprep.subr.bf16.mxu1 %v6902_v1  ;;  %v7338_v37 = vpack.c.bf16 %v4678_v63, %v4677_v5  ;;  %v4480_v63 = vld [vmem:[%s9670_s1 + $0x610] sm:$0xff] }
 0x16d   : > { %7319 = vmatprep.subr.bf16.mxu0 %v7318_v36  ;;  %5819 = vmatprep.mubr.f32.mxu1 %v8406_v60 }
 0x16e   : > { %6391 = vmatprep.mubr.f32.mxu0 %v7707_v13  ;;  %5820 = vmatmul.mubr.f32.gmra.mrb[6].mxu1 %v9703_v18  ;;  %v4472_v13 = vld [vmem:[%s9670_s1 + $0x5d0] sm:$0xff] }
 0x16f   : > { %6905 = vmatpush3.bf16.msra.mxu1 %v6902_v1  ;;  %6392 = vmatmul.mubr.f32.gmra.mrb[6].mxu0 %v8778_v43  ;;  %v4674_v43 = vld [vmem:[%s9670_s1 + $0xbe8] sm:$0xff]  ;;  %v4466_v1 = vld [vmem:[%s9670_s1 + $0x5a0] sm:$0xff] }
 0x170   : > { %7321 = vmatpush3.bf16.msra.mxu0 %v7318_v36  ;;  %6907 = vmatprep.subr.bf16.mxu1 %v6906_v10  ;;  %v7330_v61 = vpack.c.bf16 %v4674_v43, %v4673_v22  ;;  %v4467_v36 = vld [vmem:[%s9670_s1 + $0x5a8] sm:$0xff]  ;;  %v6946_v22 = vpack.c.bf16 %v4475_v19, %v4474_v56  ;;  %v7708_v19 = vld [vmem:[#allocation2] sm:$0xff] }
 0x171   : > { %7323 = vmatprep.subr.bf16.mxu0 %v7322_v62  ;;  %5854 = vmatprep.mubr.f32.mxu1 %v8881_v59  ;;  %v4460_v59 = vld [vmem:[%s9670_s1 + $0x570] sm:$0xff]  ;;  %v6930_v23 = vpack.c.bf16 %v4467_v36, %v4466_v1  ;;  %v9705_v1 = vld [vmem:[#allocation4_spill] sm:$0xff]  ;;  %v4697_v36 = vld [vmem:[%s9670_s1 + $0xca0] sm:$0xff] }
 0x172   : > { %6426 = vmatprep.mubr.f32.mxu0 %v9047_v53  ;;  %v4676_v53 = vld [vmem:[%s9670_s1 + $0xbf8] sm:$0xff]  ;;  %v6918_v11 = vpack.c.bf16 %v4461_v45, %v4460_v59  ;;  %v9709_v56 = vld [vmem:[#allocation8_spill] sm:$0xff] }
 0x173   : > { %6909 = vmatpush3.bf16.msra.mxu1 %v6906_v10  ;;  %v7334_v47 = vpack.c.bf16 %v4676_v53, %v4675_v29  ;;  %v4469_v10 = vld [vmem:[%s9670_s1 + $0x5b8] sm:$0xff]  ;;  %v4478_v53 = vld [vmem:[%s9670_s1 + $0x600] sm:$0xff] }
 0x174   : > { %7325 = vmatpush3.bf16.msra.mxu0 %v7322_v62  ;;  %6911 = vmatprep.subr.bf16.mxu1 %v6910_v50  ;;  %v4683_v62 = vld [vmem:[%s9670_s1 + $0xc30] sm:$0xff]  ;;  %v6934_v31 = vpack.c.bf16 %v4469_v10, %v4468_v0  ;;  %v4692_v59 = vld [vmem:[%s9670_s1 + $0xc78] sm:$0xff] }
 0x175   : > { %7327 = vmatprep.subr.bf16.mxu0 %v7326_v17  ;;  %v4484_v0 = vld [vmem:[%s9670_s1 + $0x630] sm:$0xff]  ;;  %v4485_v10 = vld [vmem:[%s9670_s1 + $0x638] sm:$0xff] }
 0x177   : > { %6913 = vmatpush3.bf16.msra.mxu1 %v6910_v50  ;;  %v3673_v50 = vld [vmem:[#allocation2 + $0x20] sm:$0xff] }
 0x178   : > { %7329 = vmatpush3.bf16.msra.mxu0 %v7326_v17  ;;  %6915 = vmatprep.subr.bf16.mxu1 %v6914_v20 }
 0x179   : > { %7331 = vmatprep.subr.bf16.mxu0 %v7330_v61 }
 0x17b   : > { %6917 = vmatpush3.bf16.msra.mxu1 %v6914_v20  ;;  %v4476_v20 = vld [vmem:[%s9670_s1 + $0x5f0] sm:$0xff] }
 0x17c   : > { %7333 = vmatpush3.bf16.msra.mxu0 %v7330_v61  ;;  %6919 = vmatprep.subr.bf16.mxu1 %v6918_v11  ;;  %v4691_v61 = vld [vmem:[%s9670_s1 + $0xc70] sm:$0xff] }
 0x17d   : > { %7335 = vmatprep.subr.bf16.mxu0 %v7334_v47  ;;  %v7366_v29 = vpack.c.bf16 %v4692_v59, %v4691_v61 }
 0x17f   : > { %6921 = vmatpush3.bf16.msra.mxu1 %v6918_v11  ;;  %v4479_v11 = vld [vmem:[%s9670_s1 + $0x608] sm:$0xff] }
 0x180   : > { %7337 = vmatpush3.bf16.msra.mxu0 %v7334_v47  ;;  %6923 = vmatprep.subr.bf16.mxu1 %v6922_v40  ;;  %v4693_v47 = vld [vmem:[%s9670_s1 + $0xc80] sm:$0xff]  ;;  %v6954_v32 = vpack.c.bf16 %v4479_v11, %v4478_v53  ;;  %v4708_v53 = vld [vmem:[%s9670_s1 + $0xcf8] sm:$0xff] }
 0x181   : > { %7339 = vmatprep.subr.bf16.mxu0 %v7338_v37  ;;  %v7370_v5 = vpack.c.bf16 %v4694_v33, %v4693_v47  ;;  %v4709_v33 = vld [vmem:[%s9670_s1 + $0xd00] sm:$0xff] }
 0x182   : > { %5855 = vmatmul.mubr.f32.vlgmr.msra.gmra.mrb[0].mxu1 %v9704_v34  ;;  %v4698_v34 = vld [vmem:[%s9670_s1 + $0xca8] sm:$0xff] }
 0x183   : > { %6925 = vmatpush3.bf16.msra.mxu1 %v6922_v40  ;;  %6427 = vmatmul.mubr.f32.vlgmr.msra.gmra.mrb[0].mxu0 %v9063_v21  ;;  %v4684_v21 = vld [vmem:[%s9670_s1 + $0xc38] sm:$0xff] }
 0x184   : > { %7341 = vmatpush3.bf16.msra.mxu0 %v7338_v37  ;;  %6927 = vmatprep.subr.bf16.mxu1 %v6926_v57  ;;  %v4481_v40 = vld [vmem:[%s9670_s1 + $0x618] sm:$0xff]  ;;  %v4695_v37 = vld [vmem:[%s9670_s1 + $0xc90] sm:$0xff] }
 0x185   : > { %7343 = vmatprep.subr.bf16.mxu0 %v7342_v41  ;;  %5857 = vmatprep.mubr.f32.mxu1 %v8015_v58  ;;  %v7350_v58 = vpack.c.bf16 %v4684_v21, %v4683_v62  ;;  %v6958_v38 = vpack.c.bf16 %v4481_v40, %v4480_v63  ;;  %v7374_v55 = vpack.c.bf16 %v4696_v26, %v4695_v37  ;;  %v9706_v62 = vld [vmem:[#allocation5_spill] sm:$0xff]  ;;  %v4712_v40 = vld [vmem:[%s9670_s1 + $0xd18] sm:$0xff] }
 0x186   : > { %6429 = vmatprep.mubr.f32.mxu0 %v9065_v9  ;;  %5858 = vmatmul.mubr.f32.gmra.mrb[2].mxu1 %v8079_v24  ;;  %v4685_v24 = vld [vmem:[%s9670_s1 + $0xc40] sm:$0xff]  ;;  %v4686_v9 = vld [vmem:[%s9670_s1 + $0xc48] sm:$0xff]  ;;  %v4699_v21 = vld [vmem:[%s9670_s1 + $0xcb0] sm:$0xff] }
 0x187   : > { %6929 = vmatpush3.bf16.msra.mxu1 %v6926_v57  ;;  %6430 = vmatmul.mubr.f32.gmra.mrb[2].mxu0 %v9083_v42  ;;  %v6938_v42 = vpack.c.bf16 %v4471_v7, %v4470_v4  ;;  %v4482_v57 = vld [vmem:[%s9670_s1 + $0x620] sm:$0xff]  ;;  %v6966_v4 = vpack.c.bf16 %v4485_v10, %v4484_v0  ;;  %v3678_v7 = vld [vmem:[#allocation2 + $0x70] sm:$0xff]  ;;  %v4720_v0 = vld [vmem:[%s9670_s1 + $0xd58] sm:$0xff] }
 0x188   : > { %7345 = vmatpush3.bf16.msra.mxu0 %v7342_v41  ;;  %6931 = vmatprep.subr.bf16.mxu1 %v6930_v23  ;;  %v4483_v41 = vld [vmem:[%s9670_s1 + $0x628] sm:$0xff]  ;;  %v4711_v63 = vld [vmem:[%s9670_s1 + $0xd10] sm:$0xff] }
 0x189   : > { %7347 = vmatprep.subr.bf16.mxu0 %v7346_v12  ;;  %5860 = vmatprep.mubr.f32.mxu1 %v8092_v30  ;;  %v7354_v30 = vpack.c.bf16 %v4686_v9, %v4685_v24  ;;  %v6962_v2 = vpack.c.bf16 %v4483_v41, %v4482_v57  ;;  %v4486_v9 = vld [vmem:[%s9670_s1 + $0x640] sm:$0xff]  ;;  %v3812_v37 = vld [vmem:[#allocation2 + $0x31] sm:$0xff]  ;;  %v7406_v26 = vpack.c.bf16 %v4712_v40, %v4711_v63 }
 0x18a   : > { %6432 = vmatprep.mubr.f32.mxu0 %v9085_v14  ;;  %5861 = vmatmul.mubr.f32.gmra.mrb[4].mxu1 %v8103_v35  ;;  %v4473_v14 = vld [vmem:[%s9670_s1 + $0x5d8] sm:$0xff]  ;;  %v4687_v35 = vld [vmem:[%s9670_s1 + $0xc50] sm:$0xff]  ;;  %v3949_v10 = vld [vmem:[#allocation2 + $0x22] sm:$0xff] }
 0x18b   : > { %6933 = vmatpush3.bf16.msra.mxu1 %v6930_v23  ;;  %6433 = vmatmul.mubr.f32.gmra.mrb[4].mxu0 %v9103_v39  ;;  %v4688_v39 = vld [vmem:[%s9670_s1 + $0xc58] sm:$0xff]  ;;  %v6942_v17 = vpack.c.bf16 %v4473_v14, %v4472_v13  ;;  %v3676_v23 = vld [vmem:[#allocation2 + $0x50] sm:$0xff] }
 0x18c   : > { %7349 = vmatpush3.bf16.msra.mxu0 %v7346_v12  ;;  %6935 = vmatprep.subr.bf16.mxu1 %v6934_v31  ;;  %v7378_v12 = vpack.c.bf16 %v4698_v34, %v4697_v36  ;;  %v9707_v13 = vld [vmem:[#allocation6_spill] sm:$0xff] }
 0x18d   : > { %7351 = vmatprep.subr.bf16.mxu0 %v7350_v58  ;;  %5863 = vmatprep.mubr.f32.mxu1 %v8122_v48  ;;  %v7358_v48 = vpack.c.bf16 %v4688_v39, %v4687_v35  ;;  %v4489_v39 = vld [vmem:[%s9670_s1 + $0x658] sm:$0xff] }
 0x18e   : > { %6435 = vmatprep.mubr.f32.mxu0 %v9105_v16  ;;  %5864 = vmatmul.mubr.f32.gmra.mrb[6].mxu1 %v8133_v52  ;;  %v4689_v52 = vld [vmem:[%s9670_s1 + $0xc60] sm:$0xff]  ;;  %v4690_v16 = vld [vmem:[%s9670_s1 + $0xc68] sm:$0xff]  ;;  %v3814_v57 = vld [vmem:[#allocation2 + $0x51] sm:$0xff] }
 0x18f   : > { %6937 = vmatpush3.bf16.msra.mxu1 %v6934_v31  ;;  %6436 = vmatmul.mubr.f32.gmra.mrb[6].mxu0 %v9438_v6  ;;  %v7362_v43 = vpack.c.bf16 %v4690_v16, %v4689_v52  ;;  %v4700_v31 = vld [vmem:[%s9670_s1 + $0xcb8] sm:$0xff]  ;;  %v3811_v52 = vld [vmem:[#allocation2 + $0x21] sm:$0xff] }
 0x190   : > { %7353 = vmatpush3.bf16.msra.mxu0 %v7350_v58  ;;  %6939 = vmatprep.subr.bf16.mxu1 %v6938_v42  ;;  %v3677_v58 = vld [vmem:[#allocation2 + $0x60] sm:$0xff]  ;;  %v7382_v24 = vpack.c.bf16 %v4700_v31, %v4699_v21  ;;  %v4716_v36 = vld [vmem:[%s9670_s1 + $0xd38] sm:$0xff]  ;;  %v4722_v31 = vld [vmem:[%s9670_s1 + $0xd68] sm:$0xff] }
 0x191   : > { %7355 = vmatprep.subr.bf16.mxu0 %v7354_v30  ;;  %5898 = vmatprep.mubr.f32.mxu1 %v8995_v25  ;;  %v4477_v25 = vld [vmem:[%s9670_s1 + $0x5f8] sm:$0xff]  ;;  %v4721_v21 = vld [vmem:[%s9670_s1 + $0xd60] sm:$0xff] }
 0x192   : > { %6470 = vmatprep.mubr.f32.mxu0 %v3673_v50  ;;  %v6950_v45 = vpack.c.bf16 %v4477_v25, %v4476_v20  ;;  %v9708_v50 = vld [vmem:[#allocation7_spill] sm:$0xff]  ;;  %v4491_v20 = vld [vmem:[%s9670_s1 + $0x668] sm:$0xff] }
 0x193   : > { %6941 = vmatpush3.bf16.msra.mxu1 %v6938_v42  ;;  %v4487_v42 = vld [vmem:[%s9670_s1 + $0x648] sm:$0xff] }
 0x194   : > { %7357 = vmatpush3.bf16.msra.mxu0 %v7354_v30  ;;  %6943 = vmatprep.subr.bf16.mxu1 %v6942_v17  ;;  %v4702_v30 = vld [vmem:[%s9670_s1 + $0xcc8] sm:$0xff]  ;;  %v6970_v14 = vpack.c.bf16 %v4487_v42, %v4486_v9  ;;  %v3950_v9 = vld [vmem:[#allocation2 + $0x32] sm:$0xff] }
 0x195   : > { %7359 = vmatprep.subr.bf16.mxu0 %v7358_v48  ;;  %v4706_v25 = vld [vmem:[%s9670_s1 + $0xce8] sm:$0xff] }
 0x196   : > { %v3951_v42 = vld [vmem:[#allocation2 + $0x42] sm:$0xff] }
 0x197   : > { %6945 = vmatpush3.bf16.msra.mxu1 %v6942_v17  ;;  %v4703_v17 = vld [vmem:[%s9670_s1 + $0xcd0] sm:$0xff] }
 0x198   : > { %7361 = vmatpush3.bf16.msra.mxu0 %v7358_v48  ;;  %6947 = vmatprep.subr.bf16.mxu1 %v6946_v22  ;;  %v4704_v48 = vld [vmem:[%s9670_s1 + $0xcd8] sm:$0xff] }
 0x199   : > { %7363 = vmatprep.subr.bf16.mxu0 %v7362_v43 }
 0x19b   : > { %6949 = vmatpush3.bf16.msra.mxu1 %v6946_v22  ;;  %v7390_v22 = vpack.c.bf16 %v4704_v48, %v4703_v17 }
 0x19c   : > { %7365 = vmatpush3.bf16.msra.mxu0 %v7362_v43  ;;  %6951 = vmatprep.subr.bf16.mxu1 %v6950_v45  ;;  %v4490_v43 = vld [vmem:[%s9670_s1 + $0x660] sm:$0xff] }
 0x19d   : > { %7367 = vmatprep.subr.bf16.mxu0 %v7366_v29  ;;  %v6978_v61 = vpack.c.bf16 %v4491_v20, %v4490_v43 }
 0x19f   : > { %6953 = vmatpush3.bf16.msra.mxu1 %v6950_v45  ;;  %v4492_v45 = vld [vmem:[%s9670_s1 + $0x670] sm:$0xff] }
 0x1a0   : > { %7369 = vmatpush3.bf16.msra.mxu0 %v7366_v29  ;;  %6955 = vmatprep.subr.bf16.mxu1 %v6954_v32  ;;  %v4707_v29 = vld [vmem:[%s9670_s1 + $0xcf0] sm:$0xff] }
 0x1a1   : > { %7371 = vmatprep.subr.bf16.mxu0 %v7370_v5  ;;  %v7398_v47 = vpack.c.bf16 %v4708_v53, %v4707_v29 }
 0x1a2   : > { %5899 = vmatmul.mubr.f32.vlgmr.msra.gmra.mrb[0].mxu1 %v9705_v1  ;;  %v4715_v1 = vld [vmem:[%s9670_s1 + $0xd30] sm:$0xff] }
 0x1a3   : > { %6957 = vmatpush3.bf16.msra.mxu1 %v6954_v32  ;;  %6471 = vmatmul.mubr.f32.vlgmr.msra.gmra.mrb[0].mxu0 %v3674_v51  ;;  %v4710_v32 = vld [vmem:[%s9670_s1 + $0xd08] sm:$0xff]  ;;  %v7414_v34 = vpack.c.bf16 %v4716_v36, %v4715_v1 }
 0x1a4   : > { %7373 = vmatpush3.bf16.msra.mxu0 %v7370_v5  ;;  %6959 = vmatprep.subr.bf16.mxu1 %v6958_v38  ;;  %v7402_v5 = vpack.c.bf16 %v4710_v32, %v4709_v33  ;;  %v3813_v51 = vld [vmem:[#allocation2 + $0x41] sm:$0xff] }
 0x1a5   : > { %7375 = vmatprep.subr.bf16.mxu0 %v7374_v55  ;;  %5901 = vmatprep.mubr.f32.mxu1 %v9706_v62 }
 0x1a6   : > { %6473 = vmatprep.mubr.f32.mxu0 %v3675_v15  ;;  %5902 = vmatmul.mubr.f32.gmra.mrb[2].mxu1 %v8271_v27  ;;  %v4701_v27 = vld [vmem:[%s9670_s1 + $0xcc0] sm:$0xff]  ;;  %v4718_v15 = vld [vmem:[%s9670_s1 + $0xd48] sm:$0xff] }
 0x1a7   : > { %6961 = vmatpush3.bf16.msra.mxu1 %v6958_v38  ;;  %6474 = vmatmul.mubr.f32.gmra.mrb[2].mxu0 %v3676_v23  ;;  %v7386_v35 = vpack.c.bf16 %v4702_v30, %v4701_v27  ;;  %v4713_v38 = vld [vmem:[%s9670_s1 + $0xd20] sm:$0xff]  ;;  %v7710_v27 = vld [vmem:[#allocation2 + $0x72] sm:$0xff] }
 0x1a8   : > { %7377 = vmatpush3.bf16.msra.mxu0 %v7374_v55  ;;  %6963 = vmatprep.subr.bf16.mxu1 %v6962_v2  ;;  %v4714_v55 = vld [vmem:[%s9670_s1 + $0xd28] sm:$0xff]  ;;  %v3956_v30 = vld [vmem:[#allocation2 + $0x92] sm:$0xff] }
 0x1a9   : > { %7379 = vmatprep.subr.bf16.mxu0 %v7378_v12  ;;  %5904 = vmatprep.mubr.f32.mxu1 %v8283_v28  ;;  %v4488_v28 = vld [vmem:[%s9670_s1 + $0x650] sm:$0xff]  ;;  %v7410_v41 = vpack.c.bf16 %v4714_v55, %v4713_v38  ;;  %v7709_v23 = vld [vmem:[#allocation2 + $0x81] sm:$0xff] }
 0x1aa   : > { %6476 = vmatprep.mubr.f32.mxu0 %v3677_v58  ;;  %5905 = vmatmul.mubr.f32.gmra.mrb[4].mxu1 %v9707_v13  ;;  %v6974_v16 = vpack.c.bf16 %v4489_v39, %v4488_v28  ;;  %v7426_v58 = vpack.c.bf16 %v4722_v31, %v4721_v21  ;;  %v3952_v13 = vld [vmem:[#allocation2 + $0x52] sm:$0xff] }
 0x1ab   : > { %6965 = vmatpush3.bf16.msra.mxu1 %v6962_v2  ;;  %6477 = vmatmul.mubr.f32.gmra.mrb[4].mxu0 %v3678_v7  ;;  %v4724_v7 = vld [vmem:[%s9670_s1 + $0xd78] sm:$0xff] }
 0x1ac   : > { %7381 = vmatpush3.bf16.msra.mxu0 %v7378_v12  ;;  %6967 = vmatprep.subr.bf16.mxu1 %v6966_v4  ;;  %v4719_v12 = vld [vmem:[%s9670_s1 + $0xd50] sm:$0xff] }
 0x1ad   : > { %7383 = vmatprep.subr.bf16.mxu0 %v7382_v24  ;;  %5907 = vmatprep.mubr.f32.mxu1 %v9708_v50  ;;  %v7422_v62 = vpack.c.bf16 %v4720_v0, %v4719_v12 }
 0x1ae   : > { %6479 = vmatprep.mubr.f32.mxu0 %v9219_v46  ;;  %5908 = vmatmul.mubr.f32.gmra.mrb[6].mxu1 %v9709_v56  ;;  %v4705_v46 = vld [vmem:[%s9670_s1 + $0xce0] sm:$0xff] }
 0x1af   : > { %6969 = vmatpush3.bf16.msra.mxu1 %v6966_v4  ;;  %6480 = vmatmul.mubr.f32.gmra.mrb[6].mxu0 %v7708_v19  ;;  %v7394_v59 = vpack.c.bf16 %v4706_v25, %v4705_v46  ;;  %v4723_v4 = vld [vmem:[%s9670_s1 + $0xd70] sm:$0xff] }
 0x1b0   : > { %7385 = vmatpush3.bf16.msra.mxu0 %v7382_v24  ;;  %6971 = vmatprep.subr.bf16.mxu1 %v6970_v14  ;;  %v7430_v24 = vpack.c.bf16 %v4724_v7, %v4723_v4 }
 0x1b1   : > { %7387 = vmatprep.subr.bf16.mxu0 %v7386_v35  ;;  %5942 = vmatprep.mubr.f32.mxu1 %v9701_v49  ;;  %v4493_v49 = vld [vmem:[%s9670_s1 + $0x678] sm:$0xff] }
 0x1b2   : > { %6514 = vmatprep.mubr.f32.mxu0 %v3811_v52  ;;  %v6982_v11 = vpack.c.bf16 %v4493_v49, %v4492_v45 }
 0x1b3   : > { %6973 = vmatpush3.bf16.msra.mxu1 %v6970_v14 }
 0x1b4   : > { %7389 = vmatpush3.bf16.msra.mxu0 %v7386_v35  ;;  %6975 = vmatprep.subr.bf16.mxu1 %v6974_v16 }
 0x1b5   : > { %7391 = vmatprep.subr.bf16.mxu0 %v7390_v22 }
 0x1b7   : > { %6977 = vmatpush3.bf16.msra.mxu1 %v6974_v16 }
 0x1b8   : > { %7393 = vmatpush3.bf16.msra.mxu0 %v7390_v22  ;;  %6979 = vmatprep.subr.bf16.mxu1 %v6978_v61 }
 0x1b9   : > { %7395 = vmatprep.subr.bf16.mxu0 %v7394_v59 }
 0x1bb   : > { %6981 = vmatpush3.bf16.msra.mxu1 %v6978_v61 }
 0x1bc   : > { %7397 = vmatpush3.bf16.msra.mxu0 %v7394_v59  ;;  %6983 = vmatprep.subr.bf16.mxu1 %v6982_v11 }
 0x1bd   : > { %7399 = vmatprep.subr.bf16.mxu0 %v7398_v47 }
 0x1bf   : > { %6985 = vmatpush3.bf16.msra.mxu1 %v6982_v11 }
 0x1c0   : > { %7401 = vmatpush3.bf16.msra.mxu0 %v7398_v47  ;;  %7434 = vmatprep.subr.bf16.mxu1 %v7402_v5 }
 0x1c1   : > { %7403 = vmatprep.subr.bf16.mxu0 %v7402_v5 }
 0x1c2   : > { %5943 = vmatmul.mubr.f32.vlgmr.msra.gmra.mrb[0].mxu1 %v9702_v54  ;;  %v3815_v54 = vld [vmem:[#allocation2 + $0x61] sm:$0xff] }
 0x1c3   : > { %6515 = vmatmul.mubr.f32.vlgmr.msra.gmra.mrb[0].mxu0 %v3812_v37  ;;  %7442 = vmatpush3.bf16.msra.mxu1 %v7402_v5 }
 0x1c4   : > { %7405 = vmatpush3.bf16.msra.mxu0 %v7402_v5  ;;  %5945 = vmatprep.mubr.f32.mxu1 %v8372_v44  ;;  %v3816_v44 = vld [vmem:[#allocation2 + $0x71] sm:$0xff] }
 0x1c5   : > { %6517 = vmatprep.mubr.f32.mxu0 %v3813_v51  ;;  %7407 = vmatprep.subr.bf16.mxu0 %v7406_v26 }
 0x1c6   : > { %5946 = vmatmul.mubr.f32.gmra.mrb[2].mxu1 %v8378_v3  ;;  %7435 = vmatprep.subr.bf16.mxu1 %v7406_v26  ;;  %v4717_v3 = vld [vmem:[%s9670_s1 + $0xd40] sm:$0xff] }
 0x1c7   : > { %6518 = vmatmul.mubr.f32.gmra.mrb[2].mxu0 %v3814_v57  ;;  %7443 = vmatpush3.bf16.msra.mxu1 %v7406_v26  ;;  %v7418_v2 = vpack.c.bf16 %v4718_v15, %v4717_v3 }
 0x1c8   : > { %7409 = vmatpush3.bf16.msra.mxu0 %v7406_v26  ;;  %5948 = vmatprep.mubr.f32.mxu1 %v8392_v8  ;;  %v3818_v8 = vld [vmem:[#allocation2 + $0x91] sm:$0xff] }
 0x1c9   : > { %6520 = vmatprep.mubr.f32.mxu0 %v3815_v54  ;;  %7411 = vmatprep.subr.bf16.mxu0 %v7410_v41 }
 0x1ca   : > { %5949 = vmatmul.mubr.f32.gmra.mrb[4].mxu1 %v8406_v60  ;;  %7436 = vmatprep.subr.bf16.mxu1 %v7410_v41  ;;  %v9710_v60 = vld [vmem:[#allocation12_spill] sm:$0xff] }
 0x1cb   : > { %6521 = vmatmul.mubr.f32.gmra.mrb[4].mxu0 %v3816_v44  ;;  %7444 = vmatpush3.bf16.msra.mxu1 %v7410_v41 }
 0x1cc   : > { %7413 = vmatpush3.bf16.msra.mxu0 %v7410_v41  ;;  %5951 = vmatprep.mubr.f32.mxu1 %v9703_v18  ;;  %v3953_v18 = vld [vmem:[#allocation2 + $0x62] sm:$0xff] }
 0x1cd   : > { %6523 = vmatprep.mubr.f32.mxu0 %v7709_v23  ;;  %7415 = vmatprep.subr.bf16.mxu0 %v7414_v34 }
 0x1ce   : > { %5952 = vmatmul.mubr.f32.gmra.mrb[6].mxu1 %v9710_v60  ;;  %7437 = vmatprep.subr.bf16.mxu1 %v7414_v34 }
 0x1cf   : > { %6524 = vmatmul.mubr.f32.gmra.mrb[6].mxu0 %v3818_v8  ;;  %7445 = vmatpush3.bf16.msra.mxu1 %v7414_v34 }
 0x1d0   : > { %7417 = vmatpush3.bf16.msra.mxu0 %v7414_v34  ;;  %7438 = vmatprep.subr.bf16.mxu1 %v7418_v2 }
 0x1d1   : > { %7419 = vmatprep.subr.bf16.mxu0 %v7418_v2  ;;  %6558 = vmatprep.mubr.f32.mxu0 %v3949_v10 }
 0x1d2   : > { %6564 = vmatprep.mubr.f32.mxu1 %v3953_v18 }
 0x1d3   : > { %7446 = vmatpush3.bf16.msra.mxu1 %v7418_v2 }
 0x1d4   : > { %7421 = vmatpush3.bf16.msra.mxu0 %v7418_v2  ;;  %7439 = vmatprep.subr.bf16.mxu1 %v7422_v62 }
 0x1d5   : > { %7423 = vmatprep.subr.bf16.mxu0 %v7422_v62 }
 0x1d7   : > { %7447 = vmatpush3.bf16.msra.mxu1 %v7422_v62 }
 0x1d8   : > { %7425 = vmatpush3.bf16.msra.mxu0 %v7422_v62  ;;  %7440 = vmatprep.subr.bf16.mxu1 %v7426_v58 }
 0x1d9   : > { %7427 = vmatprep.subr.bf16.mxu0 %v7426_v58 }
 0x1db   : > { %7448 = vmatpush3.bf16.msra.mxu1 %v7426_v58 }
 0x1dc   : > { %7429 = vmatpush3.bf16.msra.mxu0 %v7426_v58  ;;  %7441 = vmatprep.subr.bf16.mxu1 %v7430_v24 }
 0x1dd   : > { %7431 = vmatprep.subr.bf16.mxu0 %v7430_v24 }
 0x1df   : > { %7449 = vmatpush3.bf16.msra.mxu1 %v7430_v24 }
 0x1e0   : > { %7433 = vmatpush3.bf16.msra.mxu0 %v7430_v24 }
 0x1e2   : > { %6565 = vmatmul.mubr.f32.vlgmr.msra.gmra.mrb[8].mxu1 %v7710_v27 }
 0x1e3   : > { %6559 = vmatmul.mubr.f32.vlgmr.msra.gmra.mrb[0].mxu0 %v3950_v9  ;;  %6567 = vmatprep.mubr.f32.mxu1 %v9438_v6 }
 0x1e4   : > { %6561 = vmatprep.mubr.f32.mxu0 %v3951_v42 }
 0x1e6   : > { %6568 = vmatmul.mubr.f32.gmra.mrb[10].mxu1 %v3956_v30 }
 0x1e7   : > { %6562 = vmatmul.mubr.f32.gmra.mrb[2].mxu0 %v3952_v13  ;;  %v4095_v13 = vld [vmem:[%s7822_s6] sm:$0x1] }
 0x295   : > { %v5944_v14 = vpop.f32.mrb[0].mxu1 }
 0x296   : > { %v2070_v35 = vpop.f32.mrb[1].mxu1 }
 0x299   : > { %v5947_v28 = vpop.f32.mrb[2].mxu1 }
 0x29a   : > { %v2080_v39 = vpop.f32.mrb[3].mxu1 }
 0x29d   : > { %v5950_v50 = vpop.f32.mrb[4].mxu1 }
 0x29e   : > { %v6522_v17 = vpop.f32.mrb[4].mxu0  ;;  %v2090_v48 = vpop.f32.mrb[5].mxu1 }
 0x29f   : > { %v7454_v56 = vadd.f32 %v6522_v17, %v5950_v50  ;;  %v3922_v19 = vpop.f32.mrb[5].mxu0 }
 0x2a0   : > { %v7456_v52 = vadd.f32 %v3922_v19, %v2090_v48 }
 0x2a1   : > { %v5953_v16 = vpop.f32.mrb[6].mxu1 }
 0x2a2   : > { %v6525_v22 = vpop.f32.mrb[6].mxu0  ;;  %v2100_v6 = vpop.f32.mrb[7].mxu1 }
 0x2a3   : > { %v7458_v43 = vadd.f32 %v6525_v22, %v5953_v16  ;;  %v3932_v20 = vpop.f32.mrb[7].mxu0 }
 0x2a4   : > { %v7460_v46 = vadd.f32 %v3932_v20, %v2100_v6 }
 0x2b5   : > { %v6566_v25 = vpop.f32.mrb[8].mxu1 }
 0x2b6   : > { %v6560_v61 = vpop.f32.mrb[0].mxu0  ;;  %v7455_v59 = vadd.f32 %v7454_v56, %v6566_v25  ;;  %v4060_v45 = vpop.f32.mrb[9].mxu1 }
 0x2b7   : > { %v7450_v49 = vadd.f32 %v6560_v61, %v5944_v14  ;;  %v4040_v29 = vpop.f32.mrb[1].mxu0  ;;  %v7457_v53 = vadd.f32 %v7456_v52, %v4060_v45 }
 0x2b8   : > { %4092 = vst [vmem:[%s7832_s13 + $0x28] sm:$0xff] %v7455_v59  ;;  %v7451_v11 = vadd.f32 %v4040_v29, %v2070_v35  ;;  %v4117_v8 = vmul.f32 %v7455_v59, %v7455_v59 }
 0x2b9   : > { %4088 = vst [vmem:[%s7832_s13 + $0x8] sm:$0xff] %v7450_v49  ;;  %v4113_v47 = vmul.f32 %v7450_v49, %v7450_v49  ;;  %4091 = vst [vmem:[%s7832_s13 + $0x20] sm:$0xff] %v7457_v53  ;;  %v6569_v33 = vpop.f32.mrb[10].mxu1  ;;  %v4116_v34 = vmul.f32 %v7457_v53, %v7457_v53 }
 0x2ba   : > { %4087 = vst [vmem:[%s7832_s13] sm:$0xff] %v7451_v11  ;;  %v4096_v32 = vadd.f32 %v7451_v11, %v7450_v49  ;;  %v4112_v5 = vmul.f32 %v7451_v11, %v7451_v11  ;;  %v6563_v63 = vpop.f32.mrb[2].mxu0  ;;  %v7459_v40 = vadd.f32 %v7458_v43, %v6569_v33  ;;  %v4070_v37 = vpop.f32.mrb[11].mxu1 }
 0x2bb   : > { %v7452_v26 = vadd.f32 %v6563_v63, %v5947_v28  ;;  %v4050_v51 = vpop.f32.mrb[3].mxu0  ;;  %v7461_v38 = vadd.f32 %v7460_v46, %v4070_v37  ;;  %v4111_v28 = vld [vmem:[%s7827_s10] sm:$0x1] }
 0x2bc   : > { %v4120_v55 = vadd.f32 %v4113_v47, %v4112_v5  ;;  %4094 = vst [vmem:[%s7832_s13 + $0x38] sm:$0xff] %v7459_v40  ;;  %v7453_v57 = vadd.f32 %v4050_v51, %v2080_v39  ;;  %v4119_v10 = vmul.f32 %v7459_v40, %v7459_v40 }
 0x2bd   : > { %4090 = vst [vmem:[%s7832_s13 + $0x18] sm:$0xff] %v7452_v26  ;;  %4093 = vst [vmem:[%s7832_s13 + $0x30] sm:$0xff] %v7461_v38  ;;  %v4115_v1 = vmul.f32 %v7452_v26, %v7452_v26  ;;  %v4118_v0 = vmul.f32 %v7461_v38, %v7461_v38 }
 0x2be   : > { %4089 = vst [vmem:[%s7832_s13 + $0x10] sm:$0xff] %v7453_v57  ;;  %v4097_v41 = vadd.f32 %v7453_v57, %v4096_v32  ;;  %v4114_v54 = vmul.f32 %v7453_v57, %v7453_v57 }
 0x2c0   : > { %v4098_v36 = vadd.f32 %v7452_v26, %v4097_v41  ;;  %v4121_v44 = vadd.f32 %v4120_v55, %v4114_v54 }
 0x2c2   : > { %v4122_v3 = vadd.f32 %v4121_v44, %v4115_v1  ;;  %v4099_v15 = vadd.f32 %v7457_v53, %v4098_v36 }
 0x2c4   : > { %v4100_v2 = vadd.f32 %v7455_v59, %v4099_v15  ;;  %v4123_v23 = vadd.f32 %v4122_v3, %v4116_v34 }
 0x2c6   : > { %v4101_v12 = vadd.f32 %v7461_v38, %v4100_v2  ;;  %v4124_v60 = vadd.f32 %v4123_v23, %v4117_v8 }
 0x2c8   : > { %v4102_v18 = vadd.f32 %v7459_v40, %v4101_v12  ;;  %v4125_v62 = vadd.f32 %v4124_v60, %v4118_v0 }
 0x2ca   : > { %v4103_v21 = vrot.slane %v4102_v18, 4  ;;  %v4126_v31 = vadd.f32 %v4125_v62, %v4119_v10 }
 0x2cc   : > { %v4104_v58 = vadd.f32 %v4103_v21, %v4102_v18  ;;  %v4127_v4 = vrot.slane %v4126_v31, 4 }
 0x2ce   : > { %v4105_v7 = vrot.slane %v4104_v58, 2  ;;  %v4128_v24 = vadd.f32 %v4127_v4, %v4126_v31 }
 0x2d0   : > { %v4106_v9 = vadd.f32 %v4105_v7, %v4104_v58  ;;  %v4129_v42 = vrot.slane %v4128_v24, 2 }
 0x2d2   : > { %v4107_v27 = vrot.slane %v4106_v9, 1  ;;  %v4130_v30 = vadd.f32 %v4129_v42, %v4128_v24 }
 0x2d4   : > { %v4108_v14 = vadd.f32 %v4107_v27, %v4106_v9  ;;  %v4131_v35 = vrot.slane %v4130_v30, 1 }
 0x2d6   : > { %v4109_v39 = vadd.f32 %v4108_v14, %v4095_v13  ;;  %v4132_v50 = vadd.f32 %v4131_v35, %v4130_v30 }
 0x2d8   : > { %4110 = vst [vmem:[%s7822_s6] sm:$0x1] %v4109_v39  ;;  %v4133_v17 = vadd.f32 %v4132_v50, %v4111_v28 }
 0x2da   : > { %4134 = vst [vmem:[%s7827_s10] sm:$0x1] %v4133_v17 }
 0x2db PF: > { %s15_s19 = sadd.s32 1, %s7749_s19   ;;  %s9711_s15 = smov %s7741_s17 }
 0x2dc   : > { %p12_p8 = scmp.ge.s32.totalorder %s15_s19, 18   ;;  %s9712_s16 = smov %s7745_s18 }
 0x2dd   : > { %s9713_s17 = smov %s9716_s20  ;;  %s9714_s18 = smov %s9720_s21 }
 0x2de   :  { %14 = sbr.rel (!%p12_p8) target bundleno = 3 (0x3), region = 117 }

</bundles_post_ra>
